<compile_context>
chip_gen: v6e
topology: v6e:2x2x1
jax: 0.10.0
libtpu: 0.0.40
codegen_flags: <defaults>
</compile_context>

<pallas_src>
import functools

import numpy as np
import jax
import jax.numpy as jnp
from jax import lax
from jax.experimental import pallas as pl
from jax.experimental.pallas import tpu as pltpu

MASK_SCALE = 1e30  # additive mask magnitude for non-edges


# --------------------------------------------------------------------------
# Packed-parameter layout (shared by host packer and kernel static slicing)
# --------------------------------------------------------------------------
def _param_layout(num_layers, in_channels, hidden, heads, out_channels):
    """Row-packed parameter buffer layout; every slot starts at a multiple of 8 rows."""
    c = heads * hidden                       # packed lane width (24)
    layout, off = {}, 0

    def add(name, rows, cols):
        nonlocal off
        nrows = max(8, ((rows + 7) // 8) * 8)
        layout[name] = (off, nrows, rows, cols)
        off += nrows

    for li in range(num_layers):
        din = in_channels if li == 0 else hidden
        add(f"w{li}", din, c)                # GATConv weight           [din, heads*hidden]
        add(f"adst{li}", c, heads)           # block-diag a_dst columns [heads*hidden, heads]
        add(f"asrc{li}", heads, c)           # block-diag a_src rows    [heads, heads*hidden]
        add(f"b{li}", 1, c)                  # GATConv bias             [1, heads*hidden]
    add("w1lin", hidden, hidden)
    add("b1lin", 1, hidden)
    add("w2lin", hidden, out_channels)
    add("b2lin", 1, out_channels)
    return layout, off, c


# --------------------------------------------------------------------------
# Single fused forward kernel
# --------------------------------------------------------------------------
def _fused_forward_kernel(x_ref, adj_ref, selcat_ref, pack_ref, o_ref, stack_ref,
                          *, layout, num_layers, heads, feat):
    """num_layers x (GATConv + .view(3,N,-1).sum(0)) + inter-layer ReLU + MLP head."""
    n = x_ref.shape[0]

    adj = adj_ref[...]                               # [n, n]; adj[i, j] = 1 iff edge j -> i
    mask_bias = (adj - 1.0) * MASK_SCALE             # 0 on edges, -1e30 on non-edges
    deg = jnp.sum(adj, axis=-1, keepdims=True)       # in-degree (incl. self-loop)
    inv_deg = pl.reciprocal(deg, approx=False)       # exact; aggr='mean'
    sel_cat = selcat_ref[...]                        # [n, heads*n] 0/1 row-mixing matrix

    def load(name):                                  # static slice of the packed param buffer
        r0, nrows, rows, cols = layout[name]
        v = pack_ref[r0:r0 + nrows, :]
        if rows != nrows:
            v = v[:rows, :]
        if cols != v.shape[1]:
            v = v[:, :cols]
        return v

    h = x_ref[...]
    for li in range(num_layers):
        w = load(f"w{li}")                           # [din, heads*feat]
        a_dst_bd = load(f"adst{li}")                 # [heads*feat, heads]
        a_src_rows = load(f"asrc{li}")               # [heads, heads*feat]
        bias = load(f"b{li}")                        # [1, heads*feat]

        h_all = jnp.dot(h, w, preferred_element_type=jnp.float32)             # [n, heads*feat]
        # all-head attention logits in two small MXU passes
        dst_log = jnp.dot(h_all, a_dst_bd, preferred_element_type=jnp.float32)  # [n, heads]
        src_log = lax.dot_general(a_src_rows, h_all, (((1,), (1,)), ((), ())),
                                  preferred_element_type=jnp.float32)           # [heads, n]

        for hd in range(heads):                      # static unroll; vregs are full at n=128
            hh = h_all[:, hd * feat:(hd + 1) * feat]                  # [n, feat]
            e = dst_log[:, hd:hd + 1] + src_log[hd:hd + 1, :]         # e[i,j] = dst_i + src_j
            e = jnp.maximum(e, 0.2 * e) + mask_bias                   # LeakyReLU(0.2) + edge mask
            m = jnp.max(e, axis=-1, keepdims=True)
            p = jnp.exp(e - m)                                        # masked entries -> 0
            denom = jnp.sum(p, axis=-1, keepdims=True)
            scale = inv_deg * pl.reciprocal(denom, approx=False)      # softmax norm * mean-aggr
            agg = jnp.dot(p, hh, preferred_element_type=jnp.float32) * scale
            # stage per-head output (incl. its bias block) for the fused row-mix matmul
            stack_ref[hd * n:(hd + 1) * n, :] = agg + bias[:, hd * feat:(hd + 1) * feat]

        # faithful `.view(3, n, -1).sum(0)` as ONE 0/1 selection matmul (K = heads*n)
        h = jnp.dot(sel_cat, stack_ref[...], preferred_element_type=jnp.float32)  # [n, feat]
        if li < num_layers - 1:
            h = jnp.maximum(h, 0.0)
            # TODO(synk): F.dropout(p=0.5, training=self.training) is stochastic; evaluated
            # here as identity (eval-mode dropout).

    # ---- MLP decoder: lin1 -> relu -> lin2 -> sigmoid
    h = jnp.dot(h, load("w1lin"), preferred_element_type=jnp.float32) + load("b1lin")
    h = jnp.maximum(h, 0.0)
    h = jnp.dot(h, load("w2lin"), preferred_element_type=jnp.float32) + load("b2lin")
    o_ref[...] = jax.nn.sigmoid(h).astype(o_ref.dtype)


# --------------------------------------------------------------------------
# Wrapper: one pallas_call, whole forward in VMEM
# --------------------------------------------------------------------------
def gat_forward(x, adj, sel_cat, packed, *, num_layers, hidden, heads, out_channels, layout):
    n = x.shape[0]
    vmem = pl.BlockSpec(memory_space=pltpu.MemorySpace.VMEM)
    kernel = functools.partial(_fused_forward_kernel, layout=layout,
                               num_layers=num_layers, heads=heads, feat=hidden)
    # TODO(synk): skip branch (lin_skip over the data-dependently column-masked x),
    # skip='cat'/'sum' combination and the dec='lstm' decoder are dead code for the
    # module defaults (skip=None, dec='mlp') and are not implemented here.
    return pl.pallas_call(
        kernel,
        out_shape=jax.ShapeDtypeStruct((n, out_channels), jnp.float32),
        in_specs=[vmem, vmem, vmem, vmem],
        out_specs=vmem,
        scratch_shapes=[pltpu.VMEM((heads * n, hidden), jnp.float32)],
        compiler_params=pltpu.CompilerParams(vmem_limit_bytes=32 * 1024 * 1024),
    )(x, adj, sel_cat, packed)


# --------------------------------------------------------------------------
# Pure-JAX reference (mirrors the PyTorch forward) for a correctness check
# --------------------------------------------------------------------------
def reference_forward(x, adj, params, *, num_layers, hidden, heads):
    hi = jax.lax.Precision.HIGHEST
    deg = adj.sum(-1, keepdims=True)

    def gat_conv_ref(h, p):
        h_all = jnp.dot(h, p["w"], precision=hi)
        outs = []
        for hd in range(heads):
            hh = h_all[:, hd * hidden:(hd + 1) * hidden]
            s_dst = jnp.dot(hh, p["a_dst"][hd], precision=hi)
            s_src = jnp.dot(hh, p["a_src"][hd], precision=hi)
            e = s_dst[:, None] + s_src[None, :]
            e = jnp.where(e > 0, e, 0.2 * e)
            e = jnp.where(adj > 0, e, -MASK_SCALE)
            alpha = jax.nn.softmax(e, axis=-1)
            outs.append(jnp.dot(alpha, hh, precision=hi) / deg)
        return jnp.concatenate(outs, axis=-1) + p["b"]

    h = x
    for li in range(num_layers):
        conc = gat_conv_ref(h, params["enc"][li])
        h = conc.reshape(heads, x.shape[0], -1).sum(0)     # matches .view(3, N, -1).sum(0)
        if li < num_layers - 1:
            h = jnp.maximum(h, 0.0)
    h = jnp.maximum(jnp.dot(h, params["lin1"]["w"], precision=hi) + params["lin1"]["b"], 0.0)
    return jax.nn.sigmoid(jnp.dot(h, params["lin2"]["w"], precision=hi) + params["lin2"]["b"])


# --------------------------------------------------------------------------
if __name__ == "__main__":
    key = jax.random.PRNGKey(0)
    N = 128                 # graph nodes (multiple of 128 -> full lane occupancy)
    in_channels = 16
    hidden = 8              # hidden_channels
    out_channels = 4
    num_layers = 2
    heads = 3               # forward's .view(3, N, -1).sum(0) implies 3 blocks / node

    keys = jax.random.split(key, 16)
    x = jax.random.normal(keys[0], (N, in_channels), jnp.float32)

    # edge_index [2, E]: row 0 = src, row 1 = dst (ring + chord graph)
    src = np.arange(N, dtype=np.int32)
    edge_index = np.stack(
        [np.concatenate([src, src]),
         np.concatenate([(src + 1) % N, (src + 5) % N]).astype(np.int32)], axis=0)

    # dense adjacency mask with self-loops: adj[dst, src] = 1
    adj_np = np.zeros((N, N), dtype=np.float32)
    adj_np[edge_index[1], edge_index[0]] = 1.0
    adj_np[np.arange(N), np.arange(N)] = 1.0
    assert adj_np.sum(-1).min() >= 1.0      # self-loops guarantee no all-masked softmax row
    adj = jnp.asarray(adj_np)

    # fused selection matrix encoding `.view(3, N, -1).sum(0)` of the [N, 3*hidden] output:
    # result[b] = sum_a concat3[a*N + b]; sel_cat[b, h*N + src] sums head-h output of node src.
    sel_cat_np = np.zeros((N, heads * N), dtype=np.float32)
    for a in range(heads):
        for b in range(N):
            r = a * N + b
            sel_cat_np[b, (r % heads) * N + (r // heads)] += 1.0
    sel_cat = jnp.asarray(sel_cat_np)

    def init_lin(k, din, dout):
        kw, kb = jax.random.split(k)
        return {"w": jax.random.normal(kw, (din, dout), jnp.float32) * 0.1,
                "b": jax.random.normal(kb, (1, dout), jnp.float32) * 0.01}

    def init_gat(k, din, feat):
        k1, k2, k3, k4 = jax.random.split(k, 4)
        return {"w": jax.random.normal(k1, (din, heads * feat), jnp.float32) * 0.1,
                "a_src": jax.random.normal(k2, (heads, feat), jnp.float32) * 0.1,
                "a_dst": jax.random.normal(k3, (heads, feat), jnp.float32) * 0.1,
                "b": jax.random.normal(k4, (1, heads * feat), jnp.float32) * 0.01}

    params = {
        "enc": [init_gat(keys[2], in_channels, hidden)] +
               [init_gat(keys[3 + i], 1 * hidden, hidden) for i in range(num_layers - 1)],
        "lin1": init_lin(keys[10], hidden, hidden),          # out_dim == hidden (skip=None)
        "lin2": init_lin(keys[11], hidden, out_channels),
    }

    # ---- pack all small parameter tensors into one lane-padded buffer (one DMA) ----
    layout, total_rows, pack_c = _param_layout(num_layers, in_channels, hidden, heads, out_channels)
    packed_np = np.zeros((total_rows, pack_c), np.float32)

    def put(name, arr):
        r0, _, rows, cols = layout[name]
        packed_np[r0:r0 + rows, :cols] = np.asarray(arr, np.float32).reshape(rows, cols)

    def dst_block_diag(a_dst):   # [heads, feat] -> [heads*feat, heads] block-diag columns
        m = np.zeros((heads * hidden, heads), np.float32)
        for h in range(heads):
            m[h * hidden:(h + 1) * hidden, h] = a_dst[h]
        return m

    def src_block_rows(a_src):   # [heads, feat] -> [heads, heads*feat] block-diag rows
        m = np.zeros((heads, heads * hidden), np.float32)
        for h in range(heads):
            m[h, h * hidden:(h + 1) * hidden] = a_src[h]
        return m

    for li, p in enumerate(params["enc"]):
        put(f"w{li}", p["w"])
        put(f"adst{li}", dst_block_diag(np.asarray(p["a_dst"])))
        put(f"asrc{li}", src_block_rows(np.asarray(p["a_src"])))
        put(f"b{li}", p["b"])
    put("w1lin", params["lin1"]["w"]); put("b1lin", params["lin1"]["b"])
    put("w2lin", params["lin2"]["w"]); put("b2lin", params["lin2"]["b"])
    packed = jnp.asarray(packed_np)

    fwd = jax.jit(functools.partial(gat_forward, num_layers=num_layers, hidden=hidden,
                                    heads=heads, out_channels=out_channels, layout=layout))
    out = jax.block_until_ready(fwd(x, adj, sel_cat, packed))

    assert out.shape == (N, out_channels), out.shape
    assert bool(jnp.all(jnp.isfinite(out)))
    assert bool(jnp.all((out >= 0.0) & (out <= 1.0)))        # sigmoid output

    ref = reference_forward(x, adj, params, num_layers=num_layers,
                            hidden=hidden, heads=heads)
    np.testing.assert_allclose(np.asarray(out), np.asarray(ref), rtol=1e-3, atol=5e-4)

    print("KERNEL_OK")
</pallas_src>

<mosaic_0001>
module attributes {stable_mosaic.version = 11 : i64} {
  func.func @_fused_forward_kernel(%arg0: memref<128x16xf32, #tpu.memory_space<vmem>>, %arg1: memref<128x128xf32, #tpu.memory_space<vmem>>, %arg2: memref<128x384xf32, #tpu.memory_space<vmem>>, %arg3: memref<136x24xf32, #tpu.memory_space<vmem>>, %arg4: memref<128x4xf32, #tpu.memory_space<vmem>>, %arg5: memref<384x8xf32, #tpu.memory_space<vmem>>) attributes {dimension_semantics = [], scalar_prefetch = 0 : i64, scratch_operands = 1 : i64, tpu.core_type = #tpu.core_type<tc>} {
    %c0 = arith.constant 0 : index
    %c0_0 = arith.constant 0 : index
    %0 = vector.load %arg1[%c0, %c0_0] : memref<128x128xf32, #tpu.memory_space<vmem>>, vector<128x128xf32>
    %cst = arith.constant 1.000000e+00 : f32
    %1 = vector.broadcast %cst : f32 to vector<128x128xf32>
    %2 = arith.subf %0, %1 : vector<128x128xf32>
    %cst_1 = arith.constant 1.000000e+30 : f32
    %3 = vector.broadcast %cst_1 : f32 to vector<128x128xf32>
    %4 = arith.mulf %2, %3 : vector<128x128xf32>
    %cst_2 = arith.constant dense<0.000000e+00> : vector<128xf32>
    %5 = vector.multi_reduction <add>, %0, %cst_2 [1] : vector<128x128xf32> to vector<128xf32>
    %6 = vector.shape_cast %5 : vector<128xf32> to vector<128x1xf32>
    %7 = tpu.reciprocal %6 : vector<128x1xf32> -> vector<128x1xf32>
    %c0_3 = arith.constant 0 : index
    %c0_4 = arith.constant 0 : index
    %8 = vector.load %arg2[%c0_3, %c0_4] : memref<128x384xf32, #tpu.memory_space<vmem>>, vector<128x384xf32>
    %c0_5 = arith.constant 0 : index
    %c0_6 = arith.constant 0 : index
    %9 = vector.load %arg0[%c0_5, %c0_6] : memref<128x16xf32, #tpu.memory_space<vmem>>, vector<128x16xf32>
    %c0_7 = arith.constant 0 : index
    %c0_8 = arith.constant 0 : index
    %10 = vector.load %arg3[%c0_7, %c0_8] : memref<136x24xf32, #tpu.memory_space<vmem>>, vector<16x24xf32>
    %c16 = arith.constant 16 : index
    %c0_9 = arith.constant 0 : index
    %11 = vector.load %arg3[%c16, %c0_9] : memref<136x24xf32, #tpu.memory_space<vmem>>, vector<24x24xf32>
    %12 = vector.extract_strided_slice %11 {offsets = [0, 0], sizes = [24, 3], strides = [1, 1]} : vector<24x24xf32> to vector<24x3xf32>
    %c40 = arith.constant 40 : index
    %c0_10 = arith.constant 0 : index
    %13 = vector.load %arg3[%c40, %c0_10] : memref<136x24xf32, #tpu.memory_space<vmem>>, vector<8x24xf32>
    %14 = vector.extract_strided_slice %13 {offsets = [0, 0], sizes = [3, 24], strides = [1, 1]} : vector<8x24xf32> to vector<3x24xf32>
    %c48 = arith.constant 48 : index
    %c0_11 = arith.constant 0 : index
    %15 = vector.load %arg3[%c48, %c0_11] : memref<136x24xf32, #tpu.memory_space<vmem>>, vector<8x24xf32>
    %16 = vector.extract_strided_slice %15 {offsets = [0, 0], sizes = [1, 24], strides = [1, 1]} : vector<8x24xf32> to vector<1x24xf32>
    %cst_12 = arith.constant dense<0.000000e+00> : vector<128x24xf32>
    %17 = tpu.matmul %9, %10, %cst_12 {dimension_numbers = #tpu.dot_dimension_numbers<[1], [0], [0], [1], [0, 0, 1, 1], [], []>} : vector<128x16xf32>, vector<16x24xf32>, vector<128x24xf32> -> vector<128x24xf32>
    %cst_13 = arith.constant dense<0.000000e+00> : vector<128x3xf32>
    %18 = tpu.matmul %17, %12, %cst_13 {dimension_numbers = #tpu.dot_dimension_numbers<[1], [0], [0], [1], [0, 0, 1, 1], [], []>} : vector<128x24xf32>, vector<24x3xf32>, vector<128x3xf32> -> vector<128x3xf32>
    %cst_14 = arith.constant dense<0.000000e+00> : vector<3x128xf32>
    %19 = tpu.matmul %14, %17, %cst_14 {dimension_numbers = #tpu.dot_dimension_numbers<[1], [1], [0], [0], [0, 0, 1, 0], [], []>} : vector<3x24xf32>, vector<128x24xf32>, vector<3x128xf32> -> vector<3x128xf32>
    %20 = vector.extract_strided_slice %17 {offsets = [0, 0], sizes = [128, 8], strides = [1, 1]} : vector<128x24xf32> to vector<128x8xf32>
    %21 = vector.extract_strided_slice %18 {offsets = [0, 0], sizes = [128, 1], strides = [1, 1]} : vector<128x3xf32> to vector<128x1xf32>
    %22 = vector.extract_strided_slice %19 {offsets = [0, 0], sizes = [1, 128], strides = [1, 1]} : vector<3x128xf32> to vector<1x128xf32>
    %23 = vector.broadcast %21 : vector<128x1xf32> to vector<128x128xf32>
    %24 = vector.broadcast %22 : vector<1x128xf32> to vector<128x128xf32>
    %25 = arith.addf %23, %24 : vector<128x128xf32>
    %cst_15 = arith.constant 2.000000e-01 : f32
    %26 = vector.broadcast %cst_15 : f32 to vector<128x128xf32>
    %27 = arith.mulf %26, %25 : vector<128x128xf32>
    %28 = arith.maximumf %25, %27 : vector<128x128xf32>
    %29 = arith.addf %28, %4 : vector<128x128xf32>
    %cst_16 = arith.constant dense<0xFF800000> : vector<128xf32>
    %30 = vector.multi_reduction <maximumf>, %29, %cst_16 [1] : vector<128x128xf32> to vector<128xf32>
    %31 = vector.shape_cast %30 : vector<128xf32> to vector<128x1xf32>
    %32 = vector.broadcast %31 : vector<128x1xf32> to vector<128x128xf32>
    %33 = arith.subf %29, %32 : vector<128x128xf32>
    %34 = math.exp %33 : vector<128x128xf32>
    %cst_17 = arith.constant dense<0.000000e+00> : vector<128xf32>
    %35 = vector.multi_reduction <add>, %34, %cst_17 [1] : vector<128x128xf32> to vector<128xf32>
    %36 = vector.shape_cast %35 : vector<128xf32> to vector<128x1xf32>
    %37 = tpu.reciprocal %36 : vector<128x1xf32> -> vector<128x1xf32>
    %38 = arith.mulf %7, %37 : vector<128x1xf32>
    %cst_18 = arith.constant dense<0.000000e+00> : vector<128x8xf32>
    %39 = tpu.matmul %34, %20, %cst_18 {dimension_numbers = #tpu.dot_dimension_numbers<[1], [0], [0], [1], [0, 0, 1, 1], [], []>} : vector<128x128xf32>, vector<128x8xf32>, vector<128x8xf32> -> vector<128x8xf32>
    %40 = vector.broadcast %38 : vector<128x1xf32> to vector<128x8xf32>
    %41 = arith.mulf %39, %40 : vector<128x8xf32>
    %42 = vector.extract_strided_slice %16 {offsets = [0, 0], sizes = [1, 8], strides = [1, 1]} : vector<1x24xf32> to vector<1x8xf32>
    %43 = vector.broadcast %42 : vector<1x8xf32> to vector<128x8xf32>
    %44 = arith.addf %41, %43 : vector<128x8xf32>
    %c0_19 = arith.constant 0 : index
    %c0_20 = arith.constant 0 : index
    %45 = vector.load %arg5[%c0_19, %c0_20] : memref<384x8xf32, #tpu.memory_space<vmem>>, vector<128x8xf32>
    tpu.vector_store %arg5[%c0_19, %c0_20], %44 {strides = array<i32>} : memref<384x8xf32, #tpu.memory_space<vmem>>, vector<128x8xf32>,
    %46 = vector.extract_strided_slice %17 {offsets = [0, 8], sizes = [128, 8], strides = [1, 1]} : vector<128x24xf32> to vector<128x8xf32>
    %47 = vector.extract_strided_slice %18 {offsets = [0, 1], sizes = [128, 1], strides = [1, 1]} : vector<128x3xf32> to vector<128x1xf32>
    %48 = vector.extract_strided_slice %19 {offsets = [1, 0], sizes = [1, 128], strides = [1, 1]} : vector<3x128xf32> to vector<1x128xf32>
    %49 = vector.broadcast %47 : vector<128x1xf32> to vector<128x128xf32>
    %50 = vector.broadcast %48 : vector<1x128xf32> to vector<128x128xf32>
    %51 = arith.addf %49, %50 : vector<128x128xf32>
    %cst_21 = arith.constant 2.000000e-01 : f32
    %52 = vector.broadcast %cst_21 : f32 to vector<128x128xf32>
    %53 = arith.mulf %52, %51 : vector<128x128xf32>
    %54 = arith.maximumf %51, %53 : vector<128x128xf32>
    %55 = arith.addf %54, %4 : vector<128x128xf32>
    %cst_22 = arith.constant dense<0xFF800000> : vector<128xf32>
    %56 = vector.multi_reduction <maximumf>, %55, %cst_22 [1] : vector<128x128xf32> to vector<128xf32>
    %57 = vector.shape_cast %56 : vector<128xf32> to vector<128x1xf32>
    %58 = vector.broadcast %57 : vector<128x1xf32> to vector<128x128xf32>
    %59 = arith.subf %55, %58 : vector<128x128xf32>
    %60 = math.exp %59 : vector<128x128xf32>
    %cst_23 = arith.constant dense<0.000000e+00> : vector<128xf32>
    %61 = vector.multi_reduction <add>, %60, %cst_23 [1] : vector<128x128xf32> to vector<128xf32>
    %62 = vector.shape_cast %61 : vector<128xf32> to vector<128x1xf32>
    %63 = tpu.reciprocal %62 : vector<128x1xf32> -> vector<128x1xf32>
    %64 = arith.mulf %7, %63 : vector<128x1xf32>
    %cst_24 = arith.constant dense<0.000000e+00> : vector<128x8xf32>
    %65 = tpu.matmul %60, %46, %cst_24 {dimension_numbers = #tpu.dot_dimension_numbers<[1], [0], [0], [1], [0, 0, 1, 1], [], []>} : vector<128x128xf32>, vector<128x8xf32>, vector<128x8xf32> -> vector<128x8xf32>
    %66 = vector.broadcast %64 : vector<128x1xf32> to vector<128x8xf32>
    %67 = arith.mulf %65, %66 : vector<128x8xf32>
    %68 = vector.extract_strided_slice %16 {offsets = [0, 8], sizes = [1, 8], strides = [1, 1]} : vector<1x24xf32> to vector<1x8xf32>
    %69 = vector.broadcast %68 : vector<1x8xf32> to vector<128x8xf32>
    %70 = arith.addf %67, %69 : vector<128x8xf32>
    %c128 = arith.constant 128 : index
    %c0_25 = arith.constant 0 : index
    %71 = vector.load %arg5[%c128, %c0_25] : memref<384x8xf32, #tpu.memory_space<vmem>>, vector<128x8xf32>
    tpu.vector_store %arg5[%c128, %c0_25], %70 {strides = array<i32>} : memref<384x8xf32, #tpu.memory_space<vmem>>, vector<128x8xf32>,
    %72 = vector.extract_strided_slice %17 {offsets = [0, 16], sizes = [128, 8], strides = [1, 1]} : vector<128x24xf32> to vector<128x8xf32>
    %73 = vector.extract_strided_slice %18 {offsets = [0, 2], sizes = [128, 1], strides = [1, 1]} : vector<128x3xf32> to vector<128x1xf32>
    %74 = vector.extract_strided_slice %19 {offsets = [2, 0], sizes = [1, 128], strides = [1, 1]} : vector<3x128xf32> to vector<1x128xf32>
    %75 = vector.broadcast %73 : vector<128x1xf32> to vector<128x128xf32>
    %76 = vector.broadcast %74 : vector<1x128xf32> to vector<128x128xf32>
    %77 = arith.addf %75, %76 : vector<128x128xf32>
    %cst_26 = arith.constant 2.000000e-01 : f32
    %78 = vector.broadcast %cst_26 : f32 to vector<128x128xf32>
    %79 = arith.mulf %78, %77 : vector<128x128xf32>
    %80 = arith.maximumf %77, %79 : vector<128x128xf32>
    %81 = arith.addf %80, %4 : vector<128x128xf32>
    %cst_27 = arith.constant dense<0xFF800000> : vector<128xf32>
    %82 = vector.multi_reduction <maximumf>, %81, %cst_27 [1] : vector<128x128xf32> to vector<128xf32>
    %83 = vector.shape_cast %82 : vector<128xf32> to vector<128x1xf32>
    %84 = vector.broadcast %83 : vector<128x1xf32> to vector<128x128xf32>
    %85 = arith.subf %81, %84 : vector<128x128xf32>
    %86 = math.exp %85 : vector<128x128xf32>
    %cst_28 = arith.constant dense<0.000000e+00> : vector<128xf32>
    %87 = vector.multi_reduction <add>, %86, %cst_28 [1] : vector<128x128xf32> to vector<128xf32>
    %88 = vector.shape_cast %87 : vector<128xf32> to vector<128x1xf32>
    %89 = tpu.reciprocal %88 : vector<128x1xf32> -> vector<128x1xf32>
    %90 = arith.mulf %7, %89 : vector<128x1xf32>
    %cst_29 = arith.constant dense<0.000000e+00> : vector<128x8xf32>
    %91 = tpu.matmul %86, %72, %cst_29 {dimension_numbers = #tpu.dot_dimension_numbers<[1], [0], [0], [1], [0, 0, 1, 1], [], []>} : vector<128x128xf32>, vector<128x8xf32>, vector<128x8xf32> -> vector<128x8xf32>
    %92 = vector.broadcast %90 : vector<128x1xf32> to vector<128x8xf32>
    %93 = arith.mulf %91, %92 : vector<128x8xf32>
    %94 = vector.extract_strided_slice %16 {offsets = [0, 16], sizes = [1, 8], strides = [1, 1]} : vector<1x24xf32> to vector<1x8xf32>
    %95 = vector.broadcast %94 : vector<1x8xf32> to vector<128x8xf32>
    %96 = arith.addf %93, %95 : vector<128x8xf32>
    %c256 = arith.constant 256 : index
    %c0_30 = arith.constant 0 : index
    %97 = vector.load %arg5[%c256, %c0_30] : memref<384x8xf32, #tpu.memory_space<vmem>>, vector<128x8xf32>
    tpu.vector_store %arg5[%c256, %c0_30], %96 {strides = array<i32>} : memref<384x8xf32, #tpu.memory_space<vmem>>, vector<128x8xf32>,
    %c0_31 = arith.constant 0 : index
    %c0_32 = arith.constant 0 : index
    %98 = vector.load %arg5[%c0_31, %c0_32] : memref<384x8xf32, #tpu.memory_space<vmem>>, vector<384x8xf32>
    %cst_33 = arith.constant dense<0.000000e+00> : vector<128x8xf32>
    %99 = tpu.matmul %8, %98, %cst_33 {dimension_numbers = #tpu.dot_dimension_numbers<[1], [0], [0], [1], [0, 0, 1, 1], [], []>} : vector<128x384xf32>, vector<384x8xf32>, vector<128x8xf32> -> vector<128x8xf32>
    %cst_34 = arith.constant 0.000000e+00 : f32
    %100 = vector.broadcast %cst_34 : f32 to vector<128x8xf32>
    %101 = arith.maximumf %99, %100 : vector<128x8xf32>
    %c56 = arith.constant 56 : index
    %c0_35 = arith.constant 0 : index
    %102 = vector.load %arg3[%c56, %c0_35] : memref<136x24xf32, #tpu.memory_space<vmem>>, vector<8x24xf32>
    %c64 = arith.constant 64 : index
    %c0_36 = arith.constant 0 : index
    %103 = vector.load %arg3[%c64, %c0_36] : memref<136x24xf32, #tpu.memory_space<vmem>>, vector<24x24xf32>
    %104 = vector.extract_strided_slice %103 {offsets = [0, 0], sizes = [24, 3], strides = [1, 1]} : vector<24x24xf32> to vector<24x3xf32>
    %c88 = arith.constant 88 : index
    %c0_37 = arith.constant 0 : index
    %105 = vector.load %arg3[%c88, %c0_37] : memref<136x24xf32, #tpu.memory_space<vmem>>, vector<8x24xf32>
    %106 = vector.extract_strided_slice %105 {offsets = [0, 0], sizes = [3, 24], strides = [1, 1]} : vector<8x24xf32> to vector<3x24xf32>
    %c96 = arith.constant 96 : index
    %c0_38 = arith.constant 0 : index
    %107 = vector.load %arg3[%c96, %c0_38] : memref<136x24xf32, #tpu.memory_space<vmem>>, vector<8x24xf32>
    %108 = vector.extract_strided_slice %107 {offsets = [0, 0], sizes = [1, 24], strides = [1, 1]} : vector<8x24xf32> to vector<1x24xf32>
    %cst_39 = arith.constant dense<0.000000e+00> : vector<128x24xf32>
    %109 = tpu.matmul %101, %102, %cst_39 {dimension_numbers = #tpu.dot_dimension_numbers<[1], [0], [0], [1], [0, 0, 1, 1], [], []>} : vector<128x8xf32>, vector<8x24xf32>, vector<128x24xf32> -> vector<128x24xf32>
    %cst_40 = arith.constant dense<0.000000e+00> : vector<128x3xf32>
    %110 = tpu.matmul %109, %104, %cst_40 {dimension_numbers = #tpu.dot_dimension_numbers<[1], [0], [0], [1], [0, 0, 1, 1], [], []>} : vector<128x24xf32>, vector<24x3xf32>, vector<128x3xf32> -> vector<128x3xf32>
    %cst_41 = arith.constant dense<0.000000e+00> : vector<3x128xf32>
    %111 = tpu.matmul %106, %109, %cst_41 {dimension_numbers = #tpu.dot_dimension_numbers<[1], [1], [0], [0], [0, 0, 1, 0], [], []>} : vector<3x24xf32>, vector<128x24xf32>, vector<3x128xf32> -> vector<3x128xf32>
    %112 = vector.extract_strided_slice %109 {offsets = [0, 0], sizes = [128, 8], strides = [1, 1]} : vector<128x24xf32> to vector<128x8xf32>
    %113 = vector.extract_strided_slice %110 {offsets = [0, 0], sizes = [128, 1], strides = [1, 1]} : vector<128x3xf32> to vector<128x1xf32>
    %114 = vector.extract_strided_slice %111 {offsets = [0, 0], sizes = [1, 128], strides = [1, 1]} : vector<3x128xf32> to vector<1x128xf32>
    %115 = vector.broadcast %113 : vector<128x1xf32> to vector<128x128xf32>
    %116 = vector.broadcast %114 : vector<1x128xf32> to vector<128x128xf32>
    %117 = arith.addf %115, %116 : vector<128x128xf32>
    %cst_42 = arith.constant 2.000000e-01 : f32
    %118 = vector.broadcast %cst_42 : f32 to vector<128x128xf32>
    %119 = arith.mulf %118, %117 : vector<128x128xf32>
    %120 = arith.maximumf %117, %119 : vector<128x128xf32>
    %121 = arith.addf %120, %4 : vector<128x128xf32>
    %cst_43 = arith.constant dense<0xFF800000> : vector<128xf32>
    %122 = vector.multi_reduction <maximumf>, %121, %cst_43 [1] : vector<128x128xf32> to vector<128xf32>
    %123 = vector.shape_cast %122 : vector<128xf32> to vector<128x1xf32>
    %124 = vector.broadcast %123 : vector<128x1xf32> to vector<128x128xf32>
    %125 = arith.subf %121, %124 : vector<128x128xf32>
    %126 = math.exp %125 : vector<128x128xf32>
    %cst_44 = arith.constant dense<0.000000e+00> : vector<128xf32>
    %127 = vector.multi_reduction <add>, %126, %cst_44 [1] : vector<128x128xf32> to vector<128xf32>
    %128 = vector.shape_cast %127 : vector<128xf32> to vector<128x1xf32>
    %129 = tpu.reciprocal %128 : vector<128x1xf32> -> vector<128x1xf32>
    %130 = arith.mulf %7, %129 : vector<128x1xf32>
    %cst_45 = arith.constant dense<0.000000e+00> : vector<128x8xf32>
    %131 = tpu.matmul %126, %112, %cst_45 {dimension_numbers = #tpu.dot_dimension_numbers<[1], [0], [0], [1], [0, 0, 1, 1], [], []>} : vector<128x128xf32>, vector<128x8xf32>, vector<128x8xf32> -> vector<128x8xf32>
    %132 = vector.broadcast %130 : vector<128x1xf32> to vector<128x8xf32>
    %133 = arith.mulf %131, %132 : vector<128x8xf32>
    %134 = vector.extract_strided_slice %108 {offsets = [0, 0], sizes = [1, 8], strides = [1, 1]} : vector<1x24xf32> to vector<1x8xf32>
    %135 = vector.broadcast %134 : vector<1x8xf32> to vector<128x8xf32>
    %136 = arith.addf %133, %135 : vector<128x8xf32>
    %c0_46 = arith.constant 0 : index
    %c0_47 = arith.constant 0 : index
    %137 = vector.load %arg5[%c0_46, %c0_47] : memref<384x8xf32, #tpu.memory_space<vmem>>, vector<128x8xf32>
    tpu.vector_store %arg5[%c0_46, %c0_47], %136 {strides = array<i32>} : memref<384x8xf32, #tpu.memory_space<vmem>>, vector<128x8xf32>,
    %138 = vector.extract_strided_slice %109 {offsets = [0, 8], sizes = [128, 8], strides = [1, 1]} : vector<128x24xf32> to vector<128x8xf32>
    %139 = vector.extract_strided_slice %110 {offsets = [0, 1], sizes = [128, 1], strides = [1, 1]} : vector<128x3xf32> to vector<128x1xf32>
    %140 = vector.extract_strided_slice %111 {offsets = [1, 0], sizes = [1, 128], strides = [1, 1]} : vector<3x128xf32> to vector<1x128xf32>
    %141 = vector.broadcast %139 : vector<128x1xf32> to vector<128x128xf32>
    %142 = vector.broadcast %140 : vector<1x128xf32> to vector<128x128xf32>
    %143 = arith.addf %141, %142 : vector<128x128xf32>
    %cst_48 = arith.constant 2.000000e-01 : f32
    %144 = vector.broadcast %cst_48 : f32 to vector<128x128xf32>
    %145 = arith.mulf %144, %143 : vector<128x128xf32>
    %146 = arith.maximumf %143, %145 : vector<128x128xf32>
    %147 = arith.addf %146, %4 : vector<128x128xf32>
    %cst_49 = arith.constant dense<0xFF800000> : vector<128xf32>
    %148 = vector.multi_reduction <maximumf>, %147, %cst_49 [1] : vector<128x128xf32> to vector<128xf32>
    %149 = vector.shape_cast %148 : vector<128xf32> to vector<128x1xf32>
    %150 = vector.broadcast %149 : vector<128x1xf32> to vector<128x128xf32>
    %151 = arith.subf %147, %150 : vector<128x128xf32>
    %152 = math.exp %151 : vector<128x128xf32>
    %cst_50 = arith.constant dense<0.000000e+00> : vector<128xf32>
    %153 = vector.multi_reduction <add>, %152, %cst_50 [1] : vector<128x128xf32> to vector<128xf32>
    %154 = vector.shape_cast %153 : vector<128xf32> to vector<128x1xf32>
    %155 = tpu.reciprocal %154 : vector<128x1xf32> -> vector<128x1xf32>
    %156 = arith.mulf %7, %155 : vector<128x1xf32>
    %cst_51 = arith.constant dense<0.000000e+00> : vector<128x8xf32>
    %157 = tpu.matmul %152, %138, %cst_51 {dimension_numbers = #tpu.dot_dimension_numbers<[1], [0], [0], [1], [0, 0, 1, 1], [], []>} : vector<128x128xf32>, vector<128x8xf32>, vector<128x8xf32> -> vector<128x8xf32>
    %158 = vector.broadcast %156 : vector<128x1xf32> to vector<128x8xf32>
    %159 = arith.mulf %157, %158 : vector<128x8xf32>
    %160 = vector.extract_strided_slice %108 {offsets = [0, 8], sizes = [1, 8], strides = [1, 1]} : vector<1x24xf32> to vector<1x8xf32>
    %161 = vector.broadcast %160 : vector<1x8xf32> to vector<128x8xf32>
    %162 = arith.addf %159, %161 : vector<128x8xf32>
    %c128_52 = arith.constant 128 : index
    %c0_53 = arith.constant 0 : index
    %163 = vector.load %arg5[%c128_52, %c0_53] : memref<384x8xf32, #tpu.memory_space<vmem>>, vector<128x8xf32>
    tpu.vector_store %arg5[%c128_52, %c0_53], %162 {strides = array<i32>} : memref<384x8xf32, #tpu.memory_space<vmem>>, vector<128x8xf32>,
    %164 = vector.extract_strided_slice %109 {offsets = [0, 16], sizes = [128, 8], strides = [1, 1]} : vector<128x24xf32> to vector<128x8xf32>
    %165 = vector.extract_strided_slice %110 {offsets = [0, 2], sizes = [128, 1], strides = [1, 1]} : vector<128x3xf32> to vector<128x1xf32>
    %166 = vector.extract_strided_slice %111 {offsets = [2, 0], sizes = [1, 128], strides = [1, 1]} : vector<3x128xf32> to vector<1x128xf32>
    %167 = vector.broadcast %165 : vector<128x1xf32> to vector<128x128xf32>
    %168 = vector.broadcast %166 : vector<1x128xf32> to vector<128x128xf32>
    %169 = arith.addf %167, %168 : vector<128x128xf32>
    %cst_54 = arith.constant 2.000000e-01 : f32
    %170 = vector.broadcast %cst_54 : f32 to vector<128x128xf32>
    %171 = arith.mulf %170, %169 : vector<128x128xf32>
    %172 = arith.maximumf %169, %171 : vector<128x128xf32>
    %173 = arith.addf %172, %4 : vector<128x128xf32>
    %cst_55 = arith.constant dense<0xFF800000> : vector<128xf32>
    %174 = vector.multi_reduction <maximumf>, %173, %cst_55 [1] : vector<128x128xf32> to vector<128xf32>
    %175 = vector.shape_cast %174 : vector<128xf32> to vector<128x1xf32>
    %176 = vector.broadcast %175 : vector<128x1xf32> to vector<128x128xf32>
    %177 = arith.subf %173, %176 : vector<128x128xf32>
    %178 = math.exp %177 : vector<128x128xf32>
    %cst_56 = arith.constant dense<0.000000e+00> : vector<128xf32>
    %179 = vector.multi_reduction <add>, %178, %cst_56 [1] : vector<128x128xf32> to vector<128xf32>
    %180 = vector.shape_cast %179 : vector<128xf32> to vector<128x1xf32>
    %181 = tpu.reciprocal %180 : vector<128x1xf32> -> vector<128x1xf32>
    %182 = arith.mulf %7, %181 : vector<128x1xf32>
    %cst_57 = arith.constant dense<0.000000e+00> : vector<128x8xf32>
    %183 = tpu.matmul %178, %164, %cst_57 {dimension_numbers = #tpu.dot_dimension_numbers<[1], [0], [0], [1], [0, 0, 1, 1], [], []>} : vector<128x128xf32>, vector<128x8xf32>, vector<128x8xf32> -> vector<128x8xf32>
    %184 = vector.broadcast %182 : vector<128x1xf32> to vector<128x8xf32>
    %185 = arith.mulf %183, %184 : vector<128x8xf32>
    %186 = vector.extract_strided_slice %108 {offsets = [0, 16], sizes = [1, 8], strides = [1, 1]} : vector<1x24xf32> to vector<1x8xf32>
    %187 = vector.broadcast %186 : vector<1x8xf32> to vector<128x8xf32>
    %188 = arith.addf %185, %187 : vector<128x8xf32>
    %c256_58 = arith.constant 256 : index
    %c0_59 = arith.constant 0 : index
    %189 = vector.load %arg5[%c256_58, %c0_59] : memref<384x8xf32, #tpu.memory_space<vmem>>, vector<128x8xf32>
    tpu.vector_store %arg5[%c256_58, %c0_59], %188 {strides = array<i32>} : memref<384x8xf32, #tpu.memory_space<vmem>>, vector<128x8xf32>,
    %c0_60 = arith.constant 0 : index
    %c0_61 = arith.constant 0 : index
    %190 = vector.load %arg5[%c0_60, %c0_61] : memref<384x8xf32, #tpu.memory_space<vmem>>, vector<384x8xf32>
    %cst_62 = arith.constant dense<0.000000e+00> : vector<128x8xf32>
    %191 = tpu.matmul %8, %190, %cst_62 {dimension_numbers = #tpu.dot_dimension_numbers<[1], [0], [0], [1], [0, 0, 1, 1], [], []>} : vector<128x384xf32>, vector<384x8xf32>, vector<128x8xf32> -> vector<128x8xf32>
    %c104 = arith.constant 104 : index
    %c0_63 = arith.constant 0 : index
    %192 = vector.load %arg3[%c104, %c0_63] : memref<136x24xf32, #tpu.memory_space<vmem>>, vector<8x24xf32>
    %193 = vector.extract_strided_slice %192 {offsets = [0, 0], sizes = [8, 8], strides = [1, 1]} : vector<8x24xf32> to vector<8x8xf32>
    %cst_64 = arith.constant dense<0.000000e+00> : vector<128x8xf32>
    %194 = tpu.matmul %191, %193, %cst_64 {dimension_numbers = #tpu.dot_dimension_numbers<[1], [0], [0], [1], [0, 0, 1, 1], [], []>} : vector<128x8xf32>, vector<8x8xf32>, vector<128x8xf32> -> vector<128x8xf32>
    %c112 = arith.constant 112 : index
    %c0_65 = arith.constant 0 : index
    %195 = vector.load %arg3[%c112, %c0_65] : memref<136x24xf32, #tpu.memory_space<vmem>>, vector<8x24xf32>
    %196 = vector.extract_strided_slice %195 {offsets = [0, 0], sizes = [1, 24], strides = [1, 1]} : vector<8x24xf32> to vector<1x24xf32>
    %197 = vector.extract_strided_slice %196 {offsets = [0, 0], sizes = [1, 8], strides = [1, 1]} : vector<1x24xf32> to vector<1x8xf32>
    %198 = vector.broadcast %197 : vector<1x8xf32> to vector<128x8xf32>
    %199 = arith.addf %194, %198 : vector<128x8xf32>
    %cst_66 = arith.constant 0.000000e+00 : f32
    %200 = vector.broadcast %cst_66 : f32 to vector<128x8xf32>
    %201 = arith.maximumf %199, %200 : vector<128x8xf32>
    %c120 = arith.constant 120 : index
    %c0_67 = arith.constant 0 : index
    %202 = vector.load %arg3[%c120, %c0_67] : memref<136x24xf32, #tpu.memory_space<vmem>>, vector<8x24xf32>
    %203 = vector.extract_strided_slice %202 {offsets = [0, 0], sizes = [8, 4], strides = [1, 1]} : vector<8x24xf32> to vector<8x4xf32>
    %cst_68 = arith.constant dense<0.000000e+00> : vector<128x4xf32>
    %204 = tpu.matmul %201, %203, %cst_68 {dimension_numbers = #tpu.dot_dimension_numbers<[1], [0], [0], [1], [0, 0, 1, 1], [], []>} : vector<128x8xf32>, vector<8x4xf32>, vector<128x4xf32> -> vector<128x4xf32>
    %c128_69 = arith.constant 128 : index
    %c0_70 = arith.constant 0 : index
    %205 = vector.load %arg3[%c128_69, %c0_70] : memref<136x24xf32, #tpu.memory_space<vmem>>, vector<8x24xf32>
    %206 = vector.extract_strided_slice %205 {offsets = [0, 0], sizes = [1, 24], strides = [1, 1]} : vector<8x24xf32> to vector<1x24xf32>
    %207 = vector.extract_strided_slice %206 {offsets = [0, 0], sizes = [1, 4], strides = [1, 1]} : vector<1x24xf32> to vector<1x4xf32>
    %208 = vector.broadcast %207 : vector<1x4xf32> to vector<128x4xf32>
    %209 = arith.addf %204, %208 : vector<128x4xf32>
    %210 = arith.negf %209 : vector<128x4xf32>
    %211 = math.exp %210 : vector<128x4xf32>
    %cst_71 = arith.constant 1.000000e+00 : f32
    %212 = vector.broadcast %cst_71 : f32 to vector<128x4xf32>
    %213 = arith.addf %212, %211 : vector<128x4xf32>
    %214 = arith.divf %212, %213 : vector<128x4xf32>
    %c0_72 = arith.constant 0 : index
    %c0_73 = arith.constant 0 : index
    %215 = vector.load %arg4[%c0_72, %c0_73] : memref<128x4xf32, #tpu.memory_space<vmem>>, vector<128x4xf32>
    tpu.vector_store %arg4[%c0_72, %c0_73], %214 {strides = array<i32>} : memref<128x4xf32, #tpu.memory_space<vmem>>, vector<128x4xf32>,
    return
  }
}

</mosaic_0001>

<bundles_post_ra>
// kernel: gat_forward.1
= control target key start
LH: loop header
LB: loop body
LE: loop exit
PB: predicated region body
PF: predicated region fallthrough
CT: control target
= control target key end

     0   :  { %9 = vsyncpa [#allocation4], 0  ;;  %s7457_s15 = smov [#allocation3]   ;;  %s10297_s0 = inlined_call_operand.vmem [shape: f32[128,16], index: 0, kind: input, shape index: {}]   ;;  %s10298_s1 = inlined_call_operand.vmem [shape: f32[128,128], index: 1, kind: input, shape index: {}]   ;;  %s10299_s2 = inlined_call_operand.hbm [shape: f32[128,384], index: 2, kind: input, shape index: {}]   ;;  %s10300_s3 = inlined_call_operand.vmem [shape: f32[136,24], index: 3, kind: input, shape index: {}]   ;;  %s10301_s4 = inlined_call_operand.vmem [shape: f32[128,4], index: 4, kind: output, shape index: {}]  }
   0x1   :  { %s19_s16 = sshll.u32 %s7457_s15, 4  ;;  %s20_s16 = int_to_ptr.vmem [resolvable:$true] %s19_s16 }
   0x2   :  { %s7443_s17 = scalar_lea.vmem %s20_s16, 6144  ;;  %p7448_p1 = scmp.lt.s32.totalorder %s20_s16, %s20_s16 }
   0x3   :  { %p7444_p0 = scmp.ne.s32.totalorder %s20_s16, %s7443_s17  ;;  %p7449_p2 = scmp.lt.s32.totalorder %s7443_s17, %s7443_s17 }
   0x5   :  { %p7450_p3 = por %p7449_p2, %p7448_p1 }
   0x7   :  { %p7451_p4 = pnand %p7450_p3, %p7444_p0 }
   0x9   :  { %7454 = shalt.err (!%p7451_p4)
}
   0xa   :  { %s7458_s18 = smov 384   ;;  %s7459_s19 = smov 24  }
   0xb   :  { %25 = dma.hbm_to_vmem [thread:$0]  %s10299_s2, 6144, %s20_s16, [#allocation4], %s7458_s18, %s7458_s18, %s7459_s19  }
   0xc   :  { %7455 = dma.done.wait [#allocation4], 6144  }
   0xd   :  { %7456 = vsyncadd [#allocation4], 4294961152  ;;  %vm198_vm0 = vcmask 130048   ;;  %v192_v0 = vld [vmem:[%s10300_s3 + $0x8] sm:$0xff]  ;;  %v191_v1 = vld [vmem:[%s10300_s3] sm:$0xff]  ;;  %v10309_v21 = vmov 0.0  }
   0xe   :  { %v175_v2 = vld [vmem:[%s10297_s0] sm:$0xff]  ;;  %6128 = vmatprep.subr.mxu0 %v192_v0  ;;  %v176_v3 = vld [vmem:[%s10297_s0 + $0x8] sm:$0xff]  ;;  %v177_v4 = vld [vmem:[%s10297_s0 + $0x10] sm:$0xff]  ;;  %vm7461_vm1 = vmmov 0   ;;  %vm392_vm2 = vcmask 195584   ;;  %v10303_v28 = vmov 1  }
   0xf   :  { %6132 = vmatprep.mubr.msk.f32.mxu0 %vm198_vm0, %v175_v2  ;;  %6129 = vmatpush3.msra.mxu0 %v192_v0  ;;  %v178_v5 = vld [vmem:[%s10297_s0 + $0x18] sm:$0xff]  ;;  %v195_v6 = vld [vmem:[%s10300_s3 + $0x20] sm:$0xff]  ;;  %v180_v8 = vld [vmem:[%s10297_s0 + $0x28] sm:$0xff]  ;;  %v10305_v29 = vmov 0   ;;  %v10307_v47 = vmov 2   ;;  %v739_v0 = vlaneseq  ;;  %s7466_s17 = smov 112  }
  0x10   :  { %6130 = vmatprep.subr.mxu0 %v191_v1  ;;  %v179_v7 = vld [vmem:[%s10297_s0 + $0x20] sm:$0xff]  ;;  %6156 = vmatprep.subr.mxu1 %v195_v6  ;;  %v181_v9 = vld [vmem:[%s10297_s0 + $0x30] sm:$0xff]  ;;  %v182_v10 = vld [vmem:[%s10297_s0 + $0x38] sm:$0xff]  ;;  %vm1132_vm3 = vcmask 64512   ;;  %vm5387_vm4 = vcmask 31744  }
  0x11   :  { %6131 = vmatpush3.msra.mxu0 %v191_v1  ;;  %6157 = vmatpush3.msra.mxu1 %v195_v6  ;;  %v183_v11 = vld [vmem:[%s10297_s0 + $0x40] sm:$0xff]  ;;  %v184_v12 = vld [vmem:[%s10297_s0 + $0x48] sm:$0xff]  ;;  %v185_v13 = vld [vmem:[%s10297_s0 + $0x50] sm:$0xff]  ;;  %v7807_v2 = vshrl.u32 %v739_v0, 7 }
  0x12   :  { %6133 = vmatmul.mubr.msk.f32.vlgmr.msra.gmra.mxu0 %vm198_vm0, %v176_v3  ;;  %v186_v14 = vld [vmem:[%s10297_s0 + $0x58] sm:$0xff]  ;;  %v187_v15 = vld [vmem:[%s10297_s0 + $0x60] sm:$0xff]  ;;  %v188_v16 = vld [vmem:[%s10297_s0 + $0x68] sm:$0xff]  ;;  %6186 = vmatprep.subr.mxu0 %v10309_v21 }
  0x13   :  { %6135 = vmatprep.mubr.msk.f32.mxu0 %vm198_vm0, %v177_v4  ;;  %v189_v17 = vld [vmem:[%s10297_s0 + $0x70] sm:$0xff]  ;;  %v190_v18 = vld [vmem:[%s10297_s0 + $0x78] sm:$0xff]  ;;  %6823 = vset.pattern.permute.xlu1 %v10303_v28  ;;  %s7464_s0 = smov 120   ;;  %v196_v40 = vld [vmem:[%s10300_s3 + $0x28] sm:$0xff]  ;;  %10452 = vst [vmem:[#allocation16_spill] sm:$0xff] %v7807_v2  ;;  %v10302_v4 = vsub.s32 1, %v7807_v2 }
  0x14   :  { %v194_v19 = vld [vmem:[%s10300_s3 + $0x18] sm:$0xff]  ;;  %v193_v20 = vld [vmem:[%s10300_s3 + $0x10] sm:$0xff]  ;;  %6822 = vset.pattern.permute.xlu0 %v10305_v29  ;;  %v32_v6 = vld [vmem:[%s10298_s1 + $0x8] sm:$0xff] }
  0x15   :  { %6158 = vmatprep.subr.mxu1 %v194_v19  ;;  %v34_v0 = vld [vmem:[%s10298_s1 + $0x18] sm:$0xff] }
  0x16   :  { %6136 = vmatmul.mubr.msk.f32.gmra.mxu0 %vm198_vm0, %v178_v5  ;;  %6159 = vmatpush3.msra.mxu1 %v194_v19  ;;  %v7840_v19 = vld [vmem:[%s10298_s1] sm:$0xff] }
  0x17   :  { %6138 = vmatprep.mubr.msk.f32.mxu0 %vm198_vm0, %v179_v7  ;;  %6160 = vmatprep.subr.mxu1 %v193_v20  ;;  %10457 = vst [vmem:[#allocation21_spill] sm:$0xff] %v7840_v19 }
  0x18   :  { %6161 = vmatpush3.msra.mxu1 %v193_v20 }
  0x1a   :  { %6139 = vmatmul.mubr.msk.f32.gmra.mxu0 %vm198_vm0, %v180_v8  ;;  %v5410_v8 = vadd.f32 -1.0, %v32_v6 }
  0x1b   :  { %6141 = vmatprep.mubr.msk.f32.mxu0 %vm198_vm0, %v181_v9 }
  0x1e   :  { %6142 = vmatmul.mubr.msk.f32.gmra.mxu0 %vm198_vm0, %v182_v10 }
  0x1f   :  { %6144 = vmatprep.mubr.msk.f32.mxu0 %vm198_vm0, %v183_v11 }
  0x22   :  { %6145 = vmatmul.mubr.msk.f32.gmra.mxu0 %vm198_vm0, %v184_v12 }
  0x23   :  { %6147 = vmatprep.mubr.msk.f32.mxu0 %vm198_vm0, %v185_v13  ;;  %v7825_v13 = vmul.f32 1e+30, %v5410_v8  ;;  %v7865_v8 = vld [vmem:[%s10298_s1 + $0x10] sm:$0xff] }
  0x24   :  { %10460 = vst [vmem:[#allocation24_spill] sm:$0xff] %v7865_v8 }
  0x25   :  { %10453 = vst [vmem:[#allocation17_spill] sm:$0xff] %v7825_v13 }
  0x26   :  { %6148 = vmatmul.mubr.msk.f32.gmra.mxu0 %vm198_vm0, %v186_v14  ;;  %v7828_v14 = vsub.s32 0, %v7807_v2 }
  0x27   :  { %6150 = vmatprep.mubr.msk.f32.mxu0 %vm198_vm0, %v187_v15 }
  0x28   :  { %10454 = vst [vmem:[#allocation18_spill] sm:$0xff] %v7828_v14 }
  0x2a   :  { %6151 = vmatmul.mubr.msk.f32.gmra.mxu0 %vm198_vm0, %v188_v16 }
  0x2b   :  { %6153 = vmatprep.mubr.msk.f32.mxu0 %vm198_vm0, %v189_v17 }
  0x2e   :  { %6154 = vmatmul.mubr.msk.f32.gmra.mxu0 %vm198_vm0, %v190_v18 }
  0x2f   :  { %6218 = vmatprep.mubr.msk.f32.mxu0 %vm7461_vm1, %v10309_v21 }
  0xd2   :  { %v7577_v22 = vpop.f32.mrf.mxu0 }
  0xd3   :  { %10442 = vst [vmem:[#allocation6_spill] sm:$0xff] %v7577_v22 }
  0xd4   :  { %v7579_v23 = vpop.f32.mrf.mxu0 }
  0xd5   :  { %6162 = vmatprep.mubr.msk.f32.mxu1 %vm392_vm2, %v7579_v23 }
  0xd6   :  { %v7583_v24 = vpop.f32.mrf.mxu0  ;;  %6163 = vmatmul.mubr.msk.f32.vlgmr.msra.gmra.mxu1 %vm392_vm2, %v7577_v22 }
  0xd7   :  { %10443 = vst [vmem:[#allocation7_spill] sm:$0xff] %v7583_v24 }
  0xd8   :  { %v7587_v25 = vpop.f32.mrf.mxu0 }
  0xd9   :  { %6165 = vmatprep.mubr.msk.f32.mxu1 %vm392_vm2, %v7587_v25 }
  0xda   :  { %v7591_v26 = vpop.f32.mrf.mxu0  ;;  %6166 = vmatmul.mubr.msk.f32.gmra.mxu1 %vm392_vm2, %v7583_v24 }
  0xdc   :  { %v7595_v27 = vpop.f32.mrf.mxu0 }
  0xdd   :  { %6168 = vmatprep.mubr.msk.f32.mxu1 %vm392_vm2, %v7595_v27 }
  0xde   :  { %v7601_v30 = vpop.f32.mrf.mxu0  ;;  %6169 = vmatmul.mubr.msk.f32.gmra.mxu1 %vm392_vm2, %v7591_v26 }
  0xe0   :  { %v7605_v31 = vpop.f32.mrf.mxu0 }
  0xe1   :  { %6171 = vmatprep.mubr.msk.f32.mxu1 %vm392_vm2, %v7605_v31 }
  0xe2   :  { %v7609_v32 = vpop.f32.mrf.mxu0  ;;  %6172 = vmatmul.mubr.msk.f32.gmra.mxu1 %vm392_vm2, %v7601_v30 }
  0xe3   :  { %10444 = vst [vmem:[#allocation8_spill] sm:$0xff] %v7609_v32  ;;  %1443 = vrot.lane.b32.xlu0 %v7609_v32, %s7464_s0 }
  0xe4   :  { %v7615_v33 = vpop.f32.mrf.mxu0 }
  0xe5   :  { %10445 = vst [vmem:[#allocation9_spill] sm:$0xff] %v7615_v33  ;;  %6174 = vmatprep.mubr.msk.f32.mxu1 %vm392_vm2, %v7615_v33 }
  0xe6   :  { %v7619_v34 = vpop.f32.mrf.mxu0  ;;  %6175 = vmatmul.mubr.msk.f32.gmra.mxu1 %vm392_vm2, %v7609_v32 }
  0xe7   :  { %10446 = vst [vmem:[#allocation10_spill] sm:$0xff] %v7619_v34  ;;  %1447 = vrot.lane.b32.xlu0 %v7619_v34, %s7464_s0 }
  0xe8   :  { %v7625_v35 = vpop.f32.mrf.mxu0 }
  0xe9   :  { %10447 = vst [vmem:[#allocation11_spill] sm:$0xff] %v7625_v35  ;;  %6177 = vmatprep.mubr.msk.f32.mxu1 %vm392_vm2, %v7625_v35  ;;  %1445 = vrot.lane.b32.xlu1 %v7625_v35, %s7464_s0 }
  0xea   :  { %v7631_v36 = vpop.f32.mrf.mxu0  ;;  %6178 = vmatmul.mubr.msk.f32.gmra.mxu1 %vm392_vm2, %v7619_v34 }
  0xeb   :  { %10448 = vst [vmem:[#allocation12_spill] sm:$0xff] %v7631_v36 }
  0xec   :  { %v7635_v37 = vpop.f32.mrf.mxu0 }
  0xed   :  { %6180 = vmatprep.mubr.msk.f32.mxu1 %vm392_vm2, %v7635_v37  ;;  %1451 = vrot.lane.b32.xlu1 %v7631_v36, %s7464_s0 }
  0xee   :  { %v7641_v38 = vpop.f32.mrf.mxu0  ;;  %6181 = vmatmul.mubr.msk.f32.gmra.mxu1 %vm392_vm2, %v7631_v36 }
  0xef   :  { %10449 = vst [vmem:[#allocation13_spill] sm:$0xff] %v7641_v38  ;;  %6187 = vmatpush3.xpose.msk.msra.mxu0 %vm392_vm2, %v7641_v38  ;;  %6221 = vmatprep.subr.mxu1 %v7641_v38 }
  0xf0   :  { %v7648_v39 = vpop.f32.mrf.mxu0  ;;  %6222 = vmatpush3.msra.mxu1 %v7641_v38  ;;  %6188 = vmatprep.subr.mxu0 %v10309_v21 }
  0xf1   :  { %6223 = vmatprep.subr.mxu1 %v7648_v39  ;;  %6183 = vmatprep.mubr.msk.f32.mxu1 %vm392_vm2, %v7648_v39 }
  0xf2   :  { %6224 = vmatpush3.msra.mxu1 %v7648_v39  ;;  %1449 = vrot.lane.b32.xlu1 %v7635_v37, %s7464_s0 }
  0xf3   :  { %6189 = vmatpush3.xpose.msk.msra.mxu0 %vm392_vm2, %v7648_v39  ;;  %6225 = vmatprep.subr.mxu1 %v7631_v36 }
  0xf4   :  { %6226 = vmatpush3.msra.mxu1 %v7631_v36  ;;  %6190 = vmatprep.subr.mxu0 %v10309_v21 }
  0xf5   :  { %6227 = vmatprep.subr.mxu1 %v7635_v37  ;;  %6184 = vmatmul.mubr.msk.f32.gmra.mxu1 %vm392_vm2, %v7641_v38 }
  0xf6   :  { %6228 = vmatpush3.msra.mxu1 %v7635_v37  ;;  %1455 = vrot.lane.b32.xlu1 %v7641_v38, %s7464_s0 }
  0xf7   :  { %6191 = vmatpush3.xpose.msk.msra.mxu0 %vm392_vm2, %v7631_v36  ;;  %6229 = vmatprep.subr.mxu1 %v7619_v34 }
  0xf8   :  { %6230 = vmatpush3.msra.mxu1 %v7619_v34  ;;  %6192 = vmatprep.subr.mxu0 %v10309_v21 }
  0xf9   :  { %6231 = vmatprep.subr.mxu1 %v7625_v35  ;;  %1453 = vrot.lane.b32.xlu0 %v7648_v39, %s7464_s0 }
  0xfa   :  { %6232 = vmatpush3.msra.mxu1 %v7625_v35 }
  0xfb   :  { %6193 = vmatpush3.xpose.msk.msra.mxu0 %vm392_vm2, %v7635_v37  ;;  %6233 = vmatprep.subr.mxu1 %v7609_v32 }
  0xfc   :  { %6234 = vmatpush3.msra.mxu1 %v7609_v32  ;;  %6194 = vmatprep.subr.mxu0 %v10309_v21 }
  0xfd   :  { %6235 = vmatprep.subr.mxu1 %v7615_v33 }
  0xfe   :  { %6236 = vmatpush3.msra.mxu1 %v7615_v33 }
  0xff   :  { %6195 = vmatpush3.xpose.msk.msra.mxu0 %vm392_vm2, %v7619_v34  ;;  %6237 = vmatprep.subr.mxu1 %v7601_v30 }
 0x100   :  { %6238 = vmatpush3.msra.mxu1 %v7601_v30  ;;  %6196 = vmatprep.subr.mxu0 %v10309_v21 }
 0x101   :  { %6239 = vmatprep.subr.mxu1 %v7605_v31 }
 0x102   :  { %6240 = vmatpush3.msra.mxu1 %v7605_v31 }
 0x103   :  { %6197 = vmatpush3.xpose.msk.msra.mxu0 %vm392_vm2, %v7625_v35  ;;  %6241 = vmatprep.subr.mxu1 %v7591_v26 }
 0x104   :  { %6242 = vmatpush3.msra.mxu1 %v7591_v26  ;;  %6198 = vmatprep.subr.mxu0 %v10309_v21 }
 0x105   :  { %6243 = vmatprep.subr.mxu1 %v7595_v27 }
 0x106   :  { %6244 = vmatpush3.msra.mxu1 %v7595_v27 }
 0x107   :  { %6199 = vmatpush3.xpose.msk.msra.mxu0 %vm392_vm2, %v7609_v32  ;;  %6245 = vmatprep.subr.mxu1 %v7583_v24 }
 0x108   :  { %6246 = vmatpush3.msra.mxu1 %v7583_v24  ;;  %6200 = vmatprep.subr.mxu0 %v10309_v21 }
 0x109   :  { %6247 = vmatprep.subr.mxu1 %v7587_v25 }
 0x10a   :  { %6248 = vmatpush3.msra.mxu1 %v7587_v25 }
 0x10b   :  { %6201 = vmatpush3.xpose.msk.msra.mxu0 %vm392_vm2, %v7615_v33  ;;  %6249 = vmatprep.subr.mxu1 %v7577_v22 }
 0x10c   :  { %6250 = vmatpush3.msra.mxu1 %v7577_v22  ;;  %6202 = vmatprep.subr.mxu0 %v10309_v21 }
 0x10d   :  { %6251 = vmatprep.subr.mxu1 %v7579_v23 }
 0x10e   :  { %6252 = vmatpush3.msra.mxu1 %v7579_v23 }
 0x10f   :  { %6203 = vmatpush3.xpose.msk.msra.mxu0 %vm392_vm2, %v7601_v30 }
 0x110   :  { %6204 = vmatprep.subr.mxu0 %v10309_v21 }
 0x113   :  { %6205 = vmatpush3.xpose.msk.msra.mxu0 %vm392_vm2, %v7605_v31 }
 0x114   :  { %6206 = vmatprep.subr.mxu0 %v10309_v21 }
 0x117   :  { %6207 = vmatpush3.xpose.msk.msra.mxu0 %vm392_vm2, %v7591_v26 }
 0x118   :  { %6208 = vmatprep.subr.mxu0 %v10309_v21 }
 0x11b   :  { %6209 = vmatpush3.xpose.msk.msra.mxu0 %vm392_vm2, %v7595_v27 }
 0x11c   :  { %6210 = vmatprep.subr.mxu0 %v10309_v21 }
 0x11f   :  { %6211 = vmatpush3.xpose.msk.msra.mxu0 %vm392_vm2, %v7583_v24 }
 0x120   :  { %6212 = vmatprep.subr.mxu0 %v10309_v21 }
 0x123   :  { %6213 = vmatpush3.xpose.msk.msra.mxu0 %vm392_vm2, %v7587_v25 }
 0x124   :  { %6214 = vmatprep.subr.mxu0 %v10309_v21 }
 0x127   :  { %6215 = vmatpush3.xpose.msk.msra.mxu0 %vm392_vm2, %v7577_v22 }
 0x128   :  { %6216 = vmatprep.subr.mxu0 %v10309_v21 }
 0x12b   :  { %6217 = vmatpush3.xpose.msk.msra.mxu0 %vm392_vm2, %v7579_v23 }
 0x12e   :  { %6219 = vmatmul.mubr.msk.f32.vlgmr.msra.gmra.mxu0 %vm392_vm2, %v196_v40 }
 0x155   :  { %v7805_v1 = vpop.permute.xlu0 %1443 }
 0x159   :  { %v7810_v3 = vpop.permute.xlu0 %1447 }
 0x15b   :  { %v7740_v41 = vpop.permute.xlu1 %1445 }
 0x15f   :  { %v7742_v42 = vpop.permute.xlu1 %1451 }
 0x164   :  { %v7744_v43 = vpop.permute.xlu1 %1449 }
 0x168   :  { %v7746_v44 = vpop.permute.xlu1 %1455 }
 0x169   :  { %6277 = vmatprep.subr.mxu1 %v7746_v44 }
 0x16b   :  { %v7813_v5 = vpop.permute.xlu0 %1453 }
 0x196   :  { %v6164_v45 = vpop.f32.mrf.mxu1 }
 0x197   :  { %1154 = vperm.xlu1 %6823, %v6164_v45   ;;  %666 = vperm.xlu0 %6822, %v6164_v45  }
 0x198   :  { %v507_v46 = vpop.f32.mrf.mxu1 }
 0x19a   :  { %v6167_v48 = vpop.f32.mrf.mxu1 }
 0x19b   :  { %6827 = vset.pattern.permute.xlu1 %v10307_v47  ;;  %6824 = vset.pattern.permute.xlu0 %v10307_v47 }
 0x19c   :  { %1671 = vperm.xlu1 %6827, %v507_v46   ;;  %1675 = vperm.xlu0 %6824, %v6164_v45   ;;  %v517_v49 = vpop.f32.mrf.mxu1 }
 0x19e   :  { %v6170_v50 = vpop.f32.mrf.mxu1 }
 0x1a0   :  { %6828 = vset.pattern.permute.xlu1 %v10305_v29  ;;  %6825 = vset.pattern.permute.xlu0 %v10305_v29  ;;  %v527_v51 = vpop.f32.mrf.mxu1 }
 0x1a1   :  { %676 = vperm.xlu1 %6828, %v6167_v48   ;;  %661 = vperm.xlu0 %6825, %v507_v46  }
 0x1a2   :  { %v6173_v52 = vpop.f32.mrf.mxu1 }
 0x1a4   :  { %v537_v53 = vpop.f32.mrf.mxu1 }
 0x1a5   :  { %6829 = vset.pattern.permute.xlu1 %v10307_v47  ;;  %6826 = vset.pattern.permute.xlu0 %v10303_v28 }
 0x1a6   :  { %1683 = vperm.xlu1 %6829, %v6167_v48   ;;  %1150 = vperm.xlu0 %6826, %v507_v46   ;;  %v7765_v54 = vpop.f32.mrf.mxu1 }
 0x1a8   :  { %v547_v55 = vpop.f32.mrf.mxu1 }
 0x1aa   :  { %6830 = vset.pattern.permute.xlu1 %v10305_v29  ;;  %1162 = vperm.xlu0 %6826, %v6167_v48   ;;  %v7771_v56 = vpop.f32.mrf.mxu1  ;;  %v5409_v48 = vadd.f32 -1.0, %v7840_v19 }
 0x1ab   :  { %671 = vperm.xlu1 %6830, %v517_v49  }
 0x1ac   :  { %v557_v57 = vpop.f32.mrf.mxu1 }
 0x1ae   :  { %1170 = vperm.xlu0 %6826, %v6170_v50   ;;  %v7778_v58 = vpop.f32.mrf.mxu1 }
 0x1af   :  { %6831 = vset.pattern.permute.xlu1 %v10303_v28  ;;  %10450 = vst [vmem:[#allocation14_spill] sm:$0xff] %v7778_v58 }
 0x1b0   :  { %1158 = vperm.xlu1 %6831, %v517_v49   ;;  %v567_v59 = vpop.f32.mrf.mxu1 }
 0x1b2   :  { %6835 = vset.pattern.permute.xlu0 %v10305_v29 }
 0x1b3   :  { %681 = vperm.xlu0 %6835, %v527_v51  }
 0x1b4   :  { %6832 = vset.pattern.permute.xlu1 %v10307_v47 }
 0x1b5   :  { %1679 = vperm.xlu1 %6832, %v517_v49   ;;  %v7785_v60 = vpop.f32.mrf.mxu1 }
 0x1b6   :  { %10451 = vst [vmem:[#allocation15_spill] sm:$0xff] %v7785_v60 }
 0x1b7   :  { %6837 = vset.pattern.permute.xlu0 %v10307_v47  ;;  %v577_v61 = vpop.f32.mrf.mxu1 }
 0x1b8   :  { %1687 = vperm.xlu0 %6837, %v527_v51  }
 0x1b9   :  { %6833 = vset.pattern.permute.xlu1 %v10305_v29 }
 0x1ba   :  { %686 = vperm.xlu1 %6833, %v6170_v50  }
 0x1bc   :  { %6839 = vset.pattern.permute.xlu0 %v10303_v28 }
 0x1bd   :  { %1178 = vperm.xlu0 %6839, %v6173_v52  }
 0x1be   :  { %6834 = vset.pattern.permute.xlu1 %v10307_v47 }
 0x1bf   :  { %1691 = vperm.xlu1 %6834, %v6170_v50  }
 0x1c1   :  { %6841 = vset.pattern.permute.xlu0 %v10305_v29 }
 0x1c2   :  { %691 = vperm.xlu0 %6841, %v537_v53  }
 0x1c3   :  { %6836 = vset.pattern.permute.xlu1 %v10303_v28 }
 0x1c4   :  { %1166 = vperm.xlu1 %6836, %v527_v51  }
 0x1c6   :  { %6843 = vset.pattern.permute.xlu0 %v10307_v47 }
 0x1c7   :  { %1695 = vperm.xlu0 %6843, %v537_v53  }
 0x1c8   :  { %6838 = vset.pattern.permute.xlu1 %v10305_v29 }
 0x1c9   :  { %696 = vperm.xlu1 %6838, %v6173_v52  }
 0x1cb   :  { %6846 = vset.pattern.permute.xlu0 %v10305_v29 }
 0x1cc   :  { %701 = vperm.xlu0 %6846, %v547_v55  }
 0x1cd   :  { %6840 = vset.pattern.permute.xlu1 %v10307_v47 }
 0x1ce   :  { %1699 = vperm.xlu1 %6840, %v6173_v52  }
 0x1d0   :  { %6848 = vset.pattern.permute.xlu0 %v10307_v47 }
 0x1d1   :  { %1703 = vperm.xlu0 %6848, %v547_v55  }
 0x1d2   :  { %6842 = vset.pattern.permute.xlu1 %v10303_v28 }
 0x1d3   :  { %1174 = vperm.xlu1 %6842, %v537_v53   ;;  %v7852_v53 = vmul.f32 1e+30, %v5409_v48  ;;  %v5411_v48 = vadd.f32 -1.0, %v7865_v8 }
 0x1d5   :  { %6851 = vset.pattern.permute.xlu0 %v10305_v29  ;;  %10459 = vst [vmem:[#allocation23_spill] sm:$0xff] %v7852_v53 }
 0x1d6   :  { %711 = vperm.xlu0 %6851, %v557_v57  }
 0x1d7   :  { %6844 = vset.pattern.permute.xlu1 %v10305_v29 }
 0x1d8   :  { %706 = vperm.xlu1 %6844, %v7765_v54  }
 0x1da   :  { %6853 = vset.pattern.permute.xlu0 %v10307_v47 }
 0x1db   :  { %1711 = vperm.xlu0 %6853, %v557_v57  }
 0x1dc   :  { %6845 = vset.pattern.permute.xlu1 %v10307_v47 }
 0x1dd   :  { %1707 = vperm.xlu1 %6845, %v7765_v54  }
 0x1df   :  { %6856 = vset.pattern.permute.xlu0 %v10305_v29 }
 0x1e0   :  { %721 = vperm.xlu0 %6856, %v567_v59  }
 0x1e1   :  { %6847 = vset.pattern.permute.xlu1 %v10303_v28 }
 0x1e2   :  { %1182 = vperm.xlu1 %6847, %v547_v55  }
 0x1e4   :  { %6858 = vset.pattern.permute.xlu0 %v10307_v47 }
 0x1e5   :  { %1719 = vperm.xlu0 %6858, %v567_v59  }
 0x1e6   :  { %6849 = vset.pattern.permute.xlu1 %v10305_v29 }
 0x1e7   :  { %716 = vperm.xlu1 %6849, %v7771_v56  }
 0x1e9   :  { %6860 = vset.pattern.permute.xlu0 %v10305_v29 }
 0x1ea   :  { %731 = vperm.xlu0 %6860, %v577_v61  }
 0x1eb   :  { %6850 = vset.pattern.permute.xlu1 %v10307_v47 }
 0x1ec   :  { %1715 = vperm.xlu1 %6850, %v7771_v56  }
 0x1ee   :  { %6862 = vset.pattern.permute.xlu0 %v10307_v47  ;;  %v7794_v62 = vpop.f32.mrf.mxu0 }
 0x1ef   :  { %1727 = vperm.xlu0 %6862, %v577_v61   ;;  %v7822_v7 = vrot.slane %v7794_v62, %v10302_v4  ;;  %v7844_v20 = vrot.slane %v7794_v62, %v7828_v14 }
 0x1f0   :  { %6852 = vset.pattern.permute.xlu1 %v10303_v28  ;;  %v6220_v63 = vpop.f32.mrf.mxu0 }
 0x1f1   :  { %1190 = vperm.xlu1 %6852, %v557_v57  }
 0x1f3   :  { %6864 = vset.pattern.permute.xlu0 %v10303_v28 }
 0x1f5   :  { %6854 = vset.pattern.permute.xlu1 %v10305_v29 }
 0x1f6   :  { %726 = vperm.xlu1 %6854, %v7778_v58  }
 0x1fa   :  { %6855 = vset.pattern.permute.xlu1 %v10307_v47 }
 0x1fb   :  { %1723 = vperm.xlu1 %6855, %v7778_v58  }
 0x1ff   :  { %6857 = vset.pattern.permute.xlu1 %v10303_v28 }
 0x200   :  { %1198 = vperm.xlu1 %6857, %v567_v59  }
 0x204   :  { %6859 = vset.pattern.permute.xlu1 %v10307_v47 }
 0x205   :  { %1731 = vperm.xlu1 %6859, %v7785_v60  }
 0x209   :  { %6861 = vset.pattern.permute.xlu1 %v10303_v28 }
 0x20a   :  { %1206 = vperm.xlu1 %6861, %v577_v61  }
 0x20e   :  { %6863 = vset.pattern.permute.xlu1 %v10305_v29  ;;  %v7884_v29 = vmul.f32 1e+30, %v5411_v48 }
 0x210   :  { %10462 = vst [vmem:[#allocation26_spill] sm:$0xff] %v7884_v29 }
 0x212   :  { %v1155_v9 = vpop.permute.xlu1 %1154  ;;  %v667_v10 = vpop.permute.xlu0 %666 }
 0x213   :  { %v1218_v11 = vadd.f32 %v7822_v7, %v1155_v9  ;;  %v744_v49 = vadd.f32 %v7844_v20, %v667_v10 }
 0x215   :  { %v1234_v12 = vmul.f32 0.2, %v1218_v11  ;;  %v760_v59 = vmul.f32 0.2, %v744_v49 }
 0x217   :  { %v7830_v15 = vpop.permute.xlu1 %1671  ;;  %v7832_v16 = vpop.permute.xlu0 %1675  ;;  %v1250_v17 = vmax.f32 %v1218_v11, %v1234_v12 }
 0x218   :  { %10455 = vst [vmem:[#allocation19_spill] sm:$0xff] %v7832_v16 }
 0x219   :  { %v7835_v18 = vadd.f32 %v1250_v17, %v7825_v13  ;;  %v5412_v17 = vadd.f32 -1.0, %v34_v0 }
 0x21b   :  { %10456 = vst [vmem:[#allocation20_spill] sm:$0xff] %v7835_v18  ;;  %1283 = vmax.xlane.f32.xlu0 %v7835_v18  ;;  %v7879_v0 = vmul.f32 1e+30, %v5412_v17 }
 0x21c   :  { %v677_v40 = vpop.permute.xlu1 %676  ;;  %v662_v45 = vpop.permute.xlu0 %661 }
 0x21d   :  { %v743_v46 = vadd.f32 %v7844_v20, %v662_v45  ;;  %v746_v61 = vadd.f32 %v7844_v20, %v677_v40  ;;  %10461 = vst [vmem:[#allocation25_spill] sm:$0xff] %v7879_v0 }
 0x21f   :  { %v759_v50 = vmul.f32 0.2, %v743_v46  ;;  %v762_v40 = vmul.f32 0.2, %v746_v61 }
 0x221   :  { %v7850_v51 = vpop.permute.xlu1 %1683  ;;  %v1151_v52 = vpop.permute.xlu0 %1150  ;;  %v775_v55 = vmax.f32 %v743_v46, %v759_v50  ;;  %v776_v46 = vmax.f32 %v744_v49, %v760_v59  ;;  %v36_v50 = vld [vmem:[%s10298_s1 + $0x28] sm:$0xff] }
 0x222   :  { %10458 = vst [vmem:[#allocation22_spill] sm:$0xff] %v7850_v51  ;;  %v1217_v57 = vadd.f32 %v7822_v7, %v1151_v52  ;;  %v5414_v49 = vadd.f32 -1.0, %v36_v50 }
 0x223   :  { %v7857_v63 = vadd.f32 %v775_v55, %v7852_v53 }
 0x224   :  { %v1233_v6 = vmul.f32 0.2, %v1217_v57 }
 0x225   :  { %v1163_v9 = vpop.permute.xlu0 %1162  ;;  %807 = vmax.xlane.f32.xlu0 %v7857_v63 }
 0x226   :  { %v1220_v10 = vadd.f32 %v7822_v7, %v1163_v9  ;;  %v672_v11 = vpop.permute.xlu1 %671  ;;  %v1249_v12 = vmax.f32 %v1217_v57, %v1233_v6  ;;  %v7882_v9 = vadd.f32 %v776_v46, %v7825_v13 }
 0x227   :  { %v745_v45 = vadd.f32 %v7844_v20, %v672_v11  ;;  %v778_v11 = vmax.f32 %v746_v61, %v762_v40  ;;  %v7897_v40 = vmul.f32 1e+30, %v5414_v49 }
 0x228   :  { %v1236_v52 = vmul.f32 0.2, %v1220_v10  ;;  %v7875_v55 = vadd.f32 %v1249_v12, %v7852_v53  ;;  %v7889_v12 = vld [vmem:[%s10298_s1 + $0x20] sm:$0xff] }
 0x229   :  { %v761_v4 = vmul.f32 0.2, %v745_v45  ;;  %v1171_v28 = vpop.permute.xlu0 %1170  ;;  %10463 = vst [vmem:[#allocation27_spill] sm:$0xff] %v7889_v12  ;;  %10465 = vst [vmem:[#allocation29_spill] sm:$0xff] %v7897_v40  ;;  %v5413_v48 = vadd.f32 -1.0, %v7889_v12 }
 0x22a   :  { %1281 = vmax.xlane.f32.xlu0 %v7875_v55  ;;  %v1222_v57 = vadd.f32 %v7822_v7, %v1171_v28  ;;  %v1252_v6 = vmax.f32 %v1220_v10, %v1236_v52 }
 0x22b   :  { %v1159_v59 = vpop.permute.xlu1 %1158  ;;  %v777_v10 = vmax.f32 %v745_v45, %v761_v4 }
 0x22c   :  { %v1219_v47 = vadd.f32 %v7822_v7, %v1159_v59  ;;  %v1238_v21 = vmul.f32 0.2, %v1222_v57  ;;  %v7893_v28 = vadd.f32 %v1252_v6, %v7879_v0  ;;  %v7904_v59 = vadd.f32 %v778_v11, %v7879_v0 }
 0x22d   :  { %v7907_v4 = vadd.f32 %v777_v10, %v7884_v29 }
 0x22e   :  { %10464 = vst [vmem:[#allocation28_spill] sm:$0xff] %v7893_v28  ;;  %v1235_v17 = vmul.f32 0.2, %v1219_v47  ;;  %809 = vmax.xlane.f32.xlu1 %v7882_v9  ;;  %1287 = vmax.xlane.f32.xlu0 %v7893_v28  ;;  %v682_v61 = vpop.permute.xlu0 %681  ;;  %v1254_v46 = vmax.f32 %v1222_v57, %v1238_v21  ;;  %v7914_v57 = vmul.f32 1e+30, %v5413_v48  ;;  %v7932_v48 = vld [vmem:[%s10298_s1 + $0x30] sm:$0xff] }
 0x22f   :  { %v747_v50 = vadd.f32 %v7844_v20, %v682_v61  ;;  %10469 = vst [vmem:[#allocation33_spill] sm:$0xff] %v7932_v48 }
 0x230   :  { %v7901_v52 = vpop.permute.xlu1 %1679  ;;  %v1251_v45 = vmax.f32 %v1219_v47, %v1235_v17  ;;  %v7912_v21 = vadd.f32 %v1254_v46, %v7897_v40  ;;  %10467 = vst [vmem:[#allocation31_spill] sm:$0xff] %v7914_v57 }
 0x231   :  { %v763_v6 = vmul.f32 0.2, %v747_v50 }
 0x232   :  { %813 = vmax.xlane.f32.xlu1 %v7904_v59  ;;  %811 = vmax.xlane.f32.xlu0 %v7907_v4  ;;  %10466 = vst [vmem:[#allocation30_spill] sm:$0xff] %v7912_v21  ;;  %v7919_v11 = vadd.f32 %v1251_v45, %v7884_v29 }
 0x233   :  { %v779_v49 = vmax.f32 %v747_v50, %v763_v6  ;;  %v7916_v61 = vpop.permute.xlu0 %1687  ;;  %v5415_v6 = vadd.f32 -1.0, %v7932_v48 }
 0x234   :  { %10468 = vst [vmem:[#allocation32_spill] sm:$0xff] %v7919_v11 }
 0x235   :  { %v687_v32 = vpop.permute.xlu1 %686  ;;  %v7925_v47 = vadd.f32 %v779_v49, %v7914_v57  ;;  %v7944_v13 = vmul.f32 1e+30, %v5415_v6 }
 0x236   :  { %v748_v10 = vadd.f32 %v7844_v20, %v687_v32  ;;  %1285 = vmax.xlane.f32.xlu1 %v7919_v11  ;;  %1291 = vmax.xlane.f32.xlu0 %v7912_v21 }
 0x237   :  { %10471 = vst [vmem:[#allocation35_spill] sm:$0xff] %v7944_v13 }
 0x238   :  { %v764_v17 = vmul.f32 0.2, %v748_v10  ;;  %v7927_v46 = vpop.permute.xlu0 %1178 }
 0x23a   :  { %v7934_v50 = vpop.permute.xlu1 %1691  ;;  %815 = vmax.xlane.f32.xlu0 %v7925_v47  ;;  %v780_v32 = vmax.f32 %v748_v10, %v764_v17  ;;  %v38_v17 = vld [vmem:[%s10298_s1 + $0x38] sm:$0xff] }
 0x23b   :  { %10470 = vst [vmem:[#allocation34_spill] sm:$0xff] %v7934_v50  ;;  %v5416_v38 = vadd.f32 -1.0, %v38_v17 }
 0x23c   :  { %v7938_v45 = vadd.f32 %v780_v32, %v7897_v40  ;;  %v7954_v32 = vld [vmem:[%s10298_s1 + $0x40] sm:$0xff] }
 0x23d   :  { %v692_v49 = vpop.permute.xlu0 %691  ;;  %10473 = vst [vmem:[#allocation37_spill] sm:$0xff] %v7954_v32 }
 0x23e   :  { %v749_v34 = vadd.f32 %v7844_v20, %v692_v49  ;;  %817 = vmax.xlane.f32.xlu1 %v7938_v45 }
 0x23f   :  { %v1167_v0 = vpop.permute.xlu1 %1166 }
 0x240   :  { %v765_v51 = vmul.f32 0.2, %v749_v34  ;;  %v1221_v36 = vadd.f32 %v7822_v7, %v1167_v0 }
 0x242   :  { %v1237_v50 = vmul.f32 0.2, %v1221_v36  ;;  %v7946_v16 = vpop.permute.xlu0 %1695  ;;  %v781_v10 = vmax.f32 %v749_v34, %v765_v51  ;;  %v5417_v51 = vadd.f32 -1.0, %v7954_v32 }
 0x243   :  { %10472 = vst [vmem:[#allocation36_spill] sm:$0xff] %v7946_v16 }
 0x244   :  { %v697_v49 = vpop.permute.xlu1 %696  ;;  %v7957_v40 = vadd.f32 %v781_v10, %v7944_v13  ;;  %v1253_v0 = vmax.f32 %v1221_v36, %v1237_v50  ;;  %v7969_v10 = vmul.f32 1e+30, %v5416_v38  ;;  %v7971_v17 = vmul.f32 1e+30, %v5417_v51 }
 0x245   :  { %v750_v6 = vadd.f32 %v7844_v20, %v697_v49 }
 0x246   :  { %819 = vmax.xlane.f32.xlu0 %v7957_v40  ;;  %v7962_v34 = vadd.f32 %v1253_v0, %v7914_v57  ;;  %10476 = vst [vmem:[#allocation40_spill] sm:$0xff] %v7971_v17 }
 0x247   :  { %v766_v14 = vmul.f32 0.2, %v750_v6  ;;  %v702_v19 = vpop.permute.xlu0 %701 }
 0x248   :  { %10474 = vst [vmem:[#allocation38_spill] sm:$0xff] %v7962_v34  ;;  %v751_v11 = vadd.f32 %v7844_v20, %v702_v19  ;;  %1289 = vmax.xlane.f32.xlu1 %v7962_v34  ;;  %v7982_v19 = vld [vmem:[%s10298_s1 + $0x50] sm:$0xff] }
 0x249   :  { %v7967_v8 = vpop.permute.xlu1 %1699  ;;  %v782_v36 = vmax.f32 %v750_v6, %v766_v14  ;;  %10478 = vst [vmem:[#allocation42_spill] sm:$0xff] %v7982_v19  ;;  %v40_v14 = vld [vmem:[%s10298_s1 + $0x48] sm:$0xff]  ;;  %v5419_v6 = vadd.f32 -1.0, %v7982_v19  ;;  %v43_v19 = vld [vmem:[%s10298_s1 + $0x60] sm:$0xff] }
 0x24a   :  { %10475 = vst [vmem:[#allocation39_spill] sm:$0xff] %v7967_v8  ;;  %v767_v50 = vmul.f32 0.2, %v751_v11 }
 0x24b   :  { %v7974_v49 = vadd.f32 %v782_v36, %v7969_v10  ;;  %v5418_v36 = vadd.f32 -1.0, %v40_v14  ;;  %v7994_v48 = vmul.f32 1e+30, %v5419_v6 }
 0x24c   :  { %v7976_v0 = vpop.permute.xlu0 %1703  ;;  %v783_v12 = vmax.f32 %v751_v11, %v767_v50 }
 0x24d   :  { %10477 = vst [vmem:[#allocation41_spill] sm:$0xff] %v7976_v0  ;;  %821 = vmax.xlane.f32.xlu1 %v7974_v49  ;;  %10479 = vst [vmem:[#allocation43_spill] sm:$0xff] %v7994_v48  ;;  %v7998_v21 = vmul.f32 1e+30, %v5418_v36 }
 0x24e   :  { %v1175_v8 = vpop.permute.xlu1 %1174  ;;  %v7985_v38 = vadd.f32 %v783_v12, %v7971_v17 }
 0x250   :  { %823 = vmax.xlane.f32.xlu0 %v7985_v38 }
 0x251   :  { %v712_v11 = vpop.permute.xlu0 %711 }
 0x252   :  { %v753_v51 = vadd.f32 %v7844_v20, %v712_v11 }
 0x253   :  { %v707_v50 = vpop.permute.xlu1 %706 }
 0x254   :  { %v769_v34 = vmul.f32 0.2, %v753_v51  ;;  %v752_v18 = vadd.f32 %v7844_v20, %v707_v50  ;;  %v5421_v50 = vadd.f32 -1.0, %v43_v19 }
 0x256   :  { %v768_v12 = vmul.f32 0.2, %v752_v18  ;;  %v7996_v28 = vpop.permute.xlu0 %1711  ;;  %v785_v32 = vmax.f32 %v753_v51, %v769_v34  ;;  %v8014_v24 = vmul.f32 1e+30, %v5421_v50 }
 0x257   :  { %10480 = vst [vmem:[#allocation44_spill] sm:$0xff] %v7996_v28 }
 0x258   :  { %v8003_v22 = vpop.permute.xlu1 %1707  ;;  %v8006_v14 = vadd.f32 %v785_v32, %v7994_v48  ;;  %v784_v11 = vmax.f32 %v752_v18, %v768_v12  ;;  %10482 = vst [vmem:[#allocation46_spill] sm:$0xff] %v8014_v24  ;;  %v42_v32 = vld [vmem:[%s10298_s1 + $0x58] sm:$0xff] }
 0x259   :  { %10481 = vst [vmem:[#allocation45_spill] sm:$0xff] %v8003_v22  ;;  %v5420_v12 = vadd.f32 -1.0, %v42_v32 }
 0x25a   :  { %827 = vmax.xlane.f32.xlu0 %v8006_v14  ;;  %v8010_v6 = vadd.f32 %v784_v11, %v7998_v21 }
 0x25b   :  { %v722_v28 = vpop.permute.xlu0 %721  ;;  %v8024_v58 = vmul.f32 1e+30, %v5420_v12 }
 0x25c   :  { %v755_v34 = vadd.f32 %v7844_v20, %v722_v28  ;;  %825 = vmax.xlane.f32.xlu1 %v8010_v6 }
 0x25d   :  { %v1183_v51 = vpop.permute.xlu1 %1182  ;;  %10483 = vst [vmem:[#allocation47_spill] sm:$0xff] %v8024_v58 }
 0x25e   :  { %v771_v36 = vmul.f32 0.2, %v755_v34 }
 0x260   :  { %v787_v18 = vmax.f32 %v755_v34, %v771_v36  ;;  %v44_v36 = vld [vmem:[%s10298_s1 + $0x68] sm:$0xff] }
 0x261   :  { %v5422_v32 = vadd.f32 -1.0, %v44_v36 }
 0x262   :  { %v717_v22 = vpop.permute.xlu1 %716  ;;  %v8020_v11 = vadd.f32 %v787_v18, %v8014_v24 }
 0x263   :  { %v754_v19 = vadd.f32 %v7844_v20, %v717_v22  ;;  %v1223_v22 = vadd.f32 %v7822_v7, %v1175_v8  ;;  %v8052_v8 = vpop.permute.xlu0 %1719 }
 0x264   :  { %831 = vmax.xlane.f32.xlu0 %v8020_v11  ;;  %10487 = vst [vmem:[#allocation51_spill] sm:$0xff] %v8052_v8 }
 0x265   :  { %v770_v28 = vmul.f32 0.2, %v754_v19  ;;  %v1239_v35 = vmul.f32 0.2, %v1223_v22 }
 0x267   :  { %v8026_v0 = vpop.permute.xlu1 %1715  ;;  %v786_v50 = vmax.f32 %v754_v19, %v770_v28  ;;  %v8039_v19 = vmul.f32 1e+30, %v5422_v32  ;;  %v8054_v36 = vpop.permute.xlu0 %731 }
 0x268   :  { %10484 = vst [vmem:[#allocation48_spill] sm:$0xff] %v8026_v0 }
 0x269   :  { %v8029_v16 = vadd.f32 %v786_v50, %v8024_v58  ;;  %10485 = vst [vmem:[#allocation49_spill] sm:$0xff] %v8039_v19  ;;  %v1255_v58 = vmax.f32 %v1223_v22, %v1239_v35 }
 0x26b   :  { %829 = vmax.xlane.f32.xlu1 %v8029_v16  ;;  %v8046_v57 = vadd.f32 %v1255_v58, %v7944_v13  ;;  %v8058_v32 = vpop.permute.xlu0 %1727  ;;  %v1225_v58 = vadd.f32 %v7822_v7, %v1183_v51 }
 0x26c   :  { %v8032_v34 = vpop.permute.xlu1 %1190  ;;  %10489 = vst [vmem:[#allocation53_spill] sm:$0xff] %v8058_v32 }
 0x26d   :  { %10486 = vst [vmem:[#allocation50_spill] sm:$0xff] %v8046_v57 }
 0x271   :  { %v727_v18 = vpop.permute.xlu1 %726 }
 0x272   :  { %v756_v12 = vadd.f32 %v7844_v20, %v727_v18  ;;  %v1241_v18 = vmul.f32 0.2, %v1225_v58 }
 0x274   :  { %v772_v0 = vmul.f32 0.2, %v756_v12 }
 0x276   :  { %v788_v28 = vmax.f32 %v756_v12, %v772_v0  ;;  %v8056_v0 = vpop.permute.xlu1 %1723 }
 0x277   :  { %10488 = vst [vmem:[#allocation52_spill] sm:$0xff] %v8056_v0 }
 0x278   :  { %v8042_v50 = vadd.f32 %v788_v28, %v8039_v19  ;;  %v1257_v19 = vmax.f32 %v1225_v58, %v1241_v18 }
 0x27a   :  { %833 = vmax.xlane.f32.xlu1 %v8042_v50  ;;  %v8073_v32 = vadd.f32 %v1257_v19, %v7971_v17 }
 0x27b   :  { %v8060_v35 = vpop.permute.xlu1 %1198 }
 0x27c   :  { %10492 = vst [vmem:[#allocation56_spill] sm:$0xff] %v8073_v32 }
 0x27e   :  { %1293 = vmax.xlane.f32.xlu1 %v8046_v57 }
 0x280   :  { %v8065_v12 = vpop.permute.xlu1 %1731 }
 0x281   :  { %10491 = vst [vmem:[#allocation55_spill] sm:$0xff] %v8065_v12 }
 0x285   :  { %v8068_v8 = vpop.permute.xlu1 %1206 }
 0x28f   :  { %736 = vperm.xlu1 %6863, %v7785_v60  }
 0x293   :  { %1441 = vrot.lane.b32.xlu1 %v7615_v33, %s7464_s0 }
 0x2a4   :  { %v8063_v22 = vpop.xlane.xlu0 %1283 }
 0x2a5   :  { %10490 = vst [vmem:[#allocation54_spill] sm:$0xff] %v8063_v22 }
 0x2ae   :  { %v808_v28 = vpop.xlane.xlu0 %807 }
 0x2af   :  { %v839_v57 = vsub.f32 %v7857_v63, %v808_v28 }
 0x2b1   :  { %v855_v60 = vmul.f32 1.442695, %v839_v57 }
 0x2b3   :  { %6899 = vpow2.f32 %v855_v60  ;;  %v8070_v0 = vpop.xlane.xlu0 %1281 }
 0x2b7   :  { %1297 = vmax.xlane.f32.xlu1 %v8073_v32  ;;  %v810_v51 = vpop.xlane.xlu1 %809  ;;  %v8076_v22 = vpop.xlane.xlu0 %1287 }
 0x2b8   :  { %v840_v12 = vsub.f32 %v7882_v9, %v810_v51 }
 0x2ba   :  { %v857_v33 = vmul.f32 1.442695, %v840_v12 }
 0x2bb   :  { %v814_v13 = vpop.xlane.xlu1 %813  ;;  %v812_v63 = vpop.xlane.xlu0 %811 }
 0x2bc   :  { %6901 = vpow2.f32 %v857_v33  ;;  %v842_v57 = vsub.f32 %v7904_v59, %v814_v13  ;;  %v841_v60 = vsub.f32 %v7907_v4, %v812_v63 }
 0x2be   :  { %v861_v58 = vmul.f32 1.442695, %v842_v57  ;;  %v859_v18 = vmul.f32 1.442695, %v841_v60 }
 0x2bf   :  { %v8081_v28 = vpop.xlane.xlu0 %1291  ;;  %v8086_v32 = vpop.xlane.xlu1 %1285 }
 0x2c0   :  { %v8083_v19 = vpop.eup %6899  ;;  %6903 = vpow2.f32 %v861_v58 }
 0x2c1   :  { %10493 = vst [vmem:[#allocation57_spill] sm:$0xff] %v8083_v19  ;;  %6905 = vpow2.f32 %v859_v18  ;;  %6253 = vmatprep.mubr.f32.mxu1 %v8083_v19 }
 0x2c3   :  { %v816_v9 = vpop.xlane.xlu0 %815 }
 0x2c4   :  { %v843_v12 = vsub.f32 %v7925_v47, %v816_v9 }
 0x2c6   :  { %v863_v33 = vmul.f32 1.442695, %v843_v12 }
 0x2c7   :  { %v818_v51 = vpop.xlane.xlu1 %817 }
 0x2c8   :  { %6907 = vpow2.f32 %v863_v33  ;;  %v844_v13 = vsub.f32 %v7938_v45, %v818_v51  ;;  %1437 = vrot.lane.b32.xlu1 %v7605_v31, %s7464_s0 }
 0x2c9   :  { %v8092_v59 = vpop.eup %6901 }
 0x2ca   :  { %10494 = vst [vmem:[#allocation58_spill] sm:$0xff] %v8092_v59  ;;  %v865_v4 = vmul.f32 1.442695, %v844_v13  ;;  %6254 = vmatmul.mubr.f32.vlgmr.msra.gmra.mxu1 %v8092_v59 }
 0x2cb   :  { %6278 = vmatpush3.msra.mxu1 %v7746_v44 }
 0x2cc   :  { %6909 = vpow2.f32 %v865_v4  ;;  %6279 = vmatprep.subr.mxu1 %v7813_v5 }
 0x2cd   :  { %v8097_v63 = vpop.eup %6903  ;;  %6280 = vmatpush3.msra.mxu1 %v7813_v5 }
 0x2ce   :  { %10495 = vst [vmem:[#allocation59_spill] sm:$0xff] %v8097_v63  ;;  %v8100_v47 = vpop.eup %6905  ;;  %6281 = vmatprep.subr.mxu1 %v7742_v42 }
 0x2cf   :  { %6256 = vmatprep.mubr.f32.mxu1 %v8100_v47  ;;  %6282 = vmatpush3.msra.mxu1 %v7742_v42  ;;  %v820_v45 = vpop.xlane.xlu0 %819 }
 0x2d0   :  { %6257 = vmatmul.mubr.f32.gmra.mxu1 %v8097_v63  ;;  %6283 = vmatprep.subr.mxu1 %v7744_v43  ;;  %v845_v44 = vsub.f32 %v7957_v40, %v820_v45 }
 0x2d1   :  { %6284 = vmatpush3.msra.mxu1 %v7744_v43  ;;  %v8109_v57 = vpop.xlane.xlu1 %1289 }
 0x2d2   :  { %v867_v5 = vmul.f32 1.442695, %v845_v44  ;;  %6285 = vmatprep.subr.mxu1 %v7810_v3 }
 0x2d3   :  { %6286 = vmatpush3.msra.mxu1 %v7810_v3 }
 0x2d4   :  { %6911 = vpow2.f32 %v867_v5  ;;  %6287 = vmatprep.subr.mxu1 %v7740_v41 }
 0x2d5   :  { %v8114_v42 = vpop.eup %6907  ;;  %6288 = vmatpush3.msra.mxu1 %v7740_v41  ;;  %v1227_v41 = vadd.f32 %v7822_v7, %v8032_v34 }
 0x2d6   :  { %6289 = vmatprep.subr.mxu1 %v7805_v1  ;;  %v822_v60 = vpop.xlane.xlu1 %821  ;;  %6259 = vmatprep.mubr.f32.mxu1 %v8114_v42 }
 0x2d7   :  { %v846_v43 = vsub.f32 %v7974_v49, %v822_v60  ;;  %6290 = vmatpush3.msra.mxu1 %v7805_v1  ;;  %v1243_v33 = vmul.f32 0.2, %v1227_v41 }
 0x2d9   :  { %v8121_v40 = vpop.eup %6909  ;;  %v869_v58 = vmul.f32 1.442695, %v846_v43  ;;  %v824_v3 = vpop.xlane.xlu0 %823 }
 0x2da   :  { %10496 = vst [vmem:[#allocation60_spill] sm:$0xff] %v8121_v40  ;;  %v847_v18 = vsub.f32 %v7985_v38, %v824_v3  ;;  %6260 = vmatmul.mubr.f32.gmra.mxu1 %v8121_v40  ;;  %v1259_v38 = vmax.f32 %v1227_v41, %v1243_v33 }
 0x2db   :  { %6913 = vpow2.f32 %v869_v58 }
 0x2dc   :  { %v871_v9 = vmul.f32 1.442695, %v847_v18  ;;  %v8136_v34 = vadd.f32 %v1259_v38, %v7994_v48  ;;  %v8171_v38 = vld [vmem:[%s10298_s1 + $0x70] sm:$0xff] }
 0x2de   :  { %6915 = vpow2.f32 %v871_v9 }
 0x2e1   :  { %v8127_v12 = vpop.eup %6911 }
 0x2e2   :  { %6262 = vmatprep.mubr.f32.mxu1 %v8127_v12 }
 0x2e3   :  { %v828_v1 = vpop.xlane.xlu0 %827 }
 0x2e4   :  { %v849_v49 = vsub.f32 %v8006_v14, %v828_v1 }
 0x2e5   :  { %v826_v51 = vpop.xlane.xlu1 %825 }
 0x2e6   :  { %v848_v13 = vsub.f32 %v8010_v6, %v826_v51  ;;  %v875_v4 = vmul.f32 1.442695, %v849_v49  ;;  %v8164_v51 = vld [vmem:[%s10298_s1 + $0x78] sm:$0xff] }
 0x2e8   :  { %v8132_v45 = vpop.eup %6913  ;;  %v873_v44 = vmul.f32 1.442695, %v848_v13 }
 0x2e9   :  { %6263 = vmatmul.mubr.f32.gmra.mxu1 %v8132_v45 }
 0x2ea   :  { %6917 = vpow2.f32 %v873_v44  ;;  %v5424_v44 = vadd.f32 -1.0, %v8164_v51 }
 0x2eb   :  { %v8138_v5 = vpop.eup %6915  ;;  %6919 = vpow2.f32 %v875_v4 }
 0x2ec   :  { %1301 = vmax.xlane.f32.xlu1 %v8136_v34  ;;  %6265 = vmatprep.mubr.f32.mxu1 %v8138_v5 }
 0x2ed   :  { %v832_v14 = vpop.xlane.xlu0 %831 }
 0x2ee   :  { %v851_v6 = vsub.f32 %v8020_v11, %v832_v14  ;;  %v1224_v14 = vadd.f32 %v7822_v7, %v7927_v46 }
 0x2f0   :  { %v879_v58 = vmul.f32 1.442695, %v851_v6 }
 0x2f4   :  { %v830_v60 = vpop.xlane.xlu1 %829 }
 0x2f5   :  { %v850_v43 = vsub.f32 %v8029_v16, %v830_v60 }
 0x2f7   :  { %v8144_v3 = vpop.eup %6917  ;;  %v877_v18 = vmul.f32 1.442695, %v850_v43  ;;  %v5423_v43 = vadd.f32 -1.0, %v8171_v38 }
 0x2f8   :  { %v8146_v9 = vpop.eup %6919  ;;  %6266 = vmatmul.mubr.f32.gmra.mxu1 %v8144_v3 }
 0x2f9   :  { %6921 = vpow2.f32 %v877_v18  ;;  %6268 = vmatprep.mubr.f32.mxu1 %v8146_v9 }
 0x2fa   :  { %6923 = vpow2.f32 %v879_v58 }
 0x2fd   :  { %1433 = vrot.lane.b32.xlu1 %v7595_v27, %s7464_s0 }
 0x303   :  { %v834_v41 = vpop.xlane.xlu1 %833 }
 0x304   :  { %v852_v11 = vsub.f32 %v8042_v50, %v834_v41  ;;  %v757_v50 = vadd.f32 %v7844_v20, %v8054_v36  ;;  %v8178_v36 = vmul.f32 1e+30, %v5424_v44  ;;  %v1240_v41 = vmul.f32 0.2, %v1224_v14 }
 0x306   :  { %v8153_v33 = vpop.eup %6921  ;;  %v881_v16 = vmul.f32 1.442695, %v852_v11  ;;  %v773_v6 = vmul.f32 0.2, %v757_v50  ;;  %v1256_v44 = vmax.f32 %v1224_v14, %v1240_v41 }
 0x307   :  { %v8155_v1 = vpop.eup %6923  ;;  %v8157_v49 = vpop.xlane.xlu1 %1293  ;;  %6269 = vmatmul.mubr.f32.gmra.mxu1 %v8153_v33 }
 0x308   :  { %6925 = vpow2.f32 %v881_v16  ;;  %6271 = vmatprep.mubr.f32.mxu1 %v8155_v1  ;;  %v8181_v16 = vmul.f32 1e+30, %v5423_v43  ;;  %v10354_v43 = vsub.s32 2, %v7807_v2 }
 0x30a   :  { %10497 = vst [vmem:[#allocation61_spill] sm:$0xff] %v8181_v16 }
 0x30b   :  { %v737_v13 = vpop.permute.xlu1 %736 }
 0x30c   :  { %v758_v4 = vadd.f32 %v7844_v20, %v737_v13  ;;  %v789_v20 = vmax.f32 %v757_v50, %v773_v6  ;;  %v1229_v13 = vadd.f32 %v7822_v7, %v8060_v35  ;;  %v1231_v35 = vadd.f32 %v7822_v7, %v8068_v8 }
 0x30e   :  { %v774_v60 = vmul.f32 0.2, %v758_v4  ;;  %v805_v19 = vadd.f32 %v789_v20, %v8181_v16  ;;  %v1245_v59 = vmul.f32 0.2, %v1229_v13  ;;  %v1247_v14 = vmul.f32 0.2, %v1231_v35 }
 0x30f   :  { %v1442_v58 = vpop.permute.xlu1 %1441 }
 0x310   :  { %6291 = vmatprep.subr.mxu1 %v1442_v58  ;;  %v790_v18 = vmax.f32 %v758_v4, %v774_v60  ;;  %v8190_v4 = vadd.f32 %v1256_v44, %v7969_v10  ;;  %v1261_v60 = vmax.f32 %v1229_v13, %v1245_v59  ;;  %v1263_v59 = vmax.f32 %v1231_v35, %v1247_v14 }
 0x311   :  { %6292 = vmatpush3.msra.mxu1 %v1442_v58  ;;  %v1313_v44 = vsub.f32 %v7875_v55, %v8070_v0 }
 0x312   :  { %v806_v11 = vadd.f32 %v790_v18, %v8178_v36  ;;  %v8194_v50 = vadd.f32 %v1261_v60, %v8014_v24  ;;  %v8205_v6 = vadd.f32 %v1263_v59, %v8181_v16 }
 0x313   :  { %v1329_v14 = vmul.f32 1.442695, %v1313_v44 }
 0x314   :  { %837 = vmax.xlane.f32.xlu0 %v806_v11 }
 0x315   :  { %v8185_v46 = vpop.eup %6925 }
 0x316   :  { %6272 = vmatmul.mubr.f32.gmra.mxu1 %v8185_v46 }
 0x318   :  { %835 = vmax.xlane.f32.xlu0 %v805_v19 }
 0x31c   :  { %1295 = vmax.xlane.f32.xlu0 %v8190_v4 }
 0x321   :  { %1305 = vmax.xlane.f32.xlu1 %v8194_v50 }
 0x332   :  { %1429 = vrot.lane.b32.xlu1 %v7587_v25, %s7464_s0  ;;  %1186 = vperm.xlu0 %6864, %v7765_v54   ;;  %v8214_v54 = vrot.slane %v7794_v62, %v10354_v43 }
 0x334   :  { %v1738_v8 = vadd.f32 %v8214_v54, %v7830_v15  ;;  %v1740_v55 = vadd.f32 %v8214_v54, %v7901_v52 }
 0x336   :  { %1439 = vrot.lane.b32.xlu0 %v7601_v30, %s7464_s0  ;;  %v1754_v58 = vmul.f32 0.2, %v1738_v8 }
 0x338   :  { %v1770_v18 = vmax.f32 %v1738_v8, %v1754_v58 }
 0x33a   :  { %v1786_v41 = vadd.f32 %v1770_v18, %v7852_v53 }
 0x340   :  { %v8225_v8 = vpop.xlane.xlu1 %1297 }
 0x356   :  { %1309 = vmax.xlane.f32.xlu1 %v8205_v6 }
 0x367   :  { %1425 = vrot.lane.b32.xlu1 %v7579_v23, %s7464_s0 }
 0x38b   :  { %1802 = vmax.xlane.f32.xlu1 %v1786_v41 }
 0x39c   :  { %1974 = vrot.lane.b32.xlu1 %v7648_v39, %s7466_s17 }
 0x39d   :  { %v838_v20 = vpop.xlane.xlu0 %837 }
 0x39e   :  { %v854_v13 = vsub.f32 %v806_v11, %v838_v20  ;;  %v1438_v20 = vpop.permute.xlu1 %1437 }
 0x3a0   :  { %v885_v35 = vmul.f32 1.442695, %v854_v13 }
 0x3a1   :  { %v836_v60 = vpop.xlane.xlu0 %835 }
 0x3a2   :  { %v853_v62 = vsub.f32 %v805_v19, %v836_v60 }
 0x3a4   :  { %v883_v59 = vmul.f32 1.442695, %v853_v62  ;;  %v1756_v62 = vmul.f32 0.2, %v1740_v55 }
 0x3a5   :  { %v8223_v15 = vpop.xlane.xlu0 %1295 }
 0x3a6   :  { %6927 = vpow2.f32 %v883_v59  ;;  %v1772_v52 = vmax.f32 %v1740_v55, %v1756_v62 }
 0x3a7   :  { %6929 = vpow2.f32 %v885_v35 }
 0x3a8   :  { %6931 = vpow2.f32 %v1329_v14  ;;  %v8244_v35 = vadd.f32 %v1772_v52, %v7884_v29  ;;  %v1742_v14 = vadd.f32 %v8214_v54, %v7916_v61  ;;  %v10502_v29 = vld [vmem:[#allocation35_spill] sm:$0xff] }
 0x3aa   :  { %v1758_v59 = vmul.f32 0.2, %v1742_v14 }
 0x3ad   :  { %v1187_v58 = vpop.permute.xlu0 %1186 }
 0x3ae   :  { %v1226_v39 = vadd.f32 %v7822_v7, %v1187_v58  ;;  %v1774_v58 = vmax.f32 %v1742_v14, %v1758_v59  ;;  %v10501_v59 = vld [vmem:[#allocation36_spill] sm:$0xff] }
 0x3b0   :  { %v1242_v18 = vmul.f32 0.2, %v1226_v39 }
 0x3b1   :  { %v1440_v11 = vpop.permute.xlu0 %1439 }
 0x3b2   :  { %6293 = vmatprep.subr.mxu1 %v1440_v11  ;;  %v1258_v0 = vmax.f32 %v1226_v39, %v1242_v18  ;;  %v10499_v39 = vld [vmem:[#allocation31_spill] sm:$0xff] }
 0x3b3   :  { %v8230_v19 = vpop.eup %6927  ;;  %6294 = vmatpush3.msra.mxu1 %v1440_v11  ;;  %v8255_v18 = vadd.f32 %v1774_v58, %v10499_v39  ;;  %v8258_v11 = vpop.xlane.xlu1 %1301  ;;  %v1744_v58 = vadd.f32 %v8214_v54, %v10501_v59 }
 0x3b4   :  { %v8232_v13 = vpop.eup %6929  ;;  %6274 = vmatprep.mubr.f32.mxu1 %v8230_v19  ;;  %6295 = vmatprep.subr.mxu1 %v1438_v20  ;;  %v8236_v44 = vadd.f32 %v1258_v0, %v7998_v21 }
 0x3b5   :  { %v8238_v60 = vpop.eup %6931  ;;  %6275 = vmatmul.mubr.f32.gmra.mxu1 %v8232_v13  ;;  %v1760_v43 = vmul.f32 0.2, %v1744_v58 }
 0x3b6   :  { %10498 = vst [vmem:[#allocation62_spill] sm:$0xff] %v8238_v60  ;;  %6296 = vmatpush3.msra.mxu1 %v1438_v20  ;;  %6309 = vmatprep.mubr.f32.mxu1 %v8238_v60  ;;  %v10500_v20 = vld [vmem:[#allocation11_spill] sm:$0xff] }
 0x3b7   :  { %1299 = vmax.xlane.f32.xlu0 %v8236_v44  ;;  %v1434_v55 = vpop.permute.xlu1 %1433  ;;  %v1776_v2 = vmax.f32 %v1744_v58, %v1760_v43  ;;  %v10504_v58 = vld [vmem:[#allocation47_spill] sm:$0xff] }
 0x3b9   :  { %v8274_v53 = vadd.f32 %v1776_v2, %v10502_v29  ;;  %v10505_v2 = vld [vmem:[#allocation41_spill] sm:$0xff] }
 0x3ba   :  { %v1746_v29 = vadd.f32 %v8214_v54, %v10505_v2 }
 0x3bc   :  { %v1762_v63 = vmul.f32 0.2, %v1746_v29 }
 0x3be   :  { %v1778_v40 = vmax.f32 %v1746_v29, %v1762_v63  ;;  %v10509_v63 = vld [vmem:[#allocation51_spill] sm:$0xff] }
 0x3c0   :  { %1806 = vmax.xlane.f32.xlu1 %v8244_v35 }
 0x3cd   :  { %1194 = vperm.xlu0 %6864, %v7771_v56   ;;  %v8260_v56 = vpop.xlane.xlu1 %1305 }
 0x3d1   :  { %1435 = vrot.lane.b32.xlu0 %v7591_v26, %s7464_s0  ;;  %1970 = vrot.lane.b32.xlu1 %v7635_v37, %s7466_s17  ;;  %v1430_v0 = vpop.permute.xlu1 %1429 }
 0x3df   :  { %v8264_v37 = vpop.xlane.xlu1 %1309 }
 0x3e3   :  { %v8266_v62 = vpop.permute.xlu1 %1425 }
 0x3f5   :  { %1810 = vmax.xlane.f32.xlu1 %v8255_v18 }
 0x406   :  { %1966 = vrot.lane.b32.xlu1 %v10500_v20, %s7466_s17  ;;  %v10503_v20 = vld [vmem:[#allocation9_spill] sm:$0xff] }
 0x414   :  { %v1803_v61 = vpop.xlane.xlu1 %1802 }
 0x415   :  { %v1834_v52 = vsub.f32 %v1786_v41, %v1803_v61 }
 0x417   :  { %v1850_v14 = vmul.f32 1.442695, %v1834_v52 }
 0x419   :  { %6933 = vpow2.f32 %v1850_v14 }
 0x426   :  { %v8270_v39 = vpop.eup %6933 }
 0x427   :  { %6365 = vmatprep.mubr.f32.mxu0 %v8270_v39 }
 0x42a   :  { %1814 = vmax.xlane.f32.xlu1 %v8274_v53 }
 0x43b   :  { %1962 = vrot.lane.b32.xlu1 %v10503_v20, %s7466_s17  ;;  %v8284_v20 = vadd.f32 %v1778_v40, %v7971_v17  ;;  %v1750_v40 = vadd.f32 %v8214_v54, %v10509_v63  ;;  %v10510_v63 = vld [vmem:[#allocation49_spill] sm:$0xff] }
 0x43d   :  { %v1766_v2 = vmul.f32 0.2, %v1750_v40 }
 0x440   :  { %v1300_v41 = vpop.xlane.xlu0 %1299 }
 0x448   :  { %v1195_v61 = vpop.permute.xlu0 %1194 }
 0x449   :  { %v1228_v52 = vadd.f32 %v7822_v7, %v1195_v61  ;;  %v10506_v61 = vld [vmem:[#allocation14_spill] sm:$0xff] }
 0x44b   :  { %v1244_v14 = vmul.f32 0.2, %v1228_v52 }
 0x44c   :  { %v1436_v59 = vpop.permute.xlu0 %1435 }
 0x44d   :  { %6297 = vmatprep.subr.mxu1 %v1436_v59  ;;  %v1260_v43 = vmax.f32 %v1228_v52, %v1244_v14  ;;  %v10507_v52 = vld [vmem:[#allocation7_spill] sm:$0xff] }
 0x44e   :  { %6298 = vmatpush3.msra.mxu1 %v1436_v59 }
 0x44f   :  { %6299 = vmatprep.subr.mxu1 %v1434_v55  ;;  %v1276_v60 = vadd.f32 %v1260_v43, %v10504_v58 }
 0x450   :  { %6300 = vmatpush3.msra.mxu1 %v1434_v55  ;;  %v10508_v55 = vld [vmem:[#allocation44_spill] sm:$0xff] }
 0x451   :  { %1303 = vmax.xlane.f32.xlu0 %v1276_v60  ;;  %v1748_v14 = vadd.f32 %v8214_v54, %v10508_v55 }
 0x453   :  { %v1764_v59 = vmul.f32 0.2, %v1748_v14 }
 0x455   :  { %v1780_v43 = vmax.f32 %v1748_v14, %v1764_v59 }
 0x457   :  { %v8295_v29 = vadd.f32 %v1780_v43, %v7994_v48 }
 0x45f   :  { %1818 = vmax.xlane.f32.xlu1 %v8284_v20 }
 0x467   :  { %1202 = vperm.xlu0 %6864, %v10506_v61   ;;  %v1782_v61 = vmax.f32 %v1750_v40, %v1766_v2  ;;  %v10511_v2 = vld [vmem:[#allocation53_spill] sm:$0xff] }
 0x46b   :  { %1431 = vrot.lane.b32.xlu0 %v10507_v52, %s7464_s0 }
 0x470   :  { %1958 = vrot.lane.b32.xlu1 %v7605_v31, %s7466_s17  ;;  %v8303_v31 = vadd.f32 %v1782_v61, %v8014_v24  ;;  %v1752_v61 = vadd.f32 %v8214_v54, %v10511_v2  ;;  %v1320_v2 = vsub.f32 %v8190_v4, %v8223_v15 }
 0x494   :  { %1822 = vmax.xlane.f32.xlu1 %v8295_v29 }
 0x4a5   :  { %1954 = vrot.lane.b32.xlu1 %v7595_v27, %s7466_s17 }
 0x4c9   :  { %1826 = vmax.xlane.f32.xlu1 %v8303_v31 }
 0x4da   :  { %1950 = vrot.lane.b32.xlu1 %v7587_v25, %s7466_s17  ;;  %v1304_v55 = vpop.xlane.xlu0 %1303  ;;  %v1768_v25 = vmul.f32 0.2, %v1752_v61 }
 0x4dc   :  { %v1784_v24 = vmax.f32 %v1752_v61, %v1768_v25  ;;  %v10515_v61 = vld [vmem:[#allocation42_spill] sm:$0xff]  ;;  %v1343_v25 = vmul.f32 1.442695, %v1320_v2 }
 0x4de   :  { %v8316_v17 = vadd.f32 %v1784_v24, %v8181_v16 }
 0x4e0   :  { %10512 = vst [vmem:[#allocation11_spill] sm:$0xff] %v8316_v17 }
 0x4e2   :  { %v1203_v14 = vpop.permute.xlu0 %1202 }
 0x4e3   :  { %v1230_v59 = vadd.f32 %v7822_v7, %v1203_v14  ;;  %v10513_v14 = vld [vmem:[#allocation15_spill] sm:$0xff] }
 0x4e5   :  { %v1246_v43 = vmul.f32 0.2, %v1230_v59 }
 0x4e6   :  { %v1432_v48 = vpop.permute.xlu0 %1431 }
 0x4e7   :  { %6301 = vmatprep.subr.mxu1 %v1432_v48  ;;  %v1262_v27 = vmax.f32 %v1230_v59, %v1246_v43  ;;  %v1322_v43 = vsub.f32 %v8236_v44, %v1300_v41 }
 0x4e8   :  { %6302 = vmatpush3.msra.mxu1 %v1432_v48  ;;  %v10514_v48 = vld [vmem:[#allocation6_spill] sm:$0xff] }
 0x4e9   :  { %6303 = vmatprep.subr.mxu1 %v1430_v0  ;;  %v8310_v40 = vadd.f32 %v1262_v27, %v10510_v63  ;;  %v1347_v27 = vmul.f32 1.442695, %v1322_v43  ;;  %v8352_v43 = vpop.permute.xlu1 %1974 }
 0x4ea   :  { %6304 = vmatpush3.msra.mxu1 %v1430_v0  ;;  %v1324_v0 = vsub.f32 %v1276_v60, %v1304_v55  ;;  %v10517_v60 = vld [vmem:[#allocation37_spill] sm:$0xff] }
 0x4eb   :  { %1307 = vmax.xlane.f32.xlu0 %v8310_v40  ;;  %v10519_v55 = vld [vmem:[#allocation33_spill] sm:$0xff] }
 0x4ec   :  { %v1351_v59 = vmul.f32 1.442695, %v1324_v0  ;;  %v10520_v0 = vld [vmem:[#allocation54_spill] sm:$0xff] }
 0x4ee   :  { %6935 = vpow2.f32 %v1351_v59 }
 0x4ef   :  { %6937 = vpow2.f32 %v1347_v27  ;;  %v10522_v27 = vld [vmem:[#allocation27_spill] sm:$0xff] }
 0x4f0   :  { %6939 = vpow2.f32 %v1343_v25 }
 0x4fb   :  { %v8326_v24 = vpop.eup %6935 }
 0x4fe   :  { %1830 = vmax.xlane.f32.xlu1 %v8316_v17 }
 0x501   :  { %1210 = vperm.xlu0 %6864, %v10513_v14  }
 0x505   :  { %1427 = vrot.lane.b32.xlu0 %v10514_v48, %s7464_s0 }
 0x50f   :  { %1946 = vrot.lane.b32.xlu1 %v7579_v23, %s7466_s17  ;;  %v8333_v23 = vpop.eup %6937 }
 0x510   :  { %v8340_v4 = vpop.eup %6939 }
 0x533   :  { %107 = vadd.xlane.f32.xlu1 %v8171_v38  ;;  %v10516_v38 = vld [vmem:[#allocation30_spill] sm:$0xff] }
 0x534   :  { %v1318_v44 = vsub.f32 %v10516_v38, %v8081_v28  ;;  %v10523_v38 = vld [vmem:[#allocation24_spill] sm:$0xff] }
 0x536   :  { %v1339_v41 = vmul.f32 1.442695, %v1318_v44  ;;  %v10524_v44 = vld [vmem:[#allocation32_spill] sm:$0xff] }
 0x537   :  { %1383 = vadd.xlane.f32.xlu1 %v8326_v24 }
 0x538   :  { %6941 = vpow2.f32 %v1339_v41 }
 0x53b   :  { %99 = vadd.xlane.f32.xlu1 %v10515_v61  ;;  %v8355_v61 = vpop.xlane.xlu1 %1806 }
 0x53f   :  { %907 = vadd.xlane.f32.xlu1 %v8146_v9  ;;  %v10518_v9 = vld [vmem:[#allocation28_spill] sm:$0xff] }
 0x540   :  { %v1316_v15 = vsub.f32 %v10518_v9, %v8076_v22 }
 0x542   :  { %v1335_v14 = vmul.f32 1.442695, %v1316_v15 }
 0x543   :  { %1379 = vadd.xlane.f32.xlu1 %v8333_v23 }
 0x544   :  { %6943 = vpow2.f32 %v1335_v14 }
 0x545   :  { %v8347_v28 = vpop.eup %6941 }
 0x547   :  { %95 = vadd.xlane.f32.xlu1 %v10517_v60  ;;  %v1315_v60 = vsub.f32 %v10524_v44, %v8086_v32 }
 0x549   :  { %v1333_v15 = vmul.f32 1.442695, %v1315_v60 }
 0x54b   :  { %903 = vadd.xlane.f32.xlu1 %v8138_v5  ;;  %v10521_v5 = vld [vmem:[#allocation20_spill] sm:$0xff] }
 0x54c   :  { %v1314_v59 = vsub.f32 %v10521_v5, %v10520_v0  ;;  %v10526_v0 = vld [vmem:[#allocation21_spill] sm:$0xff] }
 0x54e   :  { %v1331_v2 = vmul.f32 1.442695, %v1314_v59  ;;  %v10527_v59 = vld [vmem:[#allocation50_spill] sm:$0xff] }
 0x54f   :  { %1375 = vadd.xlane.f32.xlu1 %v8340_v4 }
 0x550   :  { %6945 = vpow2.f32 %v1331_v2 }
 0x551   :  { %v6944_v22 = vpop.eup %6943  ;;  %6947 = vpow2.f32 %v1333_v15 }
 0x553   :  { %91 = vadd.xlane.f32.xlu1 %v10519_v55 }
 0x557   :  { %899 = vadd.xlane.f32.xlu1 %v8127_v12  ;;  %v8358_v12 = vpop.permute.xlu1 %1970 }
 0x55b   :  { %1371 = vadd.xlane.f32.xlu1 %v8347_v28  ;;  %v8360_v25 = vpop.xlane.xlu1 %1810 }
 0x55d   :  { %v6946_v9 = vpop.eup %6945 }
 0x55f   :  { %87 = vadd.xlane.f32.xlu1 %v10522_v27  ;;  %v8366_v41 = vpop.permute.xlu1 %1966 }
 0x563   :  { %895 = vadd.xlane.f32.xlu1 %v8114_v42  ;;  %v10525_v42 = vld [vmem:[#allocation38_spill] sm:$0xff]  ;;  %v8370_v14 = vpop.xlane.xlu1 %1814 }
 0x564   :  { %v1317_v55 = vsub.f32 %v10525_v42, %v8109_v57 }
 0x566   :  { %v1337_v5 = vmul.f32 1.442695, %v1317_v55  ;;  %v1323_v55 = vsub.f32 %v8136_v34, %v8258_v11  ;;  %v1325_v34 = vsub.f32 %v8194_v50, %v8260_v56  ;;  %v8397_v11 = vpop.eup %6947 }
 0x567   :  { %1367 = vadd.xlane.f32.xlu1 %v6944_v22  ;;  %v8375_v2 = vpop.permute.xlu1 %1962  ;;  %10530 = vst [vmem:[#allocation36_spill] sm:$0xff] %v8397_v11 }
 0x568   :  { %6949 = vpow2.f32 %v1337_v5 }
 0x56b   :  { %83 = vadd.xlane.f32.xlu1 %v10523_v38  ;;  %v10528_v38 = vld [vmem:[#allocation56_spill] sm:$0xff]  ;;  %v8380_v42 = vpop.xlane.xlu1 %1818 }
 0x56c   :  { %v1321_v44 = vsub.f32 %v10528_v38, %v8225_v8  ;;  %v10529_v8 = vld [vmem:[#allocation18_spill] sm:$0xff]  ;;  %v1353_v38 = vmul.f32 1.442695, %v1325_v34 }
 0x56e   :  { %v1345_v15 = vmul.f32 1.442695, %v1321_v44  ;;  %v1327_v44 = vsub.f32 %v8205_v6, %v8264_v37 }
 0x56f   :  { %891 = vadd.xlane.f32.xlu1 %v8100_v47  ;;  %v1319_v47 = vsub.f32 %v10527_v59, %v8157_v49 }
 0x571   :  { %v1341_v32 = vmul.f32 1.442695, %v1319_v47  ;;  %v1349_v47 = vmul.f32 1.442695, %v1323_v55 }
 0x573   :  { %1363 = vadd.xlane.f32.xlu1 %v6946_v9  ;;  %6951 = vpow2.f32 %v1341_v32  ;;  %v8399_v32 = vpop.permute.xlu1 %1958 }
 0x574   :  { %v1308_v27 = vpop.xlane.xlu0 %1307  ;;  %6953 = vpow2.f32 %v1345_v15 }
 0x575   :  { %6955 = vpow2.f32 %v1349_v47  ;;  %v8408_v50 = vpop.eup %6949 }
 0x576   :  { %6957 = vpow2.f32 %v1353_v38 }
 0x577   :  { %79 = vadd.xlane.f32.xlu1 %v10526_v0  ;;  %v197_v0 = vld [vmem:[%s10300_s3 + $0x30] sm:$0xff]  ;;  %v8410_v56 = vpop.xlane.xlu1 %1822 }
 0x578   :  { %v8392_v59 = vrot.slane %v197_v0, %v10529_v8  ;;  %v10545_v8 = vld [vmem:[#allocation12_spill] sm:$0xff] }
 0x57b   :  { %v8417_v6 = vpop.permute.xlu1 %1954 }
 0x57c   :  { %v1211_v60 = vpop.permute.xlu0 %1210 }
 0x57d   :  { %v1232_v57 = vadd.f32 %v7822_v7, %v1211_v60 }
 0x57f   :  { %v1248_v16 = vmul.f32 0.2, %v1232_v57 }
 0x580   :  { %v1428_v49 = vpop.permute.xlu0 %1427  ;;  %v8413_v60 = vpop.eup %6951 }
 0x581   :  { %6305 = vmatprep.subr.mxu1 %v1428_v49  ;;  %v1264_v5 = vmax.f32 %v1232_v57, %v1248_v16  ;;  %v1326_v16 = vsub.f32 %v8310_v40, %v1308_v27  ;;  %v8419_v37 = vpop.eup %6953  ;;  %v1827_v40 = vpop.xlane.xlu1 %1826  ;;  %v1836_v57 = vsub.f32 %v8244_v35, %v8355_v61  ;;  %v10533_v35 = vld [vmem:[#allocation19_spill] sm:$0xff] }
 0x582   :  { %6306 = vmatpush3.msra.mxu1 %v1428_v49  ;;  %v1846_v27 = vsub.f32 %v8303_v31, %v1827_v40  ;;  %v1739_v61 = vadd.f32 %v8214_v54, %v10533_v35 }
 0x583   :  { %6307 = vmatprep.subr.mxu1 %v8266_v62  ;;  %v8389_v7 = vadd.f32 %v1264_v5, %v8178_v36  ;;  %v1854_v31 = vmul.f32 1.442695, %v1836_v57 }
 0x584   :  { %6308 = vmatpush3.msra.mxu1 %v8266_v62  ;;  %v1355_v62 = vmul.f32 1.442695, %v1326_v16  ;;  %v1874_v15 = vmul.f32 1.442695, %v1846_v27  ;;  %v1755_v5 = vmul.f32 0.2, %v1739_v61  ;;  %v8454_v16 = vpop.f32.mrf.mxu1 }
 0x585   :  { %1311 = vmax.xlane.f32.xlu0 %v8389_v7  ;;  %6310 = vmatmul.mubr.f32.vlgmr.msra.gmra.mxu1 %v6946_v9  ;;  %v1357_v9 = vmul.f32 1.442695, %v1327_v44  ;;  %v8447_v49 = vpop.permute.xlu1 %1950  ;;  %10535 = vst [vmem:[#allocation14_spill] sm:$0xff] %v8454_v16 }
 0x586   :  { %6312 = vmatprep.mubr.f32.mxu1 %v8397_v11  ;;  %6959 = vpow2.f32 %v1355_v62  ;;  %v1771_v34 = vmax.f32 %v1739_v61, %v1755_v5  ;;  %v8457_v38 = vpop.f32.mrf.mxu1  ;;  %v10537_v62 = vld [vmem:[#allocation17_spill] sm:$0xff] }
 0x587   :  { %6961 = vpow2.f32 %v1357_v9  ;;  %10536 = vst [vmem:[#allocation7_spill] sm:$0xff] %v8457_v38 }
 0x588   :  { %1635 = vrot.lane.b32.xlu1 %v8392_v59, %s7464_s0  ;;  %6963 = vpow2.f32 %v1874_v15  ;;  %v8462_v9 = vadd.f32 %v1771_v34, %v10537_v62  ;;  %v8465_v40 = vpop.f32.mrf.mxu1 }
 0x589   :  { %6313 = vmatmul.mubr.f32.gmra.mxu1 %v6944_v22  ;;  %v8423_v22 = vpop.eup %6955  ;;  %6965 = vpow2.f32 %v1854_v31  ;;  %v8452_v47 = vpop.xlane.xlu1 %1830  ;;  %10538 = vst [vmem:[#allocation44_spill] sm:$0xff] %v8465_v40 }
 0x58a   :  { %6315 = vmatprep.mubr.f32.mxu1 %v8408_v50  ;;  %10534 = vst [vmem:[#allocation41_spill] sm:$0xff] %v8452_v47  ;;  %v8469_v57 = vpop.f32.mrf.mxu1 }
 0x58d   :  { %6316 = vmatmul.mubr.f32.gmra.mxu1 %v8347_v28  ;;  %v8428_v28 = vpop.eup %6957  ;;  %v8459_v44 = vpop.permute.xlu1 %1946 }
 0x58e   :  { %6318 = vmatprep.mubr.f32.mxu1 %v8413_v60 }
 0x591   :  { %6319 = vmatmul.mubr.f32.gmra.mxu1 %v8340_v4  ;;  %v10531_v4 = vld [vmem:[#allocation13_spill] sm:$0xff] }
 0x592   :  { %6321 = vmatprep.mubr.f32.mxu1 %v8419_v37 }
 0x593   :  { %v8436_v55 = vpop.eup %6959 }
 0x595   :  { %6322 = vmatmul.mubr.f32.gmra.mxu1 %v8333_v23  ;;  %v8438_v23 = vpop.eup %6961 }
 0x596   :  { %6324 = vmatprep.mubr.f32.mxu1 %v8423_v22 }
 0x599   :  { %6325 = vmatmul.mubr.f32.gmra.mxu1 %v8326_v24  ;;  %v8442_v24 = vpop.eup %6963 }
 0x59a   :  { %6327 = vmatprep.mubr.f32.mxu1 %v8428_v28  ;;  %10532 = vst [vmem:[#allocation9_spill] sm:$0xff] %v8442_v24  ;;  %v8449_v0 = vpop.eup %6965 }
 0x59b   :  { %1976 = vrot.lane.b32.xlu0 %v10531_v4, %s7466_s17  ;;  %v8473_v4 = vpop.f32.mrf.mxu1 }
 0x59c   :  { %10541 = vst [vmem:[#allocation15_spill] sm:$0xff] %v8473_v4 }
 0x59d   :  { %6328 = vmatmul.mubr.f32.gmra.mxu1 %v8436_v55  ;;  %v1037_v31 = vpop.f32.mrf.mxu1 }
 0x59e   :  { %6330 = vmatprep.mubr.f32.mxu1 %v8438_v23 }
 0x59f   :  { %v8475_v35 = vpop.f32.mrf.mxu1 }
 0x5a0   :  { %10542 = vst [vmem:[#allocation6_spill] sm:$0xff] %v8475_v35 }
 0x5a1   :  { %v1047_v5 = vpop.f32.mrf.mxu1 }
 0x5a3   :  { %v8479_v62 = vpop.f32.mrf.mxu1 }
 0x5a4   :  { %10544 = vst [vmem:[#allocation30_spill] sm:$0xff] %v8479_v62 }
 0x5a5   :  { %v1057_v16 = vpop.f32.mrf.mxu1 }
 0x5a7   :  { %v8485_v4 = vpop.f32.mrf.mxu1 }
 0x5a8   :  { %10547 = vst [vmem:[#allocation28_spill] sm:$0xff] %v8485_v4  ;;  %v10550_v4 = vld [vmem:[#allocation22_spill] sm:$0xff] }
 0x5ac   :  { %1906 = vadd.xlane.f32.xlu1 %v8442_v24 }
 0x5b0   :  { %1886 = vadd.xlane.f32.xlu1 %v8449_v0 }
 0x5b4   :  { %1882 = vadd.xlane.f32.xlu1 %v8270_v39 }
 0x5ba   :  { %1804 = vmax.xlane.f32.xlu0 %v8462_v9 }
 0x5bc   :  { %v8467_v27 = vpop.xlane.xlu1 %107 }
 0x5bd   :  { %10539 = vst [vmem:[#allocation51_spill] sm:$0xff] %v8467_v27 }
 0x5c0   :  { %v8471_v15 = vpop.xlane.xlu1 %1383 }
 0x5c1   :  { %10540 = vst [vmem:[#allocation53_spill] sm:$0xff] %v8471_v15  ;;  %v1067_v15 = vpop.f32.mrf.mxu1 }
 0x5c4   :  { %v100_v39 = vpop.xlane.xlu1 %99 }
 0x5c5   :  { %6967 = vrcp.f32 %v100_v39 }
 0x5c8   :  { %v908_v61 = vpop.xlane.xlu1 %907 }
 0x5c9   :  { %6969 = vrcp.f32 %v908_v61 }
 0x5cc   :  { %v8477_v34 = vpop.xlane.xlu1 %1379 }
 0x5cd   :  { %10543 = vst [vmem:[#allocation42_spill] sm:$0xff] %v8477_v34 }
 0x5d0   :  { %1972 = vrot.lane.b32.xlu0 %v10545_v8, %s7466_s17  ;;  %v96_v38 = vpop.xlane.xlu1 %95 }
 0x5d1   :  { %6971 = vrcp.f32 %v96_v38 }
 0x5d2   :  { %v8483_v40 = vpop.eup %6967 }
 0x5d3   :  { %10546 = vst [vmem:[#allocation37_spill] sm:$0xff] %v8483_v40 }
 0x5d4   :  { %v904_v39 = vpop.xlane.xlu1 %903 }
 0x5d5   :  { %6973 = vrcp.f32 %v904_v39  ;;  %v1741_v39 = vadd.f32 %v8214_v54, %v10550_v4  ;;  %v10552_v4 = vld [vmem:[#allocation25_spill] sm:$0xff] }
 0x5d6   :  { %v6970_v35 = vpop.eup %6969 }
 0x5d7   :  { %v945_v61 = vmul.f32 %v6970_v35, %v8483_v40 }
 0x5d8   :  { %v8488_v27 = vpop.xlane.xlu1 %1375 }
 0x5d9   :  { %10548 = vst [vmem:[#allocation33_spill] sm:$0xff] %v8488_v27  ;;  %v1106_v34 = vmul.f32 %v1067_v15, %v945_v61  ;;  %v1757_v15 = vmul.f32 0.2, %v1741_v39 }
 0x5db   :  { %v1126_v62 = vadd.f32 %v8392_v59, %v1106_v34  ;;  %v1773_v17 = vmax.f32 %v1741_v39, %v1757_v15 }
 0x5dc   :  { %v92_v8 = vpop.xlane.xlu1 %91 }
 0x5dd   :  { %1143 = vst.msk [vmem:[#allocation2 + $0x50] sm:$0xff] %vm1132_vm3, %v1126_v62  ;;  %6975 = vrcp.f32 %v92_v8 }
 0x5de   :  { %v8492_v38 = vpop.eup %6971 }
 0x5df   :  { %10549 = vst [vmem:[#allocation54_spill] sm:$0xff] %v8492_v38 }
 0x5e0   :  { %v900_v24 = vpop.xlane.xlu1 %899 }
 0x5e1   :  { %6977 = vrcp.f32 %v900_v24  ;;  %v8504_v24 = vadd.f32 %v1773_v17, %v10552_v4 }
 0x5e2   :  { %v6974_v11 = vpop.eup %6973 }
 0x5e3   :  { %v943_v35 = vmul.f32 %v6974_v11, %v8492_v38 }
 0x5e4   :  { %v8497_v40 = vpop.xlane.xlu1 %1371 }
 0x5e5   :  { %v1104_v61 = vmul.f32 %v1057_v16, %v943_v35 }
 0x5e7   :  { %v1124_v34 = vadd.f32 %v8392_v59, %v1104_v61 }
 0x5e8   :  { %v88_v27 = vpop.xlane.xlu1 %87 }
 0x5e9   :  { %1141 = vst.msk [vmem:[#allocation2 + $0x40] sm:$0xff] %vm1132_vm3, %v1124_v34  ;;  %6979 = vrcp.f32 %v88_v27 }
 0x5ea   :  { %v8501_v62 = vpop.eup %6975 }
 0x5eb   :  { %10551 = vst [vmem:[#allocation20_spill] sm:$0xff] %v8501_v62 }
 0x5ec   :  { %v896_v8 = vpop.xlane.xlu1 %895 }
 0x5ed   :  { %6981 = vrcp.f32 %v896_v8 }
 0x5ee   :  { %v6978_v47 = vpop.eup %6977 }
 0x5ef   :  { %v941_v11 = vmul.f32 %v6978_v47, %v8501_v62  ;;  %1808 = vmax.xlane.f32.xlu0 %v8504_v24 }
 0x5f0   :  { %v8508_v16 = vpop.xlane.xlu1 %1367 }
 0x5f1   :  { %v1102_v35 = vmul.f32 %v1047_v5, %v941_v11  ;;  %v10555_v5 = vld [vmem:[#allocation10_spill] sm:$0xff] }
 0x5f3   :  { %v1122_v39 = vadd.f32 %v8392_v59, %v1102_v35 }
 0x5f4   :  { %v84_v15 = vpop.xlane.xlu1 %83 }
 0x5f5   :  { %1139 = vst.msk [vmem:[#allocation2 + $0x30] sm:$0xff] %vm1132_vm3, %v1122_v39  ;;  %6983 = vrcp.f32 %v84_v15 }
 0x5f6   :  { %v8512_v27 = vpop.eup %6979 }
 0x5f7   :  { %10553 = vst [vmem:[#allocation27_spill] sm:$0xff] %v8512_v27 }
 0x5f8   :  { %v892_v61 = vpop.xlane.xlu1 %891 }
 0x5f9   :  { %6985 = vrcp.f32 %v892_v61 }
 0x5fa   :  { %v6982_v17 = vpop.eup %6981 }
 0x5fb   :  { %v939_v34 = vmul.f32 %v6982_v17, %v8512_v27 }
 0x5fd   :  { %v1100_v8 = vmul.f32 %v1037_v31, %v939_v34 }
 0x5ff   :  { %v1120_v47 = vadd.f32 %v8392_v59, %v1100_v8  ;;  %v10556_v8 = vld [vmem:[#allocation34_spill] sm:$0xff] }
 0x601   :  { %1137 = vst.msk [vmem:[#allocation2 + $0x20] sm:$0xff] %vm1132_vm3, %v1120_v47  ;;  %v1743_v47 = vadd.f32 %v8214_v54, %v10556_v8 }
 0x602   :  { %v8517_v4 = vpop.eup %6983 }
 0x603   :  { %10554 = vst [vmem:[#allocation24_spill] sm:$0xff] %v8517_v4 }
 0x605   :  { %1968 = vrot.lane.b32.xlu0 %v10555_v5, %s7466_s17 }
 0x606   :  { %v6986_v11 = vpop.eup %6985 }
 0x607   :  { %v937_v35 = vmul.f32 %v6986_v11, %v8517_v4 }
 0x609   :  { %v1098_v39 = vmul.f32 %v8469_v57, %v937_v35  ;;  %v1759_v57 = vmul.f32 0.2, %v1743_v47  ;;  %v10557_v35 = vld [vmem:[#allocation29_spill] sm:$0xff] }
 0x60b   :  { %v1118_v15 = vadd.f32 %v8392_v59, %v1098_v39  ;;  %v1775_v5 = vmax.f32 %v1743_v47, %v1759_v57  ;;  %v10558_v39 = vld [vmem:[#allocation8_spill] sm:$0xff] }
 0x60d   :  { %1135 = vst.msk [vmem:[#allocation2 + $0x10] sm:$0xff] %vm1132_vm3, %v1118_v15 }
 0x60e   :  { %v1312_v61 = vpop.xlane.xlu0 %1311 }
 0x60f   :  { %v1328_v31 = vsub.f32 %v8389_v7, %v1312_v61  ;;  %v8534_v7 = vadd.f32 %v1775_v5, %v10557_v35  ;;  %v10560_v5 = vld [vmem:[#allocation45_spill] sm:$0xff] }
 0x611   :  { %v1359_v17 = vmul.f32 1.442695, %v1328_v31 }
 0x612   :  { %v1977_v34 = vpop.permute.xlu0 %1976 }
 0x613   :  { %6987 = vpow2.f32 %v1359_v17  ;;  %6333 = vmatprep.subr.mxu0 %v1977_v34 }
 0x614   :  { %6334 = vmatpush3.msra.mxu0 %v1977_v34 }
 0x615   :  { %6335 = vmatprep.subr.mxu0 %v8352_v43 }
 0x616   :  { %6336 = vmatpush3.msra.mxu0 %v8352_v43  ;;  %v10559_v43 = vld [vmem:[#allocation39_spill] sm:$0xff] }
 0x617   :  { %v1745_v31 = vadd.f32 %v8214_v54, %v10559_v43 }
 0x619   :  { %v1761_v17 = vmul.f32 0.2, %v1745_v31 }
 0x61b   :  { %v1777_v34 = vmax.f32 %v1745_v31, %v1761_v17  ;;  %v10561_v17 = vld [vmem:[#allocation48_spill] sm:$0xff] }
 0x61d   :  { %v8546_v8 = vadd.f32 %v1777_v34, %v7969_v10 }
 0x620   :  { %v8530_v11 = vpop.eup %6987 }
 0x621   :  { %6331 = vmatmul.mubr.f32.gmra.mxu1 %v8530_v11 }
 0x624   :  { %1812 = vmax.xlane.f32.xlu0 %v8534_v7 }
 0x63a   :  { %1964 = vrot.lane.b32.xlu0 %v10558_v39, %s7466_s17 }
 0x643   :  { %v8539_v15 = vpop.xlane.xlu0 %1804 }
 0x647   :  { %v1973_v61 = vpop.permute.xlu0 %1972 }
 0x648   :  { %6337 = vmatprep.subr.mxu0 %v1973_v61 }
 0x649   :  { %6338 = vmatpush3.msra.mxu0 %v1973_v61 }
 0x64a   :  { %6339 = vmatprep.subr.mxu0 %v8358_v12 }
 0x64b   :  { %6340 = vmatpush3.msra.mxu0 %v8358_v12  ;;  %v1747_v12 = vadd.f32 %v8214_v54, %v10560_v5 }
 0x64d   :  { %v1763_v39 = vmul.f32 0.2, %v1747_v12 }
 0x64f   :  { %v1779_v61 = vmax.f32 %v1747_v12, %v1763_v39  ;;  %v10562_v39 = vld [vmem:[#allocation52_spill] sm:$0xff] }
 0x651   :  { %v8558_v43 = vadd.f32 %v1779_v61, %v7998_v21 }
 0x659   :  { %1816 = vmax.xlane.f32.xlu0 %v8546_v8 }
 0x66f   :  { %1960 = vrot.lane.b32.xlu0 %v7601_v30, %s7466_s17 }
 0x678   :  { %v8551_v47 = vpop.xlane.xlu0 %1808 }
 0x67c   :  { %v1969_v57 = vpop.permute.xlu0 %1968 }
 0x67d   :  { %6341 = vmatprep.subr.mxu0 %v1969_v57 }
 0x67e   :  { %6342 = vmatpush3.msra.mxu0 %v1969_v57 }
 0x67f   :  { %6343 = vmatprep.subr.mxu0 %v8366_v41 }
 0x680   :  { %6344 = vmatpush3.msra.mxu0 %v8366_v41  ;;  %v1749_v41 = vadd.f32 %v8214_v54, %v10561_v17 }
 0x682   :  { %v1765_v34 = vmul.f32 0.2, %v1749_v41 }
 0x684   :  { %v1781_v57 = vmax.f32 %v1749_v41, %v1765_v34  ;;  %v10563_v34 = vld [vmem:[#allocation55_spill] sm:$0xff] }
 0x686   :  { %v8570_v5 = vadd.f32 %v1781_v57, %v10504_v58 }
 0x68e   :  { %1820 = vmax.xlane.f32.xlu0 %v8558_v43 }
 0x6a4   :  { %1956 = vrot.lane.b32.xlu0 %v7591_v26, %s7466_s17 }
 0x6ad   :  { %v8563_v30 = vpop.xlane.xlu0 %1812 }
 0x6b1   :  { %v1965_v31 = vpop.permute.xlu0 %1964 }
 0x6b2   :  { %6345 = vmatprep.subr.mxu0 %v1965_v31 }
 0x6b3   :  { %6346 = vmatpush3.msra.mxu0 %v1965_v31 }
 0x6b4   :  { %6347 = vmatprep.subr.mxu0 %v8375_v2 }
 0x6b5   :  { %6348 = vmatpush3.msra.mxu0 %v8375_v2  ;;  %v1751_v2 = vadd.f32 %v8214_v54, %v10562_v39 }
 0x6b7   :  { %v1767_v61 = vmul.f32 0.2, %v1751_v2 }
 0x6b9   :  { %v1783_v31 = vmax.f32 %v1751_v2, %v1767_v61 }
 0x6bb   :  { %v8582_v17 = vadd.f32 %v1783_v31, %v10510_v63 }
 0x6c3   :  { %1824 = vmax.xlane.f32.xlu0 %v8570_v5 }
 0x6d9   :  { %1952 = vrot.lane.b32.xlu0 %v10507_v52, %s7466_s17 }
 0x6e2   :  { %v8575_v26 = vpop.xlane.xlu0 %1816 }
 0x6e6   :  { %v1961_v12 = vpop.permute.xlu0 %1960 }
 0x6e7   :  { %6349 = vmatprep.subr.mxu0 %v1961_v12 }
 0x6e8   :  { %6350 = vmatpush3.msra.mxu0 %v1961_v12 }
 0x6e9   :  { %6351 = vmatprep.subr.mxu0 %v8399_v32 }
 0x6ea   :  { %6352 = vmatpush3.msra.mxu0 %v8399_v32  ;;  %v1753_v32 = vadd.f32 %v8214_v54, %v10563_v34  ;;  %v7379_v54 = vld [vmem:[%s10298_s1 + $0x68] sm:$0xff] }
 0x6ec   :  { %v1769_v57 = vmul.f32 0.2, %v1753_v32 }
 0x6ee   :  { %v1785_v12 = vmax.f32 %v1753_v32, %v1769_v57  ;;  %v10568_v57 = vld [vmem:[#allocation36_spill] sm:$0xff] }
 0x6f0   :  { %v8594_v39 = vadd.f32 %v1785_v12, %v8178_v36 }
 0x6f8   :  { %1828 = vmax.xlane.f32.xlu0 %v8582_v17 }
 0x70e   :  { %1948 = vrot.lane.b32.xlu0 %v10514_v48, %s7466_s17 }
 0x717   :  { %v8587_v52 = vpop.xlane.xlu0 %1820 }
 0x71b   :  { %v1957_v41 = vpop.permute.xlu0 %1956 }
 0x71c   :  { %6353 = vmatprep.subr.mxu0 %v1957_v41 }
 0x71d   :  { %6354 = vmatpush3.msra.mxu0 %v1957_v41 }
 0x71e   :  { %6355 = vmatprep.subr.mxu0 %v8417_v6 }
 0x71f   :  { %6356 = vmatpush3.msra.mxu0 %v8417_v6  ;;  %v7383_v6 = vld [vmem:[%s10298_s1 + $0x38] sm:$0xff] }
 0x72d   :  { %1832 = vmax.xlane.f32.xlu0 %v8594_v39 }
 0x731   :  { %109 = vadd.xlane.f32.xlu0 %v8164_v51 }
 0x735   :  { %1391 = vadd.xlane.f32.xlu0 %v8530_v11  ;;  %v1844_v11 = vsub.f32 %v8295_v29, %v8410_v56  ;;  %v8662_v29 = vpop.f32.mrf.mxu1 }
 0x739   :  { %917 = vadd.xlane.f32.xlu0 %v8232_v13  ;;  %v7380_v13 = vld [vmem:[%s10298_s1 + $0x60] sm:$0xff] }
 0x73d   :  { %1389 = vadd.xlane.f32.xlu0 %v8438_v23  ;;  %v1840_v23 = vsub.f32 %v8274_v53, %v8370_v14  ;;  %v1843_v14 = vsub.f32 %v8558_v43, %v8587_v52  ;;  %v10567_v52 = vld [vmem:[#allocation59_spill] sm:$0xff] }
 0x741   :  { %915 = vadd.xlane.f32.xlu0 %v8230_v19  ;;  %v7382_v19 = vld [vmem:[%s10298_s1 + $0x48] sm:$0xff] }
 0x745   :  { %105 = vadd.xlane.f32.xlu0 %v7379_v54 }
 0x749   :  { %1387 = vadd.xlane.f32.xlu0 %v8436_v55 }
 0x74c   :  { %v8606_v48 = vpop.xlane.xlu0 %1824 }
 0x74d   :  { %913 = vadd.xlane.f32.xlu0 %v8185_v46  ;;  %v7381_v46 = vld [vmem:[%s10298_s1 + $0x58] sm:$0xff] }
 0x750   :  { %v1953_v51 = vpop.permute.xlu0 %1952 }
 0x751   :  { %103 = vadd.xlane.f32.xlu0 %v7380_v13  ;;  %6357 = vmatprep.subr.mxu0 %v1953_v51  ;;  %v7386_v13 = vld [vmem:[%s10298_s1 + $0x8] sm:$0xff] }
 0x752   :  { %6358 = vmatpush3.msra.mxu0 %v1953_v51 }
 0x753   :  { %6359 = vmatprep.subr.mxu0 %v8447_v49 }
 0x754   :  { %6360 = vmatpush3.msra.mxu0 %v8447_v49 }
 0x755   :  { %1385 = vadd.xlane.f32.xlu0 %v8428_v28  ;;  %v1838_v28 = vsub.f32 %v8255_v18, %v8360_v25  ;;  %v1862_v18 = vmul.f32 1.442695, %v1840_v23  ;;  %v7384_v25 = vld [vmem:[%s10298_s1 + $0x28] sm:$0xff]  ;;  %v10572_v23 = vld [vmem:[#allocation57_spill] sm:$0xff] }
 0x757   :  { %v1858_v55 = vmul.f32 1.442695, %v1838_v28 }
 0x759   :  { %911 = vadd.xlane.f32.xlu0 %v8155_v1  ;;  %v1835_v1 = vsub.f32 %v8462_v9, %v8539_v15  ;;  %v1841_v9 = vsub.f32 %v8546_v8, %v8575_v26  ;;  %v10566_v26 = vld [vmem:[#allocation11_spill] sm:$0xff] }
 0x75b   :  { %v1864_v53 = vmul.f32 1.442695, %v1841_v9 }
 0x75d   :  { %101 = vadd.xlane.f32.xlu0 %v7381_v46 }
 0x761   :  { %909 = vadd.xlane.f32.xlu0 %v8153_v33  ;;  %v1852_v33 = vmul.f32 1.442695, %v1835_v1 }
 0x763   :  { %6989 = vpow2.f32 %v1852_v33  ;;  %v10570_v33 = vld [vmem:[#allocation9_spill] sm:$0xff] }
 0x765   :  { %1381 = vadd.xlane.f32.xlu0 %v8423_v22  ;;  %v1837_v22 = vsub.f32 %v8504_v24, %v8551_v47  ;;  %v1870_v47 = vmul.f32 1.442695, %v1844_v11 }
 0x769   :  { %97 = vadd.xlane.f32.xlu0 %v7382_v19 }
 0x76d   :  { %905 = vadd.xlane.f32.xlu0 %v8144_v3  ;;  %v1856_v3 = vmul.f32 1.442695, %v1837_v22 }
 0x76f   :  { %6991 = vpow2.f32 %v1856_v3  ;;  %v10571_v3 = vld [vmem:[#allocation62_spill] sm:$0xff] }
 0x770   :  { %6993 = vpow2.f32 %v1858_v55  ;;  %v8656_v8 = vpop.eup %6989 }
 0x771   :  { %1377 = vadd.xlane.f32.xlu0 %v8419_v37  ;;  %v1839_v37 = vsub.f32 %v8534_v7, %v8563_v30  ;;  %v10564_v7 = vld [vmem:[#allocation60_spill] sm:$0xff] }
 0x773   :  { %v1860_v49 = vmul.f32 1.442695, %v1839_v37 }
 0x775   :  { %93 = vadd.xlane.f32.xlu0 %v7383_v6  ;;  %6995 = vpow2.f32 %v1860_v49  ;;  %v10569_v6 = vld [vmem:[#allocation58_spill] sm:$0xff] }
 0x776   :  { %6997 = vpow2.f32 %v1862_v18 }
 0x777   :  { %6999 = vpow2.f32 %v1864_v53 }
 0x779   :  { %901 = vadd.xlane.f32.xlu0 %v8132_v45  ;;  %v1842_v45 = vsub.f32 %v8284_v20, %v8380_v42  ;;  %v1868_v20 = vmul.f32 1.442695, %v1843_v14  ;;  %v1845_v42 = vsub.f32 %v8570_v5, %v8606_v48  ;;  %v10565_v5 = vld [vmem:[#allocation41_spill] sm:$0xff] }
 0x77a   :  { %v1848_v2 = vsub.f32 %v10566_v26, %v10565_v5 }
 0x77b   :  { %v1872_v56 = vmul.f32 1.442695, %v1845_v42 }
 0x77c   :  { %v8665_v30 = vpop.eup %6991 }
 0x77d   :  { %1373 = vadd.xlane.f32.xlu0 %v8413_v60  ;;  %v1866_v60 = vmul.f32 1.442695, %v1842_v45 }
 0x77f   :  { %7001 = vpow2.f32 %v1866_v60 }
 0x780   :  { %7003 = vpow2.f32 %v1868_v20 }
 0x781   :  { %89 = vadd.xlane.f32.xlu0 %v7384_v25  ;;  %v1829_v24 = vpop.xlane.xlu0 %1828  ;;  %7005 = vpow2.f32 %v1870_v47  ;;  %v10573_v47 = vld [vmem:[#allocation51_spill] sm:$0xff] }
 0x782   :  { %v1847_v43 = vsub.f32 %v8582_v17, %v1829_v24  ;;  %7007 = vpow2.f32 %v1872_v56  ;;  %v1878_v17 = vmul.f32 1.442695, %v1848_v2  ;;  %v8738_v56 = vpop.xlane.xlu1 %1363 }
 0x784   :  { %v1876_v61 = vmul.f32 1.442695, %v1847_v43 }
 0x785   :  { %897 = vadd.xlane.f32.xlu0 %v10564_v7  ;;  %v1949_v15 = vpop.permute.xlu0 %1948 }
 0x786   :  { %6361 = vmatprep.subr.mxu0 %v1949_v15  ;;  %7009 = vpow2.f32 %v1876_v61  ;;  %v8742_v2 = vpop.xlane.xlu1 %79 }
 0x787   :  { %6362 = vmatpush3.msra.mxu0 %v1949_v15  ;;  %7011 = vpow2.f32 %v1878_v17 }
 0x788   :  { %6363 = vmatprep.subr.mxu0 %v8459_v44 }
 0x789   :  { %1369 = vadd.xlane.f32.xlu0 %v8408_v50  ;;  %6364 = vmatpush3.msra.mxu0 %v8459_v44  ;;  %v7385_v50 = vld [vmem:[%s10298_s1 + $0x18] sm:$0xff]  ;;  %v8672_v44 = vpop.eup %6993 }
 0x78a   :  { %6366 = vmatmul.mubr.f32.vlgmr.msra.gmra.mxu0 %v8656_v8  ;;  %v8678_v31 = vpop.eup %6995 }
 0x78b   :  { %6368 = vmatprep.mubr.f32.mxu0 %v8449_v0  ;;  %v8676_v0 = vpop.f32.mrf.mxu1  ;;  %v8681_v41 = vpop.eup %6997 }
 0x78c   :  { %v8687_v32 = vpop.eup %6999 }
 0x78d   :  { %85 = vadd.xlane.f32.xlu0 %v7385_v50  ;;  %v8683_v34 = vpop.f32.mrf.mxu1  ;;  %v8690_v12 = vpop.eup %7001 }
 0x78e   :  { %6369 = vmatmul.mubr.f32.gmra.mxu0 %v8665_v30  ;;  %v8698_v51 = vpop.eup %7003 }
 0x78f   :  { %6371 = vmatprep.mubr.f32.mxu0 %v8672_v44  ;;  %v8692_v54 = vpop.f32.mrf.mxu1  ;;  %v8703_v46 = vpop.eup %7005 }
 0x790   :  { %v8709_v1 = vpop.eup %7007 }
 0x791   :  { %893 = vadd.xlane.f32.xlu0 %v10567_v52  ;;  %v8696_v48 = vpop.f32.mrf.mxu1 }
 0x792   :  { %6372 = vmatmul.mubr.f32.gmra.mxu0 %v8678_v31 }
 0x793   :  { %6374 = vmatprep.mubr.f32.mxu0 %v8681_v41  ;;  %v8707_v19 = vpop.f32.mrf.mxu1  ;;  %v7010_v28 = vpop.eup %7009 }
 0x794   :  { %v7012_v37 = vpop.eup %7011 }
 0x795   :  { %1365 = vadd.xlane.f32.xlu0 %v10568_v57  ;;  %v8714_v22 = vpop.f32.mrf.mxu1 }
 0x796   :  { %6375 = vmatmul.mubr.f32.gmra.mxu0 %v8687_v32 }
 0x797   :  { %6377 = vmatprep.mubr.f32.mxu0 %v8690_v12  ;;  %v8717_v55 = vpop.f32.mrf.mxu1 }
 0x799   :  { %81 = vadd.xlane.f32.xlu0 %v7386_v13  ;;  %v8720_v49 = vpop.f32.mrf.mxu1 }
 0x79a   :  { %6378 = vmatmul.mubr.f32.gmra.mxu0 %v8698_v51 }
 0x79b   :  { %6380 = vmatprep.mubr.f32.mxu0 %v8703_v46  ;;  %v8722_v9 = vpop.f32.mrf.mxu1 }
 0x79d   :  { %889 = vadd.xlane.f32.xlu0 %v10569_v6  ;;  %v8724_v18 = vpop.f32.mrf.mxu1 }
 0x79e   :  { %6381 = vmatmul.mubr.f32.gmra.mxu0 %v8709_v1 }
 0x79f   :  { %6383 = vmatprep.mubr.f32.mxu0 %v10570_v33  ;;  %v8726_v45 = vpop.f32.mrf.mxu1 }
 0x7a1   :  { %1361 = vadd.xlane.f32.xlu0 %v10571_v3  ;;  %v8729_v53 = vpop.f32.mrf.mxu1  ;;  %v8747_v3 = vpop.permute.xlu1 %1635 }
 0x7a2   :  { %6384 = vmatmul.mubr.f32.gmra.mxu0 %v7010_v28 }
 0x7a3   :  { %6386 = vmatprep.mubr.f32.mxu0 %v7012_v37  ;;  %v8731_v11 = vpop.f32.mrf.mxu1 }
 0x7a5   :  { %887 = vadd.xlane.f32.xlu0 %v10572_v23  ;;  %v8733_v15 = vpop.f32.mrf.mxu1 }
 0x7a7   :  { %v8735_v42 = vpop.f32.mrf.mxu1 }
 0x7a9   :  { %v6329_v5 = vpop.f32.mrf.mxu1 }
 0x7ab   :  { %v8744_v17 = vpop.f32.mrf.mxu1 }
 0x7ad   :  { %v6332_v57 = vpop.f32.mrf.mxu1 }
 0x7b6   :  { %v1833_v25 = vpop.xlane.xlu0 %1832 }
 0x7b7   :  { %v1849_v24 = vsub.f32 %v8594_v39, %v1833_v25 }
 0x7b9   :  { %v1880_v14 = vmul.f32 1.442695, %v1849_v24 }
 0x7ba   :  { %v110_v60 = vpop.xlane.xlu0 %109 }
 0x7bb   :  { %7013 = vpow2.f32 %v1880_v14 }
 0x7bc   :  { %7015 = vrcp.f32 %v110_v60 }
 0x7be   :  { %v1392_v7 = vpop.xlane.xlu0 %1391 }
 0x7bf   :  { %7017 = vrcp.f32 %v1392_v7 }
 0x7c2   :  { %v918_v20 = vpop.xlane.xlu0 %917 }
 0x7c3   :  { %7019 = vrcp.f32 %v918_v20 }
 0x7c4   :  { %7021 = vrcp.f32 %v10573_v47  ;;  %v1609_v47 = vpop.f32.mrf.mxu1 }
 0x7c6   :  { %v1390_v39 = vpop.xlane.xlu0 %1389 }
 0x7c7   :  { %7023 = vrcp.f32 %v1390_v39 }
 0x7c8   :  { %v7014_v43 = vpop.eup %7013 }
 0x7c9   :  { %1912 = vadd.xlane.f32.xlu0 %v7014_v43  ;;  %6387 = vmatmul.mubr.f32.gmra.mxu0 %v7014_v43  ;;  %v8740_v26 = vpop.eup %7015 }
 0x7ca   :  { %10574 = vst [vmem:[#allocation32_spill] sm:$0xff] %v8740_v26  ;;  %v916_v50 = vpop.xlane.xlu0 %915 }
 0x7cb   :  { %7025 = vrcp.f32 %v916_v50 }
 0x7cc   :  { %v7018_v61 = vpop.eup %7017 }
 0x7cd   :  { %v1424_v52 = vmul.f32 %v7018_v61, %v8740_v26  ;;  %1910 = vadd.xlane.f32.xlu0 %v7012_v37 }
 0x7ce   :  { %v106_v13 = vpop.xlane.xlu0 %105 }
 0x7cf   :  { %v1633_v6 = vmul.f32 %v6332_v57, %v1424_v52  ;;  %7027 = vrcp.f32 %v106_v13 }
 0x7d0   :  { %v7020_v33 = vpop.eup %7019 }
 0x7d1   :  { %v1653_v23 = vadd.f32 %v8747_v3, %v1633_v6  ;;  %v950_v25 = vmul.f32 %v7020_v33, %v8740_v26  ;;  %1908 = vadd.xlane.f32.xlu0 %v7010_v28  ;;  %v8751_v24 = vpop.eup %7021 }
 0x7d2   :  { %10575 = vst [vmem:[#allocation38_spill] sm:$0xff] %v8751_v24  ;;  %v1388_v14 = vpop.xlane.xlu0 %1387 }
 0x7d3   :  { %1669 = vst.msk [vmem:[#allocation2 + $0xf8] sm:$0xff] %vm1132_vm3, %v1653_v23  ;;  %v1111_v60 = vmul.f32 %v8683_v34, %v950_v25  ;;  %7029 = vrcp.f32 %v1388_v14 }
 0x7d4   :  { %v7024_v37 = vpop.eup %7023 }
 0x7d5   :  { %v1131_v7 = vadd.f32 %v8392_v59, %v1111_v60  ;;  %v1423_v20 = vmul.f32 %v7024_v37, %v8751_v24  ;;  %1904 = vadd.xlane.f32.xlu0 %v8709_v1 }
 0x7d6   :  { %v914_v39 = vpop.xlane.xlu0 %913 }
 0x7d7   :  { %1148 = vst.msk [vmem:[#allocation2 + $0x78] sm:$0xff] %vm1132_vm3, %v1131_v7  ;;  %v1632_v28 = vmul.f32 %v1609_v47, %v1423_v20  ;;  %7031 = vrcp.f32 %v914_v39  ;;  %v10577_v7 = vld [vmem:[#allocation53_spill] sm:$0xff] }
 0x7d8   :  { %v7026_v43 = vpop.eup %7025 }
 0x7d9   :  { %v1652_v50 = vadd.f32 %v8747_v3, %v1632_v28  ;;  %v949_v61 = vmul.f32 %v7026_v43, %v8751_v24  ;;  %1902 = vadd.xlane.f32.xlu0 %v8703_v46 }
 0x7da   :  { %v104_v34 = vpop.xlane.xlu0 %103  ;;  %v2221_v52 = vld [vmem:[#allocation2 + $0xf8] sm:$0xff] }
 0x7db   :  { %1668 = vst.msk [vmem:[#allocation2 + $0xf0] sm:$0xff] %vm1132_vm3, %v1652_v50  ;;  %v1110_v57 = vmul.f32 %v8692_v54, %v949_v61  ;;  %5721 = vmatprep.subr.mxu1 %v2221_v52  ;;  %7033 = vrcp.f32 %v104_v34 }
 0x7dc   :  { %v8766_v13 = vpop.eup %7027 }
 0x7dd   :  { %v1130_v1 = vadd.f32 %v8392_v59, %v1110_v57  ;;  %1900 = vadd.xlane.f32.xlu0 %v8698_v51  ;;  %10576 = vst [vmem:[#allocation21_spill] sm:$0xff] %v8766_v13  ;;  %v10579_v57 = vld [vmem:[#allocation42_spill] sm:$0xff] }
 0x7de   :  { %v1386_v6 = vpop.xlane.xlu0 %1385  ;;  %v2205_v33 = vld [vmem:[#allocation2 + $0x78] sm:$0xff] }
 0x7df   :  { %1147 = vst.msk [vmem:[#allocation2 + $0x70] sm:$0xff] %vm1132_vm3, %v1130_v1  ;;  %7035 = vrcp.f32 %v1386_v6  ;;  %5722 = vmatpush3.msra.mxu1 %v2205_v33 }
 0x7e0   :  { %v7030_v46 = vpop.eup %7029 }
 0x7e1   :  { %v1422_v23 = vmul.f32 %v7030_v46, %v8766_v13  ;;  %1898 = vadd.xlane.f32.xlu0 %v8690_v12 }
 0x7e2   :  { %v912_v54 = vpop.xlane.xlu0 %911  ;;  %v2220_v25 = vld [vmem:[#allocation2 + $0xf0] sm:$0xff] }
 0x7e3   :  { %v1631_v14 = vmul.f32 %v6329_v5, %v1422_v23  ;;  %7037 = vrcp.f32 %v912_v54  ;;  %5723 = vmatprep.subr.mxu1 %v2220_v25 }
 0x7e4   :  { %v7032_v51 = vpop.eup %7031  ;;  %7039 = vrcp.f32 %v10577_v7 }
 0x7e5   :  { %v1651_v60 = vadd.f32 %v8747_v3, %v1631_v14  ;;  %v948_v37 = vmul.f32 %v7032_v51, %v8766_v13  ;;  %1896 = vadd.xlane.f32.xlu0 %v8687_v32 }
 0x7e6   :  { %v102_v20 = vpop.xlane.xlu0 %101  ;;  %v2204_v47 = vld [vmem:[#allocation2 + $0x70] sm:$0xff] }
 0x7e7   :  { %1667 = vst.msk [vmem:[#allocation2 + $0xe8] sm:$0xff] %vm1132_vm3, %v1651_v60  ;;  %v1109_v12 = vmul.f32 %v8662_v29, %v948_v37  ;;  %7041 = vrcp.f32 %v102_v20  ;;  %5724 = vmatpush3.msra.mxu1 %v2204_v47  ;;  %v10581_v37 = vld [vmem:[#allocation28_spill] sm:$0xff]  ;;  %v10582_v47 = vld [vmem:[#allocation37_spill] sm:$0xff] }
 0x7e8   :  { %v8779_v28 = vpop.eup %7033 }
 0x7e9   :  { %v1129_v5 = vadd.f32 %v8392_v59, %v1109_v12  ;;  %1894 = vadd.xlane.f32.xlu0 %v8681_v41  ;;  %10578 = vst [vmem:[#allocation50_spill] sm:$0xff] %v8779_v28  ;;  %v10583_v12 = vld [vmem:[#allocation33_spill] sm:$0xff] }
 0x7ea   :  { %v910_v39 = vpop.xlane.xlu0 %909 }
 0x7eb   :  { %1146 = vst.msk [vmem:[#allocation2 + $0x68] sm:$0xff] %vm1132_vm3, %v1129_v5  ;;  %7043 = vrcp.f32 %v910_v39 }
 0x7ec   :  { %v7036_v32 = vpop.eup %7035 }
 0x7ed   :  { %v1421_v43 = vmul.f32 %v7036_v32, %v8779_v28  ;;  %1892 = vadd.xlane.f32.xlu0 %v8678_v31 }
 0x7ee   :  { %v1382_v50 = vpop.xlane.xlu0 %1381  ;;  %v2219_v61 = vld [vmem:[#allocation2 + $0xe8] sm:$0xff] }
 0x7ef   :  { %v1630_v29 = vmul.f32 %v8744_v17, %v1421_v43  ;;  %7045 = vrcp.f32 %v1382_v50  ;;  %5725 = vmatprep.subr.mxu1 %v2219_v61 }
 0x7f0   :  { %v7038_v34 = vpop.eup %7037  ;;  %7047 = vrcp.f32 %v10579_v57 }
 0x7f1   :  { %v1650_v41 = vadd.f32 %v8747_v3, %v1630_v29  ;;  %v947_v52 = vmul.f32 %v7038_v34, %v8779_v28  ;;  %1890 = vadd.xlane.f32.xlu0 %v8672_v44  ;;  %v7040_v33 = vpop.eup %7039 }
 0x7f2   :  { %v98_v1 = vpop.xlane.xlu0 %97  ;;  %v2203_v6 = vld [vmem:[#allocation2 + $0x68] sm:$0xff] }
 0x7f3   :  { %1666 = vst.msk [vmem:[#allocation2 + $0xe0] sm:$0xff] %vm1132_vm3, %v1650_v41  ;;  %v1108_v31 = vmul.f32 %v8676_v0, %v947_v52  ;;  %7049 = vrcp.f32 %v98_v1  ;;  %5726 = vmatpush3.msra.mxu1 %v2203_v6 }
 0x7f4   :  { %v8791_v17 = vpop.eup %7041 }
 0x7f5   :  { %10580 = vst [vmem:[#allocation56_spill] sm:$0xff] %v8791_v17  ;;  %v1128_v46 = vadd.f32 %v8392_v59, %v1108_v31  ;;  %1888 = vadd.xlane.f32.xlu0 %v8665_v30  ;;  %v1420_v23 = vmul.f32 %v8791_v17, %v7040_v33  ;;  %v10585_v33 = vld [vmem:[#allocation30_spill] sm:$0xff] }
 0x7f6   :  { %v906_v44 = vpop.xlane.xlu0 %905 }
 0x7f7   :  { %1145 = vst.msk [vmem:[#allocation2 + $0x60] sm:$0xff] %vm1132_vm3, %v1128_v46  ;;  %7051 = vrcp.f32 %v906_v44  ;;  %v1629_v54 = vmul.f32 %v8733_v15, %v1420_v23 }
 0x7f8   :  { %v7044_v25 = vpop.eup %7043 }
 0x7f9   :  { %v946_v14 = vmul.f32 %v7044_v25, %v8791_v17  ;;  %1884 = vadd.xlane.f32.xlu0 %v8656_v8  ;;  %v1649_v0 = vadd.f32 %v8747_v3, %v1629_v54 }
 0x7fa   :  { %v1378_v51 = vpop.xlane.xlu0 %1377  ;;  %v2218_v60 = vld [vmem:[#allocation2 + $0xe0] sm:$0xff] }
 0x7fb   :  { %v1107_v7 = vmul.f32 %v10581_v37, %v946_v14  ;;  %7053 = vrcp.f32 %v1378_v51  ;;  %5727 = vmatprep.subr.mxu1 %v2218_v60  ;;  %1665 = vst.msk [vmem:[#allocation2 + $0xd8] sm:$0xff] %vm1132_vm3, %v1649_v0  ;;  %v2200_v0 = vld [vmem:[#allocation2 + $0x50] sm:$0xff] }
 0x7fc   :  { %v7046_v30 = vpop.eup %7045  ;;  %7055 = vrcp.f32 %v10583_v12 }
 0x7fd   :  { %v1127_v20 = vadd.f32 %v8392_v59, %v1107_v7  ;;  %v1419_v15 = vmul.f32 %v7046_v30, %v10582_v47  ;;  %v7048_v8 = vpop.eup %7047 }
 0x7fe   :  { %v94_v5 = vpop.xlane.xlu0 %93  ;;  %v2202_v39 = vld [vmem:[#allocation2 + $0x60] sm:$0xff] }
 0x7ff   :  { %1144 = vst.msk [vmem:[#allocation2 + $0x58] sm:$0xff] %vm1132_vm3, %v1127_v20  ;;  %v1628_v32 = vmul.f32 %v8735_v42, %v1419_v15  ;;  %7057 = vrcp.f32 %v94_v5  ;;  %5728 = vmatpush3.msra.mxu1 %v2202_v39  ;;  %v10587_v39 = vld [vmem:[#allocation6_spill] sm:$0xff] }
 0x800   :  { %v8808_v43 = vpop.eup %7049 }
 0x801   :  { %10584 = vst [vmem:[#allocation13_spill] sm:$0xff] %v8808_v43  ;;  %v1648_v50 = vadd.f32 %v8747_v3, %v1628_v32  ;;  %v1418_v61 = vmul.f32 %v8808_v43, %v7048_v8  ;;  %v128_v32 = vld [vmem:[#allocation3 + $0x8] sm:$0xff] }
 0x802   :  { %v902_v29 = vpop.xlane.xlu0 %901  ;;  %v2217_v34 = vld [vmem:[#allocation2 + $0xd8] sm:$0xff]  ;;  %2302 = vmatprep.mubr.f32.mxu1 %v128_v32 }
 0x803   :  { %1664 = vst.msk [vmem:[#allocation2 + $0xd0] sm:$0xff] %vm1132_vm3, %v1648_v50  ;;  %7059 = vrcp.f32 %v902_v29  ;;  %5729 = vmatprep.subr.mxu1 %v2217_v34  ;;  %v1627_v41 = vmul.f32 %v8729_v53, %v1418_v61 }
 0x804   :  { %v7052_v52 = vpop.eup %7051 }
 0x805   :  { %v944_v57 = vmul.f32 %v7052_v52, %v8808_v43  ;;  %v1647_v42 = vadd.f32 %v8747_v3, %v1627_v41 }
 0x806   :  { %v1374_v1 = vpop.xlane.xlu0 %1373  ;;  %v2201_v6 = vld [vmem:[#allocation2 + $0x58] sm:$0xff] }
 0x807   :  { %v1105_v31 = vmul.f32 %v10585_v33, %v944_v57  ;;  %7061 = vrcp.f32 %v1374_v1  ;;  %5730 = vmatpush3.msra.mxu1 %v2201_v6  ;;  %1663 = vst.msk [vmem:[#allocation2 + $0xc8] sm:$0xff] %vm1132_vm3, %v1647_v42  ;;  %v2198_v57 = vld [vmem:[#allocation2 + $0x40] sm:$0xff] }
 0x808   :  { %v7054_v46 = vpop.eup %7053  ;;  %7063 = vrcp.f32 %v8497_v40 }
 0x809   :  { %v1125_v23 = vadd.f32 %v8392_v59, %v1105_v31  ;;  %v1417_v44 = vmul.f32 %v7054_v46, %v8492_v38  ;;  %v7056_v25 = vpop.eup %7055 }
 0x80a   :  { %v90_v53 = vpop.xlane.xlu0 %89  ;;  %v2216_v54 = vld [vmem:[#allocation2 + $0xd0] sm:$0xff] }
 0x80b   :  { %1142 = vst.msk [vmem:[#allocation2 + $0x48] sm:$0xff] %vm1132_vm3, %v1125_v23  ;;  %v1626_v14 = vmul.f32 %v8731_v11, %v1417_v44  ;;  %7065 = vrcp.f32 %v90_v53  ;;  %5731 = vmatprep.subr.mxu1 %v2216_v54  ;;  %v10589_v54 = vld [vmem:[#allocation15_spill] sm:$0xff] }
 0x80c   :  { %v8823_v51 = vpop.eup %7057  ;;  %5732 = vmatpush3.msra.mxu1 %v2200_v0 }
 0x80d   :  { %10586 = vst [vmem:[#allocation19_spill] sm:$0xff] %v8823_v51  ;;  %v1646_v60 = vadd.f32 %v8747_v3, %v1626_v14  ;;  %v1416_v37 = vmul.f32 %v8823_v51, %v7056_v25 }
 0x80e   :  { %v898_v7 = vpop.xlane.xlu0 %897  ;;  %v2215_v30 = vld [vmem:[#allocation2 + $0xc8] sm:$0xff] }
 0x80f   :  { %1662 = vst.msk [vmem:[#allocation2 + $0xc0] sm:$0xff] %vm1132_vm3, %v1646_v60  ;;  %7067 = vrcp.f32 %v898_v7  ;;  %5733 = vmatprep.subr.mxu1 %v2215_v30  ;;  %2155 = vrot.lane.b32.xlu0 %v8392_v59, %s7466_s17  ;;  %v1625_v40 = vmul.f32 %v8724_v18, %v1416_v37 }
 0x810   :  { %v7060_v11 = vpop.eup %7059 }
 0x811   :  { %v942_v20 = vmul.f32 %v7060_v11, %v8823_v51  ;;  %v1645_v15 = vadd.f32 %v8747_v3, %v1625_v40  ;;  %v2196_v40 = vld [vmem:[#allocation2 + $0x30] sm:$0xff] }
 0x812   :  { %v1370_v12 = vpop.xlane.xlu0 %1369  ;;  %v2199_v5 = vld [vmem:[#allocation2 + $0x48] sm:$0xff] }
 0x813   :  { %v1103_v8 = vmul.f32 %v10587_v39, %v942_v20  ;;  %7069 = vrcp.f32 %v1370_v12  ;;  %5734 = vmatpush3.msra.mxu1 %v2199_v5  ;;  %1661 = vst.msk [vmem:[#allocation2 + $0xb8] sm:$0xff] %vm1132_vm3, %v1645_v15 }
 0x814   :  { %v7062_v50 = vpop.eup %7061  ;;  %7071 = vrcp.f32 %v8508_v16 }
 0x815   :  { %v1123_v61 = vadd.f32 %v8392_v59, %v1103_v8  ;;  %v1415_v18 = vmul.f32 %v7062_v50, %v8501_v62  ;;  %v7064_v41 = vpop.eup %7063 }
 0x816   :  { %v86_v29 = vpop.xlane.xlu0 %85  ;;  %v2214_v34 = vld [vmem:[#allocation2 + $0xc0] sm:$0xff] }
 0x817   :  { %1140 = vst.msk [vmem:[#allocation2 + $0x38] sm:$0xff] %vm1132_vm3, %v1123_v61  ;;  %v1624_v52 = vmul.f32 %v8726_v45, %v1415_v18  ;;  %7073 = vrcp.f32 %v86_v29  ;;  %5735 = vmatprep.subr.mxu1 %v2214_v34  ;;  %v10591_v61 = vld [vmem:[#allocation44_spill] sm:$0xff] }
 0x818   :  { %v8840_v42 = vpop.eup %7065  ;;  %5736 = vmatpush3.msra.mxu1 %v2198_v57 }
 0x819   :  { %10588 = vst [vmem:[#allocation12_spill] sm:$0xff] %v8840_v42  ;;  %v1644_v1 = vadd.f32 %v8747_v3, %v1624_v52  ;;  %v1414_v6 = vmul.f32 %v8840_v42, %v7064_v41 }
 0x81a   :  { %v894_v33 = vpop.xlane.xlu0 %893  ;;  %v2213_v31 = vld [vmem:[#allocation2 + $0xb8] sm:$0xff] }
 0x81b   :  { %1660 = vst.msk [vmem:[#allocation2 + $0xb0] sm:$0xff] %vm1132_vm3, %v1644_v1  ;;  %7075 = vrcp.f32 %v894_v33  ;;  %5737 = vmatprep.subr.mxu1 %v2213_v31  ;;  %v1623_v16 = vmul.f32 %v8720_v49, %v1414_v6  ;;  %v2194_v1 = vld [vmem:[#allocation2 + $0x20] sm:$0xff] }
 0x81c   :  { %v7068_v46 = vpop.eup %7067 }
 0x81d   :  { %v940_v45 = vmul.f32 %v7068_v46, %v8840_v42  ;;  %v1643_v23 = vadd.f32 %v8747_v3, %v1623_v16 }
 0x81e   :  { %v1366_v44 = vpop.xlane.xlu0 %1365  ;;  %v2197_v53 = vld [vmem:[#allocation2 + $0x38] sm:$0xff] }
 0x81f   :  { %v1101_v25 = vmul.f32 %v10589_v54, %v940_v45  ;;  %7077 = vrcp.f32 %v1366_v44  ;;  %5738 = vmatpush3.msra.mxu1 %v2197_v53  ;;  %1659 = vst.msk [vmem:[#allocation2 + $0xa8] sm:$0xff] %vm1132_vm3, %v1643_v23  ;;  %v129_v44 = vld [vmem:[#allocation3 + $0x10] sm:$0xff] }
 0x820   :  { %v7070_v14 = vpop.eup %7069  ;;  %7079 = vrcp.f32 %v8738_v56  ;;  %6421 = vmatprep.mubr.f32.mxu0 %v129_v44 }
 0x821   :  { %v1121_v0 = vadd.f32 %v8392_v59, %v1101_v25  ;;  %v1413_v60 = vmul.f32 %v7070_v14, %v8512_v27  ;;  %v7072_v7 = vpop.eup %7071  ;;  %v10594_v25 = vld [vmem:[#allocation14_spill] sm:$0xff] }
 0x822   :  { %v82_v49 = vpop.xlane.xlu0 %81  ;;  %v2212_v37 = vld [vmem:[#allocation2 + $0xb0] sm:$0xff] }
 0x823   :  { %1138 = vst.msk [vmem:[#allocation2 + $0x28] sm:$0xff] %vm1132_vm3, %v1121_v0  ;;  %v1622_v30 = vmul.f32 %v8722_v9, %v1413_v60  ;;  %7081 = vrcp.f32 %v82_v49  ;;  %5739 = vmatprep.subr.mxu1 %v2212_v37 }
 0x824   :  { %v8855_v11 = vpop.eup %7073  ;;  %5740 = vmatpush3.msra.mxu1 %v2196_v40 }
 0x825   :  { %10590 = vst [vmem:[#allocation22_spill] sm:$0xff] %v8855_v11  ;;  %v1642_v20 = vadd.f32 %v8747_v3, %v1622_v30  ;;  %v1412_v15 = vmul.f32 %v8855_v11, %v7072_v7  ;;  %v2192_v7 = vld [vmem:[#allocation2 + $0x10] sm:$0xff] }
 0x826   :  { %v890_v12 = vpop.xlane.xlu0 %889  ;;  %v2211_v5 = vld [vmem:[#allocation2 + $0xa8] sm:$0xff] }
 0x827   :  { %1658 = vst.msk [vmem:[#allocation2 + $0xa0] sm:$0xff] %vm1132_vm3, %v1642_v20  ;;  %7083 = vrcp.f32 %v890_v12  ;;  %5741 = vmatprep.subr.mxu1 %v2211_v5  ;;  %v1621_v56 = vmul.f32 %v8714_v22, %v1412_v15  ;;  %v10595_v12 = vld [vmem:[#allocation7_spill] sm:$0xff] }
 0x828   :  { %v7076_v39 = vpop.eup %7075  ;;  %7085 = vrcp.f32 %v8742_v2 }
 0x829   :  { %v938_v9 = vmul.f32 %v7076_v39, %v8855_v11  ;;  %v1641_v8 = vadd.f32 %v8747_v3, %v1621_v56 }
 0x82a   :  { %v1362_v32 = vpop.xlane.xlu0 %1361  ;;  %v2195_v50 = vld [vmem:[#allocation2 + $0x28] sm:$0xff] }
 0x82b   :  { %v1099_v18 = vmul.f32 %v10591_v61, %v938_v9  ;;  %7087 = vrcp.f32 %v1362_v32  ;;  %5742 = vmatpush3.msra.mxu1 %v2195_v50  ;;  %1657 = vst.msk [vmem:[#allocation2 + $0x98] sm:$0xff] %vm1132_vm3, %v1641_v8  ;;  %v127_v9 = vld [vmem:[#allocation3] sm:$0xff]  ;;  %v130_v50 = vld [vmem:[#allocation3 + $0x18] sm:$0xff] }
 0x82c   :  { %v7078_v29 = vpop.eup %7077  ;;  %v131_v32 = vld [vmem:[#allocation3 + $0x20] sm:$0xff]  ;;  %v134_v61 = vld [vmem:[#allocation3 + $0x38] sm:$0xff] }
 0x82d   :  { %v1119_v34 = vadd.f32 %v8392_v59, %v1099_v18  ;;  %v1411_v22 = vmul.f32 %v7078_v29, %v8517_v4  ;;  %v7080_v57 = vpop.eup %7079 }
 0x82e   :  { %v888_v41 = vpop.xlane.xlu0 %887  ;;  %v2210_v52 = vld [vmem:[#allocation2 + $0xa0] sm:$0xff] }
 0x82f   :  { %1136 = vst.msk [vmem:[#allocation2 + $0x18] sm:$0xff] %vm1132_vm3, %v1119_v34  ;;  %v1620_v2 = vmul.f32 %v8717_v55, %v1411_v22  ;;  %7089 = vrcp.f32 %v888_v41  ;;  %5743 = vmatprep.subr.mxu1 %v2210_v52  ;;  %v137_v34 = vld [vmem:[#allocation3 + $0x50] sm:$0xff]  ;;  %v136_v41 = vld [vmem:[#allocation3 + $0x48] sm:$0xff] }
 0x830   :  { %v8870_v6 = vpop.eup %7081  ;;  %5744 = vmatpush3.msra.mxu1 %v2194_v1  ;;  %v139_v1 = vld [vmem:[#allocation3 + $0x60] sm:$0xff] }
 0x831   :  { %10592 = vst [vmem:[#allocation10_spill] sm:$0xff] %v8870_v6  ;;  %v1640_v33 = vadd.f32 %v8747_v3, %v1620_v2  ;;  %v1410_v31 = vmul.f32 %v8870_v6, %v7080_v57  ;;  %v140_v57 = vld [vmem:[#allocation3 + $0x68] sm:$0xff] }
 0x832   :  { %v2209_v16 = vld [vmem:[#allocation2 + $0x98] sm:$0xff] }
 0x833   :  { %1656 = vst.msk [vmem:[#allocation2 + $0x90] sm:$0xff] %vm1132_vm3, %v1640_v33  ;;  %5745 = vmatprep.subr.mxu1 %v2209_v16  ;;  %v1619_v46 = vmul.f32 %v8696_v48, %v1410_v31  ;;  %v143_v31 = vld [vmem:[#allocation3 + $0x80] sm:$0xff]  ;;  %v1907_v16 = vpop.xlane.xlu1 %1906 }
 0x834   :  { %v7084_v45 = vpop.eup %7083  ;;  %7091 = vrcp.f32 %v1907_v16 }
 0x835   :  { %v936_v23 = vmul.f32 %v7084_v45, %v8870_v6  ;;  %v1639_v55 = vadd.f32 %v8747_v3, %v1619_v46  ;;  %v8878_v54 = vpop.eup %7085  ;;  %v142_v45 = vld [vmem:[#allocation3 + $0x78] sm:$0xff] }
 0x836   :  { %v2193_v53 = vld [vmem:[#allocation2 + $0x18] sm:$0xff]  ;;  %10593 = vst [vmem:[#allocation34_spill] sm:$0xff] %v8878_v54 }
 0x837   :  { %v1097_v14 = vmul.f32 %v10594_v25, %v936_v23  ;;  %5746 = vmatpush3.msra.mxu1 %v2193_v53  ;;  %1655 = vst.msk [vmem:[#allocation2 + $0x88] sm:$0xff] %vm1132_vm3, %v1639_v55  ;;  %v146_v55 = vld [vmem:[#allocation3 + $0x98] sm:$0xff]  ;;  %v145_v53 = vld [vmem:[#allocation3 + $0x90] sm:$0xff] }
 0x838   :  { %v7088_v0 = vpop.eup %7087 }
 0x839   :  { %v1117_v60 = vadd.f32 %v8392_v59, %v1097_v14  ;;  %v1409_v48 = vmul.f32 %v7088_v0, %v8878_v54  ;;  %v149_v14 = vld [vmem:[#allocation3 + $0xb0] sm:$0xff]  ;;  %v1887_v0 = vpop.xlane.xlu1 %1886 }
 0x83a   :  { %v2208_v49 = vld [vmem:[#allocation2 + $0x90] sm:$0xff]  ;;  %7093 = vrcp.f32 %v1887_v0 }
 0x83b   :  { %1134 = vst.msk [vmem:[#allocation2 + $0x8] sm:$0xff] %vm1132_vm3, %v1117_v60  ;;  %v1618_v37 = vmul.f32 %v8707_v19, %v1409_v48  ;;  %5747 = vmatprep.subr.mxu1 %v2208_v49  ;;  %v148_v48 = vld [vmem:[#allocation3 + $0xa8] sm:$0xff] }
 0x83c   :  { %v7090_v30 = vpop.eup %7089  ;;  %5748 = vmatpush3.msra.mxu1 %v2192_v7 }
 0x83d   :  { %v1638_v40 = vadd.f32 %v8747_v3, %v1618_v37  ;;  %v935_v20 = vmul.f32 %v7090_v30, %v8878_v54  ;;  %v152_v37 = vld [vmem:[#allocation3 + $0xc8] sm:$0xff]  ;;  %v1883_v7 = vpop.xlane.xlu1 %1882 }
 0x83e   :  { %v2207_v15 = vld [vmem:[#allocation2 + $0x88] sm:$0xff]  ;;  %7095 = vrcp.f32 %v1883_v7 }
 0x83f   :  { %1654 = vst.msk [vmem:[#allocation2 + $0x80] sm:$0xff] %vm1132_vm3, %v1638_v40  ;;  %v1096_v5 = vmul.f32 %v10595_v12, %v935_v20  ;;  %5749 = vmatprep.subr.mxu1 %v2207_v15  ;;  %v151_v40 = vld [vmem:[#allocation3 + $0xc0] sm:$0xff] }
 0x840   :  { %v155_v15 = vld [vmem:[#allocation3 + $0xe0] sm:$0xff] }
 0x841   :  { %v1116_v56 = vadd.f32 %v8392_v59, %v1096_v5  ;;  %v133_v59 = vld [vmem:[#allocation3 + $0x30] sm:$0xff]  ;;  %v154_v5 = vld [vmem:[#allocation3 + $0xd8] sm:$0xff] }
 0x842   :  { %v2191_v39 = vld [vmem:[#allocation2 + $0x8] sm:$0xff] }
 0x843   :  { %1133 = vst.msk [vmem:[#allocation2] sm:$0xff] %vm1132_vm3, %v1116_v56  ;;  %5750 = vmatpush3.msra.mxu1 %v2191_v39  ;;  %v158_v39 = vld [vmem:[#allocation3 + $0xf8] sm:$0xff] }
 0x846   :  { %v2206_v19 = vld [vmem:[#allocation2 + $0x80] sm:$0xff] }
 0x847   :  { %5751 = vmatprep.subr.mxu1 %v2206_v19 }
 0x84a   :  { %v2190_v8 = vld [vmem:[#allocation2] sm:$0xff]  ;;  %v8892_v3 = vpop.f32.mrf.mxu0 }
 0x84b   :  { %5752 = vmatpush3.msra.mxu1 %v2190_v8 }
 0x84c   :  { %2303 = vmatmul.mubr.f32.vlgmr.msra.gmra.mxu1 %v127_v9  ;;  %v8894_v18 = vpop.f32.mrf.mxu0  ;;  %v157_v9 = vld [vmem:[#allocation3 + $0xf0] sm:$0xff] }
 0x84d   :  { %2307 = vmatprep.mubr.f32.mxu1 %v131_v32  ;;  %v161_v32 = vld [vmem:[#allocation3 + $0x110] sm:$0xff] }
 0x84e   :  { %v8896_v22 = vpop.f32.mrf.mxu0 }
 0x850   :  { %2308 = vmatmul.mubr.f32.gmra.mxu1 %v130_v50  ;;  %v8900_v2 = vpop.f32.mrf.mxu0 }
 0x851   :  { %2312 = vmatprep.mubr.f32.mxu1 %v134_v61  ;;  %v160_v61 = vld [vmem:[#allocation3 + $0x108] sm:$0xff] }
 0x852   :  { %v1913_v29 = vpop.xlane.xlu0 %1912  ;;  %v8902_v46 = vpop.f32.mrf.mxu0 }
 0x854   :  { %2313 = vmatmul.mubr.f32.gmra.mxu1 %v133_v59  ;;  %v8904_v44 = vpop.f32.mrf.mxu0 }
 0x855   :  { %2317 = vmatprep.mubr.f32.mxu1 %v137_v34  ;;  %v164_v34 = vld [vmem:[#allocation3 + $0x128] sm:$0xff] }
 0x856   :  { %v8898_v52 = vpop.xlane.xlu0 %1910  ;;  %v8906_v60 = vpop.f32.mrf.mxu0 }
 0x858   :  { %2318 = vmatmul.mubr.f32.gmra.mxu1 %v136_v41  ;;  %v8908_v30 = vpop.f32.mrf.mxu0  ;;  %v7092_v41 = vpop.eup %7091 }
 0x859   :  { %2322 = vmatprep.mubr.f32.mxu1 %v140_v57  ;;  %v7094_v57 = vpop.eup %7093 }
 0x85a   :  { %v1909_v33 = vpop.xlane.xlu0 %1908  ;;  %v8910_v12 = vpop.f32.mrf.mxu0 }
 0x85b   :  { %7097 = vrcp.f32 %v1909_v33 }
 0x85c   :  { %2323 = vmatmul.mubr.f32.gmra.mxu1 %v139_v1  ;;  %v8912_v19 = vpop.f32.mrf.mxu0  ;;  %v7096_v1 = vpop.eup %7095 }
 0x85d   :  { %2327 = vmatprep.mubr.f32.mxu1 %v143_v31  ;;  %v163_v31 = vld [vmem:[#allocation3 + $0x120] sm:$0xff] }
 0x85e   :  { %v1905_v23 = vpop.xlane.xlu0 %1904  ;;  %v6382_v50 = vpop.f32.mrf.mxu0 }
 0x85f   :  { %7099 = vrcp.f32 %v1905_v23  ;;  %v167_v23 = vld [vmem:[#allocation3 + $0x140] sm:$0xff] }
 0x860   :  { %2328 = vmatmul.mubr.f32.gmra.mxu1 %v142_v45  ;;  %v2110_v33 = vpop.f32.mrf.mxu0 }
 0x861   :  { %2332 = vmatprep.mubr.f32.mxu1 %v146_v55 }
 0x862   :  { %v1903_v25 = vpop.xlane.xlu0 %1902 }
 0x863   :  { %7101 = vrcp.f32 %v1903_v25  ;;  %v6385_v25 = vpop.f32.mrf.mxu0 }
 0x864   :  { %2333 = vmatmul.mubr.f32.gmra.mxu1 %v145_v53 }
 0x865   :  { %2337 = vmatprep.mubr.f32.mxu1 %v149_v14  ;;  %v166_v14 = vld [vmem:[#allocation3 + $0x138] sm:$0xff] }
 0x866   :  { %v1901_v49 = vpop.xlane.xlu0 %1900 }
 0x867   :  { %7103 = vrcp.f32 %v1901_v49  ;;  %v170_v49 = vld [vmem:[#allocation3 + $0x158] sm:$0xff] }
 0x868   :  { %2338 = vmatmul.mubr.f32.gmra.mxu1 %v148_v48  ;;  %v7098_v16 = vpop.eup %7097 }
 0x869   :  { %2342 = vmatprep.mubr.f32.mxu1 %v152_v37 }
 0x86a   :  { %v1899_v20 = vpop.xlane.xlu0 %1898 }
 0x86b   :  { %7105 = vrcp.f32 %v1899_v20 }
 0x86c   :  { %2343 = vmatmul.mubr.f32.gmra.mxu1 %v151_v40  ;;  %v1930_v40 = vmul.f32 %v7096_v1, %v8878_v54  ;;  %v173_v1 = vld [vmem:[#allocation3 + $0x170] sm:$0xff] }
 0x86d   :  { %2347 = vmatprep.mubr.f32.mxu1 %v155_v15 }
 0x86e   :  { %v1897_v56 = vpop.xlane.xlu0 %1896 }
 0x86f   :  { %7107 = vrcp.f32 %v1897_v56 }
 0x870   :  { %2348 = vmatmul.mubr.f32.gmra.mxu1 %v154_v5  ;;  %v1943_v5 = vmul.f32 %v7098_v16, %v8766_v13  ;;  %v2139_v16 = vmul.f32 %v8894_v18, %v1930_v40 }
 0x871   :  { %2352 = vmatprep.mubr.f32.mxu1 %v158_v39  ;;  %v1942_v39 = vmul.f32 %v7092_v41, %v8779_v28 }
 0x872   :  { %v1895_v8 = vpop.xlane.xlu0 %1894 }
 0x873   :  { %7109 = vrcp.f32 %v1895_v8  ;;  %v169_v8 = vld [vmem:[#allocation3 + $0x150] sm:$0xff] }
 0x874   :  { %7111 = vrcp.f32 %v1913_v29  ;;  %2353 = vmatmul.mubr.f32.gmra.mxu1 %v157_v9  ;;  %v7100_v29 = vpop.eup %7099  ;;  %v2120_v9 = vpop.f32.mrf.mxu0 }
 0x875   :  { %2357 = vmatprep.mubr.f32.mxu1 %v161_v32  ;;  %v7102_v55 = vpop.eup %7101  ;;  %v1941_v15 = vmul.f32 %v7100_v29, %v8791_v17  ;;  %v2151_v41 = vmul.f32 %v2120_v9, %v1942_v39 }
 0x876   :  { %v1893_v59 = vpop.xlane.xlu0 %1892  ;;  %v7104_v53 = vpop.eup %7103  ;;  %v1940_v56 = vmul.f32 %v7102_v55, %v10582_v47  ;;  %v2152_v55 = vmul.f32 %v6385_v25, %v1943_v5  ;;  %v10610_v47 = vld [vmem:[#allocation23_spill] sm:$0xff] }
 0x877   :  { %7113 = vrcp.f32 %v1893_v59  ;;  %v1939_v32 = vmul.f32 %v7104_v53, %v8808_v43  ;;  %v2150_v29 = vmul.f32 %v6382_v50, %v1941_v15  ;;  %v10612_v43 = vld [vmem:[#allocation25_spill] sm:$0xff] }
 0x878   :  { %2358 = vmatmul.mubr.f32.gmra.mxu1 %v160_v61  ;;  %7115 = vrcp.f32 %v8898_v52  ;;  %v7106_v0 = vpop.eup %7105  ;;  %v1932_v52 = vmul.f32 %v7094_v57, %v8517_v4  ;;  %v2149_v53 = vmul.f32 %v2110_v33, %v1940_v56 }
 0x879   :  { %2362 = vmatprep.mubr.f32.mxu1 %v164_v34  ;;  %v1938_v61 = vmul.f32 %v7106_v0, %v8492_v38  ;;  %v172_v0 = vld [vmem:[#allocation3 + $0x168] sm:$0xff] }
 0x87a   :  { %v1891_v45 = vpop.xlane.xlu0 %1890 }
 0x87b   :  { %7117 = vrcp.f32 %v1891_v45  ;;  %v2141_v45 = vmul.f32 %v8900_v2, %v1932_v52 }
 0x87c   :  { %2363 = vmatmul.mubr.f32.gmra.mxu1 %v163_v31  ;;  %v7108_v37 = vpop.eup %7107 }
 0x87d   :  { %2367 = vmatprep.mubr.f32.mxu1 %v167_v23  ;;  %v1937_v59 = vmul.f32 %v7108_v37, %v8823_v51  ;;  %v10611_v51 = vld [vmem:[#allocation26_spill] sm:$0xff] }
 0x87e   :  { %v1889_v48 = vpop.xlane.xlu0 %1888 }
 0x87f   :  { %7119 = vrcp.f32 %v1889_v48  ;;  %v2148_v48 = vmul.f32 %v8910_v12, %v1939_v32  ;;  %v2146_v37 = vmul.f32 %v8906_v60, %v1937_v59 }
 0x880   :  { %v7110_v7 = vpop.eup %7109  ;;  %2368 = vmatmul.mubr.f32.gmra.mxu1 %v166_v14 }
 0x881   :  { %v7112_v20 = vpop.eup %7111  ;;  %2372 = vmatprep.mubr.f32.mxu1 %v170_v49  ;;  %v1936_v34 = vmul.f32 %v7110_v7, %v8501_v62  ;;  %v2147_v49 = vmul.f32 %v8912_v19, %v1938_v61 }
 0x882   :  { %v1885_v57 = vpop.xlane.xlu0 %1884  ;;  %v1945_v23 = vmul.f32 %v7112_v20, %v8740_v26 }
 0x883   :  { %7121 = vrcp.f32 %v1885_v57  ;;  %v2145_v18 = vmul.f32 %v8908_v30, %v1936_v34 }
 0x884   :  { %v7114_v31 = vpop.eup %7113  ;;  %2373 = vmatmul.mubr.f32.gmra.mxu1 %v169_v8 }
 0x885   :  { %v1935_v14 = vmul.f32 %v7114_v31, %v8840_v42  ;;  %2377 = vmatprep.mubr.f32.mxu1 %v173_v1  ;;  %v7116_v7 = vpop.eup %7115 }
 0x886   :  { %v2156_v2 = vpop.permute.xlu0 %2155  ;;  %v1944_v9 = vmul.f32 %v7116_v7, %v8751_v24 }
 0x887   :  { %v2144_v40 = vmul.f32 %v8902_v46, %v1935_v14  ;;  %v2171_v52 = vadd.f32 %v2156_v2, %v2152_v55  ;;  %v2170_v50 = vadd.f32 %v2156_v2, %v2151_v41  ;;  %v2169_v25 = vadd.f32 %v2156_v2, %v2150_v29 }
 0x888   :  { %v7118_v33 = vpop.eup %7117  ;;  %v2168_v20 = vadd.f32 %v2156_v2, %v2149_v53  ;;  %v2167_v15 = vadd.f32 %v2156_v2, %v2148_v48  ;;  %v2166_v5 = vadd.f32 %v2156_v2, %v2147_v49  ;;  %v2165_v56 = vadd.f32 %v2156_v2, %v2146_v37  ;;  %2378 = vmatmul.mubr.f32.gmra.mxu1 %v172_v0 }
 0x889   :  { %v1934_v12 = vmul.f32 %v7118_v33, %v8512_v27  ;;  %v6388_v19 = vpop.f32.mrf.mxu0  ;;  %2187 = vst.msk [vmem:[#allocation2 + $0x168] sm:$0xff] %vm1132_vm3, %v2171_v52  ;;  %2186 = vst.msk [vmem:[#allocation2 + $0x160] sm:$0xff] %vm1132_vm3, %v2170_v50  ;;  %v2164_v60 = vadd.f32 %v2156_v2, %v2145_v18  ;;  %v2163_v46 = vadd.f32 %v2156_v2, %v2144_v40 }
 0x88a   :  { %2185 = vst.msk [vmem:[#allocation2 + $0x158] sm:$0xff] %vm1132_vm3, %v2169_v25  ;;  %v2160_v30 = vadd.f32 %v2156_v2, %v2141_v45  ;;  %v2154_v39 = vmul.f32 %v6388_v19, %v1945_v23  ;;  %2184 = vst.msk [vmem:[#allocation2 + $0x150] sm:$0xff] %vm1132_vm3, %v2168_v20  ;;  %v2158_v8 = vadd.f32 %v2156_v2, %v2139_v16  ;;  %v132_v20 = vld [vmem:[#allocation3 + $0x28] sm:$0xff]  ;;  %v10596_v19 = vmov 0.0  }
 0x88b   :  { %2183 = vst.msk [vmem:[#allocation2 + $0x148] sm:$0xff] %vm1132_vm3, %v2167_v15  ;;  %2182 = vst.msk [vmem:[#allocation2 + $0x140] sm:$0xff] %vm1132_vm3, %v2166_v5  ;;  %v2143_v32 = vmul.f32 %v8904_v44, %v1934_v12  ;;  %v2130_v61 = vpop.f32.mrf.mxu0  ;;  %v2544_v15 = vld [vmem:[%s10300_s3 + $0x38] sm:$0xff]  ;;  %v135_v5 = vld [vmem:[#allocation3 + $0x40] sm:$0xff] }
 0x88c   :  { %2181 = vst.msk [vmem:[#allocation2 + $0x138] sm:$0xff] %vm1132_vm3, %v2165_v56  ;;  %2180 = vst.msk [vmem:[#allocation2 + $0x130] sm:$0xff] %vm1132_vm3, %v2164_v60  ;;  %v7120_v59 = vpop.eup %7119  ;;  %v2173_v34 = vadd.f32 %v2156_v2, %v2154_v39  ;;  %v2153_v57 = vmul.f32 %v2130_v61, %v1944_v9  ;;  %v138_v56 = vld [vmem:[#allocation3 + $0x58] sm:$0xff]  ;;  %v141_v12 = vld [vmem:[#allocation3 + $0x70] sm:$0xff] }
 0x88d   :  { %2179 = vst.msk [vmem:[#allocation2 + $0x128] sm:$0xff] %vm1132_vm3, %v2163_v46  ;;  %2176 = vst.msk [vmem:[#allocation2 + $0x110] sm:$0xff] %vm1132_vm3, %v2160_v30  ;;  %v1933_v1 = vmul.f32 %v7120_v59, %v8855_v11  ;;  %v2162_v31 = vadd.f32 %v2156_v2, %v2143_v32  ;;  %v144_v60 = vld [vmem:[#allocation3 + $0x88] sm:$0xff]  ;;  %v147_v46 = vld [vmem:[#allocation3 + $0xa0] sm:$0xff] }
 0x88e   :  { %2174 = vst.msk [vmem:[#allocation2 + $0x100] sm:$0xff] %vm1132_vm3, %v2158_v8  ;;  %2189 = vst.msk [vmem:[#allocation2 + $0x178] sm:$0xff] %vm1132_vm3, %v2173_v34  ;;  %v2172_v16 = vadd.f32 %v2156_v2, %v2153_v57  ;;  %v150_v30 = vld [vmem:[#allocation3 + $0xb8] sm:$0xff]  ;;  %v153_v39 = vld [vmem:[#allocation3 + $0xd0] sm:$0xff] }
 0x88f   :  { %v2142_v44 = vmul.f32 %v8896_v22, %v1933_v1  ;;  %2178 = vst.msk [vmem:[#allocation2 + $0x120] sm:$0xff] %vm1132_vm3, %v2162_v31  ;;  %v156_v9 = vld [vmem:[#allocation3 + $0xe8] sm:$0xff]  ;;  %v159_v8 = vld [vmem:[#allocation3 + $0x100] sm:$0xff]  ;;  %v162_v32 = vld [vmem:[#allocation3 + $0x118] sm:$0xff] }
 0x890   :  { %v7122_v45 = vpop.eup %7121  ;;  %2188 = vst.msk [vmem:[#allocation2 + $0x170] sm:$0xff] %vm1132_vm3, %v2172_v16  ;;  %v2235_v22 = vld [vmem:[#allocation2 + $0x168] sm:$0xff]  ;;  %v2234_v0 = vld [vmem:[#allocation2 + $0x160] sm:$0xff]  ;;  %v165_v61 = vld [vmem:[#allocation3 + $0x130] sm:$0xff] }
 0x891   :  { %v1931_v41 = vmul.f32 %v7122_v45, %v8870_v6  ;;  %v2161_v23 = vadd.f32 %v2156_v2, %v2142_v44  ;;  %v2233_v48 = vld [vmem:[#allocation2 + $0x158] sm:$0xff]  ;;  %v168_v59 = vld [vmem:[#allocation3 + $0x148] sm:$0xff]  ;;  %v171_v34 = vld [vmem:[#allocation3 + $0x160] sm:$0xff] }
 0x892   :  { %v2231_v49 = vld [vmem:[#allocation2 + $0x148] sm:$0xff]  ;;  %v2230_v37 = vld [vmem:[#allocation2 + $0x140] sm:$0xff]  ;;  %v174_v57 = vld [vmem:[#allocation3 + $0x178] sm:$0xff] }
 0x893   :  { %v2140_v29 = vmul.f32 %v8892_v3, %v1931_v41  ;;  %2177 = vst.msk [vmem:[#allocation2 + $0x118] sm:$0xff] %vm1132_vm3, %v2161_v23  ;;  %v2232_v3 = vld [vmem:[#allocation2 + $0x150] sm:$0xff]  ;;  %v2229_v18 = vld [vmem:[#allocation2 + $0x138] sm:$0xff]  ;;  %v2546_v45 = vld [vmem:[%s10300_s3 + $0x48] sm:$0xff] }
 0x894   :  { %v2227_v7 = vld [vmem:[#allocation2 + $0x128] sm:$0xff]  ;;  %v2224_v50 = vld [vmem:[#allocation2 + $0x110] sm:$0xff]  ;;  %v2545_v23 = vld [vmem:[%s10300_s3 + $0x40] sm:$0xff] }
 0x895   :  { %v2237_v55 = vld [vmem:[#allocation2 + $0x178] sm:$0xff]  ;;  %v2159_v53 = vadd.f32 %v2156_v2, %v2140_v29  ;;  %v2228_v2 = vld [vmem:[#allocation2 + $0x130] sm:$0xff]  ;;  %v2222_v33 = vld [vmem:[#allocation2 + $0x100] sm:$0xff] }
 0x896   :  { %6389 = vmatprep.subr.mxu0 %v2237_v55  ;;  %v2226_v40 = vld [vmem:[#allocation2 + $0x120] sm:$0xff]  ;;  %v2547_v44 = vld [vmem:[%s10300_s3 + $0x50] sm:$0xff] }
 0x897   :  { %6390 = vmatpush3.msra.mxu0 %v2237_v55  ;;  %v2236_v14 = vld [vmem:[#allocation2 + $0x170] sm:$0xff]  ;;  %2175 = vst.msk [vmem:[#allocation2 + $0x108] sm:$0xff] %vm1132_vm3, %v2159_v53  ;;  %6471 = vmatprep.subr.mxu1 %v2547_v44 }
 0x898   :  { %6391 = vmatprep.subr.mxu0 %v2236_v14  ;;  %6472 = vmatpush3.msra.mxu1 %v2547_v44 }
 0x899   :  { %6392 = vmatpush3.msra.mxu0 %v2236_v14  ;;  %6473 = vmatprep.subr.mxu1 %v2546_v45 }
 0x89a   :  { %6393 = vmatprep.subr.mxu0 %v2235_v22  ;;  %v2225_v52 = vld [vmem:[#allocation2 + $0x118] sm:$0xff]  ;;  %6474 = vmatpush3.msra.mxu1 %v2546_v45 }
 0x89b   :  { %6394 = vmatpush3.msra.mxu0 %v2235_v22  ;;  %6475 = vmatprep.subr.mxu1 %v2545_v23 }
 0x89c   :  { %6395 = vmatprep.subr.mxu0 %v2234_v0  ;;  %6476 = vmatpush3.msra.mxu1 %v2545_v23 }
 0x89d   :  { %6396 = vmatpush3.msra.mxu0 %v2234_v0 }
 0x89e   :  { %6397 = vmatprep.subr.mxu0 %v2233_v48  ;;  %v2223_v25 = vld [vmem:[#allocation2 + $0x108] sm:$0xff] }
 0x89f   :  { %6398 = vmatpush3.msra.mxu0 %v2233_v48 }
 0x8a0   :  { %6399 = vmatprep.subr.mxu0 %v2232_v3 }
 0x8a1   :  { %6400 = vmatpush3.msra.mxu0 %v2232_v3 }
 0x8a2   :  { %6401 = vmatprep.subr.mxu0 %v2231_v49 }
 0x8a3   :  { %6402 = vmatpush3.msra.mxu0 %v2231_v49 }
 0x8a4   :  { %6403 = vmatprep.subr.mxu0 %v2230_v37 }
 0x8a5   :  { %6404 = vmatpush3.msra.mxu0 %v2230_v37 }
 0x8a6   :  { %6405 = vmatprep.subr.mxu0 %v2229_v18 }
 0x8a7   :  { %6406 = vmatpush3.msra.mxu0 %v2229_v18 }
 0x8a8   :  { %6407 = vmatprep.subr.mxu0 %v2228_v2 }
 0x8a9   :  { %6408 = vmatpush3.msra.mxu0 %v2228_v2 }
 0x8aa   :  { %6409 = vmatprep.subr.mxu0 %v2227_v7 }
 0x8ab   :  { %6410 = vmatpush3.msra.mxu0 %v2227_v7 }
 0x8ac   :  { %6411 = vmatprep.subr.mxu0 %v2226_v40 }
 0x8ad   :  { %6412 = vmatpush3.msra.mxu0 %v2226_v40 }
 0x8ae   :  { %6413 = vmatprep.subr.mxu0 %v2225_v52 }
 0x8af   :  { %6414 = vmatpush3.msra.mxu0 %v2225_v52 }
 0x8b0   :  { %6415 = vmatprep.subr.mxu0 %v2224_v50 }
 0x8b1   :  { %6416 = vmatpush3.msra.mxu0 %v2224_v50 }
 0x8b2   :  { %6417 = vmatprep.subr.mxu0 %v2223_v25 }
 0x8b3   :  { %6418 = vmatpush3.msra.mxu0 %v2223_v25 }
 0x8b4   :  { %6419 = vmatprep.subr.mxu0 %v2222_v33 }
 0x8b5   :  { %6420 = vmatpush3.msra.mxu0 %v2222_v33 }
 0x8b6   :  { %6422 = vmatmul.mubr.f32.vlgmr.msra.gmra.mxu0 %v132_v20  ;;  %6445 = vmatprep.subr.mxu0 %v2544_v15 }
 0x8b7   :  { %6424 = vmatprep.mubr.f32.mxu0 %v135_v5  ;;  %6446 = vmatpush3.msra.mxu0 %v2544_v15 }
 0x8b8   :  { %6501 = vmatprep.subr.mxu0 %v10596_v19 }
 0x8ba   :  { %6425 = vmatmul.mubr.f32.gmra.mxu0 %v138_v56 }
 0x8bb   :  { %6427 = vmatprep.mubr.f32.mxu0 %v141_v12 }
 0x8be   :  { %6428 = vmatmul.mubr.f32.gmra.mxu0 %v144_v60 }
 0x8bf   :  { %6430 = vmatprep.mubr.f32.mxu0 %v147_v46 }
 0x8c2   :  { %6431 = vmatmul.mubr.f32.gmra.mxu0 %v150_v30 }
 0x8c3   :  { %6433 = vmatprep.mubr.f32.mxu0 %v153_v39 }
 0x8c6   :  { %6434 = vmatmul.mubr.f32.gmra.mxu0 %v156_v9 }
 0x8c7   :  { %6436 = vmatprep.mubr.f32.mxu0 %v159_v8 }
 0x8ca   :  { %6437 = vmatmul.mubr.f32.gmra.mxu0 %v162_v32 }
 0x8cb   :  { %6439 = vmatprep.mubr.f32.mxu0 %v165_v61 }
 0x8ce   :  { %6440 = vmatmul.mubr.f32.gmra.mxu0 %v168_v59 }
 0x8cf   :  { %6442 = vmatprep.mubr.f32.mxu0 %v171_v34 }
 0x8d2   :  { %6443 = vmatmul.mubr.f32.gmra.mxu0 %v174_v57 }
 0x90c   :  { %v5753_v1 = vpop.f32.mrf.mxu1 }
 0x90e   :  { %v5754_v31 = vpop.f32.mrf.mxu1 }
 0x90f   :  { %v5755_v46 = vadd.f32 %v5754_v31, %v5753_v1 }
 0x910   :  { %v5756_v16 = vpop.f32.mrf.mxu1 }
 0x912   :  { %v5757_v41 = vpop.f32.mrf.mxu1 }
 0x913   :  { %v5758_v56 = vadd.f32 %v5757_v41, %v5756_v16 }
 0x914   :  { %v5759_v29 = vpop.f32.mrf.mxu1 }
 0x916   :  { %v5760_v55 = vpop.f32.mrf.mxu1 }
 0x917   :  { %v5761_v32 = vadd.f32 %v5760_v55, %v5759_v29 }
 0x918   :  { %v5762_v53 = vpop.f32.mrf.mxu1 }
 0x91a   :  { %v5763_v14 = vpop.f32.mrf.mxu1 }
 0x91b   :  { %v5764_v30 = vadd.f32 %v5763_v14, %v5762_v53 }
 0x91c   :  { %v5765_v22 = vpop.f32.mrf.mxu1 }
 0x91e   :  { %v5766_v0 = vpop.f32.mrf.mxu1 }
 0x91f   :  { %v5767_v6 = vadd.f32 %v5766_v0, %v5765_v22 }
 0x920   :  { %v5768_v48 = vpop.f32.mrf.mxu1 }
 0x922   :  { %v5769_v3 = vpop.f32.mrf.mxu1 }
 0x923   :  { %v5770_v34 = vadd.f32 %v5769_v3, %v5768_v48 }
 0x924   :  { %v5771_v49 = vpop.f32.mrf.mxu1 }
 0x926   :  { %v5772_v37 = vpop.f32.mrf.mxu1 }
 0x927   :  { %v5773_v14 = vadd.f32 %v5772_v37, %v5771_v49 }
 0x928   :  { %v5774_v18 = vpop.f32.mrf.mxu1 }
 0x92a   :  { %v5775_v2 = vpop.f32.mrf.mxu1 }
 0x92b   :  { %v5776_v1 = vadd.f32 %v5775_v2, %v5774_v18 }
 0x92c   :  { %v5777_v7 = vpop.f32.mrf.mxu1 }
 0x92e   :  { %v5778_v40 = vpop.f32.mrf.mxu1 }
 0x930   :  { %v5780_v52 = vpop.f32.mrf.mxu1 }
 0x932   :  { %v5781_v50 = vpop.f32.mrf.mxu1 }
 0x933   :  { %v5782_v22 = vadd.f32 %v5781_v50, %v5780_v52 }
 0x934   :  { %v5783_v25 = vpop.f32.mrf.mxu1 }
 0x936   :  { %v5784_v33 = vpop.f32.mrf.mxu1 }
 0x938   :  { %v5786_v20 = vpop.f32.mrf.mxu1 }
 0x93a   :  { %v5787_v15 = vpop.f32.mrf.mxu1 }
 0x93c   :  { %v5789_v5 = vpop.f32.mrf.mxu1 }
 0x93e   :  { %v5790_v12 = vpop.f32.mrf.mxu1 }
 0x940   :  { %v5792_v8 = vpop.f32.mrf.mxu1 }
 0x942   :  { %v5793_v54 = vpop.f32.mrf.mxu1 }
 0x944   :  { %v5795_v55 = vpop.f32.mrf.mxu1 }
 0x976   :  { %v6423_v60 = vpop.f32.mrf.mxu0 }
 0x977   :  { %v2455_v39 = vadd.f32 %v6423_v60, %v5758_v56 }
 0x978   :  { %v2449_v9 = vpop.f32.mrf.mxu0 }
 0x979   :  { %v2450_v61 = vadd.f32 %v5755_v46, %v2449_v9  ;;  %v2529_v45 = vmax.f32 %v2455_v39, 0.0  ;;  %v5779_v39 = vadd.f32 %v5778_v40, %v5777_v7 }
 0x97a   :  { %v6426_v59 = vpop.f32.mrf.mxu0 }
 0x97b   :  { %v2528_v57 = vmax.f32 %v2450_v61, 0.0  ;;  %v2465_v44 = vadd.f32 %v6426_v59, %v5764_v30  ;;  %v5796_v30 = vpop.f32.mrf.mxu1  ;;  %v5785_v61 = vadd.f32 %v5784_v33, %v5783_v25 }
 0x97c   :  { %v2459_v23 = vpop.f32.mrf.mxu0 }
 0x97d   :  { %v2460_v4 = vadd.f32 %v5761_v32, %v2459_v23  ;;  %6447 = vmatprep.mubr.msk.f32.mxu0 %vm1132_vm3, %v2528_v57  ;;  %v2531_v16 = vmax.f32 %v2465_v44, 0.0  ;;  %v5798_v32 = vpop.f32.mrf.mxu1 }
 0x97e   :  { %v6429_v41 = vpop.f32.mrf.mxu0  ;;  %6448 = vmatmul.mubr.msk.f32.vlgmr.msra.gmra.mxu0 %vm1132_vm3, %v2529_v45  ;;  %v5791_v45 = vadd.f32 %v5790_v12, %v5789_v5 }
 0x97f   :  { %v2530_v31 = vmax.f32 %v2460_v4, 0.0  ;;  %v2475_v53 = vadd.f32 %v6429_v41, %v5770_v34  ;;  %v5794_v34 = vadd.f32 %v5793_v54, %v5792_v8  ;;  %v5799_v44 = vpop.f32.mrf.mxu1 }
 0x980   :  { %v2469_v29 = vpop.f32.mrf.mxu0 }
 0x981   :  { %v2470_v48 = vadd.f32 %v5767_v6, %v2469_v29  ;;  %6450 = vmatprep.mubr.msk.f32.mxu0 %vm1132_vm3, %v2530_v31  ;;  %v2533_v3 = vmax.f32 %v2475_v53, 0.0  ;;  %v5788_v6 = vadd.f32 %v5787_v15, %v5786_v20 }
 0x982   :  { %v6432_v56 = vpop.f32.mrf.mxu0  ;;  %6451 = vmatmul.mubr.msk.f32.gmra.mxu0 %vm1132_vm3, %v2531_v16  ;;  %v5800_v16 = vadd.f32 %v5799_v44, %v5798_v32  ;;  %v2548_v32 = vld [vmem:[%s10300_s3 + $0x58] sm:$0xff] }
 0x983   :  { %v2532_v0 = vmax.f32 %v2470_v48, 0.0  ;;  %v2485_v60 = vadd.f32 %v6432_v56, %v5776_v1  ;;  %v5797_v1 = vadd.f32 %v5796_v30, %v5795_v55 }
 0x984   :  { %v2479_v46 = vpop.f32.mrf.mxu0 }
 0x985   :  { %v2480_v9 = vadd.f32 %v5773_v14, %v2479_v46  ;;  %6453 = vmatprep.mubr.msk.f32.mxu0 %vm1132_vm3, %v2532_v0  ;;  %v2535_v4 = vmax.f32 %v2485_v60, 0.0 }
 0x986   :  { %v6435_v18 = vpop.f32.mrf.mxu0  ;;  %6454 = vmatmul.mubr.msk.f32.gmra.mxu0 %vm1132_vm3, %v2533_v3 }
 0x987   :  { %v2534_v49 = vmax.f32 %v2480_v9, 0.0  ;;  %v2495_v37 = vadd.f32 %v6435_v18, %v5782_v22 }
 0x988   :  { %v2489_v2 = vpop.f32.mrf.mxu0 }
 0x989   :  { %v2490_v59 = vadd.f32 %v5779_v39, %v2489_v2  ;;  %6456 = vmatprep.mubr.msk.f32.mxu0 %vm1132_vm3, %v2534_v49  ;;  %v2537_v52 = vmax.f32 %v2495_v37, 0.0 }
 0x98a   :  { %v6438_v50 = vpop.f32.mrf.mxu0  ;;  %6457 = vmatmul.mubr.msk.f32.gmra.mxu0 %vm1132_vm3, %v2535_v4 }
 0x98b   :  { %v2536_v7 = vmax.f32 %v2490_v59, 0.0  ;;  %v2505_v40 = vadd.f32 %v6438_v50, %v5788_v6  ;;  %v10603_v50 = vmov 2  }
 0x98c   :  { %v2499_v57 = vpop.f32.mrf.mxu0 }
 0x98d   :  { %v2500_v23 = vadd.f32 %v5785_v61, %v2499_v57  ;;  %6459 = vmatprep.mubr.msk.f32.mxu0 %vm1132_vm3, %v2536_v7  ;;  %v2539_v20 = vmax.f32 %v2505_v40, 0.0  ;;  %v10604_v7 = vmov 0   ;;  %v10605_v57 = vmov 1  }
 0x98e   :  { %v6441_v15 = vpop.f32.mrf.mxu0  ;;  %6460 = vmatmul.mubr.msk.f32.gmra.mxu0 %vm1132_vm3, %v2537_v52 }
 0x98f   :  { %v2538_v25 = vmax.f32 %v2500_v23, 0.0  ;;  %v2515_v33 = vadd.f32 %v6441_v15, %v5794_v34 }
 0x990   :  { %v2509_v41 = vpop.f32.mrf.mxu0 }
 0x991   :  { %v2510_v31 = vadd.f32 %v5791_v45, %v2509_v41  ;;  %6462 = vmatprep.mubr.msk.f32.mxu0 %vm1132_vm3, %v2538_v25  ;;  %v2541_v53 = vmax.f32 %v2515_v33, 0.0 }
 0x992   :  { %v6444_v54 = vpop.f32.mrf.mxu0  ;;  %6463 = vmatmul.mubr.msk.f32.gmra.mxu0 %vm1132_vm3, %v2539_v20 }
 0x993   :  { %v2540_v5 = vmax.f32 %v2510_v31, 0.0  ;;  %v2525_v12 = vadd.f32 %v6444_v54, %v5800_v16  ;;  %v10607_v54 = vld [vmem:[#allocation18_spill] sm:$0xff] }
 0x994   :  { %v2519_v8 = vpop.f32.mrf.mxu0 }
 0x995   :  { %v2520_v29 = vadd.f32 %v5797_v1, %v2519_v8  ;;  %6465 = vmatprep.mubr.msk.f32.mxu0 %vm1132_vm3, %v2540_v5  ;;  %v2543_v14 = vmax.f32 %v2525_v12, 0.0 }
 0x996   :  { %6466 = vmatmul.mubr.msk.f32.gmra.mxu0 %vm1132_vm3, %v2541_v53 }
 0x997   :  { %v2542_v48 = vmax.f32 %v2520_v29, 0.0 }
 0x999   :  { %6468 = vmatprep.mubr.msk.f32.mxu0 %vm1132_vm3, %v2542_v48 }
 0x99a   :  { %6469 = vmatmul.mubr.msk.f32.gmra.mxu0 %vm1132_vm3, %v2543_v14 }
 0x99b   :  { %6533 = vmatprep.mubr.msk.f32.mxu0 %vm7461_vm1, %v10596_v19 }
 0xa3e   :  { %v8988_v55 = vpop.f32.mrf.mxu0 }
 0xa3f   :  { %10597 = vst [vmem:[#allocation29_spill] sm:$0xff] %v8988_v55 }
 0xa40   :  { %v8990_v3 = vpop.f32.mrf.mxu0 }
 0xa41   :  { %10598 = vst [vmem:[#allocation8_spill] sm:$0xff] %v8990_v3  ;;  %6477 = vmatprep.mubr.msk.f32.mxu1 %vm392_vm2, %v8990_v3 }
 0xa42   :  { %v8994_v56 = vpop.f32.mrf.mxu0  ;;  %6478 = vmatmul.mubr.msk.f32.vlgmr.msra.gmra.mxu1 %vm392_vm2, %v8988_v55 }
 0xa43   :  { %10599 = vst [vmem:[#allocation39_spill] sm:$0xff] %v8994_v56 }
 0xa44   :  { %v8998_v22 = vpop.f32.mrf.mxu0 }
 0xa45   :  { %10600 = vst [vmem:[#allocation45_spill] sm:$0xff] %v8998_v22  ;;  %6480 = vmatprep.mubr.msk.f32.mxu1 %vm392_vm2, %v8998_v22 }
 0xa46   :  { %v9002_v0 = vpop.f32.mrf.mxu0  ;;  %6481 = vmatmul.mubr.msk.f32.gmra.mxu1 %vm392_vm2, %v8994_v56 }
 0xa47   :  { %10601 = vst [vmem:[#allocation48_spill] sm:$0xff] %v9002_v0 }
 0xa48   :  { %v9006_v60 = vpop.f32.mrf.mxu0 }
 0xa49   :  { %10602 = vst [vmem:[#allocation52_spill] sm:$0xff] %v9006_v60  ;;  %6483 = vmatprep.mubr.msk.f32.mxu1 %vm392_vm2, %v9006_v60 }
 0xa4a   :  { %v9010_v46 = vpop.f32.mrf.mxu0  ;;  %6484 = vmatmul.mubr.msk.f32.gmra.mxu1 %vm392_vm2, %v9002_v0 }
 0xa4c   :  { %v9014_v30 = vpop.f32.mrf.mxu0 }
 0xa4d   :  { %6486 = vmatprep.mubr.msk.f32.mxu1 %vm392_vm2, %v9014_v30 }
 0xa4e   :  { %v9018_v39 = vpop.f32.mrf.mxu0  ;;  %6487 = vmatmul.mubr.msk.f32.gmra.mxu1 %vm392_vm2, %v9010_v46 }
 0xa50   :  { %v9022_v9 = vpop.f32.mrf.mxu0 }
 0xa51   :  { %6489 = vmatprep.mubr.msk.f32.mxu1 %vm392_vm2, %v9022_v9 }
 0xa52   :  { %v9026_v4 = vpop.f32.mrf.mxu0  ;;  %6490 = vmatmul.mubr.msk.f32.gmra.mxu1 %vm392_vm2, %v9018_v39 }
 0xa54   :  { %v9030_v18 = vpop.f32.mrf.mxu0 }
 0xa55   :  { %6492 = vmatprep.mubr.msk.f32.mxu1 %vm392_vm2, %v9030_v18 }
 0xa56   :  { %v9034_v6 = vpop.f32.mrf.mxu0  ;;  %6493 = vmatmul.mubr.msk.f32.gmra.mxu1 %vm392_vm2, %v9026_v4 }
 0xa58   :  { %v9038_v49 = vpop.f32.mrf.mxu0 }
 0xa59   :  { %6495 = vmatprep.mubr.msk.f32.mxu1 %vm392_vm2, %v9038_v49 }
 0xa5a   :  { %v9042_v37 = vpop.f32.mrf.mxu0  ;;  %6496 = vmatmul.mubr.msk.f32.gmra.mxu1 %vm392_vm2, %v9034_v6 }
 0xa5b   :  { %6502 = vmatpush3.xpose.msk.msra.mxu0 %vm392_vm2, %v9042_v37  ;;  %6536 = vmatprep.subr.mxu1 %v9042_v37 }
 0xa5c   :  { %v9049_v2 = vpop.f32.mrf.mxu0  ;;  %6537 = vmatpush3.msra.mxu1 %v9042_v37  ;;  %6503 = vmatprep.subr.mxu0 %v10596_v19 }
 0xa5d   :  { %6538 = vmatprep.subr.mxu1 %v9049_v2  ;;  %6498 = vmatprep.mubr.msk.f32.mxu1 %vm392_vm2, %v9049_v2 }
 0xa5e   :  { %6539 = vmatpush3.msra.mxu1 %v9049_v2 }
 0xa5f   :  { %6504 = vmatpush3.xpose.msk.msra.mxu0 %vm392_vm2, %v9049_v2  ;;  %6540 = vmatprep.subr.mxu1 %v9034_v6 }
 0xa60   :  { %6541 = vmatpush3.msra.mxu1 %v9034_v6  ;;  %6505 = vmatprep.subr.mxu0 %v10596_v19 }
 0xa61   :  { %6542 = vmatprep.subr.mxu1 %v9038_v49  ;;  %6499 = vmatmul.mubr.msk.f32.gmra.mxu1 %vm392_vm2, %v9042_v37 }
 0xa62   :  { %6543 = vmatpush3.msra.mxu1 %v9038_v49 }
 0xa63   :  { %6506 = vmatpush3.xpose.msk.msra.mxu0 %vm392_vm2, %v9034_v6  ;;  %6544 = vmatprep.subr.mxu1 %v9026_v4 }
 0xa64   :  { %6545 = vmatpush3.msra.mxu1 %v9026_v4  ;;  %6507 = vmatprep.subr.mxu0 %v10596_v19 }
 0xa65   :  { %6546 = vmatprep.subr.mxu1 %v9030_v18 }
 0xa66   :  { %6547 = vmatpush3.msra.mxu1 %v9030_v18 }
 0xa67   :  { %6508 = vmatpush3.xpose.msk.msra.mxu0 %vm392_vm2, %v9038_v49  ;;  %6548 = vmatprep.subr.mxu1 %v9018_v39 }
 0xa68   :  { %6549 = vmatpush3.msra.mxu1 %v9018_v39  ;;  %6509 = vmatprep.subr.mxu0 %v10596_v19 }
 0xa69   :  { %6550 = vmatprep.subr.mxu1 %v9022_v9 }
 0xa6a   :  { %6551 = vmatpush3.msra.mxu1 %v9022_v9 }
 0xa6b   :  { %6510 = vmatpush3.xpose.msk.msra.mxu0 %vm392_vm2, %v9026_v4  ;;  %6552 = vmatprep.subr.mxu1 %v9010_v46 }
 0xa6c   :  { %6553 = vmatpush3.msra.mxu1 %v9010_v46  ;;  %6511 = vmatprep.subr.mxu0 %v10596_v19 }
 0xa6d   :  { %6554 = vmatprep.subr.mxu1 %v9014_v30 }
 0xa6e   :  { %6555 = vmatpush3.msra.mxu1 %v9014_v30 }
 0xa6f   :  { %6512 = vmatpush3.xpose.msk.msra.mxu0 %vm392_vm2, %v9030_v18  ;;  %6556 = vmatprep.subr.mxu1 %v9002_v0 }
 0xa70   :  { %6557 = vmatpush3.msra.mxu1 %v9002_v0  ;;  %6513 = vmatprep.subr.mxu0 %v10596_v19 }
 0xa71   :  { %6558 = vmatprep.subr.mxu1 %v9006_v60 }
 0xa72   :  { %6559 = vmatpush3.msra.mxu1 %v9006_v60 }
 0xa73   :  { %6514 = vmatpush3.xpose.msk.msra.mxu0 %vm392_vm2, %v9018_v39  ;;  %6560 = vmatprep.subr.mxu1 %v8994_v56 }
 0xa74   :  { %6561 = vmatpush3.msra.mxu1 %v8994_v56  ;;  %6515 = vmatprep.subr.mxu0 %v10596_v19 }
 0xa75   :  { %6562 = vmatprep.subr.mxu1 %v8998_v22 }
 0xa76   :  { %6563 = vmatpush3.msra.mxu1 %v8998_v22 }
 0xa77   :  { %6516 = vmatpush3.xpose.msk.msra.mxu0 %vm392_vm2, %v9022_v9  ;;  %6564 = vmatprep.subr.mxu1 %v8988_v55 }
 0xa78   :  { %6565 = vmatpush3.msra.mxu1 %v8988_v55  ;;  %6517 = vmatprep.subr.mxu0 %v10596_v19 }
 0xa79   :  { %6566 = vmatprep.subr.mxu1 %v8990_v3 }
 0xa7a   :  { %6567 = vmatpush3.msra.mxu1 %v8990_v3 }
 0xa7b   :  { %6518 = vmatpush3.xpose.msk.msra.mxu0 %vm392_vm2, %v9010_v46 }
 0xa7c   :  { %6519 = vmatprep.subr.mxu0 %v10596_v19 }
 0xa7f   :  { %6520 = vmatpush3.xpose.msk.msra.mxu0 %vm392_vm2, %v9014_v30 }
 0xa80   :  { %6521 = vmatprep.subr.mxu0 %v10596_v19 }
 0xa83   :  { %6522 = vmatpush3.xpose.msk.msra.mxu0 %vm392_vm2, %v9002_v0 }
 0xa84   :  { %6523 = vmatprep.subr.mxu0 %v10596_v19 }
 0xa87   :  { %6524 = vmatpush3.xpose.msk.msra.mxu0 %vm392_vm2, %v9006_v60 }
 0xa88   :  { %6525 = vmatprep.subr.mxu0 %v10596_v19 }
 0xa8b   :  { %6526 = vmatpush3.xpose.msk.msra.mxu0 %vm392_vm2, %v8994_v56 }
 0xa8c   :  { %6527 = vmatprep.subr.mxu0 %v10596_v19 }
 0xa8f   :  { %6528 = vmatpush3.xpose.msk.msra.mxu0 %vm392_vm2, %v8998_v22  ;;  %v10615_v22 = vld [vmem:[#allocation31_spill] sm:$0xff] }
 0xa90   :  { %6529 = vmatprep.subr.mxu0 %v10596_v19 }
 0xa93   :  { %6530 = vmatpush3.xpose.msk.msra.mxu0 %vm392_vm2, %v8988_v55 }
 0xa94   :  { %6531 = vmatprep.subr.mxu0 %v10596_v19 }
 0xa97   :  { %6532 = vmatpush3.xpose.msk.msra.mxu0 %vm392_vm2, %v8990_v3 }
 0xa9a   :  { %6534 = vmatmul.mubr.msk.f32.vlgmr.msra.gmra.mxu0 %vm392_vm2, %v2548_v32 }
 0xb02   :  { %v6479_v61 = vpop.f32.mrf.mxu1 }
 0xb03   :  { %3503 = vperm.xlu0 %6864, %v6479_v61   ;;  %3016 = vperm.xlu1 %6863, %v6479_v61  }
 0xb04   :  { %v9135_v59 = vpop.f32.mrf.mxu1 }
 0xb06   :  { %v9137_v52 = vpop.f32.mrf.mxu1 }
 0xb07   :  { %6865 = vset.pattern.permute.xlu1 %v10603_v50  ;;  %6870 = vset.pattern.permute.xlu0 %v10604_v7 }
 0xb08   :  { %4024 = vperm.xlu1 %6865, %v6479_v61   ;;  %v2867_v19 = vpop.f32.mrf.mxu1 }
 0xb09   :  { %3021 = vperm.xlu0 %6870, %v2867_v19  }
 0xb0a   :  { %v6485_v40 = vpop.f32.mrf.mxu1 }
 0xb0c   :  { %6866 = vset.pattern.permute.xlu1 %v10604_v7  ;;  %v9143_v34 = vpop.f32.mrf.mxu1 }
 0xb0d   :  { %3011 = vperm.xlu1 %6866, %v9135_v59   ;;  %3036 = vperm.xlu0 %6870, %v6485_v40  }
 0xb0e   :  { %v6488_v44 = vpop.f32.mrf.mxu1 }
 0xb10   :  { %v9152_v45 = vpop.f32.mrf.mxu1 }
 0xb11   :  { %6867 = vset.pattern.permute.xlu1 %v10605_v57  ;;  %6875 = vset.pattern.permute.xlu0 %v10605_v57 }
 0xb12   :  { %3499 = vperm.xlu1 %6867, %v9135_v59   ;;  %3515 = vperm.xlu0 %6875, %v9143_v34   ;;  %v9158_v23 = vpop.f32.mrf.mxu1 }
 0xb14   :  { %v9162_v20 = vpop.f32.mrf.mxu1 }
 0xb16   :  { %6868 = vset.pattern.permute.xlu1 %v10604_v7  ;;  %6876 = vset.pattern.permute.xlu0 %v10604_v7  ;;  %v9167_v15 = vpop.f32.mrf.mxu1 }
 0xb17   :  { %3026 = vperm.xlu1 %6868, %v9137_v52   ;;  %3046 = vperm.xlu0 %6876, %v6488_v44  }
 0xb18   :  { %v9172_v25 = vpop.f32.mrf.mxu1 }
 0xb1a   :  { %v9177_v33 = vpop.f32.mrf.mxu1 }
 0xb1b   :  { %6869 = vset.pattern.permute.xlu1 %v10605_v57  ;;  %6880 = vset.pattern.permute.xlu0 %v10605_v57 }
 0xb1c   :  { %3511 = vperm.xlu1 %6869, %v9137_v52   ;;  %3523 = vperm.xlu0 %6880, %v9152_v45   ;;  %v9183_v16 = vpop.f32.mrf.mxu1 }
 0xb20   :  { %3507 = vperm.xlu1 %6869, %v2867_v19   ;;  %6881 = vset.pattern.permute.xlu0 %v10604_v7 }
 0xb21   :  { %3056 = vperm.xlu0 %6881, %v9158_v23   ;;  %v9188_v41 = vpop.f32.mrf.mxu1 }
 0xb23   :  { %v9193_v1 = vpop.f32.mrf.mxu1 }
 0xb24   :  { %6871 = vset.pattern.permute.xlu1 %v10603_v50 }
 0xb25   :  { %4028 = vperm.xlu1 %6871, %v2867_v19   ;;  %6884 = vset.pattern.permute.xlu0 %v10605_v57  ;;  %v10609_v19 = vld [vmem:[#allocation17_spill] sm:$0xff] }
 0xb26   :  { %3531 = vperm.xlu0 %6884, %v9162_v20  }
 0xb29   :  { %6872 = vset.pattern.permute.xlu1 %v10605_v57 }
 0xb2a   :  { %3519 = vperm.xlu1 %6872, %v6485_v40   ;;  %6885 = vset.pattern.permute.xlu0 %v10604_v7 }
 0xb2b   :  { %3066 = vperm.xlu0 %6885, %v9167_v15  }
 0xb2e   :  { %6873 = vset.pattern.permute.xlu1 %v10603_v50 }
 0xb2f   :  { %4040 = vperm.xlu1 %6873, %v6485_v40   ;;  %6888 = vset.pattern.permute.xlu0 %v10605_v57 }
 0xb30   :  { %3539 = vperm.xlu0 %6888, %v9172_v25  }
 0xb33   :  { %6874 = vset.pattern.permute.xlu1 %v10604_v7 }
 0xb34   :  { %3031 = vperm.xlu1 %6874, %v9143_v34   ;;  %6889 = vset.pattern.permute.xlu0 %v10604_v7 }
 0xb35   :  { %3076 = vperm.xlu0 %6889, %v9177_v33  }
 0xb38   :  { %6877 = vset.pattern.permute.xlu1 %v10605_v57 }
 0xb39   :  { %3527 = vperm.xlu1 %6877, %v6488_v44   ;;  %6892 = vset.pattern.permute.xlu0 %v10605_v57 }
 0xb3a   :  { %3547 = vperm.xlu0 %6892, %v9183_v16  }
 0xb3d   :  { %6878 = vset.pattern.permute.xlu1 %v10603_v50 }
 0xb3e   :  { %4048 = vperm.xlu1 %6878, %v6488_v44   ;;  %6893 = vset.pattern.permute.xlu0 %v10604_v7 }
 0xb3f   :  { %3086 = vperm.xlu0 %6893, %v9188_v41  }
 0xb42   :  { %6879 = vset.pattern.permute.xlu1 %v10604_v7 }
 0xb43   :  { %3041 = vperm.xlu1 %6879, %v9152_v45   ;;  %6896 = vset.pattern.permute.xlu0 %v10605_v57 }
 0xb44   :  { %3555 = vperm.xlu0 %6896, %v9193_v1  }
 0xb47   :  { %6882 = vset.pattern.permute.xlu1 %v10605_v57 }
 0xb48   :  { %3535 = vperm.xlu1 %6882, %v9158_v23   ;;  %6898 = vset.pattern.permute.xlu0 %v10603_v50 }
 0xb4c   :  { %6883 = vset.pattern.permute.xlu1 %v10604_v7 }
 0xb4d   :  { %3051 = vperm.xlu1 %6883, %v9162_v20  }
 0xb51   :  { %6886 = vset.pattern.permute.xlu1 %v10605_v57 }
 0xb52   :  { %3543 = vperm.xlu1 %6886, %v9167_v15  }
 0xb56   :  { %6887 = vset.pattern.permute.xlu1 %v10604_v7 }
 0xb57   :  { %3061 = vperm.xlu1 %6887, %v9172_v25  }
 0xb5a   :  { %v9208_v31 = vpop.f32.mrf.mxu0 }
 0xb5b   :  { %10606 = vst [vmem:[#allocation55_spill] sm:$0xff] %v9208_v31  ;;  %6890 = vset.pattern.permute.xlu1 %v10605_v57  ;;  %v9221_v5 = vrot.slane %v9208_v31, %v10607_v54 }
 0xb5c   :  { %3551 = vperm.xlu1 %6890, %v9177_v33   ;;  %v6535_v53 = vpop.f32.mrf.mxu0 }
 0xb60   :  { %6891 = vset.pattern.permute.xlu1 %v10604_v7 }
 0xb61   :  { %3071 = vperm.xlu1 %6891, %v9183_v16  }
 0xb65   :  { %6894 = vset.pattern.permute.xlu1 %v10605_v57 }
 0xb66   :  { %3559 = vperm.xlu1 %6894, %v9188_v41  }
 0xb6a   :  { %6895 = vset.pattern.permute.xlu1 %v10604_v7 }
 0xb6b   :  { %3081 = vperm.xlu1 %6895, %v9193_v1  }
 0xb6f   :  { %6897 = vset.pattern.permute.xlu1 %v10603_v50 }
 0xb7e   :  { %v3017_v12 = vpop.permute.xlu1 %3016  ;;  %v9224_v29 = vpop.permute.xlu0 %3503 }
 0xb7f   :  { %v3094_v8 = vadd.f32 %v9221_v5, %v3017_v12 }
 0xb81   :  { %v3110_v14 = vmul.f32 0.2, %v3094_v8 }
 0xb83   :  { %v3126_v48 = vmax.f32 %v3094_v8, %v3110_v14  ;;  %v9226_v32 = vpop.permute.xlu1 %4024 }
 0xb84   :  { %10608 = vst [vmem:[#allocation60_spill] sm:$0xff] %v9226_v32  ;;  %v3022_v61 = vpop.permute.xlu0 %3021 }
 0xb85   :  { %v9229_v7 = vadd.f32 %v3126_v48, %v10609_v19  ;;  %v3095_v50 = vadd.f32 %v9221_v5, %v3022_v61 }
 0xb87   :  { %3159 = vmax.xlane.f32.xlu0 %v9229_v7  ;;  %v3111_v12 = vmul.f32 0.2, %v3095_v50 }
 0xb88   :  { %v3012_v40 = vpop.permute.xlu1 %3011  ;;  %v3037_v57 = vpop.permute.xlu0 %3036 }
 0xb89   :  { %v3093_v44 = vadd.f32 %v9221_v5, %v3012_v40  ;;  %v3127_v14 = vmax.f32 %v3095_v50, %v3111_v12  ;;  %v3098_v48 = vadd.f32 %v9221_v5, %v3037_v57 }
 0xb8b   :  { %v3109_v53 = vmul.f32 0.2, %v3093_v44 }
 0xb8d   :  { %v3125_v11 = vmax.f32 %v3093_v44, %v3109_v53  ;;  %v9234_v27 = vpop.permute.xlu1 %3499  ;;  %v9236_v8 = vpop.permute.xlu0 %3515  ;;  %v9246_v44 = vadd.f32 %v3127_v14, %v10611_v51  ;;  %v3114_v53 = vmul.f32 0.2, %v3098_v48 }
 0xb8f   :  { %v9239_v42 = vadd.f32 %v3125_v11, %v10610_v47  ;;  %v3130_v28 = vmax.f32 %v3098_v48, %v3114_v53 }
 0xb91   :  { %3157 = vmax.xlane.f32.xlu1 %v9239_v42  ;;  %v9261_v26 = vadd.f32 %v3130_v28, %v10557_v35 }
 0xb92   :  { %v3027_v61 = vpop.permute.xlu1 %3026  ;;  %v3047_v62 = vpop.permute.xlu0 %3046 }
 0xb93   :  { %v3096_v17 = vadd.f32 %v9221_v5, %v3027_v61  ;;  %v3100_v40 = vadd.f32 %v9221_v5, %v3047_v62 }
 0xb95   :  { %v3112_v38 = vmul.f32 0.2, %v3096_v17  ;;  %3161 = vmax.xlane.f32.xlu1 %v9246_v44  ;;  %v3116_v11 = vmul.f32 0.2, %v3100_v40 }
 0xb97   :  { %v3128_v50 = vmax.f32 %v3096_v17, %v3112_v38  ;;  %v9249_v12 = vpop.permute.xlu1 %3511  ;;  %v9251_v57 = vpop.permute.xlu0 %3523  ;;  %v3132_v61 = vmax.f32 %v3100_v40, %v3116_v11 }
 0xb99   :  { %v9254_v13 = vadd.f32 %v3128_v50, %v10612_v43  ;;  %v9265_v17 = vadd.f32 %v3132_v61, %v7969_v10 }
 0xb9b   :  { %v9256_v24 = vpop.permute.xlu1 %3507  ;;  %3163 = vmax.xlane.f32.xlu0 %v9254_v13 }
 0xb9c   :  { %v3057_v62 = vpop.permute.xlu0 %3056 }
 0xb9d   :  { %v3102_v14 = vadd.f32 %v9221_v5, %v3057_v62 }
 0xb9f   :  { %v3118_v38 = vmul.f32 0.2, %v3102_v14  ;;  %3167 = vmax.xlane.f32.xlu0 %v9261_v26 }
 0xba0   :  { %v9267_v48 = vpop.permute.xlu1 %4028 }
 0xba1   :  { %10613 = vst [vmem:[#allocation41_spill] sm:$0xff] %v9267_v48  ;;  %v3134_v53 = vmax.f32 %v3102_v14, %v3118_v38  ;;  %v9269_v40 = vpop.permute.xlu0 %3531 }
 0xba3   :  { %3171 = vmax.xlane.f32.xlu0 %v9265_v17  ;;  %v9273_v50 = vadd.f32 %v3134_v53, %v7998_v21 }
 0xba5   :  { %v9275_v11 = vpop.permute.xlu1 %3519 }
 0xba6   :  { %v3067_v28 = vpop.permute.xlu0 %3066 }
 0xba7   :  { %v3104_v62 = vadd.f32 %v9221_v5, %v3067_v28  ;;  %3175 = vmax.xlane.f32.xlu0 %v9273_v50 }
 0xba9   :  { %v3120_v54 = vmul.f32 0.2, %v3104_v62 }
 0xbaa   :  { %v9279_v61 = vpop.permute.xlu1 %4040 }
 0xbab   :  { %10614 = vst [vmem:[#allocation11_spill] sm:$0xff] %v9279_v61  ;;  %v3136_v32 = vmax.f32 %v3104_v62, %v3120_v54 }
 0xbad   :  { %v9282_v14 = vadd.f32 %v3136_v32, %v10504_v58 }
 0xbaf   :  { %v3032_v38 = vpop.permute.xlu1 %3031  ;;  %3179 = vmax.xlane.f32.xlu0 %v9282_v14 }
 0xbb0   :  { %v3097_v53 = vadd.f32 %v9221_v5, %v3032_v38  ;;  %v10617_v38 = vld [vmem:[#allocation35_spill] sm:$0xff] }
 0xbb2   :  { %v3113_v48 = vmul.f32 0.2, %v3097_v53 }
 0xbb4   :  { %v3129_v3 = vmax.f32 %v3097_v53, %v3113_v48  ;;  %v9286_v55 = vpop.permute.xlu1 %3527 }
 0xbb6   :  { %v9289_v28 = vadd.f32 %v3129_v3, %v10615_v22 }
 0xbb8   :  { %3165 = vmax.xlane.f32.xlu1 %v9289_v28 }
 0xbb9   :  { %v9292_v56 = vpop.permute.xlu1 %4048 }
 0xbba   :  { %10616 = vst [vmem:[#allocation59_spill] sm:$0xff] %v9292_v56 }
 0xbbe   :  { %v3042_v54 = vpop.permute.xlu1 %3041 }
 0xbbf   :  { %v3099_v32 = vadd.f32 %v9221_v5, %v3042_v54  ;;  %v10619_v54 = vld [vmem:[#allocation40_spill] sm:$0xff] }
 0xbc1   :  { %v3115_v62 = vmul.f32 0.2, %v3099_v32 }
 0xbc3   :  { %v3131_v61 = vmax.f32 %v3099_v32, %v3115_v62  ;;  %v9295_v58 = vpop.permute.xlu1 %3535 }
 0xbc5   :  { %4020 = vperm.xlu0 %6898, %v9135_v59   ;;  %v9299_v48 = vadd.f32 %v3131_v61, %v10617_v38 }
 0xbc7   :  { %3169 = vmax.xlane.f32.xlu1 %v9299_v48 }
 0xbc8   :  { %v3052_v3 = vpop.permute.xlu1 %3051 }
 0xbc9   :  { %v3101_v53 = vadd.f32 %v9221_v5, %v3052_v3  ;;  %4032 = vperm.xlu0 %6898, %v9137_v52  }
 0xbcb   :  { %v3117_v56 = vmul.f32 0.2, %v3101_v53 }
 0xbcd   :  { %v3133_v60 = vmax.f32 %v3101_v53, %v3117_v56  ;;  %v9304_v0 = vpop.permute.xlu1 %3543  ;;  %4036 = vperm.xlu0 %6898, %v9143_v34   ;;  %v10620_v56 = vld [vmem:[#allocation43_spill] sm:$0xff] }
 0xbce   :  { %10618 = vst [vmem:[#allocation36_spill] sm:$0xff] %v9304_v0 }
 0xbcf   :  { %v9308_v32 = vadd.f32 %v3133_v60, %v10619_v54 }
 0xbd1   :  { %4044 = vperm.xlu0 %6898, %v9152_v45   ;;  %3173 = vmax.xlane.f32.xlu1 %v9308_v32  ;;  %v9323_v45 = vpop.permute.xlu0 %3539 }
 0xbd2   :  { %v3062_v59 = vpop.permute.xlu1 %3061 }
 0xbd3   :  { %v3103_v61 = vadd.f32 %v9221_v5, %v3062_v59 }
 0xbd5   :  { %v3119_v62 = vmul.f32 0.2, %v3103_v61  ;;  %4052 = vperm.xlu0 %6898, %v9162_v20   ;;  %v3077_v53 = vpop.permute.xlu0 %3076 }
 0xbd7   :  { %v3135_v52 = vmax.f32 %v3103_v61, %v3119_v62  ;;  %v9320_v60 = vpop.permute.xlu1 %3551 }
 0xbd8   :  { %10621 = vst [vmem:[#allocation58_spill] sm:$0xff] %v9320_v60 }
 0xbd9   :  { %4060 = vperm.xlu0 %6898, %v9172_v25   ;;  %v9316_v3 = vadd.f32 %v3135_v52, %v10620_v56  ;;  %v3106_v25 = vadd.f32 %v9221_v5, %v3077_v53  ;;  %v9341_v53 = vpop.permute.xlu0 %3547 }
 0xbda   :  { %10624 = vst [vmem:[#allocation62_spill] sm:$0xff] %v9341_v53 }
 0xbdb   :  { %3177 = vmax.xlane.f32.xlu1 %v9316_v3 }
 0xbdc   :  { %v3072_v34 = vpop.permute.xlu1 %3071 }
 0xbdd   :  { %4068 = vperm.xlu0 %6898, %v9183_v16   ;;  %v3122_v16 = vmul.f32 0.2, %v3106_v25 }
 0xbe1   :  { %4076 = vperm.xlu0 %6898, %v9193_v1   ;;  %v9326_v20 = vpop.permute.xlu1 %3559  ;;  %v3138_v1 = vmax.f32 %v3106_v25, %v3122_v16  ;;  %v10626_v16 = vld [vmem:[#allocation16_spill] sm:$0xff] }
 0xbe2   :  { %10622 = vst [vmem:[#allocation9_spill] sm:$0xff] %v9326_v20  ;;  %v10623_v20 = vld [vmem:[#allocation61_spill] sm:$0xff] }
 0xbe6   :  { %v3082_v59 = vpop.permute.xlu1 %3081 }
 0xbe7   :  { %v3107_v61 = vadd.f32 %v9221_v5, %v3082_v59  ;;  %v3105_v59 = vadd.f32 %v9221_v5, %v3072_v34 }
 0xbe9   :  { %v3123_v62 = vmul.f32 0.2, %v3107_v61  ;;  %v3121_v25 = vmul.f32 0.2, %v3105_v59 }
 0xbeb   :  { %v3139_v52 = vmax.f32 %v3107_v61, %v3123_v62  ;;  %v10627_v61 = vsub.s32 1, %v10626_v16 }
 0xbec   :  { %4056 = vperm.xlu1 %6897, %v9158_v23   ;;  %v9334_v23 = vadd.f32 %v3138_v1, %v10510_v63  ;;  %v3137_v63 = vmax.f32 %v3105_v59, %v3121_v25 }
 0xbed   :  { %v9350_v1 = vrot.slane %v9208_v31, %v10627_v61 }
 0xbef   :  { %v3567_v34 = vadd.f32 %v9350_v1, %v9224_v29 }
 0xbf0   :  { %4064 = vperm.xlu1 %6897, %v9167_v15   ;;  %v9338_v15 = vadd.f32 %v3139_v52, %v10623_v20  ;;  %v3566_v52 = vadd.f32 %v9350_v1, %v9234_v27 }
 0xbf1   :  { %v3583_v59 = vmul.f32 0.2, %v3567_v34 }
 0xbf4   :  { %4072 = vperm.xlu1 %6897, %v9177_v33   ;;  %v3087_v33 = vpop.permute.xlu0 %3086 }
 0xbf8   :  { %4080 = vperm.xlu1 %6897, %v9188_v41   ;;  %v9344_v60 = vpop.permute.xlu0 %3555  ;;  %v3108_v41 = vadd.f32 %v9221_v5, %v3087_v33  ;;  %v10628_v33 = vld [vmem:[#allocation46_spill] sm:$0xff] }
 0xbf9   :  { %10625 = vst [vmem:[#allocation57_spill] sm:$0xff] %v9344_v60  ;;  %v3582_v60 = vmul.f32 0.2, %v3566_v52  ;;  %v9360_v61 = vadd.f32 %v3137_v63, %v10628_v33 }
 0xbfa   :  { %v3124_v20 = vmul.f32 0.2, %v3108_v41 }
 0xbfc   :  { %v3140_v0 = vmax.f32 %v3108_v41, %v3124_v20 }
 0xbfe   :  { %v9367_v20 = vadd.f32 %v3140_v0, %v8178_v36 }
 0xc00   :  { %3183 = vmax.xlane.f32.xlu0 %v9334_v23 }
 0xc04   :  { %3185 = vmax.xlane.f32.xlu0 %v9338_v15 }
 0xc10   :  { %v3160_v62 = vpop.xlane.xlu0 %3159 }
 0xc11   :  { %v3190_v53 = vsub.f32 %v9229_v7, %v3160_v62  ;;  %v3598_v7 = vmax.f32 %v3566_v52, %v3582_v60  ;;  %v3568_v62 = vadd.f32 %v9350_v1, %v9256_v24 }
 0xc13   :  { %v3207_v16 = vmul.f32 1.442695, %v3190_v53  ;;  %v9372_v53 = vadd.f32 %v3598_v7, %v10610_v47 }
 0xc1a   :  { %3804 = vrot.lane.b32.xlu0 %v9042_v37, %s7464_s0  ;;  %v3158_v5 = vpop.xlane.xlu1 %3157 }
 0xc1b   :  { %v3189_v31 = vsub.f32 %v9239_v42, %v3158_v5  ;;  %v3599_v42 = vmax.f32 %v3567_v34, %v3583_v59 }
 0xc1c   :  { %3181 = vmax.xlane.f32.xlu1 %v9360_v61 }
 0xc1d   :  { %v3205_v27 = vmul.f32 1.442695, %v3189_v31  ;;  %v9377_v0 = vadd.f32 %v3599_v42, %v10609_v19 }
 0xc1e   :  { %3800 = vrot.lane.b32.xlu0 %v9034_v6, %s7464_s0  ;;  %v3162_v29 = vpop.xlane.xlu1 %3161 }
 0xc1f   :  { %7123 = vpow2.f32 %v3205_v27  ;;  %v3191_v41 = vsub.f32 %v9246_v44, %v3162_v29 }
 0xc20   :  { %7125 = vpow2.f32 %v3207_v16  ;;  %3187 = vmax.xlane.f32.xlu1 %v9367_v20 }
 0xc21   :  { %v3209_v63 = vmul.f32 1.442695, %v3191_v41 }
 0xc23   :  { %7127 = vpow2.f32 %v3209_v63 }
 0xc24   :  { %v3164_v31 = vpop.xlane.xlu0 %3163  ;;  %3630 = vmax.xlane.f32.xlu1 %v9372_v53 }
 0xc25   :  { %v3192_v60 = vsub.f32 %v9254_v13, %v3164_v31  ;;  %v3584_v13 = vmul.f32 0.2, %v3568_v62 }
 0xc27   :  { %v3211_v25 = vmul.f32 1.442695, %v3192_v60  ;;  %v3600_v5 = vmax.f32 %v3568_v62, %v3584_v13  ;;  %v3569_v60 = vadd.f32 %v9350_v1, %v9249_v12 }
 0xc28   :  { %3632 = vmax.xlane.f32.xlu1 %v9377_v0  ;;  %v3168_v59 = vpop.xlane.xlu0 %3167 }
 0xc29   :  { %7129 = vpow2.f32 %v3211_v25  ;;  %v9397_v27 = vadd.f32 %v3600_v5, %v10611_v51  ;;  %v3194_v24 = vsub.f32 %v9261_v26, %v3168_v59  ;;  %v3585_v26 = vmul.f32 0.2, %v3569_v60 }
 0xc2b   :  { %v3215_v41 = vmul.f32 1.442695, %v3194_v24  ;;  %v3601_v12 = vmax.f32 %v3569_v60, %v3585_v26 }
 0xc2c   :  { %v9380_v44 = vpop.eup %7123  ;;  %v3172_v42 = vpop.xlane.xlu0 %3171 }
 0xc2d   :  { %10629 = vst [vmem:[#allocation51_spill] sm:$0xff] %v9380_v44  ;;  %v9382_v16 = vpop.eup %7125  ;;  %6568 = vmatprep.mubr.f32.mxu1 %v9380_v44  ;;  %v3196_v31 = vsub.f32 %v9265_v17, %v3172_v42 }
 0xc2e   :  { %10630 = vst [vmem:[#allocation53_spill] sm:$0xff] %v9382_v16  ;;  %6569 = vmatmul.mubr.f32.vlgmr.msra.gmra.mxu1 %v9382_v16 }
 0xc2f   :  { %v3219_v13 = vmul.f32 1.442695, %v3196_v31 }
 0xc30   :  { %v9388_v52 = vpop.eup %7127  ;;  %v3176_v59 = vpop.xlane.xlu0 %3175 }
 0xc31   :  { %10631 = vst [vmem:[#allocation42_spill] sm:$0xff] %v9388_v52  ;;  %6571 = vmatprep.mubr.f32.mxu1 %v9388_v52 }
 0xc36   :  { %v9391_v34 = vpop.eup %7129 }
 0xc37   :  { %10632 = vst [vmem:[#allocation28_spill] sm:$0xff] %v9391_v34  ;;  %6572 = vmatmul.mubr.f32.gmra.mxu1 %v9391_v34  ;;  %v3572_v34 = vadd.f32 %v9350_v1, %v9251_v57 }
 0xc38   :  { %v3180_v17 = vpop.xlane.xlu0 %3179 }
 0xc39   :  { %3802 = vrot.lane.b32.xlu1 %v9049_v2, %s7464_s0 }
 0xc3d   :  { %3634 = vmax.xlane.f32.xlu0 %v9397_v27 }
 0xc41   :  { %v3166_v7 = vpop.xlane.xlu1 %3165 }
 0xc42   :  { %v3193_v29 = vsub.f32 %v9289_v28, %v3166_v7  ;;  %v9415_v7 = vpop.permute.xlu0 %4020 }
 0xc44   :  { %v3213_v63 = vmul.f32 1.442695, %v3193_v29 }
 0xc46   :  { %7131 = vpow2.f32 %v3213_v63 }
 0xc47   :  { %7133 = vpow2.f32 %v3215_v41  ;;  %v9419_v41 = vadd.f32 %v3601_v12, %v10612_v43 }
 0xc50   :  { %v3170_v25 = vpop.xlane.xlu1 %3169 }
 0xc51   :  { %v3195_v62 = vsub.f32 %v9299_v48, %v3170_v25  ;;  %v3198_v48 = vsub.f32 %v9273_v50, %v3176_v59  ;;  %v3200_v50 = vsub.f32 %v9282_v14, %v3180_v17 }
 0xc53   :  { %v9406_v5 = vpop.eup %7131  ;;  %v3217_v44 = vmul.f32 1.442695, %v3195_v62  ;;  %3798 = vrot.lane.b32.xlu0 %v9038_v49, %s7464_s0  ;;  %v3223_v63 = vmul.f32 1.442695, %v3198_v48 }
 0xc54   :  { %10633 = vst [vmem:[#allocation33_spill] sm:$0xff] %v9406_v5  ;;  %v9410_v28 = vpop.eup %7133  ;;  %6574 = vmatprep.mubr.f32.mxu1 %v9406_v5 }
 0xc55   :  { %10634 = vst [vmem:[#allocation30_spill] sm:$0xff] %v9410_v28  ;;  %7135 = vpow2.f32 %v3217_v44  ;;  %6575 = vmatmul.mubr.f32.gmra.mxu1 %v9410_v28  ;;  %v9422_v44 = vpop.permute.xlu0 %4032 }
 0xc56   :  { %7137 = vpow2.f32 %v3219_v13  ;;  %v3227_v13 = vmul.f32 1.442695, %v3200_v50 }
 0xc59   :  { %v9434_v26 = vpop.permute.xlu0 %4036 }
 0xc5a   :  { %v3174_v24 = vpop.xlane.xlu1 %3173 }
 0xc5b   :  { %v3197_v29 = vsub.f32 %v9308_v32, %v3174_v24  ;;  %v3570_v32 = vadd.f32 %v9350_v1, %v9236_v8 }
 0xc5d   :  { %v3221_v42 = vmul.f32 1.442695, %v3197_v29  ;;  %3636 = vmax.xlane.f32.xlu1 %v9419_v41  ;;  %v3586_v12 = vmul.f32 0.2, %v3570_v32  ;;  %v9440_v24 = vpop.permute.xlu0 %4044 }
 0xc5f   :  { %7139 = vpow2.f32 %v3221_v42  ;;  %v3602_v17 = vmax.f32 %v3570_v32, %v3586_v12  ;;  %v3571_v32 = vadd.f32 %v9350_v1, %v9275_v11 }
 0xc60   :  { %7141 = vpow2.f32 %v3223_v63 }
 0xc61   :  { %v9447_v8 = vadd.f32 %v3602_v17, %v10615_v22 }
 0xc62   :  { %v9424_v31 = vpop.eup %7135 }
 0xc63   :  { %10635 = vst [vmem:[#allocation6_spill] sm:$0xff] %v9424_v31  ;;  %v9427_v60 = vpop.eup %7137  ;;  %6577 = vmatprep.mubr.f32.mxu1 %v9424_v31 }
 0xc64   :  { %10636 = vst [vmem:[#allocation15_spill] sm:$0xff] %v9427_v60  ;;  %6578 = vmatmul.mubr.f32.gmra.mxu1 %v9427_v60  ;;  %v3178_v25 = vpop.xlane.xlu1 %3177 }
 0xc65   :  { %v3199_v62 = vsub.f32 %v9316_v3, %v3178_v25  ;;  %v9450_v3 = vpop.permute.xlu0 %4052 }
 0xc67   :  { %v3225_v59 = vmul.f32 1.442695, %v3199_v62  ;;  %v3587_v62 = vmul.f32 0.2, %v3571_v32 }
 0xc68   :  { %v9468_v17 = vpop.permute.xlu1 %4056 }
 0xc69   :  { %7143 = vpow2.f32 %v3225_v59  ;;  %v9458_v42 = vpop.permute.xlu0 %4060  ;;  %v3603_v59 = vmax.f32 %v3571_v32, %v3587_v62 }
 0xc6a   :  { %7145 = vpow2.f32 %v3227_v13 }
 0xc6b   :  { %v9471_v16 = vadd.f32 %v3603_v59, %v10557_v35 }
 0xc6c   :  { %v9436_v14 = vpop.eup %7139  ;;  %v9474_v11 = vpop.permute.xlu1 %4064 }
 0xc6d   :  { %10637 = vst [vmem:[#allocation44_spill] sm:$0xff] %v9436_v14  ;;  %v9438_v48 = vpop.eup %7141  ;;  %6580 = vmatprep.mubr.f32.mxu1 %v9436_v14  ;;  %v9460_v50 = vpop.permute.xlu0 %4068  ;;  %10643 = vst [vmem:[#allocation25_spill] sm:$0xff] %v9474_v11 }
 0xc6e   :  { %10638 = vst [vmem:[#allocation14_spill] sm:$0xff] %v9438_v48  ;;  %3796 = vrot.lane.b32.xlu1 %v9026_v4, %s7464_s0  ;;  %6581 = vmatmul.mubr.f32.gmra.mxu1 %v9438_v48  ;;  %10641 = vst [vmem:[#allocation23_spill] sm:$0xff] %v9460_v50  ;;  %v10660_v50 = vld [vmem:[#allocation57_spill] sm:$0xff] }
 0xc70   :  { %v9478_v5 = vpop.permute.xlu1 %4072 }
 0xc71   :  { %v9464_v25 = vpop.permute.xlu0 %4076  ;;  %10644 = vst [vmem:[#allocation31_spill] sm:$0xff] %v9478_v5 }
 0xc72   :  { %3638 = vmax.xlane.f32.xlu0 %v9447_v8  ;;  %10642 = vst [vmem:[#allocation26_spill] sm:$0xff] %v9464_v25  ;;  %v10657_v25 = vld [vmem:[#allocation58_spill] sm:$0xff] }
 0xc74   :  { %v9480_v62 = vpop.permute.xlu1 %4080 }
 0xc75   :  { %10645 = vst [vmem:[#allocation35_spill] sm:$0xff] %v9480_v62  ;;  %v10656_v62 = vld [vmem:[#allocation39_spill] sm:$0xff] }
 0xc76   :  { %v9452_v29 = vpop.eup %7143 }
 0xc77   :  { %10639 = vst [vmem:[#allocation7_spill] sm:$0xff] %v9452_v29  ;;  %v9454_v63 = vpop.eup %7145  ;;  %6583 = vmatprep.mubr.f32.mxu1 %v9452_v29  ;;  %v3588_v29 = vmul.f32 0.2, %v3572_v34 }
 0xc78   :  { %10640 = vst [vmem:[#allocation17_spill] sm:$0xff] %v9454_v63  ;;  %6584 = vmatmul.mubr.f32.gmra.mxu1 %v9454_v63 }
 0xc79   :  { %v3604_v32 = vmax.f32 %v3572_v34, %v3588_v29 }
 0xc88   :  { %3794 = vrot.lane.b32.xlu0 %v9030_v18, %s7464_s0 }
 0xc89   :  { %v3184_v13 = vpop.xlane.xlu0 %3183 }
 0xc8a   :  { %v3202_v28 = vsub.f32 %v9334_v23, %v3184_v13 }
 0xc8c   :  { %v3231_v57 = vmul.f32 1.442695, %v3202_v28 }
 0xc8d   :  { %v3186_v12 = vpop.xlane.xlu0 %3185 }
 0xc8e   :  { %v3203_v59 = vsub.f32 %v9338_v15, %v3186_v12 }
 0xc90   :  { %v3233_v60 = vmul.f32 1.442695, %v3203_v59 }
 0xc91   :  { %v3805_v52 = vpop.permute.xlu0 %3804 }
 0xc92   :  { %3640 = vmax.xlane.f32.xlu1 %v9471_v16  ;;  %6592 = vmatprep.subr.mxu1 %v3805_v52 }
 0xc93   :  { %6593 = vmatpush3.msra.mxu1 %v3805_v52  ;;  %v9487_v52 = vadd.f32 %v3604_v32, %v10617_v38 }
 0xca3   :  { %3792 = vrot.lane.b32.xlu1 %v9018_v39, %s7464_s0 }
 0xca5   :  { %v3182_v31 = vpop.xlane.xlu1 %3181 }
 0xca6   :  { %v3201_v63 = vsub.f32 %v9360_v61, %v3182_v31  ;;  %v3801_v31 = vpop.permute.xlu0 %3800 }
 0xca7   :  { %3642 = vmax.xlane.f32.xlu0 %v9487_v52 }
 0xca8   :  { %v3229_v34 = vmul.f32 1.442695, %v3201_v63 }
 0xca9   :  { %v3188_v29 = vpop.xlane.xlu1 %3187 }
 0xcaa   :  { %7147 = vpow2.f32 %v3229_v34  ;;  %v3204_v23 = vsub.f32 %v9367_v20, %v3188_v29 }
 0xcab   :  { %7149 = vpow2.f32 %v3231_v57 }
 0xcac   :  { %7151 = vpow2.f32 %v3233_v60  ;;  %v3235_v13 = vmul.f32 1.442695, %v3204_v23  ;;  %v3574_v23 = vadd.f32 %v9350_v1, %v9269_v40 }
 0xcad   :  { %v3631_v14 = vpop.xlane.xlu1 %3630 }
 0xcae   :  { %7153 = vpow2.f32 %v3235_v13  ;;  %v3662_v15 = vsub.f32 %v9372_v53, %v3631_v14  ;;  %v3573_v53 = vadd.f32 %v9350_v1, %v9286_v55  ;;  %v3590_v13 = vmul.f32 0.2, %v3574_v23 }
 0xcb0   :  { %v3678_v12 = vmul.f32 1.442695, %v3662_v15  ;;  %v3589_v14 = vmul.f32 0.2, %v3573_v53  ;;  %v3606_v15 = vmax.f32 %v3574_v23, %v3590_v13  ;;  %v3576_v13 = vadd.f32 %v9350_v1, %v9323_v45  ;;  %v10653_v45 = vld [vmem:[#allocation52_spill] sm:$0xff] }
 0xcb1   :  { %v9493_v32 = vpop.xlane.xlu1 %3632 }
 0xcb2   :  { %7155 = vpow2.f32 %v3678_v12  ;;  %v3605_v57 = vmax.f32 %v3573_v53, %v3589_v14  ;;  %v9525_v12 = vadd.f32 %v3606_v15, %v10619_v54  ;;  %v3575_v53 = vadd.f32 %v9350_v1, %v9295_v58 }
 0xcb3   :  { %v3592_v15 = vmul.f32 0.2, %v3576_v13 }
 0xcb4   :  { %v9515_v55 = vadd.f32 %v3605_v57, %v7969_v10  ;;  %v3591_v14 = vmul.f32 0.2, %v3575_v53 }
 0xcb5   :  { %v3803_v61 = vpop.permute.xlu1 %3802  ;;  %v3608_v58 = vmax.f32 %v3576_v13, %v3592_v15  ;;  %v10654_v15 = vld [vmem:[#allocation47_spill] sm:$0xff] }
 0xcb6   :  { %6594 = vmatprep.subr.mxu1 %v3803_v61  ;;  %v3607_v40 = vmax.f32 %v3575_v53, %v3591_v14 }
 0xcb7   :  { %v9495_v28 = vpop.eup %7147  ;;  %6595 = vmatpush3.msra.mxu1 %v3803_v61  ;;  %v9545_v53 = vadd.f32 %v3608_v58, %v10620_v56 }
 0xcb8   :  { %10646 = vst [vmem:[#allocation40_spill] sm:$0xff] %v9495_v28  ;;  %v9497_v63 = vpop.eup %7149  ;;  %6586 = vmatprep.mubr.f32.mxu1 %v9495_v28  ;;  %6596 = vmatprep.subr.mxu1 %v3801_v31  ;;  %v9535_v57 = vadd.f32 %v3607_v40, %v7998_v21 }
 0xcb9   :  { %10647 = vst [vmem:[#allocation63_spill] sm:$0xff] %v9497_v63  ;;  %v9500_v20 = vpop.eup %7151  ;;  %6587 = vmatmul.mubr.f32.gmra.mxu1 %v9497_v63 }
 0xcba   :  { %10648 = vst [vmem:[#allocation64_spill] sm:$0xff] %v9500_v20  ;;  %6597 = vmatpush3.msra.mxu1 %v3801_v31  ;;  %6589 = vmatprep.mubr.f32.mxu1 %v9500_v20  ;;  %v10655_v20 = vld [vmem:[#allocation62_spill] sm:$0xff] }
 0xcbb   :  { %v9506_v60 = vpop.eup %7153 }
 0xcbc   :  { %10649 = vst [vmem:[#allocation65_spill] sm:$0xff] %v9506_v60 }
 0xcbd   :  { %3790 = vrot.lane.b32.xlu0 %v9022_v9, %s7464_s0  ;;  %6590 = vmatmul.mubr.f32.gmra.mxu1 %v9506_v60 }
 0xcbf   :  { %v9511_v59 = vpop.eup %7155 }
 0xcc0   :  { %10650 = vst [vmem:[#allocation66_spill] sm:$0xff] %v9511_v59  ;;  %6624 = vmatprep.mubr.f32.mxu1 %v9511_v59  ;;  %v10652_v59 = vld [vmem:[#allocation36_spill] sm:$0xff] }
 0xcc6   :  { %v9517_v34 = vpop.xlane.xlu0 %3634 }
 0xcc7   :  { %3644 = vmax.xlane.f32.xlu1 %v9515_v55 }
 0xcca   :  { %v3799_v29 = vpop.permute.xlu0 %3798 }
 0xccb   :  { %6598 = vmatprep.subr.mxu1 %v3799_v29 }
 0xccc   :  { %6599 = vmatpush3.msra.mxu1 %v3799_v29 }
 0xcd8   :  { %3788 = vrot.lane.b32.xlu1 %v9010_v46, %s7464_s0 }
 0xcdc   :  { %3646 = vmax.xlane.f32.xlu0 %v9525_v12 }
 0xce6   :  { %v9528_v61 = vpop.xlane.xlu1 %3636 }
 0xcea   :  { %v3797_v31 = vpop.permute.xlu1 %3796 }
 0xceb   :  { %6600 = vmatprep.subr.mxu1 %v3797_v31 }
 0xcec   :  { %6601 = vmatpush3.msra.mxu1 %v3797_v31  ;;  %v10651_v31 = vld [vmem:[#allocation48_spill] sm:$0xff] }
 0xcf2   :  { %3786 = vrot.lane.b32.xlu0 %v9014_v30, %s7464_s0 }
 0xcfb   :  { %v9537_v29 = vpop.xlane.xlu0 %3638 }
 0xcfc   :  { %3648 = vmax.xlane.f32.xlu1 %v9535_v57 }
 0xcff   :  { %v3795_v23 = vpop.permute.xlu0 %3794 }
 0xd00   :  { %6602 = vmatprep.subr.mxu1 %v3795_v23 }
 0xd01   :  { %6603 = vmatpush3.msra.mxu1 %v3795_v23  ;;  %v3577_v23 = vadd.f32 %v9350_v1, %v10652_v59 }
 0xd03   :  { %v3593_v28 = vmul.f32 0.2, %v3577_v23 }
 0xd05   :  { %v3609_v13 = vmax.f32 %v3577_v23, %v3593_v28 }
 0xd07   :  { %v9555_v48 = vadd.f32 %v3609_v13, %v10654_v15 }
 0xd0d   :  { %3784 = vrot.lane.b32.xlu1 %v10651_v31, %s7464_s0 }
 0xd11   :  { %3650 = vmax.xlane.f32.xlu0 %v9545_v53 }
 0xd1b   :  { %v9548_v14 = vpop.xlane.xlu1 %3640 }
 0xd1f   :  { %v3793_v40 = vpop.permute.xlu1 %3792 }
 0xd20   :  { %6604 = vmatprep.subr.mxu1 %v3793_v40 }
 0xd21   :  { %6605 = vmatpush3.msra.mxu1 %v3793_v40  ;;  %v3578_v40 = vadd.f32 %v9350_v1, %v10655_v20  ;;  %v10658_v20 = vld [vmem:[#allocation45_spill] sm:$0xff] }
 0xd23   :  { %v3594_v60 = vmul.f32 0.2, %v3578_v40 }
 0xd25   :  { %v3610_v59 = vmax.f32 %v3578_v40, %v3594_v60  ;;  %v10659_v40 = vld [vmem:[#allocation49_spill] sm:$0xff] }
 0xd27   :  { %3782 = vrot.lane.b32.xlu0 %v10653_v45, %s7464_s0  ;;  %v9565_v28 = vadd.f32 %v3610_v59, %v10628_v33  ;;  %v10661_v45 = vld [vmem:[#allocation29_spill] sm:$0xff] }
 0xd30   :  { %v9557_v58 = vpop.xlane.xlu0 %3642 }
 0xd31   :  { %3652 = vmax.xlane.f32.xlu1 %v9555_v48 }
 0xd34   :  { %v3791_v63 = vpop.permute.xlu0 %3790 }
 0xd35   :  { %6606 = vmatprep.subr.mxu1 %v3791_v63 }
 0xd36   :  { %6607 = vmatpush3.msra.mxu1 %v3791_v63  ;;  %v3579_v63 = vadd.f32 %v9350_v1, %v10657_v25 }
 0xd38   :  { %v3595_v5 = vmul.f32 0.2, %v3579_v63 }
 0xd3a   :  { %v3611_v60 = vmax.f32 %v3579_v63, %v3595_v5 }
 0xd42   :  { %3780 = vrot.lane.b32.xlu1 %v10656_v62, %s7464_s0  ;;  %v9575_v62 = vadd.f32 %v3611_v60, %v10659_v40  ;;  %v10663_v40 = vld [vmem:[#allocation9_spill] sm:$0xff] }
 0xd46   :  { %3654 = vmax.xlane.f32.xlu0 %v9565_v28 }
 0xd50   :  { %v9568_v23 = vpop.xlane.xlu1 %3644 }
 0xd54   :  { %v3789_v13 = vpop.permute.xlu1 %3788 }
 0xd55   :  { %6608 = vmatprep.subr.mxu1 %v3789_v13 }
 0xd56   :  { %6609 = vmatpush3.msra.mxu1 %v3789_v13  ;;  %v3580_v13 = vadd.f32 %v9350_v1, %v10660_v50  ;;  %v10664_v50 = vld [vmem:[#allocation8_spill] sm:$0xff] }
 0xd58   :  { %v3596_v15 = vmul.f32 0.2, %v3580_v13 }
 0xd5a   :  { %v3612_v25 = vmax.f32 %v3580_v13, %v3596_v15 }
 0xd5c   :  { %3778 = vrot.lane.b32.xlu0 %v10658_v20, %s7464_s0  ;;  %v10662_v20 = vld [vmem:[#allocation61_spill] sm:$0xff] }
 0xd5d   :  { %v9585_v5 = vadd.f32 %v3612_v25, %v10662_v20 }
 0xd65   :  { %v9577_v59 = vpop.xlane.xlu0 %3646 }
 0xd66   :  { %3656 = vmax.xlane.f32.xlu1 %v9575_v62 }
 0xd69   :  { %v3787_v33 = vpop.permute.xlu0 %3786 }
 0xd6a   :  { %6610 = vmatprep.subr.mxu1 %v3787_v33 }
 0xd6b   :  { %6611 = vmatpush3.msra.mxu1 %v3787_v33  ;;  %v3581_v33 = vadd.f32 %v9350_v1, %v10663_v40 }
 0xd6d   :  { %v3597_v11 = vmul.f32 0.2, %v3581_v33 }
 0xd6f   :  { %v3613_v15 = vmax.f32 %v3581_v33, %v3597_v11 }
 0xd71   :  { %v9595_v13 = vadd.f32 %v3613_v15, %v8178_v36 }
 0xd77   :  { %3776 = vrot.lane.b32.xlu1 %v10661_v45, %s7464_s0  ;;  %v10665_v45 = vld [vmem:[#allocation16_spill] sm:$0xff] }
 0xd78   :  { %v10666_v56 = vsub.s32 2, %v10665_v45 }
 0xd7b   :  { %3658 = vmax.xlane.f32.xlu0 %v9585_v5 }
 0xd85   :  { %v9588_v63 = vpop.xlane.xlu1 %3648 }
 0xd89   :  { %v3785_v60 = vpop.permute.xlu1 %3784 }
 0xd8a   :  { %6612 = vmatprep.subr.mxu1 %v3785_v60 }
 0xd8b   :  { %6613 = vmatpush3.msra.mxu1 %v3785_v60  ;;  %v10667_v60 = vld [vmem:[#allocation55_spill] sm:$0xff] }
 0xd8c   :  { %v9603_v31 = vrot.slane %v10667_v60, %v10666_v56  ;;  %v10668_v56 = vld [vmem:[#allocation60_spill] sm:$0xff] }
 0xd8e   :  { %v4087_v1 = vadd.f32 %v9603_v31, %v9415_v7 }
 0xd90   :  { %v4103_v40 = vmul.f32 0.2, %v4087_v1 }
 0xd91   :  { %3774 = vrot.lane.b32.xlu0 %v10664_v50, %s7464_s0 }
 0xd92   :  { %v4119_v11 = vmax.f32 %v4087_v1, %v4103_v40  ;;  %v10669_v40 = vld [vmem:[#allocation41_spill] sm:$0xff] }
 0xd94   :  { %v9610_v33 = vadd.f32 %v4119_v11, %v10610_v47  ;;  %v4089_v11 = vadd.f32 %v9603_v31, %v10669_v40 }
 0xd9a   :  { %v9597_v25 = vpop.xlane.xlu0 %3650 }
 0xd9b   :  { %3660 = vmax.xlane.f32.xlu1 %v9595_v13 }
 0xd9e   :  { %v3783_v20 = vpop.permute.xlu0 %3782 }
 0xd9f   :  { %6614 = vmatprep.subr.mxu1 %v3783_v20 }
 0xda0   :  { %6615 = vmatpush3.msra.mxu1 %v3783_v20  ;;  %v4088_v20 = vadd.f32 %v9603_v31, %v10668_v56 }
 0xda2   :  { %v4104_v60 = vmul.f32 0.2, %v4088_v20 }
 0xda4   :  { %v4120_v7 = vmax.f32 %v4088_v20, %v4104_v60  ;;  %v3663_v60 = vsub.f32 %v9377_v0, %v9493_v32 }
 0xda6   :  { %v3680_v40 = vmul.f32 1.442695, %v3663_v60 }
 0xda8   :  { %7157 = vpow2.f32 %v3680_v40 }
 0xdac   :  { %4325 = vrot.lane.b32.xlu1 %v9042_v37, %s7466_s17  ;;  %v9620_v37 = vadd.f32 %v4120_v7, %v10609_v19  ;;  %v3664_v7 = vsub.f32 %v9397_v27, %v9517_v34  ;;  %v3667_v27 = vsub.f32 %v9471_v16, %v9548_v14 }
 0xdb0   :  { %4151 = vmax.xlane.f32.xlu0 %v9610_v33 }
 0xdba   :  { %v9613_v15 = vpop.xlane.xlu1 %3652 }
 0xdbe   :  { %v3781_v45 = vpop.permute.xlu1 %3780 }
 0xdbf   :  { %6616 = vmatprep.subr.mxu1 %v3781_v45 }
 0xdc0   :  { %6617 = vmatpush3.msra.mxu1 %v3781_v45  ;;  %v4105_v45 = vmul.f32 0.2, %v4089_v11 }
 0xdc2   :  { %v4121_v56 = vmax.f32 %v4089_v11, %v4105_v45  ;;  %v3666_v11 = vsub.f32 %v9447_v8, %v9537_v29  ;;  %v3669_v8 = vsub.f32 %v9515_v55, %v9568_v23  ;;  %v3672_v55 = vsub.f32 %v9545_v53, %v9597_v25 }
 0xdc3   :  { %v4091_v53 = vadd.f32 %v9603_v31, %v9434_v26 }
 0xdc4   :  { %v3686_v32 = vmul.f32 1.442695, %v3666_v11  ;;  %v3692_v14 = vmul.f32 1.442695, %v3669_v8 }
 0xdc5   :  { %v4107_v60 = vmul.f32 0.2, %v4091_v53 }
 0xdc6   :  { %4323 = vrot.lane.b32.xlu0 %v9049_v2, %s7466_s17  ;;  %v9630_v2 = vadd.f32 %v4121_v56, %v10611_v51  ;;  %v3665_v51 = vsub.f32 %v9419_v41, %v9528_v61  ;;  %v3688_v41 = vmul.f32 1.442695, %v3667_v27 }
 0xdc8   :  { %v3684_v0 = vmul.f32 1.442695, %v3665_v51 }
 0xdcf   :  { %v9622_v47 = vpop.xlane.xlu0 %3654 }
 0xdd0   :  { %4153 = vmax.xlane.f32.xlu1 %v9620_v37 }
 0xdd3   :  { %v3779_v1 = vpop.permute.xlu0 %3778 }
 0xdd4   :  { %6618 = vmatprep.subr.mxu1 %v3779_v1 }
 0xdd5   :  { %6619 = vmatpush3.msra.mxu1 %v3779_v1  ;;  %v4090_v1 = vadd.f32 %v9603_v31, %v9422_v44  ;;  %v3668_v44 = vsub.f32 %v9487_v52, %v9557_v58  ;;  %v3671_v52 = vsub.f32 %v9535_v57, %v9588_v63  ;;  %v3674_v57 = vsub.f32 %v9565_v28, %v9622_v47 }
 0xdd7   :  { %v4106_v45 = vmul.f32 0.2, %v4090_v1  ;;  %v3690_v61 = vmul.f32 1.442695, %v3668_v44  ;;  %v3696_v56 = vmul.f32 1.442695, %v3671_v52 }
 0xdd9   :  { %v4122_v34 = vmax.f32 %v4090_v1, %v4106_v45 }
 0xddb   :  { %v9654_v29 = vadd.f32 %v4122_v34, %v10612_v43  ;;  %v3673_v43 = vsub.f32 %v9555_v48, %v9613_v15 }
 0xddd   :  { %v3700_v48 = vmul.f32 1.442695, %v3673_v43 }
 0xde1   :  { %4321 = vrot.lane.b32.xlu1 %v9034_v6, %s7466_s17  ;;  %v3682_v6 = vmul.f32 1.442695, %v3664_v7 }
 0xde3   :  { %7159 = vpow2.f32 %v3682_v6 }
 0xde4   :  { %7161 = vpow2.f32 %v3684_v0 }
 0xde5   :  { %4155 = vmax.xlane.f32.xlu0 %v9630_v2  ;;  %7163 = vpow2.f32 %v3686_v32 }
 0xde6   :  { %7165 = vpow2.f32 %v3688_v41  ;;  %v10670_v41 = vld [vmem:[#allocation11_spill] sm:$0xff] }
 0xde7   :  { %7167 = vpow2.f32 %v3690_v61  ;;  %v4092_v8 = vadd.f32 %v9603_v31, %v10670_v41  ;;  %v10672_v41 = vld [vmem:[#allocation48_spill] sm:$0xff] }
 0xde8   :  { %7169 = vpow2.f32 %v3692_v14 }
 0xde9   :  { %v4108_v61 = vmul.f32 0.2, %v4092_v8 }
 0xdef   :  { %v3657_v19 = vpop.xlane.xlu1 %3656 }
 0xdf0   :  { %v3675_v25 = vsub.f32 %v9575_v62, %v3657_v19  ;;  %v4123_v19 = vmax.f32 %v4091_v53, %v4107_v60 }
 0xdf2   :  { %v3704_v26 = vmul.f32 1.442695, %v3675_v25  ;;  %v9696_v51 = vadd.f32 %v4123_v19, %v10615_v22  ;;  %v4096_v19 = vadd.f32 %v9603_v31, %v9468_v17 }
 0xdf3   :  { %v3777_v20 = vpop.permute.xlu1 %3776 }
 0xdf4   :  { %6620 = vmatprep.subr.mxu1 %v3777_v20 }
 0xdf5   :  { %6621 = vmatpush3.msra.mxu1 %v3777_v20  ;;  %v3702_v20 = vmul.f32 1.442695, %v3674_v57 }
 0xdfb   :  { %4319 = vrot.lane.b32.xlu0 %v9038_v49, %s7466_s17  ;;  %v3670_v49 = vsub.f32 %v9525_v12, %v9577_v59  ;;  %v9663_v12 = vpop.eup %7157  ;;  %v3698_v59 = vmul.f32 1.442695, %v3672_v55 }
 0xdfc   :  { %v9667_v63 = vpop.eup %7159 }
 0xdfd   :  { %v3694_v58 = vmul.f32 1.442695, %v3670_v49  ;;  %v9674_v15 = vpop.eup %7161  ;;  %v4124_v49 = vmax.f32 %v4092_v8, %v4108_v61 }
 0xdfe   :  { %v9677_v47 = vpop.eup %7163 }
 0xdff   :  { %7171 = vpow2.f32 %v3694_v58  ;;  %v9681_v7 = vpop.eup %7165  ;;  %v9726_v14 = vadd.f32 %v4124_v49, %v10557_v35  ;;  %v10674_v49 = vld [vmem:[#allocation25_spill] sm:$0xff] }
 0xe00   :  { %7173 = vpow2.f32 %v3696_v56  ;;  %v9683_v62 = vpop.eup %7167 }
 0xe01   :  { %7175 = vpow2.f32 %v3698_v59 }
 0xe02   :  { %7177 = vpow2.f32 %v3700_v48 }
 0xe03   :  { %7179 = vpow2.f32 %v3702_v20 }
 0xe04   :  { %v3659_v16 = vpop.xlane.xlu0 %3658  ;;  %7181 = vpow2.f32 %v3704_v26 }
 0xe05   :  { %4157 = vmax.xlane.f32.xlu1 %v9654_v29  ;;  %v3676_v28 = vsub.f32 %v9585_v5, %v3659_v16  ;;  %v9687_v5 = vpop.eup %7169 }
 0xe07   :  { %v3706_v1 = vmul.f32 1.442695, %v3676_v28  ;;  %v4095_v28 = vadd.f32 %v9603_v31, %v9450_v3 }
 0xe08   :  { %v3775_v23 = vpop.permute.xlu0 %3774 }
 0xe09   :  { %6622 = vmatprep.subr.mxu1 %v3775_v23  ;;  %7183 = vpow2.f32 %v3706_v1  ;;  %v4111_v60 = vmul.f32 0.2, %v4095_v28 }
 0xe0a   :  { %6623 = vmatpush3.msra.mxu1 %v3775_v23 }
 0xe0b   :  { %6625 = vmatmul.mubr.f32.vlgmr.msra.gmra.mxu1 %v9663_v12  ;;  %v4127_v26 = vmax.f32 %v4095_v28, %v4111_v60 }
 0xe0c   :  { %6627 = vmatprep.mubr.f32.mxu1 %v9667_v63  ;;  %v9691_v40 = vpop.eup %7171 }
 0xe0d   :  { %v9698_v6 = vpop.eup %7173 }
 0xe0e   :  { %v9701_v11 = vpop.eup %7175 }
 0xe0f   :  { %6628 = vmatmul.mubr.f32.gmra.mxu1 %v9674_v15 }
 0xe10   :  { %6630 = vmatprep.mubr.f32.mxu1 %v9677_v47 }
 0xe13   :  { %6631 = vmatmul.mubr.f32.gmra.mxu1 %v9681_v7 }
 0xe14   :  { %6633 = vmatprep.mubr.f32.mxu1 %v9683_v62 }
 0xe16   :  { %4317 = vrot.lane.b32.xlu1 %v9026_v4, %s7466_s17  ;;  %v9705_v4 = vpop.eup %7177 }
 0xe17   :  { %6634 = vmatmul.mubr.f32.gmra.mxu1 %v9687_v5  ;;  %v9707_v45 = vpop.eup %7179 }
 0xe18   :  { %6636 = vmatprep.mubr.f32.mxu1 %v9691_v40  ;;  %v9711_v22 = vpop.eup %7181 }
 0xe19   :  { %v9713_v0 = vpop.eup %7183 }
 0xe1a   :  { %4159 = vmax.xlane.f32.xlu0 %v9696_v51 }
 0xe1b   :  { %6637 = vmatmul.mubr.f32.gmra.mxu1 %v9698_v6 }
 0xe1c   :  { %6639 = vmatprep.mubr.f32.mxu1 %v9701_v11 }
 0xe1f   :  { %6640 = vmatmul.mubr.f32.gmra.mxu1 %v9705_v4 }
 0xe20   :  { %6642 = vmatprep.mubr.f32.mxu1 %v9707_v45 }
 0xe23   :  { %6643 = vmatmul.mubr.f32.gmra.mxu1 %v9711_v22 }
 0xe24   :  { %6645 = vmatprep.mubr.f32.mxu1 %v9713_v0  ;;  %v3661_v27 = vpop.xlane.xlu1 %3660 }
 0xe25   :  { %v3677_v32 = vsub.f32 %v9595_v13, %v3661_v27  ;;  %v7387_v13 = vld [vmem:[#allocation3 + $0x8] sm:$0xff]  ;;  %v4112_v27 = vmul.f32 0.2, %v4096_v19 }
 0xe27   :  { %v3708_v44 = vmul.f32 1.442695, %v3677_v32  ;;  %v4128_v3 = vmax.f32 %v4096_v19, %v4112_v27  ;;  %v10681_v27 = vld [vmem:[#allocation45_spill] sm:$0xff] }
 0xe28   :  { %v4326_v34 = vpop.permute.xlu1 %4325 }
 0xe29   :  { %7185 = vpow2.f32 %v3708_v44  ;;  %6648 = vmatprep.subr.mxu0 %v4326_v34  ;;  %v4097_v44 = vadd.f32 %v9603_v31, %v9458_v42  ;;  %v10675_v42 = vld [vmem:[#allocation52_spill] sm:$0xff] }
 0xe2a   :  { %6649 = vmatpush3.msra.mxu0 %v4326_v34 }
 0xe2b   :  { %v4113_v34 = vmul.f32 0.2, %v4097_v44 }
 0xe2d   :  { %v4129_v17 = vmax.f32 %v4097_v44, %v4113_v34 }
 0xe30   :  { %4315 = vrot.lane.b32.xlu0 %v9030_v18, %s7466_s17  ;;  %v4093_v18 = vadd.f32 %v9603_v31, %v9440_v24  ;;  %v10671_v24 = vld [vmem:[#allocation59_spill] sm:$0xff] }
 0xe31   :  { %v4094_v53 = vadd.f32 %v9603_v31, %v10671_v24 }
 0xe32   :  { %v4109_v56 = vmul.f32 0.2, %v4093_v18 }
 0xe33   :  { %v4110_v48 = vmul.f32 0.2, %v4094_v53 }
 0xe34   :  { %v4125_v43 = vmax.f32 %v4093_v18, %v4109_v56 }
 0xe36   :  { %v9722_v16 = vpop.eup %7185  ;;  %v9738_v35 = vadd.f32 %v4125_v43, %v10617_v38  ;;  %v10677_v43 = vld [vmem:[#allocation23_spill] sm:$0xff] }
 0xe37   :  { %6646 = vmatmul.mubr.f32.gmra.mxu1 %v9722_v16 }
 0xe38   :  { %4651 = vmatprep.mubr.f32.mxu1 %v7387_v13  ;;  %v4098_v13 = vadd.f32 %v9603_v31, %v10674_v49 }
 0xe39   :  { %v4152_v52 = vpop.xlane.xlu0 %4151 }
 0xe3a   :  { %v4183_v58 = vsub.f32 %v9610_v33, %v4152_v52  ;;  %4161 = vmax.xlane.f32.xlu1 %v9726_v14  ;;  %v4114_v52 = vmul.f32 0.2, %v4098_v13 }
 0xe3c   :  { %v4199_v55 = vmul.f32 1.442695, %v4183_v58  ;;  %v4130_v58 = vmax.f32 %v4098_v13, %v4114_v52  ;;  %v10684_v13 = vld [vmem:[#allocation29_spill] sm:$0xff] }
 0xe3d   :  { %v4324_v23 = vpop.permute.xlu0 %4323  ;;  %v10685_v52 = vld [vmem:[#allocation61_spill] sm:$0xff] }
 0xe3e   :  { %7187 = vpow2.f32 %v4199_v55  ;;  %6650 = vmatprep.subr.mxu0 %v4324_v23  ;;  %v10676_v55 = vld [vmem:[#allocation47_spill] sm:$0xff] }
 0xe3f   :  { %6651 = vmatpush3.msra.mxu0 %v4324_v23  ;;  %v9788_v23 = vadd.f32 %v4130_v58, %v10676_v55 }
 0xe4b   :  { %v9732_v59 = vpop.eup %7187  ;;  %4313 = vrot.lane.b32.xlu1 %v9018_v39, %s7466_s17  ;;  %v4126_v39 = vmax.f32 %v4094_v53, %v4110_v48  ;;  %v10678_v48 = vld [vmem:[#allocation39_spill] sm:$0xff] }
 0xe4c   :  { %6680 = vmatprep.mubr.f32.mxu0 %v9732_v59 }
 0xe4d   :  { %v9748_v25 = vadd.f32 %v4126_v39, %v7969_v10  ;;  %v10679_v39 = vld [vmem:[#allocation46_spill] sm:$0xff] }
 0xe4f   :  { %4163 = vmax.xlane.f32.xlu0 %v9738_v35 }
 0xe59   :  { %v9741_v33 = vpop.xlane.xlu1 %4153 }
 0xe5d   :  { %v4322_v57 = vpop.permute.xlu1 %4321 }
 0xe5e   :  { %6652 = vmatprep.subr.mxu0 %v4322_v57 }
 0xe5f   :  { %6653 = vmatpush3.msra.mxu0 %v4322_v57  ;;  %v4099_v57 = vadd.f32 %v9603_v31, %v10677_v43 }
 0xe61   :  { %v4115_v24 = vmul.f32 0.2, %v4099_v57 }
 0xe63   :  { %v4131_v53 = vmax.f32 %v4099_v57, %v4115_v24 }
 0xe65   :  { %4311 = vrot.lane.b32.xlu0 %v9022_v9, %s7466_s17  ;;  %v9758_v9 = vadd.f32 %v4127_v26, %v10619_v54  ;;  %v10680_v26 = vld [vmem:[#allocation31_spill] sm:$0xff] }
 0xe6e   :  { %v9750_v38 = vpop.xlane.xlu0 %4155 }
 0xe6f   :  { %4165 = vmax.xlane.f32.xlu1 %v9748_v25 }
 0xe72   :  { %v4320_v20 = vpop.permute.xlu0 %4319 }
 0xe73   :  { %6654 = vmatprep.subr.mxu0 %v4320_v20 }
 0xe74   :  { %6655 = vmatpush3.msra.mxu0 %v4320_v20  ;;  %v9798_v20 = vadd.f32 %v4131_v53, %v10679_v39 }
 0xe80   :  { %4309 = vrot.lane.b32.xlu1 %v9010_v46, %s7466_s17  ;;  %v9768_v46 = vadd.f32 %v4128_v3, %v7998_v21 }
 0xe84   :  { %4167 = vmax.xlane.f32.xlu0 %v9758_v9 }
 0xe8e   :  { %v9761_v10 = vpop.xlane.xlu1 %4157 }
 0xe92   :  { %v4318_v1 = vpop.permute.xlu1 %4317 }
 0xe93   :  { %6656 = vmatprep.subr.mxu0 %v4318_v1 }
 0xe94   :  { %6657 = vmatpush3.msra.mxu0 %v4318_v1  ;;  %v4100_v1 = vadd.f32 %v9603_v31, %v10680_v26  ;;  %v10691_v26 = vld [vmem:[#allocation40_spill] sm:$0xff] }
 0xe96   :  { %v4116_v19 = vmul.f32 0.2, %v4100_v1 }
 0xe98   :  { %v4132_v3 = vmax.f32 %v4100_v1, %v4116_v19  ;;  %v10692_v1 = vld [vmem:[#allocation44_spill] sm:$0xff]  ;;  %v10693_v19 = vld [vmem:[#allocation15_spill] sm:$0xff] }
 0xe9a   :  { %4307 = vrot.lane.b32.xlu0 %v9014_v30, %s7466_s17  ;;  %v10673_v30 = vld [vmem:[#allocation43_spill] sm:$0xff] }
 0xe9b   :  { %v9778_v8 = vadd.f32 %v4129_v17, %v10673_v30 }
 0xea3   :  { %v9770_v54 = vpop.xlane.xlu0 %4159 }
 0xea4   :  { %4169 = vmax.xlane.f32.xlu1 %v9768_v46 }
 0xea7   :  { %v4316_v32 = vpop.permute.xlu0 %4315 }
 0xea8   :  { %6658 = vmatprep.subr.mxu0 %v4316_v32 }
 0xea9   :  { %6659 = vmatpush3.msra.mxu0 %v4316_v32  ;;  %v10682_v32 = vld [vmem:[#allocation49_spill] sm:$0xff] }
 0xeaa   :  { %v9808_v44 = vadd.f32 %v4132_v3, %v10682_v32  ;;  %v10695_v3 = vld [vmem:[#allocation6_spill] sm:$0xff]  ;;  %v10698_v32 = vld [vmem:[#allocation33_spill] sm:$0xff] }
 0xeb5   :  { %4305 = vrot.lane.b32.xlu1 %v10672_v41, %s7466_s17  ;;  %v10683_v41 = vld [vmem:[#allocation26_spill] sm:$0xff] }
 0xeb6   :  { %v4101_v30 = vadd.f32 %v9603_v31, %v10683_v41  ;;  %v10700_v41 = vld [vmem:[#allocation42_spill] sm:$0xff] }
 0xeb9   :  { %4171 = vmax.xlane.f32.xlu0 %v9778_v8 }
 0xec3   :  { %v9781_v21 = vpop.xlane.xlu1 %4161 }
 0xec7   :  { %v4314_v61 = vpop.permute.xlu1 %4313 }
 0xec8   :  { %6660 = vmatprep.subr.mxu0 %v4314_v61 }
 0xec9   :  { %6661 = vmatpush3.msra.mxu0 %v4314_v61  ;;  %v4117_v61 = vmul.f32 0.2, %v4101_v30 }
 0xecb   :  { %v4133_v49 = vmax.f32 %v4101_v30, %v4117_v61 }
 0xecf   :  { %4303 = vrot.lane.b32.xlu0 %v10675_v42, %s7466_s17  ;;  %v9818_v42 = vadd.f32 %v4133_v49, %v10685_v52  ;;  %v10704_v49 = vld [vmem:[#allocation51_spill] sm:$0xff] }
 0xed8   :  { %v9790_v18 = vpop.xlane.xlu0 %4163 }
 0xed9   :  { %4173 = vmax.xlane.f32.xlu1 %v9788_v23 }
 0xedc   :  { %v4312_v56 = vpop.permute.xlu0 %4311 }
 0xedd   :  { %6662 = vmatprep.subr.mxu0 %v4312_v56 }
 0xede   :  { %6663 = vmatpush3.msra.mxu0 %v4312_v56  ;;  %v10686_v56 = vld [vmem:[#allocation35_spill] sm:$0xff] }
 0xedf   :  { %v4102_v43 = vadd.f32 %v9603_v31, %v10686_v56  ;;  %v10688_v31 = vld [vmem:[#allocation64_spill] sm:$0xff] }
 0xee1   :  { %v4118_v57 = vmul.f32 0.2, %v4102_v43 }
 0xee3   :  { %v4134_v24 = vmax.f32 %v4102_v43, %v4118_v57  ;;  %v4187_v57 = vsub.f32 %v9696_v51, %v9770_v54 }
 0xee5   :  { %v9828_v53 = vadd.f32 %v4134_v24, %v8178_v36  ;;  %v10690_v36 = vld [vmem:[#allocation14_spill] sm:$0xff] }
 0xeea   :  { %4301 = vrot.lane.b32.xlu1 %v10678_v48, %s7466_s17 }
 0xeee   :  { %4175 = vmax.xlane.f32.xlu0 %v9798_v20 }
 0xef8   :  { %v9801_v28 = vpop.xlane.xlu1 %4165 }
 0xef9   :  { %v4190_v51 = vsub.f32 %v9748_v25, %v9801_v28 }
 0xefc   :  { %v4310_v60 = vpop.permute.xlu1 %4309 }
 0xefd   :  { %6664 = vmatprep.subr.mxu0 %v4310_v60 }
 0xefe   :  { %6665 = vmatpush3.msra.mxu0 %v4310_v60  ;;  %v10687_v60 = vld [vmem:[#allocation65_spill] sm:$0xff] }
 0xf04   :  { %4299 = vrot.lane.b32.xlu0 %v10681_v27, %s7466_s17  ;;  %v10694_v27 = vld [vmem:[#allocation17_spill] sm:$0xff] }
 0xf0d   :  { %v9810_v34 = vpop.xlane.xlu0 %4167 }
 0xf0e   :  { %4177 = vmax.xlane.f32.xlu1 %v9808_v44 }
 0xf11   :  { %v4308_v17 = vpop.permute.xlu0 %4307 }
 0xf12   :  { %6666 = vmatprep.subr.mxu0 %v4308_v17 }
 0xf13   :  { %6667 = vmatpush3.msra.mxu0 %v4308_v17 }
 0xf1f   :  { %4297 = vrot.lane.b32.xlu1 %v10684_v13, %s7466_s17 }
 0xf23   :  { %4179 = vmax.xlane.f32.xlu0 %v9818_v42 }
 0xf2d   :  { %v9821_v58 = vpop.xlane.xlu1 %4169 }
 0xf31   :  { %v4306_v55 = vpop.permute.xlu1 %4305 }
 0xf32   :  { %6668 = vmatprep.subr.mxu0 %v4306_v55 }
 0xf33   :  { %6669 = vmatpush3.msra.mxu0 %v4306_v55 }
 0xf39   :  { %4295 = vrot.lane.b32.xlu0 %v10664_v50, %s7466_s17  ;;  %v10689_v50 = vld [vmem:[#allocation63_spill] sm:$0xff] }
 0xf42   :  { %v9830_v48 = vpop.xlane.xlu0 %4171 }
 0xf43   :  { %4181 = vmax.xlane.f32.xlu1 %v9828_v53  ;;  %v4193_v25 = vsub.f32 %v9778_v8, %v9830_v48 }
 0xf46   :  { %v4304_v39 = vpop.permute.xlu0 %4303 }
 0xf47   :  { %3740 = vadd.xlane.f32.xlu1 %v9722_v16  ;;  %6670 = vmatprep.subr.mxu0 %v4304_v39 }
 0xf48   :  { %6671 = vmatpush3.msra.mxu0 %v4304_v39  ;;  %v4189_v39 = vsub.f32 %v9738_v35, %v9790_v18  ;;  %v4192_v35 = vsub.f32 %v9768_v46, %v9821_v58 }
 0xf4a   :  { %v4211_v54 = vmul.f32 1.442695, %v4189_v39 }
 0xf4b   :  { %3267 = vadd.xlane.f32.xlu1 %v10687_v60  ;;  %v4191_v60 = vsub.f32 %v9758_v9, %v9810_v34 }
 0xf4d   :  { %v4215_v18 = vmul.f32 1.442695, %v4191_v60 }
 0xf4f   :  { %3738 = vadd.xlane.f32.xlu1 %v9713_v0 }
 0xf53   :  { %3265 = vadd.xlane.f32.xlu1 %v10688_v31  ;;  %v4213_v31 = vmul.f32 1.442695, %v4190_v51  ;;  %v7388_v51 = vld [vmem:[#allocation3 + $0x10] sm:$0xff] }
 0xf57   :  { %3263 = vadd.xlane.f32.xlu1 %v10689_v50 }
 0xf58   :  { %3736 = vadd.xlane.f32.xlu0 %v9711_v22  ;;  %v10697_v22 = vld [vmem:[#allocation7_spill] sm:$0xff] }
 0xf5b   :  { %3734 = vadd.xlane.f32.xlu1 %v9707_v45  ;;  %v10696_v45 = vld [vmem:[#allocation30_spill] sm:$0xff] }
 0xf5c   :  { %3255 = vadd.xlane.f32.xlu0 %v10690_v36 }
 0xf5f   :  { %3261 = vadd.xlane.f32.xlu1 %v10691_v26  ;;  %v4217_v26 = vmul.f32 1.442695, %v4192_v35 }
 0xf60   :  { %3253 = vadd.xlane.f32.xlu0 %v10692_v1  ;;  %v4219_v1 = vmul.f32 1.442695, %v4193_v25 }
 0xf62   :  { %v4174_v16 = vpop.xlane.xlu1 %4173 }
 0xf63   :  { %3732 = vadd.xlane.f32.xlu1 %v9705_v4  ;;  %v10699_v4 = vld [vmem:[#allocation28_spill] sm:$0xff] }
 0xf64   :  { %3251 = vadd.xlane.f32.xlu0 %v10693_v19 }
 0xf66   :  { %v4302_v0 = vpop.permute.xlu1 %4301 }
 0xf67   :  { %3259 = vadd.xlane.f32.xlu1 %v10694_v27  ;;  %6672 = vmatprep.subr.mxu0 %v4302_v0 }
 0xf68   :  { %3249 = vadd.xlane.f32.xlu0 %v10695_v3  ;;  %6673 = vmatpush3.msra.mxu0 %v4302_v0 }
 0xf6b   :  { %3730 = vadd.xlane.f32.xlu1 %v9701_v11  ;;  %v10701_v11 = vld [vmem:[#allocation53_spill] sm:$0xff] }
 0xf6c   :  { %3247 = vadd.xlane.f32.xlu0 %v10696_v45 }
 0xf6f   :  { %3257 = vadd.xlane.f32.xlu1 %v10697_v22 }
 0xf70   :  { %3245 = vadd.xlane.f32.xlu0 %v10698_v32 }
 0xf73   :  { %3728 = vadd.xlane.f32.xlu1 %v9698_v6  ;;  %v2549_v6 = vld [vmem:[%s10300_s3 + $0x60] sm:$0xff] }
 0xf74   :  { %3243 = vadd.xlane.f32.xlu0 %v10699_v4 }
 0xf77   :  { %v9853_v17 = vpop.xlane.xlu0 %4175  ;;  %3726 = vadd.xlane.f32.xlu1 %v9691_v40  ;;  %v10702_v40 = vld [vmem:[#allocation18_spill] sm:$0xff] }
 0xf78   :  { %3241 = vadd.xlane.f32.xlu0 %v10700_v41  ;;  %v9867_v61 = vrot.slane %v2549_v6, %v10702_v40  ;;  %v4195_v46 = vsub.f32 %v9798_v20, %v9853_v17 }
 0xf7a   :  { %v4223_v19 = vmul.f32 1.442695, %v4195_v46 }
 0xf7b   :  { %v4300_v30 = vpop.permute.xlu0 %4299  ;;  %3724 = vadd.xlane.f32.xlu1 %v9687_v5  ;;  %v4194_v5 = vsub.f32 %v9788_v23, %v4174_v16  ;;  %v4186_v23 = vsub.f32 %v9654_v29, %v9761_v10 }
 0xf7c   :  { %3239 = vadd.xlane.f32.xlu0 %v10701_v11  ;;  %6674 = vmatprep.subr.mxu0 %v4300_v30 }
 0xf7d   :  { %6675 = vmatpush3.msra.mxu0 %v4300_v30  ;;  %v4221_v52 = vmul.f32 1.442695, %v4194_v5 }
 0xf7f   :  { %3722 = vadd.xlane.f32.xlu1 %v9683_v62  ;;  %v10703_v62 = vld [vmem:[#allocation66_spill] sm:$0xff]  ;;  %7189 = vpow2.f32 %v4221_v52 }
 0xf83   :  { %3720 = vadd.xlane.f32.xlu1 %v9681_v7 }
 0xf87   :  { %3718 = vadd.xlane.f32.xlu1 %v9677_v47  ;;  %v9876_v47 = vpop.f32.mrf.mxu1 }
 0xf89   :  { %v9882_v13 = vpop.f32.mrf.mxu1 }
 0xf8b   :  { %3716 = vadd.xlane.f32.xlu1 %v9674_v15  ;;  %v9886_v55 = vpop.f32.mrf.mxu1 }
 0xf8c   :  { %v7190_v28 = vpop.eup %7189 }
 0xf8d   :  { %v9892_v24 = vpop.f32.mrf.mxu1 }
 0xf8f   :  { %3714 = vadd.xlane.f32.xlu1 %v9667_v63  ;;  %v4184_v63 = vsub.f32 %v9620_v37, %v9741_v33  ;;  %v4205_v37 = vmul.f32 1.442695, %v4186_v23  ;;  %v4188_v33 = vsub.f32 %v9726_v14, %v9781_v21 }
 0xf91   :  { %v4201_v56 = vmul.f32 1.442695, %v4184_v63  ;;  %v4209_v29 = vmul.f32 1.442695, %v4188_v33 }
 0xf92   :  { %3984 = vrot.lane.b32.xlu0 %v9867_v61, %s7464_s0 }
 0xf93   :  { %3712 = vadd.xlane.f32.xlu1 %v9663_v12  ;;  %v4185_v12 = vsub.f32 %v9630_v2, %v9750_v38  ;;  %7191 = vpow2.f32 %v4201_v56  ;;  %v9896_v2 = vpop.f32.mrf.mxu1  ;;  %v4207_v38 = vmul.f32 1.442695, %v4187_v57 }
 0xf95   :  { %v4203_v43 = vmul.f32 1.442695, %v4185_v12  ;;  %v9902_v10 = vpop.f32.mrf.mxu1 }
 0xf97   :  { %3710 = vadd.xlane.f32.xlu1 %v10703_v62  ;;  %v9874_v7 = vpop.xlane.xlu1 %4177  ;;  %7193 = vpow2.f32 %v4203_v43  ;;  %v9906_v14 = vpop.f32.mrf.mxu1 }
 0xf98   :  { %7195 = vpow2.f32 %v4205_v37  ;;  %v4196_v8 = vsub.f32 %v9808_v44, %v9874_v7 }
 0xf99   :  { %7197 = vpow2.f32 %v4207_v38  ;;  %v9912_v50 = vpop.f32.mrf.mxu1 }
 0xf9a   :  { %7199 = vpow2.f32 %v4209_v29  ;;  %v4225_v3 = vmul.f32 1.442695, %v4196_v8  ;;  %v10706_v8 = vld [vmem:[#allocation38_spill] sm:$0xff] }
 0xf9b   :  { %3237 = vadd.xlane.f32.xlu1 %v10704_v49  ;;  %v4298_v15 = vpop.permute.xlu1 %4297  ;;  %7201 = vpow2.f32 %v4211_v54  ;;  %v9916_v34 = vpop.f32.mrf.mxu1 }
 0xf9c   :  { %6676 = vmatprep.subr.mxu0 %v4298_v15  ;;  %7203 = vpow2.f32 %v4213_v31 }
 0xf9d   :  { %6677 = vmatpush3.msra.mxu0 %v4298_v15  ;;  %7205 = vpow2.f32 %v4215_v18  ;;  %v9925_v16 = vpop.f32.mrf.mxu1 }
 0xf9e   :  { %7207 = vpow2.f32 %v4217_v26 }
 0xf9f   :  { %7209 = vpow2.f32 %v4219_v1  ;;  %v9931_v20 = vpop.f32.mrf.mxu1 }
 0xfa0   :  { %v9914_v9 = vpop.eup %7191  ;;  %7211 = vpow2.f32 %v4223_v19 }
 0xfa1   :  { %7213 = vpow2.f32 %v4225_v3 }
 0xfa4   :  { %v7194_v58 = vpop.eup %7193 }
 0xfa5   :  { %v9923_v48 = vpop.eup %7195 }
 0xfa6   :  { %v9928_v27 = vpop.eup %7197 }
 0xfa7   :  { %v9935_v44 = vpop.eup %7199 }
 0xfa8   :  { %v9937_v22 = vpop.eup %7201 }
 0xfa9   :  { %v9943_v32 = vpop.eup %7203 }
 0xfaa   :  { %v9947_v17 = vpop.eup %7205 }
 0xfac   :  { %v4180_v21 = vpop.xlane.xlu0 %4179 }
 0xfad   :  { %v4197_v0 = vsub.f32 %v9818_v42, %v4180_v21  ;;  %v9940_v42 = vpop.f32.mrf.mxu1  ;;  %v10705_v21 = vld [vmem:[#allocation32_spill] sm:$0xff] }
 0xfaf   :  { %v4227_v45 = vmul.f32 1.442695, %v4197_v0  ;;  %v9945_v4 = vpop.f32.mrf.mxu1 }
 0xfb0   :  { %v4296_v36 = vpop.permute.xlu0 %4295 }
 0xfb1   :  { %4253 = vadd.xlane.f32.xlu0 %v7190_v28  ;;  %6678 = vmatprep.subr.mxu0 %v4296_v36  ;;  %7215 = vpow2.f32 %v4227_v45  ;;  %v9953_v41 = vpop.f32.mrf.mxu1 }
 0xfb2   :  { %6679 = vmatpush3.msra.mxu0 %v4296_v36 }
 0xfb3   :  { %6681 = vmatmul.mubr.f32.vlgmr.msra.gmra.mxu0 %v9914_v9  ;;  %v6591_v11 = vpop.f32.mrf.mxu1 }
 0xfb4   :  { %6683 = vmatprep.mubr.f32.mxu0 %v7194_v58 }
 0xfb5   :  { %4235 = vadd.xlane.f32.xlu0 %v7194_v58  ;;  %v3437_v7 = vpop.f32.mrf.mxu1 }
 0xfb7   :  { %6684 = vmatmul.mubr.f32.gmra.mxu0 %v9923_v48  ;;  %v9959_v49 = vpop.f32.mrf.mxu1 }
 0xfb8   :  { %6686 = vmatprep.mubr.f32.mxu0 %v9928_v27 }
 0xfb9   :  { %4231 = vadd.xlane.f32.xlu0 %v9732_v59  ;;  %v9951_v59 = vpop.eup %7207  ;;  %v9962_v52 = vpop.f32.mrf.mxu1 }
 0xfba   :  { %v9955_v30 = vpop.eup %7209 }
 0xfbb   :  { %6687 = vmatmul.mubr.f32.gmra.mxu0 %v9935_v44  ;;  %v7212_v6 = vpop.eup %7211  ;;  %v9964_v23 = vpop.f32.mrf.mxu1 }
 0xfbc   :  { %6689 = vmatprep.mubr.f32.mxu0 %v9937_v22  ;;  %v7214_v62 = vpop.eup %7213 }
 0xfbd   :  { %v9966_v57 = vpop.f32.mrf.mxu1 }
 0xfbe   :  { %v7216_v5 = vpop.eup %7215 }
 0xfbf   :  { %6690 = vmatmul.mubr.f32.gmra.mxu0 %v9943_v32  ;;  %v9968_v33 = vpop.f32.mrf.mxu1 }
 0xfc0   :  { %6692 = vmatprep.mubr.f32.mxu0 %v9947_v17 }
 0xfc3   :  { %6693 = vmatmul.mubr.f32.gmra.mxu0 %v9951_v59 }
 0xfc4   :  { %6695 = vmatprep.mubr.f32.mxu0 %v9955_v30 }
 0xfc7   :  { %6696 = vmatmul.mubr.f32.gmra.mxu0 %v7190_v28 }
 0xfc8   :  { %6698 = vmatprep.mubr.f32.mxu0 %v7212_v6 }
 0xfcb   :  { %6699 = vmatmul.mubr.f32.gmra.mxu0 %v7214_v62 }
 0xfcc   :  { %6701 = vmatprep.mubr.f32.mxu0 %v7216_v5  ;;  %v4182_v15 = vpop.xlane.xlu1 %4181 }
 0xfcd   :  { %v4198_v63 = vsub.f32 %v9828_v53, %v4182_v15  ;;  %v9970_v53 = vpop.f32.mrf.mxu1  ;;  %v10707_v15 = vld [vmem:[#allocation21_spill] sm:$0xff] }
 0xfcf   :  { %v4229_v12 = vmul.f32 1.442695, %v4198_v63  ;;  %v9973_v35 = vpop.f32.mrf.mxu1 }
 0xfd0   :  { %v3741_v56 = vpop.xlane.xlu1 %3740 }
 0xfd1   :  { %7217 = vpow2.f32 %v4229_v12  ;;  %v9976_v26 = vpop.f32.mrf.mxu1 }
 0xfd3   :  { %v9980_v0 = vpop.f32.mrf.mxu1 }
 0xfd4   :  { %v3268_v43 = vpop.xlane.xlu1 %3267 }
 0xfd5   :  { %7219 = vrcp.f32 %v3268_v43  ;;  %v9985_v12 = vpop.f32.mrf.mxu1 }
 0xfd8   :  { %v3739_v37 = vpop.xlane.xlu1 %3738 }
 0xfdc   :  { %v3266_v38 = vpop.xlane.xlu1 %3265 }
 0xfdd   :  { %7221 = vrcp.f32 %v3266_v38  ;;  %v9991_v38 = vpop.f32.mrf.mxu1 }
 0xfde   :  { %v7218_v39 = vpop.eup %7217 }
 0xfdf   :  { %4261 = vadd.xlane.f32.xlu1 %v7218_v39  ;;  %6702 = vmatmul.mubr.f32.gmra.mxu0 %v7218_v39 }
 0xfe0   :  { %v3264_v29 = vpop.xlane.xlu1 %3263  ;;  %6736 = vmatprep.mubr.f32.mxu0 %v7388_v51 }
 0xfe1   :  { %7223 = vrcp.f32 %v3264_v29  ;;  %v3737_v54 = vpop.xlane.xlu0 %3736 }
 0xfe2   :  { %v7220_v60 = vpop.eup %7219 }
 0xfe3   :  { %v3300_v31 = vmul.f32 %v7220_v60, %v10705_v21  ;;  %4259 = vadd.xlane.f32.xlu1 %v7216_v5 }
 0xfe4   :  { %v3735_v18 = vpop.xlane.xlu1 %3734 }
 0xfe5   :  { %v3461_v25 = vmul.f32 %v6591_v11, %v3300_v31  ;;  %v3256_v28 = vpop.xlane.xlu0 %3255  ;;  %v10709_v31 = vld [vmem:[#allocation50_spill] sm:$0xff] }
 0xfe6   :  { %7225 = vrcp.f32 %v3256_v28  ;;  %v10710_v28 = vld [vmem:[#allocation54_spill] sm:$0xff] }
 0xfe7   :  { %v3481_v36 = vadd.f32 %v9867_v61, %v3461_v25  ;;  %4257 = vadd.xlane.f32.xlu1 %v7214_v62 }
 0xfe8   :  { %v3262_v1 = vpop.xlane.xlu1 %3261 }
 0xfe9   :  { %3497 = vst.msk [vmem:[#allocation2 + $0x78] sm:$0xff] %vm1132_vm3, %v3481_v36  ;;  %7227 = vrcp.f32 %v3262_v1  ;;  %v3254_v46 = vpop.xlane.xlu0 %3253 }
 0xfea   :  { %v7222_v58 = vpop.eup %7221  ;;  %7229 = vrcp.f32 %v3254_v46 }
 0xfeb   :  { %v3299_v19 = vmul.f32 %v7222_v58, %v10706_v8  ;;  %4255 = vadd.xlane.f32.xlu1 %v7212_v6  ;;  %7231 = vrcp.f32 %v3741_v56 }
 0xfec   :  { %v3733_v3 = vpop.xlane.xlu1 %3732 }
 0xfed   :  { %v3460_v45 = vmul.f32 %v3437_v7, %v3299_v19  ;;  %v3252_v11 = vpop.xlane.xlu0 %3251 }
 0xfee   :  { %v7224_v5 = vpop.eup %7223  ;;  %7233 = vrcp.f32 %v3252_v11 }
 0xfef   :  { %7235 = vrcp.f32 %v3739_v37  ;;  %v3480_v62 = vadd.f32 %v9867_v61, %v3460_v45  ;;  %v3298_v63 = vmul.f32 %v7224_v5, %v10707_v15  ;;  %4251 = vadd.xlane.f32.xlu1 %v9955_v30  ;;  %v10708_v30 = vld [vmem:[#allocation13_spill] sm:$0xff] }
 0xff0   :  { %7237 = vrcp.f32 %v3737_v54  ;;  %v3260_v43 = vpop.xlane.xlu1 %3259 }
 0xff1   :  { %3496 = vst.msk [vmem:[#allocation2 + $0x70] sm:$0xff] %vm1132_vm3, %v3480_v62  ;;  %v3459_v6 = vmul.f32 %v9945_v4, %v3298_v63  ;;  %7239 = vrcp.f32 %v3260_v43  ;;  %v3250_v7 = vpop.xlane.xlu0 %3249  ;;  %v10711_v62 = vld [vmem:[#allocation19_spill] sm:$0xff] }
 0xff2   :  { %7241 = vrcp.f32 %v3250_v7 }
 0xff3   :  { %v7226_v56 = vpop.eup %7225  ;;  %v3479_v37 = vadd.f32 %v9867_v61, %v3459_v6  ;;  %7243 = vrcp.f32 %v3735_v18  ;;  %4249 = vadd.xlane.f32.xlu1 %v9951_v59  ;;  %v9998_v59 = vpop.f32.mrf.mxu1 }
 0xff4   :  { %v3294_v39 = vmul.f32 %v7226_v56, %v10708_v30  ;;  %7245 = vrcp.f32 %v3733_v3  ;;  %v3731_v29 = vpop.xlane.xlu1 %3730 }
 0xff5   :  { %3495 = vst.msk [vmem:[#allocation2 + $0x68] sm:$0xff] %vm1132_vm3, %v3479_v37  ;;  %7247 = vrcp.f32 %v3731_v29  ;;  %v3248_v51 = vpop.xlane.xlu0 %3247  ;;  %v6644_v11 = vpop.f32.mrf.mxu1 }
 0xff6   :  { %v7228_v4 = vpop.eup %7227  ;;  %v3455_v54 = vmul.f32 %v9916_v34, %v3294_v39  ;;  %7249 = vrcp.f32 %v3248_v51 }
 0xff7   :  { %v7230_v60 = vpop.eup %7229  ;;  %v3297_v25 = vmul.f32 %v7228_v4, %v10709_v31  ;;  %4247 = vadd.xlane.f32.xlu1 %v9947_v17  ;;  %v3948_v29 = vpop.f32.mrf.mxu1  ;;  %v10713_v4 = vld [vmem:[#allocation20_spill] sm:$0xff] }
 0xff8   :  { %v3475_v18 = vadd.f32 %v9867_v61, %v3455_v54  ;;  %v3293_v36 = vmul.f32 %v7230_v60, %v10710_v28  ;;  %v3258_v1 = vpop.xlane.xlu1 %3257  ;;  %v7232_v19 = vpop.eup %7231 }
 0xff9   :  { %v3458_v46 = vmul.f32 %v9953_v41, %v3297_v25  ;;  %7251 = vrcp.f32 %v3258_v1  ;;  %v3246_v58 = vpop.xlane.xlu0 %3245 }
 0xffa   :  { %3491 = vst.msk [vmem:[#allocation2 + $0x48] sm:$0xff] %vm1132_vm3, %v3475_v18  ;;  %v3454_v34 = vmul.f32 %v9925_v16, %v3293_v36  ;;  %7253 = vrcp.f32 %v3246_v58  ;;  %v3773_v58 = vmul.f32 %v7232_v19, %v10705_v21  ;;  %v10715_v19 = vld [vmem:[#allocation37_spill] sm:$0xff] }
 0xffb   :  { %v7234_v3 = vpop.eup %7233  ;;  %v3478_v17 = vadd.f32 %v9867_v61, %v3458_v46  ;;  %4245 = vadd.xlane.f32.xlu1 %v9943_v32  ;;  %v10712_v32 = vld [vmem:[#allocation56_spill] sm:$0xff] }
 0xffc   :  { %v7236_v45 = vpop.eup %7235  ;;  %v3474_v5 = vadd.f32 %v9867_v61, %v3454_v34  ;;  %v3292_v63 = vmul.f32 %v7234_v3, %v10711_v62  ;;  %v3729_v41 = vpop.xlane.xlu1 %3728 }
 0xffd   :  { %v7238_v43 = vpop.eup %7237  ;;  %3494 = vst.msk [vmem:[#allocation2 + $0x60] sm:$0xff] %vm1132_vm3, %v3478_v17  ;;  %7255 = vrcp.f32 %v3729_v41  ;;  %v3244_v6 = vpop.xlane.xlu0 %3243  ;;  %v3772_v34 = vmul.f32 %v7236_v45, %v10706_v8 }
 0xffe   :  { %v7240_v7 = vpop.eup %7239  ;;  %3490 = vst.msk [vmem:[#allocation2 + $0x40] sm:$0xff] %vm1132_vm3, %v3474_v5  ;;  %v3453_v16 = vmul.f32 %v9906_v14, %v3292_v63  ;;  %7257 = vrcp.f32 %v3244_v6  ;;  %v6647_v14 = vpop.f32.mrf.mxu1  ;;  %v10714_v63 = vld [vmem:[#allocation12_spill] sm:$0xff] }
 0xfff   :  { %v7242_v56 = vpop.eup %7241  ;;  %v3296_v37 = vmul.f32 %v7240_v7, %v10712_v32  ;;  %4243 = vadd.xlane.f32.xlu1 %v9937_v22 }
0x1000   :  { %v7244_v39 = vpop.eup %7243  ;;  %v3473_v51 = vadd.f32 %v9867_v61, %v3453_v16  ;;  %v3291_v54 = vmul.f32 %v7242_v56, %v10713_v4  ;;  %v3727_v60 = vpop.xlane.xlu1 %3726 }
0x1001   :  { %v7246_v25 = vpop.eup %7245  ;;  %v3457_v18 = vmul.f32 %v9931_v20, %v3296_v37  ;;  %7259 = vrcp.f32 %v3727_v60  ;;  %v3242_v36 = vpop.xlane.xlu0 %3241  ;;  %v3771_v20 = vmul.f32 %v7238_v43, %v10707_v15  ;;  %v3770_v17 = vmul.f32 %v7244_v39, %v10709_v31 }
0x1002   :  { %v7248_v1 = vpop.eup %7247  ;;  %3489 = vst.msk [vmem:[#allocation2 + $0x38] sm:$0xff] %vm1132_vm3, %v3473_v51  ;;  %v3452_v46 = vmul.f32 %v9912_v50, %v3291_v54  ;;  %7261 = vrcp.f32 %v3242_v36  ;;  %v3769_v50 = vmul.f32 %v7246_v25, %v10712_v32  ;;  %v3958_v56 = vpop.f32.mrf.mxu1  ;;  %v3982_v37 = vmul.f32 %v6647_v14, %v3773_v58 }
0x1003   :  { %v7250_v22 = vpop.eup %7249  ;;  %v3477_v3 = vadd.f32 %v9867_v61, %v3457_v18  ;;  %4241 = vadd.xlane.f32.xlu1 %v9935_v44  ;;  %v3768_v7 = vmul.f32 %v7248_v1, %v10715_v19  ;;  %v3981_v39 = vmul.f32 %v3958_v56, %v3772_v34  ;;  %v3980_v54 = vmul.f32 %v6644_v11, %v3771_v20  ;;  %v10716_v18 = vld [vmem:[#allocation27_spill] sm:$0xff] }
0x1004   :  { %v3472_v5 = vadd.f32 %v9867_v61, %v3452_v46  ;;  %v3290_v41 = vmul.f32 %v7250_v22, %v10714_v63  ;;  %v3725_v6 = vpop.xlane.xlu1 %3724  ;;  %v3979_v60 = vmul.f32 %v3948_v29, %v3770_v17  ;;  %v3978_v46 = vmul.f32 %v9991_v38, %v3769_v50 }
0x1005   :  { %3493 = vst.msk [vmem:[#allocation2 + $0x58] sm:$0xff] %vm1132_vm3, %v3477_v3  ;;  %7263 = vrcp.f32 %v3725_v6  ;;  %v3240_v45 = vpop.xlane.xlu0 %3239  ;;  %v3977_v22 = vmul.f32 %v9998_v59, %v3768_v7 }
0x1006   :  { %v7252_v16 = vpop.eup %7251  ;;  %3488 = vst.msk [vmem:[#allocation2 + $0x30] sm:$0xff] %vm1132_vm3, %v3472_v5  ;;  %v3451_v44 = vmul.f32 %v9896_v2, %v3290_v41  ;;  %7265 = vrcp.f32 %v3240_v45 }
0x1007   :  { %v7254_v43 = vpop.eup %7253  ;;  %v3295_v51 = vmul.f32 %v7252_v16, %v10715_v19  ;;  %4239 = vadd.xlane.f32.xlu1 %v9928_v27 }
0x1008   :  { %v3471_v25 = vadd.f32 %v9867_v61, %v3451_v44  ;;  %v3289_v36 = vmul.f32 %v7254_v43, %v10716_v18  ;;  %v3723_v1 = vpop.xlane.xlu1 %3722  ;;  %v10718_v44 = vld [vmem:[#allocation24_spill] sm:$0xff] }
0x1009   :  { %v3456_v2 = vmul.f32 %v9940_v42, %v3295_v51  ;;  %7267 = vrcp.f32 %v3723_v1  ;;  %v10039_v14 = vpop.permute.xlu0 %3984  ;;  %v10719_v1 = vld [vmem:[#allocation10_spill] sm:$0xff] }
0x100a   :  { %v7256_v58 = vpop.eup %7255  ;;  %3487 = vst.msk [vmem:[#allocation2 + $0x28] sm:$0xff] %vm1132_vm3, %v3471_v25  ;;  %v3450_v27 = vmul.f32 %v9902_v10, %v3289_v36  ;;  %v4002_v11 = vadd.f32 %v10039_v14, %v3982_v37  ;;  %v4001_v29 = vadd.f32 %v10039_v14, %v3981_v39  ;;  %v4000_v34 = vadd.f32 %v10039_v14, %v3980_v54  ;;  %v10717_v10 = vld [vmem:[#allocation22_spill] sm:$0xff] }
0x100b   :  { %v7258_v3 = vpop.eup %7257  ;;  %v3476_v38 = vadd.f32 %v9867_v61, %v3456_v2  ;;  %v3767_v59 = vmul.f32 %v7256_v58, %v10708_v30  ;;  %4237 = vadd.xlane.f32.xlu1 %v9923_v48  ;;  %v3999_v42 = vadd.f32 %v10039_v14, %v3979_v60  ;;  %v3998_v20 = vadd.f32 %v10039_v14, %v3978_v46 }
0x100c   :  { %v3470_v17 = vadd.f32 %v9867_v61, %v3450_v27  ;;  %v3288_v5 = vmul.f32 %v7258_v3, %v10717_v10  ;;  %v3721_v41 = vpop.xlane.xlu1 %3720  ;;  %4018 = vst.msk [vmem:[#allocation2 + $0xf8] sm:$0xff] %vm1132_vm3, %v4002_v11  ;;  %4017 = vst.msk [vmem:[#allocation2 + $0xf0] sm:$0xff] %vm1132_vm3, %v4001_v29  ;;  %v3997_v6 = vadd.f32 %v10039_v14, %v3977_v22  ;;  %v4554_v22 = vld [vmem:[#allocation2 + $0x78] sm:$0xff]  ;;  %v4553_v11 = vld [vmem:[#allocation2 + $0x70] sm:$0xff] }
0x100d   :  { %4016 = vst.msk [vmem:[#allocation2 + $0xe8] sm:$0xff] %vm1132_vm3, %v4000_v34  ;;  %3492 = vst.msk [vmem:[#allocation2 + $0x50] sm:$0xff] %vm1132_vm3, %v3476_v38  ;;  %v3976_v48 = vmul.f32 %v9980_v0, %v3767_v59  ;;  %7269 = vrcp.f32 %v3721_v41  ;;  %v4552_v59 = vld [vmem:[#allocation2 + $0x68] sm:$0xff] }
0x100e   :  { %4015 = vst.msk [vmem:[#allocation2 + $0xe0] sm:$0xff] %vm1132_vm3, %v3999_v42  ;;  %4014 = vst.msk [vmem:[#allocation2 + $0xd8] sm:$0xff] %vm1132_vm3, %v3998_v20  ;;  %v7260_v50 = vpop.eup %7259  ;;  %v3449_v7 = vmul.f32 %v9886_v55, %v3288_v5 }
0x100f   :  { %3486 = vst.msk [vmem:[#allocation2 + $0x20] sm:$0xff] %vm1132_vm3, %v3470_v17  ;;  %4013 = vst.msk [vmem:[#allocation2 + $0xd0] sm:$0xff] %vm1132_vm3, %v3997_v6  ;;  %v7262_v45 = vpop.eup %7261  ;;  %v3766_v16 = vmul.f32 %v7260_v50, %v10710_v28  ;;  %4233 = vadd.xlane.f32.xlu1 %v9914_v9  ;;  %v3996_v56 = vadd.f32 %v10039_v14, %v3976_v48  ;;  %v4551_v17 = vld [vmem:[#allocation2 + $0x60] sm:$0xff]  ;;  %v4550_v50 = vld [vmem:[#allocation2 + $0x58] sm:$0xff] }
0x1010   :  { %v3469_v0 = vadd.f32 %v9867_v61, %v3449_v7  ;;  %v3287_v43 = vmul.f32 %v7262_v45, %v10718_v44  ;;  %v3719_v37 = vpop.xlane.xlu1 %3718 }
0x1011   :  { %v3975_v39 = vmul.f32 %v9985_v12, %v3766_v16  ;;  %7271 = vrcp.f32 %v3719_v37  ;;  %4012 = vst.msk [vmem:[#allocation2 + $0xc8] sm:$0xff] %vm1132_vm3, %v3996_v56 }
0x1012   :  { %v7264_v55 = vpop.eup %7263  ;;  %3485 = vst.msk [vmem:[#allocation2 + $0x18] sm:$0xff] %vm1132_vm3, %v3469_v0  ;;  %v3448_v51 = vmul.f32 %v9892_v24, %v3287_v43 }
0x1013   :  { %v7266_v54 = vpop.eup %7265  ;;  %v3765_v9 = vmul.f32 %v7264_v55, %v10711_v62  ;;  %v4570_v60 = vld [vmem:[#allocation2 + $0xf8] sm:$0xff]  ;;  %v3995_v25 = vadd.f32 %v10039_v14, %v3975_v39  ;;  %v4569_v58 = vld [vmem:[#allocation2 + $0xf0] sm:$0xff]  ;;  %v4548_v39 = vld [vmem:[#allocation2 + $0x48] sm:$0xff] }
0x1014   :  { %v3468_v36 = vadd.f32 %v9867_v61, %v3448_v51  ;;  %v3286_v46 = vmul.f32 %v7266_v54, %v10719_v1  ;;  %5982 = vmatprep.subr.mxu1 %v4570_v60  ;;  %v3717_v12 = vpop.xlane.xlu1 %3716  ;;  %v4568_v34 = vld [vmem:[#allocation2 + $0xe8] sm:$0xff]  ;;  %v4549_v16 = vld [vmem:[#allocation2 + $0x50] sm:$0xff]  ;;  %v4547_v54 = vld [vmem:[#allocation2 + $0x40] sm:$0xff] }
0x1015   :  { %v3974_v2 = vmul.f32 %v9973_v35, %v3765_v9  ;;  %7273 = vrcp.f32 %v3717_v12  ;;  %5983 = vmatpush3.msra.mxu1 %v4554_v22  ;;  %4011 = vst.msk [vmem:[#allocation2 + $0xc0] sm:$0xff] %vm1132_vm3, %v3995_v25  ;;  %v4567_v20 = vld [vmem:[#allocation2 + $0xe0] sm:$0xff]  ;;  %v4566_v41 = vld [vmem:[#allocation2 + $0xd8] sm:$0xff] }
0x1016   :  { %v7268_v24 = vpop.eup %7267  ;;  %3484 = vst.msk [vmem:[#allocation2 + $0x10] sm:$0xff] %vm1132_vm3, %v3468_v36  ;;  %v3447_v27 = vmul.f32 %v9876_v47, %v3286_v46  ;;  %5984 = vmatprep.subr.mxu1 %v4569_v58  ;;  %v4565_v7 = vld [vmem:[#allocation2 + $0xd0] sm:$0xff]  ;;  %v4546_v46 = vld [vmem:[#allocation2 + $0x38] sm:$0xff] }
0x1017   :  { %v3764_v29 = vmul.f32 %v7268_v24, %v10713_v4  ;;  %5985 = vmatpush3.msra.mxu1 %v4553_v11  ;;  %v3994_v3 = vadd.f32 %v10039_v14, %v3974_v2  ;;  %v4545_v2 = vld [vmem:[#allocation2 + $0x30] sm:$0xff] }
0x1018   :  { %v3467_v35 = vadd.f32 %v9867_v61, %v3447_v27  ;;  %5986 = vmatprep.subr.mxu1 %v4568_v34  ;;  %v3715_v38 = vpop.xlane.xlu1 %3714  ;;  %v4564_v43 = vld [vmem:[#allocation2 + $0xc8] sm:$0xff] }
0x1019   :  { %v3973_v42 = vmul.f32 %v9976_v26, %v3764_v29  ;;  %7275 = vrcp.f32 %v3715_v38  ;;  %5987 = vmatpush3.msra.mxu1 %v4552_v59  ;;  %4010 = vst.msk [vmem:[#allocation2 + $0xb8] sm:$0xff] %vm1132_vm3, %v3994_v3  ;;  %v4544_v29 = vld [vmem:[#allocation2 + $0x28] sm:$0xff]  ;;  %v4543_v59 = vld [vmem:[#allocation2 + $0x20] sm:$0xff] }
0x101a   :  { %v7270_v47 = vpop.eup %7269  ;;  %3483 = vst.msk [vmem:[#allocation2 + $0x8] sm:$0xff] %vm1132_vm3, %v3467_v35  ;;  %5988 = vmatprep.subr.mxu1 %v4567_v20 }
0x101b   :  { %v3763_v5 = vmul.f32 %v7270_v47, %v10714_v63  ;;  %5989 = vmatpush3.msra.mxu1 %v4551_v17  ;;  %v3993_v6 = vadd.f32 %v10039_v14, %v3973_v42 }
0x101c   :  { %5990 = vmatprep.subr.mxu1 %v4566_v41  ;;  %v3713_v48 = vpop.xlane.xlu1 %3712  ;;  %v4563_v55 = vld [vmem:[#allocation2 + $0xc0] sm:$0xff]  ;;  %v4542_v41 = vld [vmem:[#allocation2 + $0x18] sm:$0xff] }
0x101d   :  { %v3972_v26 = vmul.f32 %v9968_v33, %v3763_v5  ;;  %7277 = vrcp.f32 %v3713_v48  ;;  %5991 = vmatpush3.msra.mxu1 %v4550_v50  ;;  %4009 = vst.msk [vmem:[#allocation2 + $0xb0] sm:$0xff] %vm1132_vm3, %v3993_v6 }
0x101e   :  { %v7272_v45 = vpop.eup %7271  ;;  %5992 = vmatprep.subr.mxu1 %v4565_v7  ;;  %v4541_v7 = vld [vmem:[#allocation2 + $0x10] sm:$0xff] }
0x101f   :  { %v3992_v56 = vadd.f32 %v10039_v14, %v3972_v26  ;;  %v3762_v0 = vmul.f32 %v7272_v45, %v10716_v18  ;;  %5993 = vmatpush3.msra.mxu1 %v4549_v16 }
0x1020   :  { %5994 = vmatprep.subr.mxu1 %v4564_v43  ;;  %v3711_v37 = vpop.xlane.xlu1 %3710  ;;  %4504 = vrot.lane.b32.xlu1 %v9867_v61, %s7466_s17  ;;  %v4562_v25 = vld [vmem:[#allocation2 + $0xb8] sm:$0xff]  ;;  %v7390_v43 = vld [vmem:[#allocation3 + $0x20] sm:$0xff] }
0x1021   :  { %4008 = vst.msk [vmem:[#allocation2 + $0xa8] sm:$0xff] %vm1132_vm3, %v3992_v56  ;;  %v3971_v33 = vmul.f32 %v9970_v53, %v3762_v0  ;;  %7279 = vrcp.f32 %v3711_v37  ;;  %5995 = vmatpush3.msra.mxu1 %v4548_v39  ;;  %v7389_v0 = vld [vmem:[#allocation3] sm:$0xff]  ;;  %v7392_v37 = vld [vmem:[#allocation3 + $0x38] sm:$0xff]  ;;  %v7393_v39 = vld [vmem:[#allocation3 + $0x30] sm:$0xff] }
0x1022   :  { %v7274_v51 = vpop.eup %7273  ;;  %5996 = vmatprep.subr.mxu1 %v4563_v55  ;;  %v7396_v55 = vld [vmem:[#allocation3 + $0x68] sm:$0xff] }
0x1023   :  { %v3991_v9 = vadd.f32 %v10039_v14, %v3971_v33  ;;  %v3761_v60 = vmul.f32 %v7274_v51, %v10717_v10  ;;  %5997 = vmatpush3.msra.mxu1 %v4547_v54  ;;  %v7395_v33 = vld [vmem:[#allocation3 + $0x48] sm:$0xff]  ;;  %v7397_v51 = vld [vmem:[#allocation3 + $0x60] sm:$0xff] }
0x1024   :  { %5998 = vmatprep.subr.mxu1 %v4562_v25  ;;  %v3238_v36 = vpop.xlane.xlu1 %3237  ;;  %v4561_v12 = vld [vmem:[#allocation2 + $0xb0] sm:$0xff]  ;;  %v7398_v54 = vld [vmem:[#allocation3 + $0x80] sm:$0xff] }
0x1025   :  { %4007 = vst.msk [vmem:[#allocation2 + $0xa0] sm:$0xff] %vm1132_vm3, %v3991_v9  ;;  %v3970_v53 = vmul.f32 %v9964_v23, %v3761_v60  ;;  %7281 = vrcp.f32 %v3238_v36  ;;  %5999 = vmatpush3.msra.mxu1 %v4546_v46  ;;  %v7399_v9 = vld [vmem:[#allocation3 + $0x78] sm:$0xff]  ;;  %v7401_v25 = vld [vmem:[#allocation3 + $0x90] sm:$0xff]  ;;  %v7403_v46 = vld [vmem:[#allocation3 + $0xa8] sm:$0xff] }
0x1026   :  { %v7276_v22 = vpop.eup %7275  ;;  %6000 = vmatprep.subr.mxu1 %v4561_v12  ;;  %v7400_v60 = vld [vmem:[#allocation3 + $0x98] sm:$0xff]  ;;  %v7402_v36 = vld [vmem:[#allocation3 + $0xb0] sm:$0xff]  ;;  %v7404_v12 = vld [vmem:[#allocation3 + $0xc8] sm:$0xff] }
0x1027   :  { %v3990_v58 = vadd.f32 %v10039_v14, %v3970_v53  ;;  %v3760_v24 = vmul.f32 %v7276_v22, %v10718_v44  ;;  %6001 = vmatpush3.msra.mxu1 %v4545_v2  ;;  %v7405_v53 = vld [vmem:[#allocation3 + $0xc0] sm:$0xff]  ;;  %v7407_v2 = vld [vmem:[#allocation3 + $0xd8] sm:$0xff] }
0x1028   :  { %v4560_v27 = vld [vmem:[#allocation2 + $0xa8] sm:$0xff]  ;;  %v7406_v22 = vld [vmem:[#allocation3 + $0xe0] sm:$0xff] }
0x1029   :  { %4006 = vst.msk [vmem:[#allocation2 + $0x98] sm:$0xff] %vm1132_vm3, %v3990_v58  ;;  %v3969_v11 = vmul.f32 %v9966_v57, %v3760_v24  ;;  %6002 = vmatprep.subr.mxu1 %v4560_v27  ;;  %v10720_v57 = vld [vmem:[#allocation34_spill] sm:$0xff]  ;;  %v7408_v58 = vld [vmem:[#allocation3 + $0xf8] sm:$0xff]  ;;  %v7409_v27 = vld [vmem:[#allocation3 + $0xf0] sm:$0xff] }
0x102a   :  { %v7278_v34 = vpop.eup %7277  ;;  %6003 = vmatpush3.msra.mxu1 %v4544_v29 }
0x102b   :  { %v3989_v23 = vadd.f32 %v10039_v14, %v3969_v11  ;;  %v3759_v3 = vmul.f32 %v7278_v34, %v10719_v1  ;;  %v7410_v11 = vld [vmem:[#allocation3 + $0x110] sm:$0xff]  ;;  %v7411_v34 = vld [vmem:[#allocation3 + $0x108] sm:$0xff] }
0x102c   :  { %v4559_v35 = vld [vmem:[#allocation2 + $0xa0] sm:$0xff] }
0x102d   :  { %4005 = vst.msk [vmem:[#allocation2 + $0x90] sm:$0xff] %vm1132_vm3, %v3989_v23  ;;  %v3968_v38 = vmul.f32 %v9959_v49, %v3759_v3  ;;  %6004 = vmatprep.subr.mxu1 %v4559_v35  ;;  %v7412_v23 = vld [vmem:[#allocation3 + $0x128] sm:$0xff]  ;;  %v7413_v35 = vld [vmem:[#allocation3 + $0x120] sm:$0xff] }
0x102e   :  { %v7280_v42 = vpop.eup %7279  ;;  %6005 = vmatpush3.msra.mxu1 %v4543_v59 }
0x102f   :  { %v3988_v20 = vadd.f32 %v10039_v14, %v3968_v38  ;;  %v3758_v47 = vmul.f32 %v7280_v42, %v10720_v57  ;;  %v7414_v42 = vld [vmem:[#allocation3 + $0x140] sm:$0xff] }
0x1030   :  { %v4558_v17 = vld [vmem:[#allocation2 + $0x98] sm:$0xff] }
0x1031   :  { %4004 = vst.msk [vmem:[#allocation2 + $0x88] sm:$0xff] %vm1132_vm3, %v3988_v20  ;;  %v3967_v5 = vmul.f32 %v9962_v52, %v3758_v47  ;;  %6006 = vmatprep.subr.mxu1 %v4558_v17  ;;  %v4540_v52 = vld [vmem:[#allocation2 + $0x8] sm:$0xff]  ;;  %v7415_v17 = vld [vmem:[#allocation3 + $0x138] sm:$0xff] }
0x1032   :  { %v7282_v6 = vpop.eup %7281  ;;  %6007 = vmatpush3.msra.mxu1 %v4542_v41  ;;  %v7416_v41 = vld [vmem:[#allocation3 + $0x158] sm:$0xff] }
0x1033   :  { %v3987_v48 = vadd.f32 %v10039_v14, %v3967_v5  ;;  %v3285_v49 = vmul.f32 %v7282_v6, %v10720_v57 }
0x1034   :  { %v4557_v50 = vld [vmem:[#allocation2 + $0x90] sm:$0xff] }
0x1035   :  { %4003 = vst.msk [vmem:[#allocation2 + $0x80] sm:$0xff] %vm1132_vm3, %v3987_v48  ;;  %v3446_v26 = vmul.f32 %v9882_v13, %v3285_v49  ;;  %6008 = vmatprep.subr.mxu1 %v4557_v50  ;;  %v7391_v13 = vld [vmem:[#allocation3 + $0x18] sm:$0xff]  ;;  %v7417_v50 = vld [vmem:[#allocation3 + $0x150] sm:$0xff] }
0x1036   :  { %6009 = vmatpush3.msra.mxu1 %v4541_v7  ;;  %v7418_v7 = vld [vmem:[#allocation3 + $0x170] sm:$0xff] }
0x1037   :  { %v3466_v45 = vadd.f32 %v9867_v61, %v3446_v26  ;;  %v7394_v61 = vld [vmem:[#allocation3 + $0x50] sm:$0xff] }
0x1038   :  { %v4556_v16 = vld [vmem:[#allocation2 + $0x88] sm:$0xff] }
0x1039   :  { %3482 = vst.msk [vmem:[#allocation2] sm:$0xff] %vm1132_vm3, %v3466_v45  ;;  %6010 = vmatprep.subr.mxu1 %v4556_v16 }
0x103a   :  { %6011 = vmatpush3.msra.mxu1 %v4540_v52  ;;  %v4254_v38 = vpop.xlane.xlu0 %4253  ;;  %v7419_v52 = vld [vmem:[#allocation3 + $0x168] sm:$0xff] }
0x103b   :  { %7283 = vrcp.f32 %v4254_v38 }
0x103c   :  { %v4555_v56 = vld [vmem:[#allocation2 + $0x80] sm:$0xff] }
0x103d   :  { %6012 = vmatprep.subr.mxu1 %v4555_v56 }
0x103e   :  { %v4236_v48 = vpop.xlane.xlu0 %4235 }
0x103f   :  { %7285 = vrcp.f32 %v4236_v48 }
0x1040   :  { %v4539_v14 = vld [vmem:[#allocation2] sm:$0xff] }
0x1041   :  { %6013 = vmatpush3.msra.mxu1 %v4539_v14 }
0x1042   :  { %4652 = vmatmul.mubr.f32.vlgmr.msra.gmra.mxu1 %v7389_v0  ;;  %v4232_v56 = vpop.xlane.xlu0 %4231 }
0x1043   :  { %4656 = vmatprep.mubr.f32.mxu1 %v7390_v43  ;;  %7287 = vrcp.f32 %v4232_v56 }
0x1046   :  { %4657 = vmatmul.mubr.f32.gmra.mxu1 %v7391_v13 }
0x1047   :  { %4661 = vmatprep.mubr.f32.mxu1 %v7392_v37 }
0x104a   :  { %4662 = vmatmul.mubr.f32.gmra.mxu1 %v7393_v39 }
0x104b   :  { %4666 = vmatprep.mubr.f32.mxu1 %v7394_v61 }
0x104e   :  { %4667 = vmatmul.mubr.f32.gmra.mxu1 %v7395_v33 }
0x104f   :  { %4671 = vmatprep.mubr.f32.mxu1 %v7396_v55 }
0x1052   :  { %4672 = vmatmul.mubr.f32.gmra.mxu1 %v7397_v51  ;;  %v7284_v51 = vpop.eup %7283 }
0x1053   :  { %4676 = vmatprep.mubr.f32.mxu1 %v7398_v54  ;;  %v7286_v54 = vpop.eup %7285 }
0x1056   :  { %4677 = vmatmul.mubr.f32.gmra.mxu1 %v7399_v9  ;;  %v7288_v9 = vpop.eup %7287 }
0x1057   :  { %4681 = vmatprep.mubr.f32.mxu1 %v7400_v60 }
0x105a   :  { %4682 = vmatmul.mubr.f32.gmra.mxu1 %v7401_v25 }
0x105b   :  { %4686 = vmatprep.mubr.f32.mxu1 %v7402_v36 }
0x105e   :  { %4687 = vmatmul.mubr.f32.gmra.mxu1 %v7403_v46 }
0x105f   :  { %4691 = vmatprep.mubr.f32.mxu1 %v7404_v12 }
0x1062   :  { %4692 = vmatmul.mubr.f32.gmra.mxu1 %v7405_v53 }
0x1063   :  { %4696 = vmatprep.mubr.f32.mxu1 %v7406_v22 }
0x1066   :  { %4697 = vmatmul.mubr.f32.gmra.mxu1 %v7407_v2 }
0x1067   :  { %4701 = vmatprep.mubr.f32.mxu1 %v7408_v58 }
0x1068   :  { %v4262_v24 = vpop.xlane.xlu1 %4261 }
0x106a   :  { %4702 = vmatmul.mubr.f32.gmra.mxu1 %v7409_v27 }
0x106b   :  { %4706 = vmatprep.mubr.f32.mxu1 %v7410_v11 }
0x106c   :  { %v4260_v29 = vpop.xlane.xlu1 %4259 }
0x106e   :  { %4707 = vmatmul.mubr.f32.gmra.mxu1 %v7411_v34  ;;  %v4279_v34 = vmul.f32 %v7288_v9, %v10720_v57 }
0x106f   :  { %4711 = vmatprep.mubr.f32.mxu1 %v7412_v23  ;;  %v4281_v23 = vmul.f32 %v7286_v54, %v10718_v44 }
0x1070   :  { %v4258_v3 = vpop.xlane.xlu1 %4257 }
0x1071   :  { %7289 = vrcp.f32 %v4258_v3  ;;  %v4290_v3 = vmul.f32 %v7284_v51, %v10712_v32 }
0x1072   :  { %4712 = vmatmul.mubr.f32.gmra.mxu1 %v7413_v35 }
0x1073   :  { %v10119_v59 = vpop.f32.mrf.mxu0  ;;  %4716 = vmatprep.mubr.f32.mxu1 %v7414_v42 }
0x1074   :  { %v4256_v20 = vpop.xlane.xlu1 %4255 }
0x1075   :  { %v10121_v47 = vpop.f32.mrf.mxu0  ;;  %7291 = vrcp.f32 %v4256_v20 }
0x1076   :  { %4717 = vmatmul.mubr.f32.gmra.mxu1 %v7415_v17  ;;  %v4488_v32 = vmul.f32 %v10121_v47, %v4279_v34 }
0x1077   :  { %v10123_v5 = vpop.f32.mrf.mxu0  ;;  %4721 = vmatprep.mubr.f32.mxu1 %v7416_v41 }
0x1078   :  { %v4252_v6 = vpop.xlane.xlu1 %4251 }
0x1079   :  { %v10125_v49 = vpop.f32.mrf.mxu0  ;;  %7293 = vrcp.f32 %v4252_v6 }
0x107a   :  { %4722 = vmatmul.mubr.f32.gmra.mxu1 %v7417_v50 }
0x107b   :  { %v10127_v26 = vpop.f32.mrf.mxu0  ;;  %4726 = vmatprep.mubr.f32.mxu1 %v7418_v7 }
0x107c   :  { %v4250_v45 = vpop.xlane.xlu1 %4249 }
0x107d   :  { %v10129_v16 = vpop.f32.mrf.mxu0  ;;  %7295 = vrcp.f32 %v4250_v45 }
0x107e   :  { %4727 = vmatmul.mubr.f32.gmra.mxu1 %v7419_v52  ;;  %v7290_v60 = vpop.eup %7289 }
0x107f   :  { %v6691_v14 = vpop.f32.mrf.mxu0  ;;  %v4292_v6 = vmul.f32 %v7290_v60, %v10707_v15 }
0x1080   :  { %v4248_v0 = vpop.xlane.xlu1 %4247 }
0x1081   :  { %v4439_v43 = vpop.f32.mrf.mxu0  ;;  %7297 = vrcp.f32 %v4248_v0 }
0x1082   :  { %v7292_v46 = vpop.eup %7291 }
0x1083   :  { %v6694_v13 = vpop.f32.mrf.mxu0  ;;  %v4291_v57 = vmul.f32 %v7292_v46, %v10709_v31 }
0x1084   :  { %v4246_v37 = vpop.xlane.xlu1 %4245 }
0x1085   :  { %7299 = vrcp.f32 %v4246_v37  ;;  %v4449_v39 = vpop.f32.mrf.mxu0 }
0x1086   :  { %v7294_v12 = vpop.eup %7293 }
0x1087   :  { %v6697_v33 = vpop.f32.mrf.mxu0 }
0x1088   :  { %v4244_v61 = vpop.xlane.xlu1 %4243  ;;  %v4499_v48 = vmul.f32 %v6697_v33, %v4290_v3 }
0x1089   :  { %7301 = vrcp.f32 %v4244_v61  ;;  %v4459_v25 = vpop.f32.mrf.mxu0 }
0x108a   :  { %7303 = vrcp.f32 %v4262_v24  ;;  %v7296_v53 = vpop.eup %7295 }
0x108b   :  { %v6700_v2 = vpop.f32.mrf.mxu0  ;;  %v4288_v35 = vmul.f32 %v7296_v53, %v10708_v30 }
0x108c   :  { %v4242_v55 = vpop.xlane.xlu1 %4241  ;;  %v4501_v50 = vmul.f32 %v6700_v2, %v4292_v6 }
0x108d   :  { %7305 = vrcp.f32 %v4242_v55  ;;  %v4469_v17 = vpop.f32.mrf.mxu0  ;;  %v4497_v7 = vmul.f32 %v6694_v13, %v4288_v35 }
0x108e   :  { %7307 = vrcp.f32 %v4260_v29  ;;  %v7298_v22 = vpop.eup %7297  ;;  %v4289_v29 = vmul.f32 %v7294_v12, %v10715_v19  ;;  %v4490_v19 = vmul.f32 %v10125_v49, %v4281_v23 }
0x108f   :  { %v4287_v42 = vmul.f32 %v7298_v22, %v10710_v28 }
0x1090   :  { %v4240_v36 = vpop.xlane.xlu1 %4239 }
0x1091   :  { %7309 = vrcp.f32 %v4240_v36  ;;  %v4496_v52 = vmul.f32 %v4449_v39, %v4287_v42 }
0x1092   :  { %v7300_v27 = vpop.eup %7299 }
0x1093   :  { %v4286_v38 = vmul.f32 %v7300_v27, %v10711_v62  ;;  %v4498_v62 = vmul.f32 %v4459_v25, %v4289_v29 }
0x1094   :  { %v4238_v58 = vpop.xlane.xlu1 %4237 }
0x1095   :  { %7311 = vrcp.f32 %v4238_v58  ;;  %v4495_v45 = vmul.f32 %v6691_v14, %v4286_v38 }
0x1096   :  { %v7302_v24 = vpop.eup %7301 }
0x1097   :  { %v7304_v11 = vpop.eup %7303  ;;  %v4285_v20 = vmul.f32 %v7302_v24, %v10713_v4  ;;  %v4500_v4 = vmul.f32 %v4469_v17, %v4291_v57  ;;  %v4877_v57 = vld [vmem:[%s10300_s3 + $0x68] sm:$0xff] }
0x1098   :  { %v4234_v41 = vpop.xlane.xlu1 %4233  ;;  %v4294_v30 = vmul.f32 %v7304_v11, %v10705_v21 }
0x1099   :  { %7313 = vrcp.f32 %v4234_v41  ;;  %v4494_v15 = vmul.f32 %v4439_v43, %v4285_v20 }
0x109a   :  { %v7306_v44 = vpop.eup %7305 }
0x109b   :  { %v4284_v28 = vmul.f32 %v7306_v44, %v10714_v63  ;;  %v7308_v31 = vpop.eup %7307  ;;  %v7420_v44 = vld [vmem:[#allocation3 + $0x28] sm:$0xff] }
0x109c   :  { %v4505_v56 = vpop.permute.xlu1 %4504  ;;  %v4293_v39 = vmul.f32 %v7308_v31, %v10706_v8  ;;  %v7434_v31 = vld [vmem:[#allocation3 + $0x178] sm:$0xff] }
0x109d   :  { %v4493_v0 = vmul.f32 %v10127_v26, %v4284_v28  ;;  %v4520_v37 = vadd.f32 %v4505_v56, %v4501_v50  ;;  %v4519_v47 = vadd.f32 %v4505_v56, %v4500_v4  ;;  %v4518_v61 = vadd.f32 %v4505_v56, %v4499_v48  ;;  %v7423_v48 = vld [vmem:[#allocation3 + $0x70] sm:$0xff]  ;;  %v7426_v50 = vld [vmem:[#allocation3 + $0xb8] sm:$0xff]  ;;  %v7428_v4 = vld [vmem:[#allocation3 + $0xe8] sm:$0xff] }
0x109e   :  { %v7310_v49 = vpop.eup %7309  ;;  %v4517_v33 = vadd.f32 %v4505_v56, %v4498_v62  ;;  %v4516_v55 = vadd.f32 %v4505_v56, %v4497_v7  ;;  %v4515_v21 = vadd.f32 %v4505_v56, %v4496_v52  ;;  %v4514_v51 = vadd.f32 %v4505_v56, %v4495_v45  ;;  %v7425_v62 = vld [vmem:[#allocation3 + $0xa0] sm:$0xff]  ;;  %v7427_v28 = vld [vmem:[#allocation3 + $0xd0] sm:$0xff]  ;;  %v7430_v45 = vld [vmem:[#allocation3 + $0x118] sm:$0xff] }
0x109f   :  { %v4283_v54 = vmul.f32 %v7310_v49, %v10716_v18  ;;  %v6703_v63 = vpop.f32.mrf.mxu0  ;;  %4536 = vst.msk [vmem:[#allocation2 + $0x168] sm:$0xff] %vm1132_vm3, %v4520_v37  ;;  %4535 = vst.msk [vmem:[#allocation2 + $0x160] sm:$0xff] %vm1132_vm3, %v4519_v47  ;;  %v4513_v14 = vadd.f32 %v4505_v56, %v4494_v15  ;;  %v4512_v43 = vadd.f32 %v4505_v56, %v4493_v0  ;;  %v7429_v7 = vld [vmem:[#allocation3 + $0x100] sm:$0xff]  ;;  %v7431_v52 = vld [vmem:[#allocation3 + $0x130] sm:$0xff] }
0x10a0   :  { %4534 = vst.msk [vmem:[#allocation2 + $0x158] sm:$0xff] %vm1132_vm3, %v4518_v61  ;;  %v4509_v26 = vadd.f32 %v4505_v56, %v4490_v19  ;;  %v4503_v13 = vmul.f32 %v6703_v63, %v4294_v30  ;;  %4533 = vst.msk [vmem:[#allocation2 + $0x150] sm:$0xff] %vm1132_vm3, %v4517_v33  ;;  %v4507_v18 = vadd.f32 %v4505_v56, %v4488_v32  ;;  %v7421_v32 = vld [vmem:[#allocation3 + $0x40] sm:$0xff]  ;;  %v7422_v19 = vld [vmem:[#allocation3 + $0x58] sm:$0xff] }
0x10a1   :  { %4532 = vst.msk [vmem:[#allocation2 + $0x148] sm:$0xff] %vm1132_vm3, %v4516_v55  ;;  %4531 = vst.msk [vmem:[#allocation2 + $0x140] sm:$0xff] %vm1132_vm3, %v4515_v21  ;;  %v4492_v9 = vmul.f32 %v10129_v16, %v4283_v54  ;;  %v4479_v60 = vpop.f32.mrf.mxu0  ;;  %v7424_v30 = vld [vmem:[#allocation3 + $0x88] sm:$0xff]  ;;  %v5092_v47 = vld [vmem:[%s10300_s3 + $0x78] sm:$0xff] }
0x10a2   :  { %4530 = vst.msk [vmem:[#allocation2 + $0x138] sm:$0xff] %vm1132_vm3, %v4514_v51  ;;  %4529 = vst.msk [vmem:[#allocation2 + $0x130] sm:$0xff] %vm1132_vm3, %v4513_v14  ;;  %v7312_v25 = vpop.eup %7311  ;;  %v4522_v8 = vadd.f32 %v4505_v56, %v4503_v13  ;;  %v4502_v36 = vmul.f32 %v4479_v60, %v4293_v39  ;;  %v7432_v15 = vld [vmem:[#allocation3 + $0x148] sm:$0xff]  ;;  %6786 = vmatprep.subr.mxu1 %v5092_v47 }
0x10a3   :  { %4528 = vst.msk [vmem:[#allocation2 + $0x128] sm:$0xff] %vm1132_vm3, %v4512_v43  ;;  %4525 = vst.msk [vmem:[#allocation2 + $0x110] sm:$0xff] %vm1132_vm3, %v4509_v26  ;;  %v4282_v46 = vmul.f32 %v7312_v25, %v10717_v10  ;;  %v4511_v12 = vadd.f32 %v4505_v56, %v4492_v9  ;;  %6787 = vmatpush3.msra.mxu1 %v5092_v47 }
0x10a4   :  { %4523 = vst.msk [vmem:[#allocation2 + $0x100] sm:$0xff] %vm1132_vm3, %v4507_v18  ;;  %4538 = vst.msk [vmem:[#allocation2 + $0x178] sm:$0xff] %vm1132_vm3, %v4522_v8  ;;  %v4521_v53 = vadd.f32 %v4505_v56, %v4502_v36 }
0x10a5   :  { %v4491_v16 = vmul.f32 %v10123_v5, %v4282_v46  ;;  %4527 = vst.msk [vmem:[#allocation2 + $0x120] sm:$0xff] %vm1132_vm3, %v4511_v12 }
0x10a6   :  { %v7314_v22 = vpop.eup %7313  ;;  %4537 = vst.msk [vmem:[#allocation2 + $0x170] sm:$0xff] %vm1132_vm3, %v4521_v53  ;;  %v4584_v5 = vld [vmem:[#allocation2 + $0x168] sm:$0xff]  ;;  %v4583_v34 = vld [vmem:[#allocation2 + $0x160] sm:$0xff] }
0x10a7   :  { %v4280_v2 = vmul.f32 %v7314_v22, %v10719_v1  ;;  %v4510_v58 = vadd.f32 %v4505_v56, %v4491_v16  ;;  %v4582_v1 = vld [vmem:[#allocation2 + $0x158] sm:$0xff] }
0x10a8   :  { %v4580_v23 = vld [vmem:[#allocation2 + $0x148] sm:$0xff]  ;;  %v4579_v3 = vld [vmem:[#allocation2 + $0x140] sm:$0xff] }
0x10a9   :  { %v4489_v27 = vmul.f32 %v10119_v59, %v4280_v2  ;;  %4526 = vst.msk [vmem:[#allocation2 + $0x118] sm:$0xff] %vm1132_vm3, %v4510_v58  ;;  %v4581_v59 = vld [vmem:[#allocation2 + $0x150] sm:$0xff]  ;;  %v4578_v29 = vld [vmem:[#allocation2 + $0x138] sm:$0xff] }
0x10aa   :  { %v4577_v35 = vld [vmem:[#allocation2 + $0x130] sm:$0xff]  ;;  %v4576_v38 = vld [vmem:[#allocation2 + $0x128] sm:$0xff] }
0x10ab   :  { %v4586_v24 = vld [vmem:[#allocation2 + $0x178] sm:$0xff]  ;;  %v4508_v10 = vadd.f32 %v4505_v56, %v4489_v27  ;;  %v4573_v17 = vld [vmem:[#allocation2 + $0x110] sm:$0xff]  ;;  %v4571_v6 = vld [vmem:[#allocation2 + $0x100] sm:$0xff] }
0x10ac   :  { %6704 = vmatprep.subr.mxu0 %v4586_v24  ;;  %v4575_v42 = vld [vmem:[#allocation2 + $0x120] sm:$0xff] }
0x10ad   :  { %6705 = vmatpush3.msra.mxu0 %v4586_v24  ;;  %v4585_v11 = vld [vmem:[#allocation2 + $0x170] sm:$0xff]  ;;  %4524 = vst.msk [vmem:[#allocation2 + $0x108] sm:$0xff] %vm1132_vm3, %v4508_v10  ;;  %v7433_v56 = vld [vmem:[#allocation3 + $0x160] sm:$0xff] }
0x10ae   :  { %6706 = vmatprep.subr.mxu0 %v4585_v11 }
0x10af   :  { %6707 = vmatpush3.msra.mxu0 %v4585_v11 }
0x10b0   :  { %6708 = vmatprep.subr.mxu0 %v4584_v5  ;;  %v4574_v20 = vld [vmem:[#allocation2 + $0x118] sm:$0xff] }
0x10b1   :  { %6709 = vmatpush3.msra.mxu0 %v4584_v5 }
0x10b2   :  { %6710 = vmatprep.subr.mxu0 %v4583_v34 }
0x10b3   :  { %6711 = vmatpush3.msra.mxu0 %v4583_v34 }
0x10b4   :  { %6712 = vmatprep.subr.mxu0 %v4582_v1  ;;  %v4572_v41 = vld [vmem:[#allocation2 + $0x108] sm:$0xff] }
0x10b5   :  { %6713 = vmatpush3.msra.mxu0 %v4582_v1 }
0x10b6   :  { %6714 = vmatprep.subr.mxu0 %v4581_v59 }
0x10b7   :  { %6715 = vmatpush3.msra.mxu0 %v4581_v59 }
0x10b8   :  { %6716 = vmatprep.subr.mxu0 %v4580_v23 }
0x10b9   :  { %6717 = vmatpush3.msra.mxu0 %v4580_v23 }
0x10ba   :  { %6718 = vmatprep.subr.mxu0 %v4579_v3 }
0x10bb   :  { %6719 = vmatpush3.msra.mxu0 %v4579_v3 }
0x10bc   :  { %6720 = vmatprep.subr.mxu0 %v4578_v29 }
0x10bd   :  { %6721 = vmatpush3.msra.mxu0 %v4578_v29 }
0x10be   :  { %6722 = vmatprep.subr.mxu0 %v4577_v35 }
0x10bf   :  { %6723 = vmatpush3.msra.mxu0 %v4577_v35 }
0x10c0   :  { %6724 = vmatprep.subr.mxu0 %v4576_v38 }
0x10c1   :  { %6725 = vmatpush3.msra.mxu0 %v4576_v38 }
0x10c2   :  { %6726 = vmatprep.subr.mxu0 %v4575_v42 }
0x10c3   :  { %6727 = vmatpush3.msra.mxu0 %v4575_v42 }
0x10c4   :  { %6728 = vmatprep.subr.mxu0 %v4574_v20 }
0x10c5   :  { %6729 = vmatpush3.msra.mxu0 %v4574_v20 }
0x10c6   :  { %6730 = vmatprep.subr.mxu0 %v4573_v17 }
0x10c7   :  { %6731 = vmatpush3.msra.mxu0 %v4573_v17 }
0x10c8   :  { %6732 = vmatprep.subr.mxu0 %v4572_v41 }
0x10c9   :  { %6733 = vmatpush3.msra.mxu0 %v4572_v41 }
0x10ca   :  { %6734 = vmatprep.subr.mxu0 %v4571_v6 }
0x10cb   :  { %6735 = vmatpush3.msra.mxu0 %v4571_v6 }
0x10cc   :  { %6737 = vmatmul.mubr.f32.vlgmr.msra.gmra.mxu0 %v7420_v44  ;;  %6760 = vmatprep.subr.mxu0 %v4877_v57 }
0x10cd   :  { %6739 = vmatprep.mubr.f32.mxu0 %v7421_v32  ;;  %6761 = vmatpush3.msra.mxu0 %v4877_v57 }
0x10d0   :  { %6740 = vmatmul.mubr.f32.gmra.mxu0 %v7422_v19 }
0x10d1   :  { %6742 = vmatprep.mubr.f32.mxu0 %v7423_v48 }
0x10d4   :  { %6743 = vmatmul.mubr.f32.gmra.mxu0 %v7424_v30 }
0x10d5   :  { %6745 = vmatprep.mubr.f32.mxu0 %v7425_v62 }
0x10d8   :  { %6746 = vmatmul.mubr.f32.gmra.mxu0 %v7426_v50 }
0x10d9   :  { %6748 = vmatprep.mubr.f32.mxu0 %v7427_v28 }
0x10dc   :  { %6749 = vmatmul.mubr.f32.gmra.mxu0 %v7428_v4 }
0x10dd   :  { %6751 = vmatprep.mubr.f32.mxu0 %v7429_v7 }
0x10e0   :  { %6752 = vmatmul.mubr.f32.gmra.mxu0 %v7430_v45 }
0x10e1   :  { %6754 = vmatprep.mubr.f32.mxu0 %v7431_v52 }
0x10e4   :  { %6755 = vmatmul.mubr.f32.gmra.mxu0 %v7432_v15 }
0x10e5   :  { %6757 = vmatprep.mubr.f32.mxu0 %v7433_v56 }
0x10e8   :  { %6758 = vmatmul.mubr.f32.gmra.mxu0 %v7434_v31 }
0x1102   :  { %v6014_v0 = vpop.f32.mrf.mxu1 }
0x1104   :  { %v6015_v37 = vpop.f32.mrf.mxu1 }
0x1105   :  { %v6016_v2 = vadd.f32 %v6015_v37, %v6014_v0 }
0x1106   :  { %v6017_v61 = vpop.f32.mrf.mxu1 }
0x1108   :  { %v6018_v49 = vpop.f32.mrf.mxu1 }
0x1109   :  { %v6019_v27 = vadd.f32 %v6018_v49, %v6017_v61 }
0x110a   :  { %v6020_v33 = vpop.f32.mrf.mxu1 }
0x110c   :  { %v6021_v55 = vpop.f32.mrf.mxu1 }
0x110d   :  { %v6022_v34 = vadd.f32 %v6021_v55, %v6020_v33 }
0x110e   :  { %v6023_v21 = vpop.f32.mrf.mxu1 }
0x1110   :  { %v6024_v51 = vpop.f32.mrf.mxu1 }
0x1111   :  { %v6025_v59 = vadd.f32 %v6024_v51, %v6023_v21 }
0x1112   :  { %v6026_v54 = vpop.f32.mrf.mxu1 }
0x1114   :  { %v6027_v63 = vpop.f32.mrf.mxu1 }
0x1115   :  { %v6028_v38 = vadd.f32 %v6027_v63, %v6026_v54 }
0x1116   :  { %v6029_v14 = vpop.f32.mrf.mxu1 }
0x1118   :  { %v6030_v43 = vpop.f32.mrf.mxu1 }
0x1119   :  { %v6031_v20 = vadd.f32 %v6030_v43, %v6029_v14 }
0x111a   :  { %v6032_v26 = vpop.f32.mrf.mxu1 }
0x111c   :  { %v6033_v13 = vpop.f32.mrf.mxu1 }
0x111d   :  { %v6034_v44 = vadd.f32 %v6033_v13, %v6032_v26 }
0x111e   :  { %v6035_v39 = vpop.f32.mrf.mxu1 }
0x1120   :  { %v6036_v18 = vpop.f32.mrf.mxu1 }
0x1121   :  { %v6037_v19 = vadd.f32 %v6036_v18, %v6035_v39 }
0x1122   :  { %v6038_v9 = vpop.f32.mrf.mxu1 }
0x1124   :  { %v6039_v60 = vpop.f32.mrf.mxu1 }
0x1125   :  { %v6040_v28 = vadd.f32 %v6039_v60, %v6038_v9  ;;  %v4878_v60 = vld [vmem:[%s10300_s3 + $0x70] sm:$0xff] }
0x1126   :  { %v6041_v25 = vpop.f32.mrf.mxu1 }
0x1128   :  { %v6042_v8 = vpop.f32.mrf.mxu1 }
0x1129   :  { %v6043_v7 = vadd.f32 %v6042_v8, %v6041_v25  ;;  %v4882_v25 = vrot.slane %v4878_v60, %v10702_v40 }
0x112a   :  { %v6044_v36 = vpop.f32.mrf.mxu1 }
0x112c   :  { %v6045_v46 = vpop.f32.mrf.mxu1 }
0x112d   :  { %v6046_v31 = vadd.f32 %v6045_v46, %v6044_v36 }
0x112e   :  { %v6047_v12 = vpop.f32.mrf.mxu1 }
0x1130   :  { %v6048_v53 = vpop.f32.mrf.mxu1 }
0x1131   :  { %v6049_v37 = vadd.f32 %v6048_v53, %v6047_v12 }
0x1132   :  { %v6050_v16 = vpop.f32.mrf.mxu1 }
0x1134   :  { %v6051_v58 = vpop.f32.mrf.mxu1 }
0x1135   :  { %v6052_v55 = vadd.f32 %v6051_v58, %v6050_v16 }
0x1136   :  { %v6053_v1 = vpop.f32.mrf.mxu1 }
0x1138   :  { %v6054_v42 = vpop.f32.mrf.mxu1 }
0x1139   :  { %v6055_v51 = vadd.f32 %v6054_v42, %v6053_v1 }
0x113a   :  { %v6056_v32 = vpop.f32.mrf.mxu1 }
0x113c   :  { %v6057_v4 = vpop.f32.mrf.mxu1 }
0x113d   :  { %v6058_v13 = vadd.f32 %v6057_v4, %v6056_v32 }
0x113e   :  { %v6059_v0 = vpop.f32.mrf.mxu1 }
0x1140   :  { %v6060_v21 = vpop.f32.mrf.mxu1 }
0x1141   :  { %v6061_v43 = vadd.f32 %v6060_v21, %v6059_v0 }
0x118c   :  { %v6738_v22 = vpop.f32.mrf.mxu0 }
0x118d   :  { %v4804_v11 = vadd.f32 %v6738_v22, %v6019_v27 }
0x118e   :  { %v4798_v24 = vpop.f32.mrf.mxu0 }
0x118f   :  { %v4799_v10 = vadd.f32 %v6016_v2, %v4798_v24 }
0x1190   :  { %v6741_v5 = vpop.f32.mrf.mxu0 }
0x1191   :  { %6762 = vmatprep.mubr.msk.f32.mxu0 %vm1132_vm3, %v4799_v10  ;;  %v4814_v29 = vadd.f32 %v6741_v5, %v6025_v59 }
0x1192   :  { %v4808_v23 = vpop.f32.mrf.mxu0  ;;  %6763 = vmatmul.mubr.msk.f32.vlgmr.msra.gmra.mxu0 %vm1132_vm3, %v4804_v11 }
0x1193   :  { %v4809_v3 = vadd.f32 %v6022_v34, %v4808_v23 }
0x1194   :  { %v6744_v35 = vpop.f32.mrf.mxu0 }
0x1195   :  { %6765 = vmatprep.mubr.msk.f32.mxu0 %vm1132_vm3, %v4809_v3  ;;  %v4824_v6 = vadd.f32 %v6744_v35, %v6031_v20 }
0x1196   :  { %v4818_v17 = vpop.f32.mrf.mxu0  ;;  %6766 = vmatmul.mubr.msk.f32.gmra.mxu0 %vm1132_vm3, %v4814_v29 }
0x1197   :  { %v4819_v41 = vadd.f32 %v6028_v38, %v4818_v17 }
0x1198   :  { %v6747_v57 = vpop.f32.mrf.mxu0 }
0x1199   :  { %6768 = vmatprep.mubr.msk.f32.mxu0 %vm1132_vm3, %v4819_v41  ;;  %v4834_v62 = vadd.f32 %v6747_v57, %v6037_v19 }
0x119a   :  { %v4828_v48 = vpop.f32.mrf.mxu0  ;;  %6769 = vmatmul.mubr.msk.f32.gmra.mxu0 %vm1132_vm3, %v4824_v6 }
0x119b   :  { %v4829_v30 = vadd.f32 %v6034_v44, %v4828_v48 }
0x119c   :  { %v6750_v50 = vpop.f32.mrf.mxu0 }
0x119d   :  { %6771 = vmatprep.mubr.msk.f32.mxu0 %vm1132_vm3, %v4829_v30  ;;  %v4844_v15 = vadd.f32 %v6750_v50, %v6043_v7 }
0x119e   :  { %v4838_v45 = vpop.f32.mrf.mxu0  ;;  %6772 = vmatmul.mubr.msk.f32.gmra.mxu0 %vm1132_vm3, %v4834_v62 }
0x119f   :  { %v4839_v52 = vadd.f32 %v6040_v28, %v4838_v45 }
0x11a0   :  { %v6753_v56 = vpop.f32.mrf.mxu0 }
0x11a1   :  { %6774 = vmatprep.mubr.msk.f32.mxu0 %vm1132_vm3, %v4839_v52  ;;  %v4854_v49 = vadd.f32 %v6753_v56, %v6049_v37 }
0x11a2   :  { %v4848_v47 = vpop.f32.mrf.mxu0  ;;  %6775 = vmatmul.mubr.msk.f32.gmra.mxu0 %vm1132_vm3, %v4844_v15 }
0x11a3   :  { %v4849_v61 = vadd.f32 %v6046_v31, %v4848_v47 }
0x11a4   :  { %v6756_v33 = vpop.f32.mrf.mxu0 }
0x11a5   :  { %6777 = vmatprep.mubr.msk.f32.mxu0 %vm1132_vm3, %v4849_v61  ;;  %v4864_v14 = vadd.f32 %v6756_v33, %v6055_v51  ;;  %v5093_v33 = vld [vmem:[%s10300_s3 + $0x80] sm:$0xff] }
0x11a6   :  { %v4858_v54 = vpop.f32.mrf.mxu0  ;;  %6778 = vmatmul.mubr.msk.f32.gmra.mxu0 %vm1132_vm3, %v4854_v49 }
0x11a7   :  { %v4859_v63 = vadd.f32 %v6052_v55, %v4858_v54  ;;  %v10215_v55 = vrot.slane %v5093_v33, %v10702_v40 }
0x11a8   :  { %v6759_v26 = vpop.f32.mrf.mxu0 }
0x11a9   :  { %6780 = vmatprep.mubr.msk.f32.mxu0 %vm1132_vm3, %v4859_v63  ;;  %v4874_v9 = vadd.f32 %v6759_v26, %v6061_v43 }
0x11aa   :  { %v4868_v39 = vpop.f32.mrf.mxu0  ;;  %6781 = vmatmul.mubr.msk.f32.gmra.mxu0 %vm1132_vm3, %v4864_v14 }
0x11ab   :  { %v4869_v18 = vadd.f32 %v6058_v13, %v4868_v39 }
0x11ad   :  { %6783 = vmatprep.mubr.msk.f32.mxu0 %vm1132_vm3, %v4869_v18 }
0x11ae   :  { %6784 = vmatmul.mubr.msk.f32.gmra.mxu0 %vm1132_vm3, %v4874_v9 }
0x1252   :  { %v6764_v8 = vpop.f32.mrf.mxu0 }
0x1253   :  { %v5003_v36 = vadd.f32 %v6764_v8, %v4882_v25 }
0x1254   :  { %v4997_v46 = vpop.f32.mrf.mxu0 }
0x1255   :  { %v4998_v12 = vadd.f32 %v4997_v46, %v4882_v25  ;;  %v5077_v22 = vmax.f32 %v5003_v36, 0.0 }
0x1256   :  { %v6767_v53 = vpop.f32.mrf.mxu0 }
0x1257   :  { %v5076_v16 = vmax.f32 %v4998_v12, 0.0  ;;  %v5013_v2 = vadd.f32 %v6767_v53, %v4882_v25 }
0x1258   :  { %v5007_v58 = vpop.f32.mrf.mxu0 }
0x1259   :  { %v5008_v27 = vadd.f32 %v5007_v58, %v4882_v25  ;;  %6788 = vmatprep.mubr.msk.f32.mxu1 %vm1132_vm3, %v5076_v16  ;;  %v5079_v11 = vmax.f32 %v5013_v2, 0.0 }
0x125a   :  { %v6770_v24 = vpop.f32.mrf.mxu0  ;;  %6789 = vmatmul.mubr.msk.f32.vlgmr.msra.gmra.mxu1 %vm1132_vm3, %v5077_v22 }
0x125b   :  { %v5078_v10 = vmax.f32 %v5008_v27, 0.0  ;;  %v5023_v5 = vadd.f32 %v6770_v24, %v4882_v25 }
0x125c   :  { %v5017_v34 = vpop.f32.mrf.mxu0 }
0x125d   :  { %v5018_v1 = vadd.f32 %v5017_v34, %v4882_v25  ;;  %6791 = vmatprep.mubr.msk.f32.mxu1 %vm1132_vm3, %v5078_v10  ;;  %v5081_v3 = vmax.f32 %v5023_v5, 0.0 }
0x125e   :  { %v6773_v59 = vpop.f32.mrf.mxu0  ;;  %6792 = vmatmul.mubr.msk.f32.gmra.mxu1 %vm1132_vm3, %v5079_v11 }
0x125f   :  { %v5080_v23 = vmax.f32 %v5018_v1, 0.0  ;;  %v5033_v29 = vadd.f32 %v6773_v59, %v4882_v25 }
0x1260   :  { %v5027_v35 = vpop.f32.mrf.mxu0 }
0x1261   :  { %v5028_v38 = vadd.f32 %v5027_v35, %v4882_v25  ;;  %6794 = vmatprep.mubr.msk.f32.mxu1 %vm1132_vm3, %v5080_v23  ;;  %v5083_v17 = vmax.f32 %v5033_v29, 0.0 }
0x1262   :  { %v6776_v42 = vpop.f32.mrf.mxu0  ;;  %6795 = vmatmul.mubr.msk.f32.gmra.mxu1 %vm1132_vm3, %v5081_v3 }
0x1263   :  { %v5082_v20 = vmax.f32 %v5028_v38, 0.0  ;;  %v5043_v41 = vadd.f32 %v6776_v42, %v4882_v25 }
0x1264   :  { %v5037_v6 = vpop.f32.mrf.mxu0 }
0x1265   :  { %v5038_v57 = vadd.f32 %v5037_v6, %v4882_v25  ;;  %6797 = vmatprep.mubr.msk.f32.mxu1 %vm1132_vm3, %v5082_v20  ;;  %v5085_v19 = vmax.f32 %v5043_v41, 0.0 }
0x1266   :  { %v6779_v44 = vpop.f32.mrf.mxu0  ;;  %6798 = vmatmul.mubr.msk.f32.gmra.mxu1 %vm1132_vm3, %v5083_v17 }
0x1267   :  { %v5084_v32 = vmax.f32 %v5038_v57, 0.0  ;;  %v5053_v48 = vadd.f32 %v6779_v44, %v4882_v25 }
0x1268   :  { %v5047_v30 = vpop.f32.mrf.mxu0 }
0x1269   :  { %v5048_v62 = vadd.f32 %v5047_v30, %v4882_v25  ;;  %6800 = vmatprep.mubr.msk.f32.mxu1 %vm1132_vm3, %v5084_v32  ;;  %v5087_v4 = vmax.f32 %v5053_v48, 0.0 }
0x126a   :  { %v6782_v50 = vpop.f32.mrf.mxu0  ;;  %6801 = vmatmul.mubr.msk.f32.gmra.mxu1 %vm1132_vm3, %v5085_v19 }
0x126b   :  { %v5086_v28 = vmax.f32 %v5048_v62, 0.0  ;;  %v5063_v7 = vadd.f32 %v6782_v50, %v4882_v25 }
0x126c   :  { %v5057_v45 = vpop.f32.mrf.mxu0 }
0x126d   :  { %v5058_v52 = vadd.f32 %v5057_v45, %v4882_v25  ;;  %6803 = vmatprep.mubr.msk.f32.mxu1 %vm1132_vm3, %v5086_v28  ;;  %v5089_v31 = vmax.f32 %v5063_v7, 0.0 }
0x126e   :  { %v6785_v15 = vpop.f32.mrf.mxu0  ;;  %6804 = vmatmul.mubr.msk.f32.gmra.mxu1 %vm1132_vm3, %v5087_v4 }
0x126f   :  { %v5088_v56 = vmax.f32 %v5058_v52, 0.0  ;;  %v5073_v0 = vadd.f32 %v6785_v15, %v4882_v25 }
0x1270   :  { %v5067_v37 = vpop.f32.mrf.mxu0 }
0x1271   :  { %v5068_v47 = vadd.f32 %v5067_v37, %v4882_v25  ;;  %6806 = vmatprep.mubr.msk.f32.mxu1 %vm1132_vm3, %v5088_v56  ;;  %v5091_v49 = vmax.f32 %v5073_v0, 0.0 }
0x1272   :  { %6807 = vmatmul.mubr.msk.f32.gmra.mxu1 %vm1132_vm3, %v5089_v31 }
0x1273   :  { %v5090_v61 = vmax.f32 %v5068_v47, 0.0 }
0x1275   :  { %6809 = vmatprep.mubr.msk.f32.mxu1 %vm1132_vm3, %v5090_v61 }
0x1276   :  { %6810 = vmatmul.mubr.msk.f32.gmra.mxu1 %vm1132_vm3, %v5091_v49 }
0x131a   :  { %v6790_v21 = vpop.f32.mrf.mxu1 }
0x131b   :  { %v5218_v51 = vadd.f32 %v6790_v21, %v10215_v55 }
0x131c   :  { %v5212_v54 = vpop.f32.mrf.mxu1 }
0x131d   :  { %v5556_v63 = vmul.f32 -1.442695, %v5218_v51  ;;  %v5213_v14 = vadd.f32 %v5212_v54, %v10215_v55 }
0x131e   :  { %v6793_v43 = vpop.f32.mrf.mxu1 }
0x131f   :  { %7315 = vpow2.f32 %v5556_v63  ;;  %v5555_v26 = vmul.f32 -1.442695, %v5213_v14  ;;  %v5228_v13 = vadd.f32 %v6793_v43, %v10215_v55 }
0x1320   :  { %v5222_v39 = vpop.f32.mrf.mxu1 }
0x1321   :  { %7317 = vpow2.f32 %v5555_v26  ;;  %v5558_v18 = vmul.f32 -1.442695, %v5228_v13  ;;  %v5223_v9 = vadd.f32 %v5222_v39, %v10215_v55 }
0x1322   :  { %v6796_v60 = vpop.f32.mrf.mxu1 }
0x1323   :  { %7319 = vpow2.f32 %v5558_v18  ;;  %v5557_v40 = vmul.f32 -1.442695, %v5223_v9  ;;  %v5238_v25 = vadd.f32 %v6796_v60, %v10215_v55 }
0x1324   :  { %v5232_v8 = vpop.f32.mrf.mxu1 }
0x1325   :  { %7321 = vpow2.f32 %v5557_v40  ;;  %v5560_v36 = vmul.f32 -1.442695, %v5238_v25  ;;  %v5233_v46 = vadd.f32 %v5232_v8, %v10215_v55 }
0x1326   :  { %v6799_v12 = vpop.f32.mrf.mxu1 }
0x1327   :  { %7323 = vpow2.f32 %v5560_v36  ;;  %v5559_v53 = vmul.f32 -1.442695, %v5233_v46  ;;  %v5248_v16 = vadd.f32 %v6799_v12, %v10215_v55 }
0x1328   :  { %v5242_v22 = vpop.f32.mrf.mxu1 }
0x1329   :  { %7325 = vpow2.f32 %v5559_v53  ;;  %v5562_v2 = vmul.f32 -1.442695, %v5248_v16  ;;  %v5243_v58 = vadd.f32 %v5242_v22, %v10215_v55 }
0x132a   :  { %v6802_v27 = vpop.f32.mrf.mxu1 }
0x132b   :  { %7327 = vpow2.f32 %v5562_v2  ;;  %v5561_v24 = vmul.f32 -1.442695, %v5243_v58  ;;  %v5258_v10 = vadd.f32 %v6802_v27, %v10215_v55 }
0x132c   :  { %v7316_v11 = vpop.eup %7315  ;;  %v5252_v5 = vpop.f32.mrf.mxu1 }
0x132d   :  { %v5340_v34 = vadd.f32 1.0, %v7316_v11  ;;  %7329 = vpow2.f32 %v5561_v24  ;;  %v5564_v1 = vmul.f32 -1.442695, %v5258_v10  ;;  %v5253_v59 = vadd.f32 %v5252_v5, %v10215_v55 }
0x132e   :  { %v7318_v23 = vpop.eup %7317  ;;  %v6805_v3 = vpop.f32.mrf.mxu1 }
0x132f   :  { %7331 = vrcp.f32 %v5340_v34  ;;  %v5339_v29 = vadd.f32 1.0, %v7318_v23  ;;  %v5563_v35 = vmul.f32 -1.442695, %v5253_v59  ;;  %v5268_v38 = vadd.f32 %v6805_v3, %v10215_v55 }
0x1330   :  { %v7320_v42 = vpop.eup %7319  ;;  %7333 = vpow2.f32 %v5564_v1  ;;  %v5262_v20 = vpop.f32.mrf.mxu1 }
0x1331   :  { %7335 = vrcp.f32 %v5339_v29  ;;  %v5342_v17 = vadd.f32 1.0, %v7320_v42  ;;  %v5566_v41 = vmul.f32 -1.442695, %v5268_v38  ;;  %v5263_v6 = vadd.f32 %v5262_v20, %v10215_v55 }
0x1332   :  { %v7322_v57 = vpop.eup %7321  ;;  %7337 = vpow2.f32 %v5563_v35  ;;  %v6808_v44 = vpop.f32.mrf.mxu1 }
0x1333   :  { %7339 = vrcp.f32 %v5342_v17  ;;  %v5341_v32 = vadd.f32 1.0, %v7322_v57  ;;  %v5565_v19 = vmul.f32 -1.442695, %v5263_v6  ;;  %v5278_v48 = vadd.f32 %v6808_v44, %v10215_v55 }
0x1334   :  { %v7324_v30 = vpop.eup %7323  ;;  %7341 = vpow2.f32 %v5566_v41  ;;  %v5272_v62 = vpop.f32.mrf.mxu1 }
0x1335   :  { %7343 = vrcp.f32 %v5341_v32  ;;  %v5344_v50 = vadd.f32 1.0, %v7324_v30  ;;  %v5568_v28 = vmul.f32 -1.442695, %v5278_v48  ;;  %v5273_v4 = vadd.f32 %v5272_v62, %v10215_v55 }
0x1336   :  { %v7326_v7 = vpop.eup %7325  ;;  %7345 = vpow2.f32 %v5565_v19  ;;  %v6811_v45 = vpop.f32.mrf.mxu1 }
0x1337   :  { %7347 = vrcp.f32 %v5344_v50  ;;  %v5343_v52 = vadd.f32 1.0, %v7326_v7  ;;  %v5567_v15 = vmul.f32 -1.442695, %v5273_v4  ;;  %v5288_v56 = vadd.f32 %v6811_v45, %v10215_v55 }
0x1338   :  { %v7328_v31 = vpop.eup %7327  ;;  %7349 = vpow2.f32 %v5568_v28  ;;  %v5282_v0 = vpop.f32.mrf.mxu1 }
0x1339   :  { %7351 = vrcp.f32 %v5343_v52  ;;  %v5346_v37 = vadd.f32 1.0, %v7328_v31  ;;  %v5570_v47 = vmul.f32 -1.442695, %v5288_v56  ;;  %v5283_v61 = vadd.f32 %v5282_v0, %v10215_v55 }
0x133a   :  { %v7330_v49 = vpop.eup %7329  ;;  %7353 = vpow2.f32 %v5567_v15 }
0x133b   :  { %7355 = vrcp.f32 %v5346_v37  ;;  %v5345_v33 = vadd.f32 1.0, %v7330_v49  ;;  %v5569_v21 = vmul.f32 -1.442695, %v5283_v61 }
0x133c   :  { %v7332_v51 = vpop.eup %7331  ;;  %7357 = vpow2.f32 %v5570_v47 }
0x133d   :  { %v7334_v54 = vpop.eup %7333  ;;  %5389 = vst.msk [vmem:[%s10301_s4 + $0x8] sm:$0xff] %vm5387_vm4, %v7332_v51  ;;  %7359 = vrcp.f32 %v5345_v33 }
0x133e   :  { %v7336_v63 = vpop.eup %7335  ;;  %v5348_v14 = vadd.f32 1.0, %v7334_v54  ;;  %7361 = vpow2.f32 %v5569_v21 }
0x133f   :  { %v7338_v43 = vpop.eup %7337  ;;  %5388 = vst.msk [vmem:[%s10301_s4] sm:$0xff] %vm5387_vm4, %v7336_v63 }
0x1340   :  { %v7340_v55 = vpop.eup %7339  ;;  %7363 = vrcp.f32 %v5348_v14  ;;  %v5347_v26 = vadd.f32 1.0, %v7338_v43 }
0x1341   :  { %v7342_v13 = vpop.eup %7341  ;;  %5391 = vst.msk [vmem:[%s10301_s4 + $0x18] sm:$0xff] %vm5387_vm4, %v7340_v55 }
0x1342   :  { %v7344_v39 = vpop.eup %7343  ;;  %7365 = vrcp.f32 %v5347_v26  ;;  %v5350_v18 = vadd.f32 1.0, %v7342_v13 }
0x1343   :  { %v7346_v9 = vpop.eup %7345  ;;  %5390 = vst.msk [vmem:[%s10301_s4 + $0x10] sm:$0xff] %vm5387_vm4, %v7344_v39 }
0x1344   :  { %v7348_v60 = vpop.eup %7347  ;;  %7367 = vrcp.f32 %v5350_v18  ;;  %v5349_v40 = vadd.f32 1.0, %v7346_v9 }
0x1345   :  { %v7350_v25 = vpop.eup %7349  ;;  %5393 = vst.msk [vmem:[%s10301_s4 + $0x28] sm:$0xff] %vm5387_vm4, %v7348_v60 }
0x1346   :  { %v7352_v8 = vpop.eup %7351  ;;  %7369 = vrcp.f32 %v5349_v40  ;;  %v5352_v36 = vadd.f32 1.0, %v7350_v25 }
0x1347   :  { %v7354_v46 = vpop.eup %7353  ;;  %5392 = vst.msk [vmem:[%s10301_s4 + $0x20] sm:$0xff] %vm5387_vm4, %v7352_v8 }
0x1348   :  { %v7356_v12 = vpop.eup %7355  ;;  %7371 = vrcp.f32 %v5352_v36  ;;  %v5351_v53 = vadd.f32 1.0, %v7354_v46 }
0x1349   :  { %v7358_v16 = vpop.eup %7357  ;;  %5395 = vst.msk [vmem:[%s10301_s4 + $0x38] sm:$0xff] %vm5387_vm4, %v7356_v12 }
0x134a   :  { %v7360_v22 = vpop.eup %7359  ;;  %7373 = vrcp.f32 %v5351_v53  ;;  %v5354_v2 = vadd.f32 1.0, %v7358_v16 }
0x134b   :  { %v7362_v58 = vpop.eup %7361  ;;  %5394 = vst.msk [vmem:[%s10301_s4 + $0x30] sm:$0xff] %vm5387_vm4, %v7360_v22 }
0x134c   :  { %7375 = vrcp.f32 %v5354_v2  ;;  %v5353_v27 = vadd.f32 1.0, %v7362_v58 }
0x134d   :  { %v7364_v24 = vpop.eup %7363 }
0x134e   :  { %5397 = vst.msk [vmem:[%s10301_s4 + $0x48] sm:$0xff] %vm5387_vm4, %v7364_v24  ;;  %7377 = vrcp.f32 %v5353_v27 }
0x134f   :  { %v7366_v10 = vpop.eup %7365 }
0x1350   :  { %5396 = vst.msk [vmem:[%s10301_s4 + $0x40] sm:$0xff] %vm5387_vm4, %v7366_v10 }
0x1351   :  { %v7368_v11 = vpop.eup %7367 }
0x1352   :  { %5399 = vst.msk [vmem:[%s10301_s4 + $0x58] sm:$0xff] %vm5387_vm4, %v7368_v11 }
0x1353   :  { %v7370_v5 = vpop.eup %7369 }
0x1354   :  { %5398 = vst.msk [vmem:[%s10301_s4 + $0x50] sm:$0xff] %vm5387_vm4, %v7370_v5 }
0x1355   :  { %v7372_v34 = vpop.eup %7371 }
0x1356   :  { %5401 = vst.msk [vmem:[%s10301_s4 + $0x68] sm:$0xff] %vm5387_vm4, %v7372_v34 }
0x1357   :  { %v7374_v1 = vpop.eup %7373 }
0x1358   :  { %5400 = vst.msk [vmem:[%s10301_s4 + $0x60] sm:$0xff] %vm5387_vm4, %v7374_v1 }
0x1359   :  { %v7376_v59 = vpop.eup %7375 }
0x135a   :  { %5403 = vst.msk [vmem:[%s10301_s4 + $0x78] sm:$0xff] %vm5387_vm4, %v7376_v59 }
0x135b   :  { %v7378_v23 = vpop.eup %7377 }
0x135c   :  { %5402 = vst.msk [vmem:[%s10301_s4 + $0x70] sm:$0xff] %vm5387_vm4, %v7378_v23 }
0x135d   :  { %5408 = vsyncpa [#allocation4], 1 }

</bundles_post_ra>
